<compile_context>
chip_gen: v7x
topology: tpu7x:2x2x1
jax: 0.10.0
libtpu: 0.0.40
codegen_flags: <defaults>
</compile_context>

<pallas_src>
import functools

import jax
import jax.numpy as jnp
from jax.experimental import pallas as pl
from jax.experimental.pallas import tpu as pltpu


# ----------------------------------------------------------------------------
# Pallas kernels
# ----------------------------------------------------------------------------
def _tile_max(h, nt, *, n_valid, tile_n, mask):
    """Row-max of an (tile_n, C) f32 activation, masking padded rows with -inf."""
    if mask:
        row = nt * tile_n + jax.lax.broadcasted_iota(jnp.int32, (tile_n, 1), 0)
        h = jnp.where(row < n_valid, h, -jnp.inf)
    return jnp.max(h, axis=0, keepdims=True)


def _stn_pool_kernel(x_ref, w1_ref, b1_ref, w2_ref, b2_ref, w3_ref, b3_ref,
                     pooled_ref, *, n_valid, tile_n, mask):
    """STN conv stack (3->64->128->1024) + running max-pool over point tiles."""
    f32, bf16 = jnp.float32, jnp.bfloat16
    nt = pl.program_id(1)

    x = x_ref[0].astype(bf16)                                          # (tile_n, 3)
    h = jnp.maximum(jnp.dot(x, w1_ref[...], preferred_element_type=f32) + b1_ref[...], 0.0)
    h = jnp.maximum(jnp.dot(h.astype(bf16), w2_ref[...], preferred_element_type=f32) + b2_ref[...], 0.0)
    h = jnp.maximum(jnp.dot(h.astype(bf16), w3_ref[...], preferred_element_type=f32) + b3_ref[...], 0.0)
    tmax = _tile_max(h, nt, n_valid=n_valid, tile_n=tile_n, mask=mask)  # (1, 1024)

    @pl.when(nt == 0)
    def _():
        pooled_ref[0] = tmax

    @pl.when(nt > 0)
    def _():
        pooled_ref[0] = jnp.maximum(pooled_ref[0], tmax)


def _main_pool_kernel(x_ref, w1e_ref, b1_ref, w2_ref, b2_ref, w3_ref, b3_ref,
                      gfeat_ref, *, n_valid, tile_n, mask):
    """Main conv stack (3->64->128->1024), transform folded into W1, + max-pool."""
    f32, bf16 = jnp.float32, jnp.bfloat16
    nt = pl.program_id(1)

    x = x_ref[0].astype(bf16)                                          # (tile_n, 3)
    # conv1+bn1 with the per-batch 3x3 transform pre-folded: x @ (T @ W1) + b1
    y = jnp.maximum(jnp.dot(x, w1e_ref[0], preferred_element_type=f32) + b1_ref[...], 0.0)
    y = jnp.maximum(jnp.dot(y.astype(bf16), w2_ref[...], preferred_element_type=f32) + b2_ref[...], 0.0)
    y = jnp.dot(y.astype(bf16), w3_ref[...], preferred_element_type=f32) + b3_ref[...]  # bn3, no ReLU
    tmax = _tile_max(y, nt, n_valid=n_valid, tile_n=tile_n, mask=mask)  # (1, 1024)

    @pl.when(nt == 0)
    def _():
        gfeat_ref[0] = tmax

    @pl.when(nt > 0)
    def _():
        gfeat_ref[0] = jnp.maximum(gfeat_ref[0], tmax)


# ----------------------------------------------------------------------------
# Wrapper
# ----------------------------------------------------------------------------
_TILE_N = 256  # >=256 rows per matmul keeps the MXU push/pop cadence amortized


@jax.jit
def pointnetfeat(x_bnc, params):
    """x_bnc: (B, N, 3) float32 (channels-last). params: tuple of 18 f32 arrays."""
    (ws1, bs1, ws2, bs2, ws3, bs3,
     wf1, bf1, wf2, bf2, wf3, bf3,
     w1, b1, w2, b2, w3, b3) = params

    B, N, C = x_bnc.shape
    assert C == 3
    f32, bf16 = jnp.float32, jnp.bfloat16

    # -------- point-dimension tiling (pad to a multiple of the tile) --------
    if N <= _TILE_N:
        tile_n, n_pad = N, N
    else:
        tile_n = _TILE_N
        n_pad = ((N + tile_n - 1) // tile_n) * tile_n
    n_tiles = n_pad // tile_n
    mask = (n_pad != N)
    x_pad = x_bnc if not mask else jnp.pad(x_bnc, ((0, 0), (0, n_pad - N), (0, 0)))

    # bf16 weights for the MXU (biases / accumulation stay f32)
    ws1b, ws2b, ws3b = ws1.astype(bf16), ws2.astype(bf16), ws3.astype(bf16)
    w2b, w3b = w2.astype(bf16), w3.astype(bf16)

    dimsem = pltpu.CompilerParams(dimension_semantics=("parallel", "arbitrary"))

    # -------------------- pass 1: STN conv stack + max-pool --------------------
    pooled = pl.pallas_call(
        functools.partial(_stn_pool_kernel, n_valid=N, tile_n=tile_n, mask=mask),
        grid=(B, n_tiles),
        in_specs=[
            pl.BlockSpec((1, tile_n, 3), lambda b, n: (b, n, 0)),
            pl.BlockSpec((3, 64), lambda b, n: (0, 0)),
            pl.BlockSpec((1, 64), lambda b, n: (0, 0)),
            pl.BlockSpec((64, 128), lambda b, n: (0, 0)),
            pl.BlockSpec((1, 128), lambda b, n: (0, 0)),
            pl.BlockSpec((128, 1024), lambda b, n: (0, 0)),
            pl.BlockSpec((1, 1024), lambda b, n: (0, 0)),
        ],
        out_specs=pl.BlockSpec((1, 1, 1024), lambda b, n: (b, 0, 0)),
        out_shape=jax.ShapeDtypeStruct((B, 1, 1024), f32),
        compiler_params=dimsem,
    )(x_pad, ws1b, bs1, ws2b, bs2, ws3b, bs3)

    # -------- STN FC stage, identity add, transform fold (plain XLA, M=B) --------
    g = pooled.reshape(B, 1024)
    f = jax.nn.relu(g @ wf1 + bf1)
    f = jax.nn.relu(f @ wf2 + bf2)
    t9 = f @ wf3 + bf3 + jnp.eye(3, dtype=f32).reshape(1, 9)
    trans = t9.reshape(B, 3, 3)

    # fold the per-batch 3x3 transform into conv1's (BN-folded) weight
    w1_eff = jnp.einsum('bij,jk->bik', trans, w1).astype(bf16)          # (B, 3, 64)

    # -------------------- pass 2: main conv stack + max-pool --------------------
    gfeat = pl.pallas_call(
        functools.partial(_main_pool_kernel, n_valid=N, tile_n=tile_n, mask=mask),
        grid=(B, n_tiles),
        in_specs=[
            pl.BlockSpec((1, tile_n, 3), lambda b, n: (b, n, 0)),
            pl.BlockSpec((1, 3, 64), lambda b, n: (b, 0, 0)),
            pl.BlockSpec((1, 64), lambda b, n: (0, 0)),
            pl.BlockSpec((64, 128), lambda b, n: (0, 0)),
            pl.BlockSpec((1, 128), lambda b, n: (0, 0)),
            pl.BlockSpec((128, 1024), lambda b, n: (0, 0)),
            pl.BlockSpec((1, 1024), lambda b, n: (0, 0)),
        ],
        out_specs=pl.BlockSpec((1, 1, 1024), lambda b, n: (b, 0, 0)),
        out_shape=jax.ShapeDtypeStruct((B, 1, 1024), f32),
        compiler_params=dimsem,
    )(x_pad, w1_eff, b1, w2b, b2, w3b, b3)

    return gfeat.reshape(B, 1024), trans


# ----------------------------------------------------------------------------
# Deterministic parameter construction (BN folded into conv / linear layers)
# ----------------------------------------------------------------------------
def _fold_bn(W, b, gamma, beta, mean, var, eps=1e-5):
    s = gamma / jnp.sqrt(var + eps)
    return W * s[None, :], (b - mean) * s + beta


def make_params(key):
    scale = 0.05
    keys = iter(jax.random.split(key, 64))

    def nrm(shape):
        return (scale * jax.random.normal(next(keys), shape)).astype(jnp.float32)

    def layer_bn(cin, cout):
        W = nrm((cin, cout))
        b = nrm((cout,))
        gamma = 1.0 + nrm((cout,))
        beta = nrm((cout,))
        mean = nrm((cout,))
        var = 1.0 + 0.1 * jax.random.uniform(next(keys), (cout,), jnp.float32)
        Wf, bf = _fold_bn(W, b, gamma, beta, mean, var)
        return Wf, bf.reshape(1, cout)

    def layer_plain(cin, cout):
        W = nrm((cin, cout))
        b = nrm((cout,))
        return W, b.reshape(1, cout)

    layers = [
        layer_bn(3, 64),      # STN conv1 + bn
        layer_bn(64, 128),    # STN conv2 + bn
        layer_bn(128, 1024),  # STN conv3 + bn
        layer_bn(1024, 512),  # STN fc1 + bn
        layer_bn(512, 256),   # STN fc2 + bn
        layer_plain(256, 9),  # STN fc3
        layer_bn(3, 64),      # conv1 + bn1
        layer_bn(64, 128),    # conv2 + bn2
        layer_bn(128, 1024),  # conv3 + bn3
    ]
    flat = []
    for W, b in layers:
        flat.extend([W, b])
    return tuple(flat)


# ----------------------------------------------------------------------------
# Pure-JAX reference (same channels-last layout, full f32) for sanity checking
# ----------------------------------------------------------------------------
def reference_forward(x_bnc, p):
    (ws1, bs1, ws2, bs2, ws3, bs3,
     wf1, bf1, wf2, bf2, wf3, bf3,
     w1, b1, w2, b2, w3, b3) = p
    relu = jax.nn.relu
    B = x_bnc.shape[0]

    h = relu(x_bnc @ ws1 + bs1)
    h = relu(h @ ws2 + bs2)
    h = relu(h @ ws3 + bs3)
    g = jnp.max(h, axis=1)                       # (B, 1024)
    f = relu(g @ wf1 + bf1)
    f = relu(f @ wf2 + bf2)
    t9 = f @ wf3 + bf3 + jnp.eye(3, dtype=jnp.float32).reshape(1, 9)
    trans = t9.reshape(B, 3, 3)

    xt = jnp.einsum('bnc,bcd->bnd', x_bnc, trans)
    y = relu(xt @ w1 + b1)
    y = relu(y @ w2 + b2)
    y = y @ w3 + b3
    gfeat = jnp.max(y, axis=1)
    return gfeat, trans


if __name__ == "__main__":
    key = jax.random.PRNGKey(0)
    kx, kp = jax.random.split(key)

    # small demo: B=4, N=500 (exercises N-tiling *and* the partial-tile mask)
    B, N = 4, 500
    # kernel layout (B, N, 3); PyTorch sees x_pt = x.transpose(0, 2, 1) of shape (B, 3, N)
    x = jax.random.normal(kx, (B, N, 3), dtype=jnp.float32)
    params = make_params(kp)

    gfeat, trans = pointnetfeat(x, params)
    jax.block_until_ready((gfeat, trans))

    gref, tref = reference_forward(x, params)
    assert gfeat.shape == (B, 1024) and trans.shape == (B, 3, 3)
    assert jnp.allclose(trans, tref, rtol=2e-2, atol=2e-2), "trans mismatch"
    assert jnp.allclose(gfeat, gref, rtol=2e-2, atol=2e-2), "global feature mismatch"

    print("KERNEL_OK")
</pallas_src>

<mosaic_0001>
module attributes {stable_mosaic.version = 11 : i64} {
  func.func @_stn_pool_kernel(%arg0: i32, %arg1: i32, %arg2: memref<1x256x3xf32, #tpu.memory_space<vmem>>, %arg3: memref<3x64xbf16, #tpu.memory_space<vmem>>, %arg4: memref<1x64xf32, #tpu.memory_space<vmem>>, %arg5: memref<64x128xbf16, #tpu.memory_space<vmem>>, %arg6: memref<1x128xf32, #tpu.memory_space<vmem>>, %arg7: memref<128x1024xbf16, #tpu.memory_space<vmem>>, %arg8: memref<1x1024xf32, #tpu.memory_space<vmem>>, %arg9: memref<1x1x1024xf32, #tpu.memory_space<vmem>>) attributes {dimension_semantics = [#tpu.dimension_semantics<parallel>, #tpu.dimension_semantics<arbitrary>], iteration_bounds = array<i64: 4, 2>, scalar_prefetch = 0 : i64, scratch_operands = 0 : i64, tpu.core_type = #tpu.core_type<tc>, window_params = [{transform_indices = @transform_0, window_bounds = array<i64: 1, 256, 3>}, {pipeline_mode = #tpu.pipeline_mode<synchronous>, transform_indices = @transform_1, window_bounds = array<i64: 3, 64>}, {pipeline_mode = #tpu.pipeline_mode<synchronous>, transform_indices = @transform_2, window_bounds = array<i64: 1, 64>}, {pipeline_mode = #tpu.pipeline_mode<synchronous>, transform_indices = @transform_3, window_bounds = array<i64: 64, 128>}, {pipeline_mode = #tpu.pipeline_mode<synchronous>, transform_indices = @transform_4, window_bounds = array<i64: 1, 128>}, {pipeline_mode = #tpu.pipeline_mode<synchronous>, transform_indices = @transform_5, window_bounds = array<i64: 128, 1024>}, {pipeline_mode = #tpu.pipeline_mode<synchronous>, transform_indices = @transform_6, window_bounds = array<i64: 1, 1024>}, {transform_indices = @transform_7, window_bounds = array<i64: 1, 1, 1024>}]} {
    %c0 = arith.constant 0 : index
    %c0_0 = arith.constant 0 : index
    %c0_1 = arith.constant 0 : index
    %0 = vector.load %arg2[%c0, %c0_0, %c0_1] : memref<1x256x3xf32, #tpu.memory_space<vmem>>, vector<1x256x3xf32>
    %1 = vector.shape_cast %0 : vector<1x256x3xf32> to vector<256x3xf32>
    %2 = arith.truncf %1 : vector<256x3xf32> to vector<256x3xbf16>
    %c0_2 = arith.constant 0 : index
    %c0_3 = arith.constant 0 : index
    %3 = vector.load %arg3[%c0_2, %c0_3] : memref<3x64xbf16, #tpu.memory_space<vmem>>, vector<3x64xbf16>
    %cst = arith.constant dense<0.000000e+00> : vector<256x64xf32>
    %4 = tpu.matmul %2, %3, %cst {dimension_numbers = #tpu.dot_dimension_numbers<[1], [0], [0], [1], [0, 0, 1, 1], [], []>} : vector<256x3xbf16>, vector<3x64xbf16>, vector<256x64xf32> -> vector<256x64xf32>
    %c0_4 = arith.constant 0 : index
    %c0_5 = arith.constant 0 : index
    %5 = vector.load %arg4[%c0_4, %c0_5] : memref<1x64xf32, #tpu.memory_space<vmem>>, vector<1x64xf32>
    %6 = vector.broadcast %5 : vector<1x64xf32> to vector<256x64xf32>
    %7 = arith.addf %4, %6 : vector<256x64xf32>
    %cst_6 = arith.constant 0.000000e+00 : f32
    %8 = vector.broadcast %cst_6 : f32 to vector<256x64xf32>
    %9 = arith.maximumf %7, %8 : vector<256x64xf32>
    %10 = arith.truncf %9 : vector<256x64xf32> to vector<256x64xbf16>
    %c0_7 = arith.constant 0 : index
    %c0_8 = arith.constant 0 : index
    %11 = vector.load %arg5[%c0_7, %c0_8] : memref<64x128xbf16, #tpu.memory_space<vmem>>, vector<64x128xbf16>
    %cst_9 = arith.constant dense<0.000000e+00> : vector<256x128xf32>
    %12 = tpu.matmul %10, %11, %cst_9 {dimension_numbers = #tpu.dot_dimension_numbers<[1], [0], [0], [1], [0, 0, 1, 1], [], []>} : vector<256x64xbf16>, vector<64x128xbf16>, vector<256x128xf32> -> vector<256x128xf32>
    %c0_10 = arith.constant 0 : index
    %c0_11 = arith.constant 0 : index
    %13 = vector.load %arg6[%c0_10, %c0_11] : memref<1x128xf32, #tpu.memory_space<vmem>>, vector<1x128xf32>
    %14 = vector.broadcast %13 : vector<1x128xf32> to vector<256x128xf32>
    %15 = arith.addf %12, %14 : vector<256x128xf32>
    %cst_12 = arith.constant 0.000000e+00 : f32
    %16 = vector.broadcast %cst_12 : f32 to vector<256x128xf32>
    %17 = arith.maximumf %15, %16 : vector<256x128xf32>
    %18 = arith.truncf %17 : vector<256x128xf32> to vector<256x128xbf16>
    %c0_13 = arith.constant 0 : index
    %c0_14 = arith.constant 0 : index
    %19 = vector.load %arg7[%c0_13, %c0_14] : memref<128x1024xbf16, #tpu.memory_space<vmem>>, vector<128x1024xbf16>
    %cst_15 = arith.constant dense<0.000000e+00> : vector<256x1024xf32>
    %20 = tpu.matmul %18, %19, %cst_15 {dimension_numbers = #tpu.dot_dimension_numbers<[1], [0], [0], [1], [0, 0, 1, 1], [], []>} : vector<256x128xbf16>, vector<128x1024xbf16>, vector<256x1024xf32> -> vector<256x1024xf32>
    %c0_16 = arith.constant 0 : index
    %c0_17 = arith.constant 0 : index
    %21 = vector.load %arg8[%c0_16, %c0_17] : memref<1x1024xf32, #tpu.memory_space<vmem>>, vector<1x1024xf32>
    %22 = vector.broadcast %21 : vector<1x1024xf32> to vector<256x1024xf32>
    %23 = arith.addf %20, %22 : vector<256x1024xf32>
    %cst_18 = arith.constant 0.000000e+00 : f32
    %24 = vector.broadcast %cst_18 : f32 to vector<256x1024xf32>
    %25 = arith.maximumf %23, %24 : vector<256x1024xf32>
    %c256_i32 = arith.constant 256 : i32
    %26 = arith.muli %arg1, %c256_i32 : i32
    %27 = tpu.iota {dimensions = array<i32: 0>} : vector<256x1xi32>
    %28 = vector.broadcast %26 : i32 to vector<256x1xi32>
    %29 = arith.addi %28, %27 : vector<256x1xi32>
    %c500_i32 = arith.constant 500 : i32
    %30 = vector.broadcast %c500_i32 : i32 to vector<256x1xi32>
    %31 = arith.cmpi slt, %29, %30 : vector<256x1xi32>
    %cst_19 = arith.constant 0xFF800000 : f32
    %32 = vector.shape_cast %31 : vector<256x1xi1> to vector<256x1xi1>
    %33 = vector.broadcast %32 : vector<256x1xi1> to vector<256x1024xi1>
    %34 = vector.broadcast %cst_19 : f32 to vector<256x1024xf32>
    %35 = arith.select %33, %25, %34 : vector<256x1024xi1>, vector<256x1024xf32>
    %cst_20 = arith.constant dense<0xFF800000> : vector<1024xf32>
    %36 = vector.multi_reduction <maximumf>, %35, %cst_20 [0] : vector<256x1024xf32> to vector<1024xf32>
    %37 = vector.shape_cast %36 : vector<1024xf32> to vector<1x1024xf32>
    %c0_i32 = arith.constant 0 : i32
    %38 = arith.cmpi eq, %arg1, %c0_i32 : i32
    %39 = arith.extui %38 : i1 to i32
    %c0_i32_21 = arith.constant 0 : i32
    %40 = arith.cmpi ne, %39, %c0_i32_21 : i32
    scf.if %40 {
      %c0_24 = arith.constant 0 : index
      %c0_25 = arith.constant 0 : index
      %c0_26 = arith.constant 0 : index
      %44 = vector.load %arg9[%c0_24, %c0_25, %c0_26] : memref<1x1x1024xf32, #tpu.memory_space<vmem>>, vector<1x1x1024xf32>
      %45 = vector.shape_cast %44 : vector<1x1x1024xf32> to vector<1x1024xf32>
      %46 = vector.shape_cast %37 : vector<1x1024xf32> to vector<1x1x1024xf32>
      tpu.vector_store %arg9[%c0_24, %c0_25, %c0_26], %46 {strides = array<i32>} : memref<1x1x1024xf32, #tpu.memory_space<vmem>>, vector<1x1x1024xf32>,
    } else {
    }
    %c0_i32_22 = arith.constant 0 : i32
    %41 = arith.cmpi sgt, %arg1, %c0_i32_22 : i32
    %42 = arith.extui %41 : i1 to i32
    %c0_i32_23 = arith.constant 0 : i32
    %43 = arith.cmpi ne, %42, %c0_i32_23 : i32
    scf.if %43 {
      %c0_24 = arith.constant 0 : index
      %c0_25 = arith.constant 0 : index
      %c0_26 = arith.constant 0 : index
      %44 = vector.load %arg9[%c0_24, %c0_25, %c0_26] : memref<1x1x1024xf32, #tpu.memory_space<vmem>>, vector<1x1x1024xf32>
      %45 = vector.shape_cast %44 : vector<1x1x1024xf32> to vector<1x1024xf32>
      %46 = arith.maximumf %45, %37 : vector<1x1024xf32>
      %c0_27 = arith.constant 0 : index
      %c0_28 = arith.constant 0 : index
      %c0_29 = arith.constant 0 : index
      %47 = vector.load %arg9[%c0_27, %c0_28, %c0_29] : memref<1x1x1024xf32, #tpu.memory_space<vmem>>, vector<1x1x1024xf32>
      %48 = vector.shape_cast %47 : vector<1x1x1024xf32> to vector<1x1024xf32>
      %49 = vector.shape_cast %46 : vector<1x1024xf32> to vector<1x1x1024xf32>
      tpu.vector_store %arg9[%c0_27, %c0_28, %c0_29], %49 {strides = array<i32>} : memref<1x1x1024xf32, #tpu.memory_space<vmem>>, vector<1x1x1024xf32>,
    } else {
    }
    return
  }
  func.func @transform_0(%arg0: i32, %arg1: i32) -> (i32, i32, i32) {
    %c0_i32 = arith.constant 0 : i32
    %c0_i32_0 = arith.constant 0 : i32
    return %arg0, %arg1, %c0_i32 : i32, i32, i32
  }
  func.func @transform_1(%arg0: i32, %arg1: i32) -> (i32, i32) {
    %c0_i32 = arith.constant 0 : i32
    %c0_i32_0 = arith.constant 0 : i32
    %c0_i32_1 = arith.constant 0 : i32
    return %c0_i32, %c0_i32_0 : i32, i32
  }
  func.func @transform_2(%arg0: i32, %arg1: i32) -> (i32, i32) {
    %c0_i32 = arith.constant 0 : i32
    %c0_i32_0 = arith.constant 0 : i32
    %c0_i32_1 = arith.constant 0 : i32
    return %c0_i32, %c0_i32_0 : i32, i32
  }
  func.func @transform_3(%arg0: i32, %arg1: i32) -> (i32, i32) {
    %c0_i32 = arith.constant 0 : i32
    %c0_i32_0 = arith.constant 0 : i32
    %c0_i32_1 = arith.constant 0 : i32
    return %c0_i32, %c0_i32_0 : i32, i32
  }
  func.func @transform_4(%arg0: i32, %arg1: i32) -> (i32, i32) {
    %c0_i32 = arith.constant 0 : i32
    %c0_i32_0 = arith.constant 0 : i32
    %c0_i32_1 = arith.constant 0 : i32
    return %c0_i32, %c0_i32_0 : i32, i32
  }
  func.func @transform_5(%arg0: i32, %arg1: i32) -> (i32, i32) {
    %c0_i32 = arith.constant 0 : i32
    %c0_i32_0 = arith.constant 0 : i32
    %c0_i32_1 = arith.constant 0 : i32
    return %c0_i32, %c0_i32_0 : i32, i32
  }
  func.func @transform_6(%arg0: i32, %arg1: i32) -> (i32, i32) {
    %c0_i32 = arith.constant 0 : i32
    %c0_i32_0 = arith.constant 0 : i32
    %c0_i32_1 = arith.constant 0 : i32
    return %c0_i32, %c0_i32_0 : i32, i32
  }
  func.func @transform_7(%arg0: i32, %arg1: i32) -> (i32, i32, i32) {
    %c0_i32 = arith.constant 0 : i32
    %c0_i32_0 = arith.constant 0 : i32
    %c0_i32_1 = arith.constant 0 : i32
    return %arg0, %c0_i32, %c0_i32_0 : i32, i32, i32
  }
}

module attributes {stable_mosaic.version = 11 : i64} {
  func.func @_main_pool_kernel(%arg0: i32, %arg1: i32, %arg2: memref<1x256x3xf32, #tpu.memory_space<vmem>>, %arg3: memref<1x3x64xbf16, #tpu.memory_space<vmem>>, %arg4: memref<1x64xf32, #tpu.memory_space<vmem>>, %arg5: memref<64x128xbf16, #tpu.memory_space<vmem>>, %arg6: memref<1x128xf32, #tpu.memory_space<vmem>>, %arg7: memref<128x1024xbf16, #tpu.memory_space<vmem>>, %arg8: memref<1x1024xf32, #tpu.memory_space<vmem>>, %arg9: memref<1x1x1024xf32, #tpu.memory_space<vmem>>) attributes {dimension_semantics = [#tpu.dimension_semantics<parallel>, #tpu.dimension_semantics<arbitrary>], iteration_bounds = array<i64: 4, 2>, scalar_prefetch = 0 : i64, scratch_operands = 0 : i64, tpu.core_type = #tpu.core_type<tc>, window_params = [{transform_indices = @transform_0, window_bounds = array<i64: 1, 256, 3>}, {transform_indices = @transform_1, window_bounds = array<i64: 1, 3, 64>}, {pipeline_mode = #tpu.pipeline_mode<synchronous>, transform_indices = @transform_2, window_bounds = array<i64: 1, 64>}, {pipeline_mode = #tpu.pipeline_mode<synchronous>, transform_indices = @transform_3, window_bounds = array<i64: 64, 128>}, {pipeline_mode = #tpu.pipeline_mode<synchronous>, transform_indices = @transform_4, window_bounds = array<i64: 1, 128>}, {pipeline_mode = #tpu.pipeline_mode<synchronous>, transform_indices = @transform_5, window_bounds = array<i64: 128, 1024>}, {pipeline_mode = #tpu.pipeline_mode<synchronous>, transform_indices = @transform_6, window_bounds = array<i64: 1, 1024>}, {transform_indices = @transform_7, window_bounds = array<i64: 1, 1, 1024>}]} {
    %c0 = arith.constant 0 : index
    %c0_0 = arith.constant 0 : index
    %c0_1 = arith.constant 0 : index
    %0 = vector.load %arg2[%c0, %c0_0, %c0_1] : memref<1x256x3xf32, #tpu.memory_space<vmem>>, vector<1x256x3xf32>
    %1 = vector.shape_cast %0 : vector<1x256x3xf32> to vector<256x3xf32>
    %2 = arith.truncf %1 : vector<256x3xf32> to vector<256x3xbf16>
    %c0_2 = arith.constant 0 : index
    %c0_3 = arith.constant 0 : index
    %c0_4 = arith.constant 0 : index
    %3 = vector.load %arg3[%c0_2, %c0_3, %c0_4] : memref<1x3x64xbf16, #tpu.memory_space<vmem>>, vector<1x3x64xbf16>
    %4 = vector.shape_cast %3 : vector<1x3x64xbf16> to vector<3x64xbf16>
    %cst = arith.constant dense<0.000000e+00> : vector<256x64xf32>
    %5 = tpu.matmul %2, %4, %cst {dimension_numbers = #tpu.dot_dimension_numbers<[1], [0], [0], [1], [0, 0, 1, 1], [], []>} : vector<256x3xbf16>, vector<3x64xbf16>, vector<256x64xf32> -> vector<256x64xf32>
    %c0_5 = arith.constant 0 : index
    %c0_6 = arith.constant 0 : index
    %6 = vector.load %arg4[%c0_5, %c0_6] : memref<1x64xf32, #tpu.memory_space<vmem>>, vector<1x64xf32>
    %7 = vector.broadcast %6 : vector<1x64xf32> to vector<256x64xf32>
    %8 = arith.addf %5, %7 : vector<256x64xf32>
    %cst_7 = arith.constant 0.000000e+00 : f32
    %9 = vector.broadcast %cst_7 : f32 to vector<256x64xf32>
    %10 = arith.maximumf %8, %9 : vector<256x64xf32>
    %11 = arith.truncf %10 : vector<256x64xf32> to vector<256x64xbf16>
    %c0_8 = arith.constant 0 : index
    %c0_9 = arith.constant 0 : index
    %12 = vector.load %arg5[%c0_8, %c0_9] : memref<64x128xbf16, #tpu.memory_space<vmem>>, vector<64x128xbf16>
    %cst_10 = arith.constant dense<0.000000e+00> : vector<256x128xf32>
    %13 = tpu.matmul %11, %12, %cst_10 {dimension_numbers = #tpu.dot_dimension_numbers<[1], [0], [0], [1], [0, 0, 1, 1], [], []>} : vector<256x64xbf16>, vector<64x128xbf16>, vector<256x128xf32> -> vector<256x128xf32>
    %c0_11 = arith.constant 0 : index
    %c0_12 = arith.constant 0 : index
    %14 = vector.load %arg6[%c0_11, %c0_12] : memref<1x128xf32, #tpu.memory_space<vmem>>, vector<1x128xf32>
    %15 = vector.broadcast %14 : vector<1x128xf32> to vector<256x128xf32>
    %16 = arith.addf %13, %15 : vector<256x128xf32>
    %cst_13 = arith.constant 0.000000e+00 : f32
    %17 = vector.broadcast %cst_13 : f32 to vector<256x128xf32>
    %18 = arith.maximumf %16, %17 : vector<256x128xf32>
    %19 = arith.truncf %18 : vector<256x128xf32> to vector<256x128xbf16>
    %c0_14 = arith.constant 0 : index
    %c0_15 = arith.constant 0 : index
    %20 = vector.load %arg7[%c0_14, %c0_15] : memref<128x1024xbf16, #tpu.memory_space<vmem>>, vector<128x1024xbf16>
    %cst_16 = arith.constant dense<0.000000e+00> : vector<256x1024xf32>
    %21 = tpu.matmul %19, %20, %cst_16 {dimension_numbers = #tpu.dot_dimension_numbers<[1], [0], [0], [1], [0, 0, 1, 1], [], []>} : vector<256x128xbf16>, vector<128x1024xbf16>, vector<256x1024xf32> -> vector<256x1024xf32>
    %c0_17 = arith.constant 0 : index
    %c0_18 = arith.constant 0 : index
    %22 = vector.load %arg8[%c0_17, %c0_18] : memref<1x1024xf32, #tpu.memory_space<vmem>>, vector<1x1024xf32>
    %23 = vector.broadcast %22 : vector<1x1024xf32> to vector<256x1024xf32>
    %24 = arith.addf %21, %23 : vector<256x1024xf32>
    %c256_i32 = arith.constant 256 : i32
    %25 = arith.muli %arg1, %c256_i32 : i32
    %26 = tpu.iota {dimensions = array<i32: 0>} : vector<256x1xi32>
    %27 = vector.broadcast %25 : i32 to vector<256x1xi32>
    %28 = arith.addi %27, %26 : vector<256x1xi32>
    %c500_i32 = arith.constant 500 : i32
    %29 = vector.broadcast %c500_i32 : i32 to vector<256x1xi32>
    %30 = arith.cmpi slt, %28, %29 : vector<256x1xi32>
    %cst_19 = arith.constant 0xFF800000 : f32
    %31 = vector.shape_cast %30 : vector<256x1xi1> to vector<256x1xi1>
    %32 = vector.broadcast %31 : vector<256x1xi1> to vector<256x1024xi1>
    %33 = vector.broadcast %cst_19 : f32 to vector<256x1024xf32>
    %34 = arith.select %32, %24, %33 : vector<256x1024xi1>, vector<256x1024xf32>
    %cst_20 = arith.constant dense<0xFF800000> : vector<1024xf32>
    %35 = vector.multi_reduction <maximumf>, %34, %cst_20 [0] : vector<256x1024xf32> to vector<1024xf32>
    %36 = vector.shape_cast %35 : vector<1024xf32> to vector<1x1024xf32>
    %c0_i32 = arith.constant 0 : i32
    %37 = arith.cmpi eq, %arg1, %c0_i32 : i32
    %38 = arith.extui %37 : i1 to i32
    %c0_i32_21 = arith.constant 0 : i32
    %39 = arith.cmpi ne, %38, %c0_i32_21 : i32
    scf.if %39 {
      %c0_24 = arith.constant 0 : index
      %c0_25 = arith.constant 0 : index
      %c0_26 = arith.constant 0 : index
      %43 = vector.load %arg9[%c0_24, %c0_25, %c0_26] : memref<1x1x1024xf32, #tpu.memory_space<vmem>>, vector<1x1x1024xf32>
      %44 = vector.shape_cast %43 : vector<1x1x1024xf32> to vector<1x1024xf32>
      %45 = vector.shape_cast %36 : vector<1x1024xf32> to vector<1x1x1024xf32>
      tpu.vector_store %arg9[%c0_24, %c0_25, %c0_26], %45 {strides = array<i32>} : memref<1x1x1024xf32, #tpu.memory_space<vmem>>, vector<1x1x1024xf32>,
    } else {
    }
    %c0_i32_22 = arith.constant 0 : i32
    %40 = arith.cmpi sgt, %arg1, %c0_i32_22 : i32
    %41 = arith.extui %40 : i1 to i32
    %c0_i32_23 = arith.constant 0 : i32
    %42 = arith.cmpi ne, %41, %c0_i32_23 : i32
    scf.if %42 {
      %c0_24 = arith.constant 0 : index
      %c0_25 = arith.constant 0 : index
      %c0_26 = arith.constant 0 : index
      %43 = vector.load %arg9[%c0_24, %c0_25, %c0_26] : memref<1x1x1024xf32, #tpu.memory_space<vmem>>, vector<1x1x1024xf32>
      %44 = vector.shape_cast %43 : vector<1x1x1024xf32> to vector<1x1024xf32>
      %45 = arith.maximumf %44, %36 : vector<1x1024xf32>
      %c0_27 = arith.constant 0 : index
      %c0_28 = arith.constant 0 : index
      %c0_29 = arith.constant 0 : index
      %46 = vector.load %arg9[%c0_27, %c0_28, %c0_29] : memref<1x1x1024xf32, #tpu.memory_space<vmem>>, vector<1x1x1024xf32>
      %47 = vector.shape_cast %46 : vector<1x1x1024xf32> to vector<1x1024xf32>
      %48 = vector.shape_cast %45 : vector<1x1024xf32> to vector<1x1x1024xf32>
      tpu.vector_store %arg9[%c0_27, %c0_28, %c0_29], %48 {strides = array<i32>} : memref<1x1x1024xf32, #tpu.memory_space<vmem>>, vector<1x1x1024xf32>,
    } else {
    }
    return
  }
  func.func @transform_0(%arg0: i32, %arg1: i32) -> (i32, i32, i32) {
    %c0_i32 = arith.constant 0 : i32
    %c0_i32_0 = arith.constant 0 : i32
    return %arg0, %arg1, %c0_i32 : i32, i32, i32
  }
  func.func @transform_1(%arg0: i32, %arg1: i32) -> (i32, i32, i32) {
    %c0_i32 = arith.constant 0 : i32
    %c0_i32_0 = arith.constant 0 : i32
    %c0_i32_1 = arith.constant 0 : i32
    return %arg0, %c0_i32, %c0_i32_0 : i32, i32, i32
  }
  func.func @transform_2(%arg0: i32, %arg1: i32) -> (i32, i32) {
    %c0_i32 = arith.constant 0 : i32
    %c0_i32_0 = arith.constant 0 : i32
    %c0_i32_1 = arith.constant 0 : i32
    return %c0_i32, %c0_i32_0 : i32, i32
  }
  func.func @transform_3(%arg0: i32, %arg1: i32) -> (i32, i32) {
    %c0_i32 = arith.constant 0 : i32
    %c0_i32_0 = arith.constant 0 : i32
    %c0_i32_1 = arith.constant 0 : i32
    return %c0_i32, %c0_i32_0 : i32, i32
  }
  func.func @transform_4(%arg0: i32, %arg1: i32) -> (i32, i32) {
    %c0_i32 = arith.constant 0 : i32
    %c0_i32_0 = arith.constant 0 : i32
    %c0_i32_1 = arith.constant 0 : i32
    return %c0_i32, %c0_i32_0 : i32, i32
  }
  func.func @transform_5(%arg0: i32, %arg1: i32) -> (i32, i32) {
    %c0_i32 = arith.constant 0 : i32
    %c0_i32_0 = arith.constant 0 : i32
    %c0_i32_1 = arith.constant 0 : i32
    return %c0_i32, %c0_i32_0 : i32, i32
  }
  func.func @transform_6(%arg0: i32, %arg1: i32) -> (i32, i32) {
    %c0_i32 = arith.constant 0 : i32
    %c0_i32_0 = arith.constant 0 : i32
    %c0_i32_1 = arith.constant 0 : i32
    return %c0_i32, %c0_i32_0 : i32, i32
  }
  func.func @transform_7(%arg0: i32, %arg1: i32) -> (i32, i32, i32) {
    %c0_i32 = arith.constant 0 : i32
    %c0_i32_0 = arith.constant 0 : i32
    %c0_i32_1 = arith.constant 0 : i32
    return %arg0, %c0_i32, %c0_i32_0 : i32, i32, i32
  }
}

</mosaic_0001>

<bundles_post_ra>
// kernel: pointnetfeat.3
= control target key start
LH: loop header
LB: loop body
LE: loop exit
PB: predicated region body
PF: predicated region fallthrough
CT: control target
= control target key end

     0   :  { %s3425_s24 = smov 0   ;;  %s3427_s25 = smov 0   ;;  %s4985_s0 = inlined_call_operand.vmem [shape: f32[4,512,3], index: 0, kind: input, shape index: {}]   ;;  %s4986_s1 = inlined_call_operand.vmem [shape: bf16[4,3,64], index: 1, kind: input, shape index: {}]   ;;  %s4987_s2 = inlined_call_operand.vmem [shape: f32[1,64], index: 2, kind: input, shape index: {}]   ;;  %s4988_s3 = inlined_call_operand.vmem [shape: bf16[64,128], index: 3, kind: input, shape index: {}]   ;;  %s4989_s4 = inlined_call_operand.vmem [shape: f32[1,128], index: 4, kind: input, shape index: {}]   ;;  %s4990_s5 = inlined_call_operand.vmem [shape: bf16[128,1024], index: 5, kind: input, shape index: {}]   ;;  %s4991_s6 = inlined_call_operand.vmem [shape: f32[1,1024], index: 6, kind: input, shape index: {}]   ;;  %s4992_s7 = inlined_call_operand.vmem [shape: f32[4,1,1024], index: 7, kind: output, shape index: {}]  }
   0x1   :  { %s3429_s26 = smov 0   ;;  %s3431_s27 = smov 0  }
   0x2   :  { %s3433_s28 = smov 0  }
   0x3 LB: > { %s26_s29 = sadd.s32 1, %s3371_s26  ;;  %s29_s30 = sadd.s32 1, %s3375_s27  ;;  %s3379_s28 = sphi %s3433_s28, %s17_s28   ;;  %s3375_s27 = sphi %s3431_s27, %s5084_s27   ;;  %s3371_s26 = sphi %s3429_s26, %s5083_s26   ;;  %s3367_s25 = sphi %s3427_s25, %s5082_s25   ;;  %s3363_s24 = sphi %s3425_s24, %s5081_s24  }
   0x4   : > { %p27_p0 = scmp.ge.s32.totalorder %s26_s29, 2  ;;  %p3068_p1 = scmp.ge.s32.totalorder %s3379_s28, 1 }
   0x5   : > { %p265_p2 = scmp.lt.s32.totalorder %s3379_s28, 9 }
   0x6   : > { %s5086_s29 = smov (%p27_p0, %s26_s29), 0  ;;  %s5088_s30 = smov (!%p27_p0, %s29_s30), %s3375_s27 }
   0x7   : > { %p266_p3 = pnand %p3068_p1, %p265_p2  ;;  %p31_p4 = scmp.ge.s32.totalorder %s5088_s30, 4 }
   0x9   : > { %s5090_s30 = smov (%p31_p4, %s5088_s30), 0  ;;  %269 = sbr.rel (%p266_p3) target bundleno = 984 (0x3d8), region = 48 }
  0x10   : > { %s3069_s8 = sshll.u32 %s3363_s24, 5  ;;  %p305_p5 = scmp.lt.s32.totalorder %s3367_s25, 3  ;;  %vm428_vm0 = vcmask 1040384   ;;  %vm429_vm1 = vcmask 1041408   ;;  %v3381_v0 = vmov 65535   ;;  %v3336_v2 = vld [vmem:[%s4988_s3] sm:$0xff]  }
  0x11   : > { %p307_p6 = scmp.lt.s32.totalorder %s3069_s8, 63  ;;  %v430_v1 = vsel %vm428_vm0, 4294967295, %v3381_v0  ;;  %v3337_v3 = vld [vmem:[%s4988_s3 + $0x8] sm:$0xff]   ;;  %3252 = vmatprep.subr.bf16.mxu1 %v3336_v2  ;;  %vm379_vm2 = vcmask 23552   ;;  %v3338_v55 = vld [vmem:[%s4988_s3 + $0x10] sm:$0xff]   ;;  %v3339_v56 = vld [vmem:[%s4988_s3 + $0x18] sm:$0xff]  }
  0x12   : > { %s5092_s25 = smov (!%p305_p5, %s3367_s25), 3  ;;  %v431_v4 = vsel %vm429_vm1, %v430_v1, 0  ;;  %3253 = vmatpush3.bf16.msra.mxu1 %v3336_v2  ;;  %v941_v57 = vld [vmem:[%s4990_s5] sm:$0xff]  ;;  %v3540_v59 = vld [vmem:[%s4990_s5 + $0x8] sm:$0xff]  ;;  %vm683_vm3 = vcmask 523264   ;;  %p3177_p7 = scmp.ne.s32.totalorder %s3363_s24, 0 }
  0x13   : > { %s5094_s8 = smov (!%p307_p6, %s3069_s8), 63  ;;  %s3070_s13 = sshll.u32 %s5092_s25, 6  ;;  %3254 = vmatprep.subr.bf16.mxu1 %v3337_v3  ;;  %v945_v58 = vld [vmem:[%s4990_s5 + $0x20] sm:$0xff]  ;;  %v3545_v62 = vld [vmem:[%s4990_s5 + $0x28] sm:$0xff] }
  0x14   : > { %s3072_s14 = sshll.u32 %s5092_s25, 1  ;;  %s310_s15 = sadd.s32 %s3070_s13, %s5094_s8  ;;  %v3112_v60 = vcombine.low %v941_v57, %v945_v58  ;;  %v3113_v61 = vcombine.high %v941_v57, %v945_v58  ;;  %v949_v63 = vld [vmem:[%s4990_s5 + $0x40] sm:$0xff]  ;;  %v3114_v1 = vcombine.low %v3540_v59, %v3545_v62  ;;  %v3115_v2 = vcombine.high %v3540_v59, %v3545_v62 }
  0x15   : > { %s317_s18 = scalar_lea.vmem %s4986_s1, %s3072_s14  ;;  %s3071_s19 = sshll.u32 %s310_s15, 3  ;;  %v953_v0 = vld [vmem:[%s4990_s5 + $0x60] sm:$0xff] }
  0x16   : > { %s3073_s20 = sshll.u32 %s5092_s25, 3  ;;  %v371_v5 = vld [vmem:[%s317_s18] sm:$0x3]  ;;  %s3470_s23 = scalar_lea.vmem %s4985_s0, %s3071_s19  ;;  %3255 = vmatpush3.bf16.msra.mxu1 %v3337_v3  ;;  %v3121_v3 = vcombine.high %v949_v63, %v953_v0 }
  0x17   : > { %s3475_s8 = scalar_lea.vmem %s4992_s7, %s3073_s20  ;;  %v433_v6 = vand.u32 %v431_v4, %v371_v5  ;;  %v323_v7 = vld [vmem:[%s3470_s23] sm:$0xff]  ;;  %v324_v8 = vld [vmem:[%s3470_s23 + $0x8] sm:$0xff]  ;;  %v325_v9 = vld [vmem:[%s3470_s23 + $0x10] sm:$0xff]  ;;  %3256 = vmatprep.subr.bf16.mxu1 %v3338_v55  ;;  %s3176_s18 = sshll.u32 %s3363_s24, 8 }
  0x18   : > { %v355_v10 = vpack.c.bf16 %v324_v8, %v323_v7  ;;  %v326_v11 = vld [vmem:[%s3470_s23 + $0x18] sm:$0xff]  ;;  %v327_v12 = vld [vmem:[%s3470_s23 + $0x20] sm:$0xff]  ;;  %v328_v13 = vld [vmem:[%s3470_s23 + $0x28] sm:$0xff] }
  0x19   : > { %3218 = vmatprep.subr.bf16.mxu0 %v433_v6  ;;  %v356_v14 = vpack.c.bf16 %v326_v11, %v325_v9  ;;  %v357_v15 = vpack.c.bf16 %v328_v13, %v327_v12  ;;  %v329_v16 = vld [vmem:[%s3470_s23 + $0x30] sm:$0xff]  ;;  %v330_v17 = vld [vmem:[%s3470_s23 + $0x38] sm:$0xff]  ;;  %v331_v18 = vld [vmem:[%s3470_s23 + $0x40] sm:$0xff] }
  0x1a   : > { %3219 = vmatpush3.bf16.msra.mxu0 %v433_v6  ;;  %3220 = vmatprep.mubr.msk.bf16.mxu0 %vm379_vm2, %v355_v10  ;;  %v332_v19 = vld [vmem:[%s3470_s23 + $0x48] sm:$0xff]  ;;  %v358_v20 = vpack.c.bf16 %v330_v17, %v329_v16  ;;  %v333_v22 = vld [vmem:[%s3470_s23 + $0x50] sm:$0xff]  ;;  %v334_v23 = vld [vmem:[%s3470_s23 + $0x58] sm:$0xff]  ;;  %v3120_v6 = vcombine.low %v949_v63, %v953_v0 }
  0x1b   : > { %v359_v21 = vpack.c.bf16 %v332_v19, %v331_v18  ;;  %v335_v24 = vld [vmem:[%s3470_s23 + $0x60] sm:$0xff]  ;;  %v336_v25 = vld [vmem:[%s3470_s23 + $0x68] sm:$0xff]  ;;  %v360_v26 = vpack.c.bf16 %v334_v23, %v333_v22  ;;  %v337_v28 = vld [vmem:[%s3470_s23 + $0x70] sm:$0xff]  ;;  %3257 = vmatpush3.bf16.msra.mxu1 %v3338_v55  ;;  %1367 = vmatprep.subr.bf16.mxu0 %v3113_v61 }
  0x1c   : > { %v361_v27 = vpack.c.bf16 %v336_v25, %v335_v24  ;;  %v338_v29 = vld [vmem:[%s3470_s23 + $0x78] sm:$0xff]  ;;  %v339_v30 = vld [vmem:[%s3470_s23 + $0x80] sm:$0xff]  ;;  %v340_v31 = vld [vmem:[%s3470_s23 + $0x88] sm:$0xff]  ;;  %3258 = vmatprep.subr.bf16.mxu1 %v3339_v56 }
  0x1d   : > { %3221 = vmatmul.mubr.msk.bf16.vlgmr.msra.gmra.mrb[0].mxu0 %vm379_vm2, %v356_v14  ;;  %v362_v32 = vpack.c.bf16 %v338_v29, %v337_v28  ;;  %v363_v33 = vpack.c.bf16 %v340_v31, %v339_v30  ;;  %v341_v34 = vld [vmem:[%s3470_s23 + $0x90] sm:$0xff]  ;;  %v342_v35 = vld [vmem:[%s3470_s23 + $0x98] sm:$0xff]  ;;  %v343_v36 = vld [vmem:[%s3470_s23 + $0xa0] sm:$0xff] }
  0x1e   : > { %3224 = vmatprep.mubr.msk.bf16.mxu0 %vm379_vm2, %v357_v15  ;;  %v344_v37 = vld [vmem:[%s3470_s23 + $0xa8] sm:$0xff]  ;;  %v364_v38 = vpack.c.bf16 %v342_v35, %v341_v34  ;;  %v345_v40 = vld [vmem:[%s3470_s23 + $0xb0] sm:$0xff]  ;;  %v346_v41 = vld [vmem:[%s3470_s23 + $0xb8] sm:$0xff]  ;;  %1368 = vmatpush1.bf16.msra.mxu0 %v3112_v60 }
  0x1f   : > { %v365_v39 = vpack.c.bf16 %v344_v37, %v343_v36  ;;  %v347_v42 = vld [vmem:[%s3470_s23 + $0xc0] sm:$0xff]  ;;  %v348_v43 = vld [vmem:[%s3470_s23 + $0xc8] sm:$0xff]  ;;  %v366_v44 = vpack.c.bf16 %v346_v41, %v345_v40  ;;  %v349_v46 = vld [vmem:[%s3470_s23 + $0xd0] sm:$0xff]  ;;  %3259 = vmatpush3.bf16.msra.mxu1 %v3339_v56  ;;  %1369 = vmatprep.subr.bf16.mxu0 %v3121_v3 }
  0x20   : > { %v367_v45 = vpack.c.bf16 %v348_v43, %v347_v42  ;;  %v350_v47 = vld [vmem:[%s3470_s23 + $0xd8] sm:$0xff]  ;;  %v351_v48 = vld [vmem:[%s3470_s23 + $0xe0] sm:$0xff]  ;;  %v352_v49 = vld [vmem:[%s3470_s23 + $0xe8] sm:$0xff]  ;;  %1560 = vmatprep.subr.bf16.mxu1 %v3115_v2 }
  0x21   : > { %v368_v50 = vpack.c.bf16 %v350_v47, %v349_v46  ;;  %v369_v51 = vpack.c.bf16 %v352_v49, %v351_v48  ;;  %v353_v52 = vld [vmem:[%s3470_s23 + $0xf0] sm:$0xff]  ;;  %v354_v53 = vld [vmem:[%s3470_s23 + $0xf8] sm:$0xff]  ;;  %v957_v4 = vld [vmem:[%s4990_s5 + $0x80] sm:$0xff] }
  0x22   : > { %v370_v54 = vpack.c.bf16 %v354_v53, %v353_v52  ;;  %v961_v5 = vld [vmem:[%s4990_s5 + $0xa0] sm:$0xff]  ;;  %1370 = vmatpush1.bf16.msra.mxu0 %v3120_v6  ;;  %v958_v48 = vld [vmem:[%s4990_s5 + $0x88] sm:$0xff] }
  0x23   : > { %v3129_v7 = vcombine.high %v957_v4, %v961_v5  ;;  %v965_v8 = vld [vmem:[%s4990_s5 + $0xc0] sm:$0xff]  ;;  %v3128_v10 = vcombine.low %v957_v4, %v961_v5  ;;  %v962_v49 = vld [vmem:[%s4990_s5 + $0xa8] sm:$0xff] }
  0x24   : > { %v969_v9 = vld [vmem:[%s4990_s5 + $0xe0] sm:$0xff]  ;;  %v3131_v57 = vcombine.high %v958_v48, %v962_v49  ;;  %v966_v60 = vld [vmem:[%s4990_s5 + $0xc8] sm:$0xff]  ;;  %v3130_v3 = vcombine.low %v958_v48, %v962_v49 }
  0x25   : > { %3225 = vmatmul.mubr.msk.bf16.gmra.mrb[4].mxu0 %vm379_vm2, %v358_v20  ;;  %1371 = vmatprep.subr.bf16.mxu0 %v3129_v7  ;;  %v3137_v11 = vcombine.high %v965_v8, %v969_v9  ;;  %v973_v12 = vld [vmem:[%s4990_s5 + $0x100] sm:$0xff]  ;;  %v3136_v14 = vcombine.low %v965_v8, %v969_v9  ;;  %v970_v61 = vld [vmem:[%s4990_s5 + $0xe8] sm:$0xff] }
  0x26   : > { %3228 = vmatprep.mubr.msk.bf16.mxu0 %vm379_vm2, %v359_v21  ;;  %v977_v13 = vld [vmem:[%s4990_s5 + $0x120] sm:$0xff]  ;;  %1372 = vmatpush1.bf16.msra.mxu0 %v3128_v10  ;;  %v974_v6 = vld [vmem:[%s4990_s5 + $0x108] sm:$0xff] }
  0x27   : > { %1373 = vmatprep.subr.bf16.mxu0 %v3137_v11  ;;  %v3145_v15 = vcombine.high %v973_v12, %v977_v13  ;;  %v981_v16 = vld [vmem:[%s4990_s5 + $0x140] sm:$0xff]  ;;  %v3144_v18 = vcombine.low %v973_v12, %v977_v13  ;;  %v978_v7 = vld [vmem:[%s4990_s5 + $0x128] sm:$0xff]  ;;  %v3138_v13 = vcombine.low %v966_v60, %v970_v61 }
  0x28   : > { %v985_v17 = vld [vmem:[%s4990_s5 + $0x160] sm:$0xff] }
  0x29   : > { %v3153_v19 = vcombine.high %v981_v16, %v985_v17  ;;  %v989_v20 = vld [vmem:[%s4990_s5 + $0x180] sm:$0xff]  ;;  %v3152_v22 = vcombine.low %v981_v16, %v985_v17  ;;  %v982_v17 = vld [vmem:[%s4990_s5 + $0x148] sm:$0xff] }
  0x2a   : > { %1374 = vmatpush1.bf16.msra.mxu0 %v3136_v14  ;;  %v993_v21 = vld [vmem:[%s4990_s5 + $0x1a0] sm:$0xff] }
  0x2b   : > { %1375 = vmatprep.subr.bf16.mxu0 %v3145_v15  ;;  %v3161_v23 = vcombine.high %v989_v20, %v993_v21  ;;  %v3160_v24 = vcombine.low %v989_v20, %v993_v21  ;;  %v3590_v25 = vld [vmem:[%s4987_s2] ss:$0 sm:$0xff]  ;;  %v3147_v15 = vcombine.high %v974_v6, %v978_v7 }
  0x2d   : > { %3229 = vmatmul.mubr.msk.bf16.gmra.mrb[8].mxu0 %vm379_vm2, %v360_v26 }
  0x2e   : > { %3232 = vmatprep.mubr.msk.bf16.mxu0 %vm379_vm2, %v361_v27  ;;  %1376 = vmatpush1.bf16.msra.mxu0 %v3144_v18  ;;  %v986_v18 = vld [vmem:[%s4990_s5 + $0x168] sm:$0xff] }
  0x2f   : > { %1377 = vmatprep.subr.bf16.mxu0 %v3153_v19 }
  0x32   : > { %1378 = vmatpush1.bf16.msra.mxu0 %v3152_v22  ;;  %v3146_v22 = vcombine.low %v974_v6, %v978_v7 }
  0x33   : > { %1379 = vmatprep.subr.bf16.mxu0 %v3161_v23 }
  0x35   : > { %3233 = vmatmul.mubr.msk.bf16.gmra.mrb[12].mxu0 %vm379_vm2, %v362_v32 }
  0x36   : > { %3236 = vmatprep.mubr.msk.bf16.mxu0 %vm379_vm2, %v363_v33  ;;  %1380 = vmatpush1.bf16.msra.mxu0 %v3160_v24 }
  0x3d   : > { %3237 = vmatmul.mubr.msk.bf16.gmra.mrb[16].mxu0 %vm379_vm2, %v364_v38  ;;  %v950_v38 = vld [vmem:[%s4990_s5 + $0x48] sm:$0xff] }
  0x3e   : > { %3240 = vmatprep.mubr.msk.bf16.mxu0 %vm379_vm2, %v365_v39  ;;  %v954_v39 = vld [vmem:[%s4990_s5 + $0x68] sm:$0xff] }
  0x3f   : > { %v3122_v55 = vcombine.low %v950_v38, %v954_v39 }
  0x45   : > { %3241 = vmatmul.mubr.msk.bf16.gmra.mrb[20].mxu0 %vm379_vm2, %v366_v44 }
  0x46   : > { %3244 = vmatprep.mubr.msk.bf16.mxu0 %vm379_vm2, %v367_v45  ;;  %v3123_v45 = vcombine.high %v950_v38, %v954_v39 }
  0x4d   : > { %3245 = vmatmul.mubr.msk.bf16.gmra.mrb[24].mxu0 %vm379_vm2, %v368_v50 }
  0x4e   : > { %3248 = vmatprep.mubr.msk.bf16.mxu0 %vm379_vm2, %v369_v51 }
  0x55   : > { %3249 = vmatmul.mubr.msk.bf16.gmra.mrb[28].mxu0 %vm379_vm2, %v370_v54 }
  0xf0   : > { %v3222_v26 = vpop.f32.mrb[0].mxu0 }
  0xf1   : > { %v478_v27 = vadd.f32 %v3222_v26, %v3590_v25  ;;  %v469_v28 = vpop.f32.mrb[1].mxu0  ;;  %v3155_v26 = vcombine.high %v982_v17, %v986_v18 }
  0xf2   : > { %v470_v29 = vadd.f32 %v3590_v25, %v469_v28  ;;  %v3223_v30 = vpop.f32.mrb[2].mxu0 }
  0xf3   : > { %v481_v31 = vadd.f32 %v3223_v30, %v3590_v25  ;;  %v472_v32 = vpop.f32.mrb[3].mxu0  ;;  %v598_v34 = vmax.f32 %v478_v27, 0.0  ;;  %v994_v30 = vld [vmem:[%s4990_s5 + $0x1a8] sm:$0xff] }
  0xf4   : > { %v473_v33 = vadd.f32 %v3590_v25, %v472_v32  ;;  %v596_v36 = vmax.f32 %v470_v29, 0.0  ;;  %v990_v29 = vld [vmem:[%s4990_s5 + $0x188] sm:$0xff] }
  0xf5   : > { %v599_v35 = vmax.f32 %v481_v31, 0.0  ;;  %v3163_v38 = vcombine.high %v990_v29, %v994_v30 }
  0xf6   : > { %v597_v37 = vmax.f32 %v473_v33, 0.0 }
  0xf7   : > { %v629_v40 = vpack.c.bf16 %v599_v35, %v598_v34 }
  0xf8   : > { %v3226_v41 = vpop.f32.mrb[4].mxu0  ;;  %v628_v42 = vpack.c.bf16 %v597_v37, %v596_v36  ;;  %v3154_v36 = vcombine.low %v982_v17, %v986_v18 }
  0xf9   : > { %v494_v43 = vadd.f32 %v3226_v41, %v3590_v25  ;;  %v485_v44 = vpop.f32.mrb[5].mxu0 }
  0xfa   : > { %v486_v46 = vadd.f32 %v3590_v25, %v485_v44  ;;  %3260 = vmatprep.mubr.msk.bf16.mxu1 %vm683_vm3, %v628_v42  ;;  %v3227_v47 = vpop.f32.mrb[6].mxu0 }
  0xfb   : > { %v602_v50 = vmax.f32 %v494_v43, 0.0  ;;  %v497_v51 = vadd.f32 %v3227_v47, %v3590_v25  ;;  %3261 = vmatmul.mubr.msk.bf16.vlgmr.msra.gmra.mrb[0].mxu1 %vm683_vm3, %v629_v40  ;;  %v488_v52 = vpop.f32.mrb[7].mxu0  ;;  %v3162_v43 = vcombine.low %v990_v29, %v994_v30 }
  0xfc   : > { %v600_v53 = vmax.f32 %v486_v46, 0.0  ;;  %v489_v54 = vadd.f32 %v3590_v25, %v488_v52  ;;  %1561 = vmatpush1.bf16.msra.mxu1 %v3114_v1  ;;  %v3139_v1 = vcombine.high %v966_v60, %v970_v61 }
  0xfd   : > { %v603_v56 = vmax.f32 %v497_v51, 0.0  ;;  %1562 = vmatprep.subr.bf16.mxu1 %v3123_v45 }
  0xfe   : > { %v601_v58 = vmax.f32 %v489_v54, 0.0 }
  0xff   : > { %v631_v63 = vpack.c.bf16 %v603_v56, %v602_v50 }
 0x100   : > { %v630_v0 = vpack.c.bf16 %v601_v58, %v600_v53  ;;  %v3230_v2 = vpop.f32.mrb[8].mxu0  ;;  %1563 = vmatpush1.bf16.msra.mxu1 %v3122_v55 }
 0x101   : > { %v510_v59 = vadd.f32 %v3230_v2, %v3590_v25  ;;  %v501_v62 = vpop.f32.mrb[9].mxu0  ;;  %1564 = vmatprep.subr.bf16.mxu1 %v3131_v57 }
 0x102   : > { %3264 = vmatprep.mubr.msk.bf16.mxu1 %vm683_vm3, %v630_v0  ;;  %v502_v4 = vadd.f32 %v3590_v25, %v501_v62  ;;  %v3231_v5 = vpop.f32.mrb[10].mxu0 }
 0x103   : > { %3265 = vmatmul.mubr.msk.bf16.gmra.mrb[4].mxu1 %vm683_vm3, %v631_v63  ;;  %v606_v8 = vmax.f32 %v510_v59, 0.0  ;;  %v513_v9 = vadd.f32 %v3231_v5, %v3590_v25  ;;  %v504_v10 = vpop.f32.mrb[11].mxu0 }
 0x104   : > { %v604_v11 = vmax.f32 %v502_v4, 0.0  ;;  %v505_v12 = vadd.f32 %v3590_v25, %v504_v10  ;;  %1565 = vmatpush1.bf16.msra.mxu1 %v3130_v3 }
 0x105   : > { %v607_v14 = vmax.f32 %v513_v9, 0.0  ;;  %1566 = vmatprep.subr.bf16.mxu1 %v3139_v1 }
 0x106   : > { %v605_v16 = vmax.f32 %v505_v12, 0.0 }
 0x107   : > { %v633_v19 = vpack.c.bf16 %v607_v14, %v606_v8 }
 0x108   : > { %v632_v20 = vpack.c.bf16 %v605_v16, %v604_v11  ;;  %v3234_v21 = vpop.f32.mrb[12].mxu0  ;;  %1567 = vmatpush1.bf16.msra.mxu1 %v3138_v13 }
 0x109   : > { %v526_v23 = vadd.f32 %v3234_v21, %v3590_v25  ;;  %v517_v24 = vpop.f32.mrb[13].mxu0  ;;  %1568 = vmatprep.subr.bf16.mxu1 %v3147_v15 }
 0x10a   : > { %3268 = vmatprep.mubr.msk.bf16.mxu1 %vm683_vm3, %v632_v20  ;;  %v518_v27 = vadd.f32 %v3590_v25, %v517_v24  ;;  %v3235_v28 = vpop.f32.mrb[14].mxu0 }
 0x10b   : > { %3269 = vmatmul.mubr.msk.bf16.gmra.mrb[8].mxu1 %vm683_vm3, %v633_v19  ;;  %v610_v31 = vmax.f32 %v526_v23, 0.0  ;;  %v529_v32 = vadd.f32 %v3235_v28, %v3590_v25  ;;  %v520_v33 = vpop.f32.mrb[15].mxu0 }
 0x10c   : > { %v608_v34 = vmax.f32 %v518_v27, 0.0  ;;  %v521_v35 = vadd.f32 %v3590_v25, %v520_v33  ;;  %1569 = vmatpush1.bf16.msra.mxu1 %v3146_v22 }
 0x10d   : > { %v611_v37 = vmax.f32 %v529_v32, 0.0  ;;  %1570 = vmatprep.subr.bf16.mxu1 %v3155_v26 }
 0x10e   : > { %v609_v39 = vmax.f32 %v521_v35, 0.0 }
 0x10f   : > { %v635_v40 = vpack.c.bf16 %v611_v37, %v610_v31  ;;  %v1001_v37 = vld [vmem:[%s4990_s5 + $0x1e0] sm:$0xff] }
 0x110   : > { %v634_v41 = vpack.c.bf16 %v609_v39, %v608_v34  ;;  %v3238_v42 = vpop.f32.mrb[16].mxu0  ;;  %1571 = vmatpush1.bf16.msra.mxu1 %v3154_v36  ;;  %v997_v36 = vld [vmem:[%s4990_s5 + $0x1c0] sm:$0xff] }
 0x111   : > { %v542_v44 = vadd.f32 %v3238_v42, %v3590_v25  ;;  %v533_v45 = vpop.f32.mrb[17].mxu0  ;;  %1572 = vmatprep.subr.bf16.mxu1 %v3163_v38  ;;  %v3168_v38 = vcombine.low %v997_v36, %v1001_v37  ;;  %v3169_v39 = vcombine.high %v997_v36, %v1001_v37 }
 0x112   : > { %3272 = vmatprep.mubr.msk.bf16.mxu1 %vm683_vm3, %v634_v41  ;;  %v534_v46 = vadd.f32 %v3590_v25, %v533_v45  ;;  %v3239_v47 = vpop.f32.mrb[18].mxu0  ;;  %v947_v45 = vld [vmem:[%s4990_s5 + $0x30] sm:$0xff] }
 0x113   : > { %3273 = vmatmul.mubr.msk.bf16.gmra.mrb[12].mxu1 %vm683_vm3, %v635_v40  ;;  %v614_v48 = vmax.f32 %v542_v44, 0.0  ;;  %v545_v49 = vadd.f32 %v3239_v47, %v3590_v25  ;;  %v536_v50 = vpop.f32.mrb[19].mxu0  ;;  %v1002_v40 = vld [vmem:[%s4990_s5 + $0x1e8] sm:$0xff]  ;;  %1381 = vmatprep.subr.bf16.mxu0 %v3169_v39  ;;  %v943_v44 = vld [vmem:[%s4990_s5 + $0x10] sm:$0xff] }
 0x114   : > { %v612_v51 = vmax.f32 %v534_v46, 0.0  ;;  %v537_v52 = vadd.f32 %v3590_v25, %v536_v50  ;;  %1573 = vmatpush1.bf16.msra.mxu1 %v3162_v43  ;;  %1382 = vmatpush1.bf16.msra.mxu0 %v3168_v38  ;;  %v3382_v43 = vmov 0   ;;  %v944_v46 = vld [vmem:[%s4990_s5 + $0x18] sm:$0xff]  ;;  %v3116_v47 = vcombine.low %v943_v44, %v947_v45 }
 0x115   : > { %v615_v53 = vmax.f32 %v545_v49, 0.0  ;;  %1399 = vmatprep.mubr.bf16.mxu0 %v3382_v43  ;;  %v948_v49 = vld [vmem:[%s4990_s5 + $0x38] sm:$0xff] }
 0x116   : > { %v613_v54 = vmax.f32 %v537_v52, 0.0  ;;  %v3118_v50 = vcombine.low %v944_v46, %v948_v49  ;;  %v3708_v52 = vld [vmem:[%s4989_s4] ss:$0 sm:$0xff] }
 0x117   : > { %v637_v55 = vpack.c.bf16 %v615_v53, %v614_v48  ;;  %v3117_v48 = vcombine.high %v943_v44, %v947_v45 }
 0x118   : > { %v636_v56 = vpack.c.bf16 %v613_v54, %v612_v51  ;;  %v3242_v57 = vpop.f32.mrb[20].mxu0  ;;  %v3119_v51 = vcombine.high %v944_v46, %v948_v49  ;;  %v979_v46 = vld [vmem:[%s4990_s5 + $0x130] sm:$0xff] }
 0x119   : > { %v558_v58 = vadd.f32 %v3242_v57, %v3590_v25  ;;  %v549_v60 = vpop.f32.mrb[21].mxu0  ;;  %1753 = vmatprep.subr.bf16.mxu0 %v3117_v48  ;;  %v980_v48 = vld [vmem:[%s4990_s5 + $0x138] sm:$0xff] }
 0x11a   : > { %3276 = vmatprep.mubr.msk.bf16.mxu1 %vm683_vm3, %v636_v56  ;;  %v550_v61 = vadd.f32 %v3590_v25, %v549_v60  ;;  %v3243_v63 = vpop.f32.mrb[22].mxu0 }
 0x11b   : > { %3277 = vmatmul.mubr.msk.bf16.gmra.mrb[16].mxu1 %vm683_vm3, %v637_v55  ;;  %v618_v0 = vmax.f32 %v558_v58, 0.0  ;;  %v561_v2 = vadd.f32 %v3243_v63, %v3590_v25  ;;  %v552_v3 = vpop.f32.mrb[23].mxu0 }
 0x11c   : > { %v616_v59 = vmax.f32 %v550_v61, 0.0  ;;  %v553_v62 = vadd.f32 %v3590_v25, %v552_v3 }
 0x11d   : > { %v619_v1 = vmax.f32 %v561_v2, 0.0  ;;  %v951_v2 = vld [vmem:[%s4990_s5 + $0x50] sm:$0xff] }
 0x11e   : > { %v617_v4 = vmax.f32 %v553_v62, 0.0  ;;  %v955_v62 = vld [vmem:[%s4990_s5 + $0x70] sm:$0xff] }
 0x11f   : > { %v639_v5 = vpack.c.bf16 %v619_v1, %v618_v0  ;;  %v952_v1 = vld [vmem:[%s4990_s5 + $0x58] sm:$0xff] }
 0x120   : > { %v638_v6 = vpack.c.bf16 %v617_v4, %v616_v59  ;;  %v3246_v7 = vpop.f32.mrb[24].mxu0  ;;  %v956_v4 = vld [vmem:[%s4990_s5 + $0x78] sm:$0xff] }
 0x121   : > { %v574_v8 = vadd.f32 %v3246_v7, %v3590_v25  ;;  %v565_v9 = vpop.f32.mrb[25].mxu0 }
 0x122   : > { %3280 = vmatprep.mubr.msk.bf16.mxu1 %vm683_vm3, %v638_v6  ;;  %v566_v10 = vadd.f32 %v3590_v25, %v565_v9  ;;  %v3247_v11 = vpop.f32.mrb[26].mxu0 }
 0x123   : > { %3281 = vmatmul.mubr.msk.bf16.gmra.mrb[20].mxu1 %vm683_vm3, %v639_v5  ;;  %v622_v12 = vmax.f32 %v574_v8, 0.0  ;;  %v577_v13 = vadd.f32 %v3247_v11, %v3590_v25  ;;  %v568_v14 = vpop.f32.mrb[27].mxu0  ;;  %v959_v8 = vld [vmem:[%s4990_s5 + $0x90] sm:$0xff]  ;;  %v3125_v11 = vcombine.high %v951_v2, %v955_v62 }
 0x124   : > { %v620_v15 = vmax.f32 %v566_v10, 0.0  ;;  %v569_v16 = vadd.f32 %v3590_v25, %v568_v14  ;;  %v960_v14 = vld [vmem:[%s4990_s5 + $0x98] sm:$0xff] }
 0x125   : > { %v623_v17 = vmax.f32 %v577_v13, 0.0  ;;  %v963_v13 = vld [vmem:[%s4990_s5 + $0xb0] sm:$0xff] }
 0x126   : > { %v621_v18 = vmax.f32 %v569_v16, 0.0  ;;  %v3132_v37 = vcombine.low %v959_v8, %v963_v13 }
 0x127   : > { %v641_v19 = vpack.c.bf16 %v623_v17, %v622_v12  ;;  %v3127_v12 = vcombine.high %v952_v1, %v956_v4 }
 0x128   : > { %v640_v20 = vpack.c.bf16 %v621_v18, %v620_v15  ;;  %v3250_v21 = vpop.f32.mrb[28].mxu0  ;;  %v964_v15 = vld [vmem:[%s4990_s5 + $0xb8] sm:$0xff] }
 0x129   : > { %v590_v22 = vadd.f32 %v3250_v21, %v3590_v25  ;;  %v581_v23 = vpop.f32.mrb[29].mxu0  ;;  %v3124_v21 = vcombine.low %v951_v2, %v955_v62  ;;  %v984_v2 = vld [vmem:[%s4990_s5 + $0x158] sm:$0xff] }
 0x12a   : > { %3284 = vmatprep.mubr.msk.bf16.mxu1 %vm683_vm3, %v640_v20  ;;  %v582_v24 = vadd.f32 %v3590_v25, %v581_v23  ;;  %v3251_v26 = vpop.f32.mrb[30].mxu0 }
 0x12b   : > { %3285 = vmatmul.mubr.msk.bf16.gmra.mrb[24].mxu1 %vm683_vm3, %v641_v19  ;;  %v626_v27 = vmax.f32 %v590_v22, 0.0  ;;  %v593_v28 = vadd.f32 %v3251_v26, %v3590_v25  ;;  %v584_v29 = vpop.f32.mrb[31].mxu0  ;;  %v3126_v22 = vcombine.low %v952_v1, %v956_v4  ;;  %v3133_v26 = vcombine.high %v959_v8, %v963_v13 }
 0x12c   : > { %v624_v30 = vmax.f32 %v582_v24, 0.0  ;;  %v585_v31 = vadd.f32 %v3590_v25, %v584_v29  ;;  %v998_v25 = vld [vmem:[%s4990_s5 + $0x1c8] sm:$0xff]  ;;  %v967_v29 = vld [vmem:[%s4990_s5 + $0xd0] sm:$0xff] }
 0x12d   : > { %v627_v32 = vmax.f32 %v593_v28, 0.0  ;;  %v3170_v41 = vcombine.low %v998_v25, %v1002_v40  ;;  %v3171_v42 = vcombine.high %v998_v25, %v1002_v40  ;;  %v3134_v25 = vcombine.low %v960_v14, %v964_v15 }
 0x12e   : > { %v625_v33 = vmax.f32 %v585_v31, 0.0  ;;  %v971_v31 = vld [vmem:[%s4990_s5 + $0xf0] sm:$0xff] }
 0x12f   : > { %v643_v34 = vpack.c.bf16 %v627_v32, %v626_v27  ;;  %1574 = vmatprep.subr.bf16.mxu1 %v3171_v42  ;;  %v3135_v27 = vcombine.high %v960_v14, %v964_v15  ;;  %v968_v32 = vld [vmem:[%s4990_s5 + $0xd8] sm:$0xff]  ;;  %v3141_v40 = vcombine.high %v967_v29, %v971_v31  ;;  %v975_v42 = vld [vmem:[%s4990_s5 + $0x110] sm:$0xff] }
 0x130   : > { %v642_v35 = vpack.c.bf16 %v625_v33, %v624_v30  ;;  %1575 = vmatpush1.bf16.msra.mxu1 %v3170_v41  ;;  %v972_v33 = vld [vmem:[%s4990_s5 + $0xf8] sm:$0xff]  ;;  %v3148_v4 = vcombine.low %v975_v42, %v979_v46  ;;  %v995_v15 = vld [vmem:[%s4990_s5 + $0x1b0] sm:$0xff] }
 0x131   : > { %1946 = vmatprep.subr.bf16.mxu1 %v3119_v51  ;;  %v3143_v41 = vcombine.high %v968_v32, %v972_v33 }
 0x132   : > { %3288 = vmatprep.mubr.msk.bf16.mxu1 %vm683_vm3, %v642_v35 }
 0x133   : > { %3289 = vmatmul.mubr.msk.bf16.gmra.mrb[28].mxu1 %vm683_vm3, %v643_v34 }
 0x134   : > { %1592 = vmatprep.mubr.bf16.mxu1 %v3382_v43 }
 0x1ce   : > { %v3262_v53 = vpop.f32.mrb[0].mxu1 }
 0x1cf   : > { %v775_v54 = vadd.f32 %v3262_v53, %v3708_v52  ;;  %v766_v55 = vpop.f32.mrb[1].mxu1 }
 0x1d0   : > { %v767_v56 = vadd.f32 %v3708_v52, %v766_v55  ;;  %v3263_v57 = vpop.f32.mrb[2].mxu1  ;;  %v3140_v55 = vcombine.low %v967_v29, %v971_v31  ;;  %v999_v29 = vld [vmem:[%s4990_s5 + $0x1d0] sm:$0xff] }
 0x1d1   : > { %v778_v58 = vadd.f32 %v3263_v57, %v3708_v52  ;;  %v769_v60 = vpop.f32.mrb[3].mxu1  ;;  %v895_v63 = vmax.f32 %v775_v54, 0.0  ;;  %v1003_v31 = vld [vmem:[%s4990_s5 + $0x1f0] sm:$0xff] }
 0x1d2   : > { %v770_v61 = vadd.f32 %v3708_v52, %v769_v60  ;;  %v893_v3 = vmax.f32 %v767_v56, 0.0  ;;  %v3142_v56 = vcombine.low %v968_v32, %v972_v33  ;;  %v1000_v32 = vld [vmem:[%s4990_s5 + $0x1d8] sm:$0xff] }
 0x1d3   : > { %v896_v0 = vmax.f32 %v778_v58, 0.0  ;;  %v3149_v58 = vcombine.high %v975_v42, %v979_v46  ;;  %v1004_v33 = vld [vmem:[%s4990_s5 + $0x1f8] sm:$0xff]  ;;  %v3173_v42 = vcombine.high %v999_v29, %v1003_v31 }
 0x1d4   : > { %v894_v59 = vmax.f32 %v770_v61, 0.0  ;;  %v983_v61 = vld [vmem:[%s4990_s5 + $0x150] sm:$0xff] }
 0x1d5   : > { %v3726_v5 = vpack.c.bf16 %v896_v0, %v895_v63  ;;  %v987_v0 = vld [vmem:[%s4990_s5 + $0x170] sm:$0xff] }
 0x1d6   : > { %v3728_v6 = vpack.c.bf16 %v894_v59, %v893_v3  ;;  %v3266_v7 = vpop.f32.mrb[4].mxu1  ;;  %v988_v3 = vld [vmem:[%s4990_s5 + $0x178] sm:$0xff] }
 0x1d7   : > { %v791_v9 = vadd.f32 %v3266_v7, %v3708_v52  ;;  %v782_v10 = vpop.f32.mrb[5].mxu1 }
 0x1d8   : > { %v783_v16 = vadd.f32 %v3708_v52, %v782_v10  ;;  %1400 = vmatmul.mubr.bf16.vlgmr.msra.gmra.mrb[32].mxu0 %v3728_v6  ;;  %1593 = vmatmul.mubr.bf16.vlgmr.msra.gmra.mrb[32].mxu1 %v3728_v6  ;;  %v3267_v17 = vpop.f32.mrb[6].mxu1  ;;  %v3157_v10 = vcombine.high %v983_v61, %v987_v0 }
 0x1d9   : > { %v899_v18 = vmax.f32 %v791_v9, 0.0  ;;  %1754 = vmatpush1.bf16.msra.mxu0 %v3116_v47  ;;  %1947 = vmatpush1.bf16.msra.mxu1 %v3118_v50  ;;  %v794_v19 = vadd.f32 %v3267_v17, %v3708_v52  ;;  %v785_v20 = vpop.f32.mrb[7].mxu1  ;;  %v976_v47 = vld [vmem:[%s4990_s5 + $0x118] sm:$0xff] }
 0x1da   : > { %v897_v23 = vmax.f32 %v783_v16, 0.0  ;;  %v786_v24 = vadd.f32 %v3708_v52, %v785_v20  ;;  %1409 = vmatprep.mubr.bf16.mxu0 %v3382_v43  ;;  %1602 = vmatprep.mubr.bf16.mxu1 %v3382_v43  ;;  %v3151_v60 = vcombine.high %v976_v47, %v980_v48  ;;  %v3150_v7 = vcombine.low %v976_v47, %v980_v48  ;;  %v992_v16 = vld [vmem:[%s4990_s5 + $0x198] sm:$0xff] }
 0x1db   : > { %v900_v28 = vmax.f32 %v794_v19, 0.0  ;;  %1755 = vmatprep.subr.bf16.mxu0 %v3125_v11  ;;  %1948 = vmatprep.subr.bf16.mxu1 %v3127_v12  ;;  %v3159_v11 = vcombine.high %v984_v2, %v988_v3  ;;  %v991_v12 = vld [vmem:[%s4990_s5 + $0x190] sm:$0xff]  ;;  %v996_v17 = vld [vmem:[%s4990_s5 + $0x1b8] sm:$0xff] }
 0x1dc   : > { %v898_v30 = vmax.f32 %v786_v24, 0.0  ;;  %v3158_v24 = vcombine.low %v984_v2, %v988_v3 }
 0x1dd   : > { %v3762_v34 = vpack.c.bf16 %v900_v28, %v899_v18  ;;  %1756 = vmatpush1.bf16.msra.mxu0 %v3124_v21  ;;  %1949 = vmatpush1.bf16.msra.mxu1 %v3126_v22  ;;  %v3167_v28 = vcombine.high %v992_v16, %v996_v17 }
 0x1de   : > { %v3764_v35 = vpack.c.bf16 %v898_v30, %v897_v23  ;;  %v3270_v36 = vpop.f32.mrb[8].mxu1  ;;  %1757 = vmatprep.subr.bf16.mxu0 %v3133_v26  ;;  %1950 = vmatprep.subr.bf16.mxu1 %v3135_v27  ;;  %v3156_v23 = vcombine.low %v983_v61, %v987_v0  ;;  %v3165_v27 = vcombine.high %v991_v12, %v995_v15 }
 0x1df   : > { %v807_v38 = vadd.f32 %v3270_v36, %v3708_v52  ;;  %v798_v39 = vpop.f32.mrb[9].mxu1 }
 0x1e0   : > { %1410 = vmatmul.mubr.bf16.gmra.mrb[36].mxu0 %v3726_v5  ;;  %1603 = vmatmul.mubr.bf16.gmra.mrb[36].mxu1 %v3726_v5  ;;  %v799_v44 = vadd.f32 %v3708_v52, %v798_v39  ;;  %v3271_v45 = vpop.f32.mrb[10].mxu1  ;;  %v3166_v39 = vcombine.low %v992_v16, %v996_v17 }
 0x1e1   : > { %v903_v49 = vmax.f32 %v807_v38, 0.0  ;;  %1419 = vmatprep.mubr.bf16.mxu0 %v3382_v43  ;;  %1612 = vmatprep.mubr.bf16.mxu1 %v3382_v43  ;;  %v810_v50 = vadd.f32 %v3271_v45, %v3708_v52  ;;  %v801_v51 = vpop.f32.mrb[11].mxu1  ;;  %v3164_v38 = vcombine.low %v991_v12, %v995_v15 }
 0x1e2   : > { %v901_v53 = vmax.f32 %v799_v44, 0.0  ;;  %v802_v54 = vadd.f32 %v3708_v52, %v801_v51  ;;  %1758 = vmatpush1.bf16.msra.mxu0 %v3132_v37  ;;  %1951 = vmatpush1.bf16.msra.mxu1 %v3134_v25  ;;  %v3175_v44 = vcombine.high %v1000_v32, %v1004_v33 }
 0x1e3   : > { %v904_v57 = vmax.f32 %v810_v50, 0.0  ;;  %1759 = vmatprep.subr.bf16.mxu0 %v3141_v40  ;;  %1952 = vmatprep.subr.bf16.mxu1 %v3143_v41 }
 0x1e4   : > { %v902_v63 = vmax.f32 %v802_v54, 0.0  ;;  %v3174_v54 = vcombine.low %v1000_v32, %v1004_v33 }
 0x1e5   : > { %v3798_v59 = vpack.c.bf16 %v904_v57, %v903_v49 }
 0x1e6   : > { %v3800_v62 = vpack.c.bf16 %v902_v63, %v901_v53  ;;  %v3274_v1 = vpop.f32.mrb[12].mxu1  ;;  %1760 = vmatpush1.bf16.msra.mxu0 %v3140_v55  ;;  %1953 = vmatpush1.bf16.msra.mxu1 %v3142_v56  ;;  %v3172_v53 = vcombine.low %v999_v29, %v1003_v31 }
 0x1e7   : > { %v823_v8 = vadd.f32 %v3274_v1, %v3708_v52  ;;  %v814_v9 = vpop.f32.mrb[13].mxu1  ;;  %1761 = vmatprep.subr.bf16.mxu0 %v3149_v58  ;;  %1954 = vmatprep.subr.bf16.mxu1 %v3151_v60 }
 0x1e8   : > { %1420 = vmatmul.mubr.bf16.gmra.mrb[40].mxu0 %v3764_v35  ;;  %1613 = vmatmul.mubr.bf16.gmra.mrb[40].mxu1 %v3764_v35  ;;  %v815_v13 = vadd.f32 %v3708_v52, %v814_v9  ;;  %v3275_v14 = vpop.f32.mrb[14].mxu1 }
 0x1e9   : > { %1429 = vmatprep.mubr.bf16.mxu0 %v3382_v43  ;;  %1622 = vmatprep.mubr.bf16.mxu1 %v3382_v43  ;;  %v907_v18 = vmax.f32 %v823_v8, 0.0  ;;  %v826_v19 = vadd.f32 %v3275_v14, %v3708_v52  ;;  %v817_v20 = vpop.f32.mrb[15].mxu1 }
 0x1ea   : > { %v905_v21 = vmax.f32 %v815_v13, 0.0  ;;  %v818_v22 = vadd.f32 %v3708_v52, %v817_v20  ;;  %1762 = vmatpush1.bf16.msra.mxu0 %v3148_v4  ;;  %1955 = vmatpush1.bf16.msra.mxu1 %v3150_v7 }
 0x1eb   : > { %v908_v26 = vmax.f32 %v826_v19, 0.0  ;;  %1763 = vmatprep.subr.bf16.mxu0 %v3157_v10  ;;  %1956 = vmatprep.subr.bf16.mxu1 %v3159_v11 }
 0x1ec   : > { %v906_v30 = vmax.f32 %v818_v22, 0.0 }
 0x1ed   : > { %v3834_v36 = vpack.c.bf16 %v908_v26, %v907_v18 }
 0x1ee   : > { %v3836_v37 = vpack.c.bf16 %v906_v30, %v905_v21  ;;  %v3278_v25 = vpop.f32.mrb[16].mxu1  ;;  %1764 = vmatpush1.bf16.msra.mxu0 %v3156_v23  ;;  %1957 = vmatpush1.bf16.msra.mxu1 %v3158_v24 }
 0x1ef   : > { %v839_v40 = vadd.f32 %v3278_v25, %v3708_v52  ;;  %v830_v41 = vpop.f32.mrb[17].mxu1  ;;  %1765 = vmatprep.subr.bf16.mxu0 %v3165_v27  ;;  %1958 = vmatprep.subr.bf16.mxu1 %v3167_v28 }
 0x1f0   : > { %1430 = vmatmul.mubr.bf16.gmra.mrb[44].mxu0 %v3762_v34  ;;  %1623 = vmatmul.mubr.bf16.gmra.mrb[44].mxu1 %v3762_v34  ;;  %v831_v45 = vadd.f32 %v3708_v52, %v830_v41  ;;  %v3279_v46 = vpop.f32.mrb[18].mxu1 }
 0x1f1   : > { %1439 = vmatprep.mubr.bf16.mxu0 %v3382_v43  ;;  %1632 = vmatprep.mubr.bf16.mxu1 %v3382_v43  ;;  %v911_v47 = vmax.f32 %v839_v40, 0.0  ;;  %v842_v48 = vadd.f32 %v3279_v46, %v3708_v52  ;;  %v833_v49 = vpop.f32.mrb[19].mxu1 }
 0x1f2   : > { %v909_v50 = vmax.f32 %v831_v45, 0.0  ;;  %v834_v51 = vadd.f32 %v3708_v52, %v833_v49  ;;  %1766 = vmatpush1.bf16.msra.mxu0 %v3164_v38  ;;  %1959 = vmatpush1.bf16.msra.mxu1 %v3166_v39 }
 0x1f3   : > { %v912_v55 = vmax.f32 %v842_v48, 0.0  ;;  %1767 = vmatprep.subr.bf16.mxu0 %v3173_v42  ;;  %1960 = vmatprep.subr.bf16.mxu1 %v3175_v44 }
 0x1f4   : > { %v910_v56 = vmax.f32 %v834_v51, 0.0 }
 0x1f5   : > { %v3846_v57 = vpack.c.bf16 %v912_v55, %v911_v47 }
 0x1f6   : > { %v3848_v58 = vpack.c.bf16 %v910_v56, %v909_v50  ;;  %v3282_v60 = vpop.f32.mrb[20].mxu1  ;;  %1768 = vmatpush1.bf16.msra.mxu0 %v3172_v53  ;;  %1961 = vmatpush1.bf16.msra.mxu1 %v3174_v54 }
 0x1f7   : > { %v855_v61 = vadd.f32 %v3282_v60, %v3708_v52  ;;  %v846_v63 = vpop.f32.mrb[21].mxu1 }
 0x1f8   : > { %1440 = vmatmul.mubr.bf16.gmra.mrb[48].mxu0 %v3800_v62  ;;  %1633 = vmatmul.mubr.bf16.gmra.mrb[48].mxu1 %v3800_v62  ;;  %v847_v0 = vadd.f32 %v3708_v52, %v846_v63  ;;  %v3283_v2 = vpop.f32.mrb[22].mxu1 }
 0x1f9   : > { %1449 = vmatprep.mubr.bf16.mxu0 %v3382_v43  ;;  %1642 = vmatprep.mubr.bf16.mxu1 %v3382_v43  ;;  %v915_v3 = vmax.f32 %v855_v61, 0.0  ;;  %v858_v1 = vadd.f32 %v3283_v2, %v3708_v52  ;;  %v849_v4 = vpop.f32.mrb[23].mxu1 }
 0x1fa   : > { %v913_v7 = vmax.f32 %v847_v0, 0.0  ;;  %v850_v8 = vadd.f32 %v3708_v52, %v849_v4 }
 0x1fb   : > { %v916_v9 = vmax.f32 %v858_v1, 0.0 }
 0x1fc   : > { %v914_v10 = vmax.f32 %v850_v8, 0.0 }
 0x1fd   : > { %v3858_v11 = vpack.c.bf16 %v916_v9, %v915_v3 }
 0x1fe   : > { %v3860_v12 = vpack.c.bf16 %v914_v10, %v913_v7  ;;  %v3286_v13 = vpop.f32.mrb[24].mxu1 }
 0x1ff   : > { %v871_v14 = vadd.f32 %v3286_v13, %v3708_v52  ;;  %v862_v15 = vpop.f32.mrb[25].mxu1 }
 0x200   : > { %1450 = vmatmul.mubr.bf16.gmra.mrb[52].mxu0 %v3798_v59  ;;  %1643 = vmatmul.mubr.bf16.gmra.mrb[52].mxu1 %v3798_v59  ;;  %v863_v16 = vadd.f32 %v3708_v52, %v862_v15  ;;  %v3287_v17 = vpop.f32.mrb[26].mxu1 }
 0x201   : > { %1459 = vmatprep.mubr.bf16.mxu0 %v3382_v43  ;;  %1652 = vmatprep.mubr.bf16.mxu1 %v3382_v43  ;;  %v919_v18 = vmax.f32 %v871_v14, 0.0  ;;  %v874_v19 = vadd.f32 %v3287_v17, %v3708_v52  ;;  %v865_v20 = vpop.f32.mrb[27].mxu1 }
 0x202   : > { %v917_v21 = vmax.f32 %v863_v16, 0.0  ;;  %v866_v22 = vadd.f32 %v3708_v52, %v865_v20 }
 0x203   : > { %v920_v23 = vmax.f32 %v874_v19, 0.0 }
 0x204   : > { %v918_v24 = vmax.f32 %v866_v22, 0.0 }
 0x205   : > { %v3870_v26 = vpack.c.bf16 %v920_v23, %v919_v18 }
 0x206   : > { %v3872_v27 = vpack.c.bf16 %v918_v24, %v917_v21  ;;  %v3290_v28 = vpop.f32.mrb[28].mxu1 }
 0x207   : > { %v887_v29 = vadd.f32 %v3290_v28, %v3708_v52  ;;  %v878_v30 = vpop.f32.mrb[29].mxu1 }
 0x208   : > { %1460 = vmatmul.mubr.bf16.gmra.mrb[56].mxu0 %v3836_v37  ;;  %1653 = vmatmul.mubr.bf16.gmra.mrb[56].mxu1 %v3836_v37  ;;  %v879_v31 = vadd.f32 %v3708_v52, %v878_v30  ;;  %v3291_v32 = vpop.f32.mrb[30].mxu1 }
 0x209   : > { %1469 = vmatprep.mubr.bf16.mxu0 %v3382_v43  ;;  %1662 = vmatprep.mubr.bf16.mxu1 %v3382_v43  ;;  %v923_v33 = vmax.f32 %v887_v29, 0.0  ;;  %v890_v25 = vadd.f32 %v3291_v32, %v3708_v52  ;;  %v881_v38 = vpop.f32.mrb[31].mxu1 }
 0x20a   : > { %v921_v39 = vmax.f32 %v879_v31, 0.0  ;;  %v882_v40 = vadd.f32 %v3708_v52, %v881_v38  ;;  %v1007_v52 = vlaneseq }
 0x20b   : > { %v924_v41 = vmax.f32 %v890_v25, 0.0 }
 0x20c   : > { %v922_v42 = vmax.f32 %v882_v40, 0.0 }
 0x20d   : > { %v3882_v44 = vpack.c.bf16 %v924_v41, %v923_v33 }
 0x20e   : > { %v3884_v45 = vpack.c.bf16 %v922_v42, %v921_v39 }
 0x210   : > { %1470 = vmatmul.mubr.bf16.gmra.mrb[60].mxu0 %v3834_v36  ;;  %1663 = vmatmul.mubr.bf16.gmra.mrb[60].mxu1 %v3834_v36 }
 0x211   : > { %1479 = vmatprep.mubr.bf16.mxu0 %v3382_v43  ;;  %1672 = vmatprep.mubr.bf16.mxu1 %v3382_v43 }
 0x218   : > { %1480 = vmatmul.mubr.bf16.gmra.mrb[64].mxu0 %v3848_v58  ;;  %1673 = vmatmul.mubr.bf16.gmra.mrb[64].mxu1 %v3848_v58 }
 0x219   : > { %1489 = vmatprep.mubr.bf16.mxu0 %v3382_v43  ;;  %1682 = vmatprep.mubr.bf16.mxu1 %v3382_v43 }
 0x220   : > { %1490 = vmatmul.mubr.bf16.gmra.mrb[68].mxu0 %v3846_v57  ;;  %1683 = vmatmul.mubr.bf16.gmra.mrb[68].mxu1 %v3846_v57 }
 0x221   : > { %1499 = vmatprep.mubr.bf16.mxu0 %v3382_v43  ;;  %1692 = vmatprep.mubr.bf16.mxu1 %v3382_v43 }
 0x228   : > { %1500 = vmatmul.mubr.bf16.gmra.mrb[72].mxu0 %v3860_v12  ;;  %1693 = vmatmul.mubr.bf16.gmra.mrb[72].mxu1 %v3860_v12 }
 0x229   : > { %1509 = vmatprep.mubr.bf16.mxu0 %v3382_v43  ;;  %1702 = vmatprep.mubr.bf16.mxu1 %v3382_v43 }
 0x230   : > { %1510 = vmatmul.mubr.bf16.gmra.mrb[76].mxu0 %v3858_v11  ;;  %1703 = vmatmul.mubr.bf16.gmra.mrb[76].mxu1 %v3858_v11 }
 0x231   : > { %1519 = vmatprep.mubr.bf16.mxu0 %v3382_v43  ;;  %1712 = vmatprep.mubr.bf16.mxu1 %v3382_v43 }
 0x238   : > { %1520 = vmatmul.mubr.bf16.gmra.mrb[80].mxu0 %v3872_v27  ;;  %1713 = vmatmul.mubr.bf16.gmra.mrb[80].mxu1 %v3872_v27 }
 0x239   : > { %1529 = vmatprep.mubr.bf16.mxu0 %v3382_v43  ;;  %1722 = vmatprep.mubr.bf16.mxu1 %v3382_v43 }
 0x240   : > { %1530 = vmatmul.mubr.bf16.gmra.mrb[84].mxu0 %v3870_v26  ;;  %1723 = vmatmul.mubr.bf16.gmra.mrb[84].mxu1 %v3870_v26 }
 0x241   : > { %1539 = vmatprep.mubr.bf16.mxu0 %v3382_v43  ;;  %1732 = vmatprep.mubr.bf16.mxu1 %v3382_v43 }
 0x248   : > { %1540 = vmatmul.mubr.bf16.gmra.mrb[88].mxu0 %v3884_v45  ;;  %1733 = vmatmul.mubr.bf16.gmra.mrb[88].mxu1 %v3884_v45 }
 0x249   : > { %1549 = vmatprep.mubr.bf16.mxu0 %v3382_v43  ;;  %1742 = vmatprep.mubr.bf16.mxu1 %v3382_v43 }
 0x250   : > { %1550 = vmatmul.mubr.bf16.gmra.mrb[92].mxu0 %v3882_v44  ;;  %1743 = vmatmul.mubr.bf16.gmra.mrb[92].mxu1 %v3882_v44 }
 0x251   : > { %1785 = vmatprep.mubr.bf16.mxu0 %v3382_v43  ;;  %1978 = vmatprep.mubr.bf16.mxu1 %v3382_v43 }
 0x258   : > { %1786 = vmatmul.mubr.bf16.vlgmr.msra.gmra.mrb[96].mxu0 %v3728_v6  ;;  %1979 = vmatmul.mubr.bf16.vlgmr.msra.gmra.mrb[96].mxu1 %v3728_v6 }
 0x259   : > { %1795 = vmatprep.mubr.bf16.mxu0 %v3382_v43  ;;  %1988 = vmatprep.mubr.bf16.mxu1 %v3382_v43 }
 0x260   : > { %1796 = vmatmul.mubr.bf16.gmra.mrb[100].mxu0 %v3726_v5  ;;  %1989 = vmatmul.mubr.bf16.gmra.mrb[100].mxu1 %v3726_v5  ;;  %v3958_v5 = vshrl.u32 %v1007_v52, 7 }
 0x261   : > { %1805 = vmatprep.mubr.bf16.mxu0 %v3382_v43  ;;  %1998 = vmatprep.mubr.bf16.mxu1 %v3382_v43 }
 0x262   : > { %5012 = vst [vmem:[#allocation2_spill] sm:$0xff] %v3958_v5  ;;  %v1009_v6 = vsub.s32 0, %v3958_v5  ;;  %v2143_v53 = vadd.s32 16, %v3958_v5  ;;  %v2144_v54 = vadd.s32 24, %v3958_v5  ;;  %v2146_v13 = vadd.s32 40, %v3958_v5 }
 0x268   : > { %1806 = vmatmul.mubr.bf16.gmra.mrb[104].mxu0 %v3764_v35  ;;  %1999 = vmatmul.mubr.bf16.gmra.mrb[104].mxu1 %v3764_v35  ;;  %v1017_v35 = vsub.s32 2, %v3958_v5 }
 0x269   : > { %1815 = vmatprep.mubr.bf16.mxu0 %v3382_v43  ;;  %2008 = vmatprep.mubr.bf16.mxu1 %v3382_v43 }
 0x270   : > { %1816 = vmatmul.mubr.bf16.gmra.mrb[108].mxu0 %v3762_v34  ;;  %2009 = vmatmul.mubr.bf16.gmra.mrb[108].mxu1 %v3762_v34  ;;  %v1005_v34 = vld [vmem:[%s4991_s6] sm:$0xff] }
 0x271   : > { %1825 = vmatprep.mubr.bf16.mxu0 %v3382_v43  ;;  %2018 = vmatprep.mubr.bf16.mxu1 %v3382_v43  ;;  %v3975_v46 = vrot.slane %v1005_v34, %v1009_v6  ;;  %v3983_v48 = vrot.slane %v1005_v34, %v1017_v35  ;;  %v2148_v35 = vadd.s32 56, %v3958_v5 }
 0x278   : > { %1826 = vmatmul.mubr.bf16.gmra.mrb[112].mxu0 %v3800_v62  ;;  %2019 = vmatmul.mubr.bf16.gmra.mrb[112].mxu1 %v3800_v62  ;;  %v3971_v62 = vstv %s3176_s18 }
 0x279   : > { %1835 = vmatprep.mubr.bf16.mxu0 %v3382_v43  ;;  %2028 = vmatprep.mubr.bf16.mxu1 %v3382_v43  ;;  %v3981_v47 = vadd.s32 %v3971_v62, %v3958_v5  ;;  %v4003_v1 = vadd.s32 %v3971_v62, %v2143_v53  ;;  %v4006_v4 = vadd.s32 %v3971_v62, %v2144_v54 }
 0x27a   : > { %v4042_v40 = vadd.s32 %v3971_v62, %v2146_v13 }
 0x27b   : > { %vm2206_vm4 = vcmp.lt.s32.totalorder %v3981_v47, 500  ;;  %vm2208_vm6 = vcmp.lt.s32.totalorder %v4003_v1, 500  ;;  %vm2209_vm7 = vcmp.lt.s32.totalorder %v4006_v4, 500 }
 0x27c   : > { %vm2211_vm9 = vcmp.lt.s32.totalorder %v4042_v40, 500 }
 0x280   : > { %1836 = vmatmul.mubr.bf16.gmra.mrb[116].mxu0 %v3798_v59  ;;  %2029 = vmatmul.mubr.bf16.gmra.mrb[116].mxu1 %v3798_v59  ;;  %v2142_v59 = vadd.s32 8, %v3958_v5 }
 0x281   : > { %1845 = vmatprep.mubr.bf16.mxu0 %v3382_v43  ;;  %2038 = vmatprep.mubr.bf16.mxu1 %v3382_v43 }
 0x282   : > { %v3986_v49 = vadd.s32 %v3971_v62, %v2142_v59 }
 0x284   : > { %vm2207_vm5 = vcmp.lt.s32.totalorder %v3986_v49, 500 }
 0x288   : > { %1846 = vmatmul.mubr.bf16.gmra.mrb[120].mxu0 %v3836_v37  ;;  %2039 = vmatmul.mubr.bf16.gmra.mrb[120].mxu1 %v3836_v37  ;;  %v1021_v37 = vsub.s32 3, %v3958_v5 }
 0x289   : > { %1855 = vmatprep.mubr.bf16.mxu0 %v3382_v43  ;;  %2048 = vmatprep.mubr.bf16.mxu1 %v3382_v43 }
 0x28a   : > { %v3990_v51 = vrot.slane %v1005_v34, %v1021_v37 }
 0x290   : > { %1856 = vmatmul.mubr.bf16.gmra.mrb[124].mxu0 %v3834_v36  ;;  %2049 = vmatmul.mubr.bf16.gmra.mrb[124].mxu1 %v3834_v36  ;;  %v1013_v36 = vsub.s32 1, %v3958_v5 }
 0x291   : > { %1865 = vmatprep.mubr.bf16.mxu0 %v3382_v43  ;;  %2058 = vmatprep.mubr.bf16.mxu1 %v3382_v43 }
 0x292   : > { %v3988_v50 = vrot.slane %v1005_v34, %v1013_v36  ;;  %v2147_v34 = vadd.s32 48, %v3958_v5 }
 0x298   : > { %1866 = vmatmul.mubr.bf16.gmra.mrb[128].mxu0 %v3848_v58  ;;  %2059 = vmatmul.mubr.bf16.gmra.mrb[128].mxu1 %v3848_v58 }
 0x299   : > { %1875 = vmatprep.mubr.bf16.mxu0 %v3382_v43  ;;  %2068 = vmatprep.mubr.bf16.mxu1 %v3382_v43 }
 0x2a0   : > { %1876 = vmatmul.mubr.bf16.gmra.mrb[132].mxu0 %v3846_v57  ;;  %2069 = vmatmul.mubr.bf16.gmra.mrb[132].mxu1 %v3846_v57 }
 0x2a1   : > { %1885 = vmatprep.mubr.bf16.mxu0 %v3382_v43  ;;  %2078 = vmatprep.mubr.bf16.mxu1 %v3382_v43 }
 0x2a8   : > { %1886 = vmatmul.mubr.bf16.gmra.mrb[136].mxu0 %v3860_v12  ;;  %2079 = vmatmul.mubr.bf16.gmra.mrb[136].mxu1 %v3860_v12  ;;  %v2145_v12 = vadd.s32 32, %v3958_v5 }
 0x2a9   : > { %1895 = vmatprep.mubr.bf16.mxu0 %v3382_v43  ;;  %2088 = vmatprep.mubr.bf16.mxu1 %v3382_v43 }
 0x2aa   : > { %v4039_v39 = vadd.s32 %v3971_v62, %v2145_v12 }
 0x2ab   : > { %v1401_v55 = vpop.f32.mrb[32].mxu0  ;;  %v1594_v56 = vpop.f32.mrb[32].mxu1 }
 0x2ac   : > { %v1402_v57 = vadd.f32 %v1401_v55, %v3975_v46  ;;  %v1595_v58 = vadd.f32 %v1594_v56, %v3983_v48  ;;  %v1403_v60 = vpop.f32.mrb[33].mxu0  ;;  %v1596_v61 = vpop.f32.mrb[33].mxu1  ;;  %vm2210_vm8 = vcmp.lt.s32.totalorder %v4039_v39, 500 }
 0x2ad   : > { %v1404_v63 = vadd.f32 %v1403_v60, %v3988_v50  ;;  %v1597_v0 = vadd.f32 %v1596_v61, %v3990_v51  ;;  %v1405_v2 = vpop.f32.mrb[34].mxu0  ;;  %v1598_v3 = vpop.f32.mrb[34].mxu1 }
 0x2ae   : > { %v1406_v7 = vadd.f32 %v1405_v2, %v3975_v46  ;;  %v1599_v8 = vadd.f32 %v1598_v3, %v3983_v48  ;;  %v1407_v9 = vpop.f32.mrb[35].mxu0  ;;  %v1600_v10 = vpop.f32.mrb[35].mxu1  ;;  %v2302_v14 = vsel %vm2206_vm4, %v1402_v57, -inf  ;;  %v2304_v15 = vsel %vm2206_vm4, %v1595_v58, -inf }
 0x2af   : > { %v1408_v16 = vadd.f32 %v1407_v9, %v3988_v50  ;;  %v1601_v17 = vadd.f32 %v1600_v10, %v3990_v51  ;;  %v2303_v18 = vsel %vm2206_vm4, %v1404_v63, -inf  ;;  %v2305_v19 = vsel %vm2206_vm4, %v1597_v0, -inf }
 0x2b0   : > { %v2310_v20 = vsel %vm2207_vm5, %v1406_v7, -inf  ;;  %v2312_v21 = vsel %vm2207_vm5, %v1599_v8, -inf  ;;  %1896 = vmatmul.mubr.bf16.gmra.mrb[140].mxu0 %v3858_v11  ;;  %2089 = vmatmul.mubr.bf16.gmra.mrb[140].mxu1 %v3858_v11 }
 0x2b1   : > { %v2558_v22 = vmax.f32 %v2302_v14, %v2310_v20  ;;  %v2632_v23 = vmax.f32 %v2304_v15, %v2312_v21  ;;  %v2311_v24 = vsel %vm2207_vm5, %v1408_v16, -inf  ;;  %v2313_v28 = vsel %vm2207_vm5, %v1601_v17, -inf  ;;  %1905 = vmatprep.mubr.bf16.mxu0 %v3382_v43  ;;  %2098 = vmatprep.mubr.bf16.mxu1 %v3382_v43 }
 0x2b2   : > { %v2595_v29 = vmax.f32 %v2303_v18, %v2311_v24  ;;  %v2669_v30 = vmax.f32 %v2305_v19, %v2313_v28  ;;  %v4075_v14 = vadd.s32 %v3971_v62, %v2147_v34  ;;  %v4078_v15 = vadd.s32 %v3971_v62, %v2148_v35 }
 0x2b3   : > { %v1411_v31 = vpop.f32.mrb[36].mxu0  ;;  %v1604_v32 = vpop.f32.mrb[36].mxu1 }
 0x2b4   : > { %v1412_v11 = vadd.f32 %v1411_v31, %v3975_v46  ;;  %v1605_v33 = vadd.f32 %v1604_v32, %v3983_v48  ;;  %v1413_v25 = vpop.f32.mrb[37].mxu0  ;;  %v1606_v38 = vpop.f32.mrb[37].mxu1  ;;  %vm2212_vm10 = vcmp.lt.s32.totalorder %v4075_v14, 500  ;;  %vm2213_vm11 = vcmp.lt.s32.totalorder %v4078_v15, 500 }
 0x2b5   : > { %v1414_v41 = vadd.f32 %v1413_v25, %v3988_v50  ;;  %v1607_v42 = vadd.f32 %v1606_v38, %v3990_v51  ;;  %v1415_v52 = vpop.f32.mrb[38].mxu0  ;;  %v1608_v6 = vpop.f32.mrb[38].mxu1 }
 0x2b6   : > { %v2318_v59 = vsel %vm2208_vm6, %v1412_v11, -inf  ;;  %v2320_v36 = vsel %vm2208_vm6, %v1605_v33, -inf  ;;  %v1416_v37 = vadd.f32 %v1415_v52, %v3975_v46  ;;  %v1609_v53 = vadd.f32 %v1608_v6, %v3983_v48  ;;  %v1417_v54 = vpop.f32.mrb[39].mxu0  ;;  %v1610_v55 = vpop.f32.mrb[39].mxu1 }
 0x2b7   : > { %v2559_v56 = vmax.f32 %v2558_v22, %v2318_v59  ;;  %v2633_v57 = vmax.f32 %v2632_v23, %v2320_v36  ;;  %v2319_v58 = vsel %vm2208_vm6, %v1414_v41, -inf  ;;  %v2321_v60 = vsel %vm2208_vm6, %v1607_v42, -inf }
 0x2b8   : > { %v2596_v61 = vmax.f32 %v2595_v29, %v2319_v58  ;;  %v2670_v63 = vmax.f32 %v2669_v30, %v2321_v60  ;;  %v2326_v0 = vsel %vm2209_vm7, %v1416_v37, -inf  ;;  %v2328_v2 = vsel %vm2209_vm7, %v1609_v53, -inf  ;;  %1906 = vmatmul.mubr.bf16.gmra.mrb[144].mxu0 %v3872_v27  ;;  %2099 = vmatmul.mubr.bf16.gmra.mrb[144].mxu1 %v3872_v27 }
 0x2b9   : > { %v2560_v3 = vmax.f32 %v2559_v56, %v2326_v0  ;;  %v2634_v7 = vmax.f32 %v2633_v57, %v2328_v2  ;;  %v1418_v8 = vadd.f32 %v1417_v54, %v3988_v50  ;;  %v1611_v9 = vadd.f32 %v1610_v55, %v3990_v51  ;;  %1915 = vmatprep.mubr.bf16.mxu0 %v3382_v43 }
 0x2ba   : > { %2108 = vmatprep.mubr.bf16.mxu1 %v3382_v43  ;;  %v2149_v29 = vadd.s32 64, %v3958_v5  ;;  %v2150_v30 = vadd.s32 72, %v3958_v5 }
 0x2bb   : > { %v2327_v10 = vsel %vm2209_vm7, %v1418_v8, -inf  ;;  %v2329_v27 = vsel %vm2209_vm7, %v1611_v9, -inf  ;;  %v1421_v12 = vpop.f32.mrb[40].mxu0  ;;  %v1614_v13 = vpop.f32.mrb[40].mxu1 }
 0x2bc   : > { %v2597_v16 = vmax.f32 %v2596_v61, %v2327_v10  ;;  %v2671_v17 = vmax.f32 %v2670_v63, %v2329_v27  ;;  %v1422_v18 = vadd.f32 %v1421_v12, %v3975_v46  ;;  %v1615_v19 = vadd.f32 %v1614_v13, %v3983_v48  ;;  %v1423_v20 = vpop.f32.mrb[41].mxu0  ;;  %v1616_v21 = vpop.f32.mrb[41].mxu1 }
 0x2bd   : > { %v1424_v22 = vadd.f32 %v1423_v20, %v3988_v50  ;;  %v1617_v23 = vadd.f32 %v1616_v21, %v3990_v51  ;;  %v1425_v24 = vpop.f32.mrb[42].mxu0  ;;  %v1618_v28 = vpop.f32.mrb[42].mxu1  ;;  %v4113_v60 = vadd.s32 %v3971_v62, %v2149_v29  ;;  %v4116_v61 = vadd.s32 %v3971_v62, %v2150_v30 }
 0x2be   : > { %v2334_v31 = vsel %vm2210_vm8, %v1422_v18, -inf  ;;  %v2336_v32 = vsel %vm2210_vm8, %v1615_v19, -inf  ;;  %v1426_v11 = vadd.f32 %v1425_v24, %v3975_v46  ;;  %v1619_v33 = vadd.f32 %v1618_v28, %v3983_v48  ;;  %v1427_v25 = vpop.f32.mrb[43].mxu0  ;;  %v1620_v38 = vpop.f32.mrb[43].mxu1 }
 0x2bf   : > { %v2561_v41 = vmax.f32 %v2560_v3, %v2334_v31  ;;  %v2635_v42 = vmax.f32 %v2634_v7, %v2336_v32  ;;  %v2335_v52 = vsel %vm2210_vm8, %v1424_v22, -inf  ;;  %v2337_v6 = vsel %vm2210_vm8, %v1617_v23, -inf }
 0x2c0   : > { %v2598_v34 = vmax.f32 %v2597_v16, %v2335_v52  ;;  %v2672_v35 = vmax.f32 %v2671_v17, %v2337_v6  ;;  %v2342_v59 = vsel %vm2211_vm9, %v1426_v11, -inf  ;;  %v2344_v36 = vsel %vm2211_vm9, %v1619_v33, -inf  ;;  %1916 = vmatmul.mubr.bf16.gmra.mrb[148].mxu0 %v3870_v26  ;;  %2109 = vmatmul.mubr.bf16.gmra.mrb[148].mxu1 %v3870_v26 }
 0x2c1   : > { %v2562_v37 = vmax.f32 %v2561_v41, %v2342_v59  ;;  %v2636_v53 = vmax.f32 %v2635_v42, %v2344_v36  ;;  %v1428_v54 = vadd.f32 %v1427_v25, %v3988_v50  ;;  %v1621_v55 = vadd.f32 %v1620_v38, %v3990_v51  ;;  %1925 = vmatprep.mubr.bf16.mxu0 %v3382_v43 }
 0x2c2   : > { %2118 = vmatprep.mubr.bf16.mxu1 %v3382_v43  ;;  %v2151_v13 = vadd.s32 80, %v3958_v5  ;;  %v2152_v16 = vadd.s32 88, %v3958_v5  ;;  %vm2214_vm12 = vcmp.lt.s32.totalorder %v4113_v60, 500  ;;  %vm2215_vm13 = vcmp.lt.s32.totalorder %v4116_v61, 500 }
 0x2c3   : > { %v2343_v56 = vsel %vm2211_vm9, %v1428_v54, -inf  ;;  %v2345_v26 = vsel %vm2211_vm9, %v1621_v55, -inf  ;;  %v1431_v57 = vpop.f32.mrb[44].mxu0  ;;  %v1624_v58 = vpop.f32.mrb[44].mxu1 }
 0x2c4   : > { %v2599_v63 = vmax.f32 %v2598_v34, %v2343_v56  ;;  %v2673_v0 = vmax.f32 %v2672_v35, %v2345_v26  ;;  %v1432_v2 = vadd.f32 %v1431_v57, %v3975_v46  ;;  %v1625_v3 = vadd.f32 %v1624_v58, %v3983_v48  ;;  %v1433_v7 = vpop.f32.mrb[45].mxu0  ;;  %v1626_v8 = vpop.f32.mrb[45].mxu1 }
 0x2c5   : > { %v1434_v9 = vadd.f32 %v1433_v7, %v3988_v50  ;;  %v1627_v10 = vadd.f32 %v1626_v8, %v3990_v51  ;;  %v1435_v27 = vpop.f32.mrb[46].mxu0  ;;  %v1628_v12 = vpop.f32.mrb[46].mxu1  ;;  %v4151_v34 = vadd.s32 %v3971_v62, %v2151_v13  ;;  %v4154_v35 = vadd.s32 %v3971_v62, %v2152_v16 }
 0x2c6   : > { %v2350_v17 = vsel %vm2212_vm10, %v1432_v2, -inf  ;;  %v2352_v18 = vsel %vm2212_vm10, %v1625_v3, -inf  ;;  %v1436_v19 = vadd.f32 %v1435_v27, %v3975_v46  ;;  %v1629_v20 = vadd.f32 %v1628_v12, %v3983_v48  ;;  %v1437_v21 = vpop.f32.mrb[47].mxu0  ;;  %v1630_v22 = vpop.f32.mrb[47].mxu1 }
 0x2c7   : > { %v2563_v23 = vmax.f32 %v2562_v37, %v2350_v17  ;;  %v2637_v24 = vmax.f32 %v2636_v53, %v2352_v18  ;;  %v2351_v28 = vsel %vm2212_vm10, %v1434_v9, -inf  ;;  %v2353_v29 = vsel %vm2212_vm10, %v1627_v10, -inf }
 0x2c8   : > { %v2600_v30 = vmax.f32 %v2599_v63, %v2351_v28  ;;  %v2674_v31 = vmax.f32 %v2673_v0, %v2353_v29  ;;  %v2358_v32 = vsel %vm2213_vm11, %v1436_v19, -inf  ;;  %v2360_v11 = vsel %vm2213_vm11, %v1629_v20, -inf  ;;  %1926 = vmatmul.mubr.bf16.gmra.mrb[152].mxu0 %v3884_v45  ;;  %2119 = vmatmul.mubr.bf16.gmra.mrb[152].mxu1 %v3884_v45 }
 0x2c9   : > { %v2564_v33 = vmax.f32 %v2563_v23, %v2358_v32  ;;  %v2638_v25 = vmax.f32 %v2637_v24, %v2360_v11  ;;  %v1438_v38 = vadd.f32 %v1437_v21, %v3988_v50  ;;  %v1631_v41 = vadd.f32 %v1630_v22, %v3990_v51  ;;  %1935 = vmatprep.mubr.bf16.mxu0 %v3382_v43 }
 0x2ca   : > { %2128 = vmatprep.mubr.bf16.mxu1 %v3382_v43  ;;  %v2153_v58 = vadd.s32 96, %v3958_v5  ;;  %v2154_v63 = vadd.s32 104, %v3958_v5  ;;  %vm2216_vm14 = vcmp.lt.s32.totalorder %v4151_v34, 500  ;;  %vm2217_vm15 = vcmp.lt.s32.totalorder %v4154_v35, 500 }
 0x2cb   : > { %v2359_v42 = vsel %vm2213_vm11, %v1438_v38, -inf  ;;  %v2361_v45 = vsel %vm2213_vm11, %v1631_v41, -inf  ;;  %v1441_v52 = vpop.f32.mrb[48].mxu0  ;;  %v1634_v6 = vpop.f32.mrb[48].mxu1 }
 0x2cc   : > { %v2601_v59 = vmax.f32 %v2600_v30, %v2359_v42  ;;  %v2675_v36 = vmax.f32 %v2674_v31, %v2361_v45  ;;  %v1442_v37 = vadd.f32 %v1441_v52, %v3975_v46  ;;  %v1635_v43 = vadd.f32 %v1634_v6, %v3983_v48  ;;  %v1443_v53 = vpop.f32.mrb[49].mxu0  ;;  %v1636_v54 = vpop.f32.mrb[49].mxu1 }
 0x2cd   : > { %v1444_v55 = vadd.f32 %v1443_v53, %v3988_v50  ;;  %v1637_v56 = vadd.f32 %v1636_v54, %v3990_v51  ;;  %v1445_v26 = vpop.f32.mrb[50].mxu0  ;;  %v1638_v57 = vpop.f32.mrb[50].mxu1  ;;  %v4190_v31 = vadd.s32 %v3971_v62, %v2154_v63 }
 0x2ce   : > { %v2366_v0 = vsel %vm2214_vm12, %v1442_v37, -inf  ;;  %v2368_v2 = vsel %vm2214_vm12, %v1635_v43, -inf  ;;  %v1446_v3 = vadd.f32 %v1445_v26, %v3975_v46  ;;  %v1639_v7 = vadd.f32 %v1638_v57, %v3983_v48  ;;  %v1447_v8 = vpop.f32.mrb[51].mxu0  ;;  %v1640_v9 = vpop.f32.mrb[51].mxu1 }
 0x2cf   : > { %v2565_v10 = vmax.f32 %v2564_v33, %v2366_v0  ;;  %v2639_v27 = vmax.f32 %v2638_v25, %v2368_v2  ;;  %v2367_v12 = vsel %vm2214_vm12, %v1444_v55, -inf  ;;  %v2369_v13 = vsel %vm2214_vm12, %v1637_v56, -inf }
 0x2d0   : > { %v2602_v16 = vmax.f32 %v2601_v59, %v2367_v12  ;;  %v2676_v17 = vmax.f32 %v2675_v36, %v2369_v13  ;;  %v2374_v18 = vsel %vm2215_vm13, %v1446_v3, -inf  ;;  %v2376_v19 = vsel %vm2215_vm13, %v1639_v7, -inf  ;;  %1936 = vmatmul.mubr.bf16.gmra.mrb[156].mxu0 %v3882_v44  ;;  %2129 = vmatmul.mubr.bf16.gmra.mrb[156].mxu1 %v3882_v44 }
 0x2d1   : > { %v2566_v20 = vmax.f32 %v2565_v10, %v2374_v18  ;;  %v2640_v21 = vmax.f32 %v2639_v27, %v2376_v19  ;;  %v1448_v22 = vadd.f32 %v1447_v8, %v3988_v50  ;;  %v1641_v23 = vadd.f32 %v1640_v9, %v3990_v51 }
 0x2d2   : > { %v4187_v44 = vadd.s32 %v3971_v62, %v2153_v58  ;;  %v2155_v59 = vadd.s32 112, %v3958_v5  ;;  %v2156_v36 = vadd.s32 120, %v3958_v5  ;;  %vm4993_vm1 = vcmp.lt.s32.totalorder %v4190_v31, 500 }
 0x2d3   : > { %v2375_v24 = vsel %vm2215_vm13, %v1448_v22, -inf  ;;  %v2377_v28 = vsel %vm2215_vm13, %v1641_v23, -inf  ;;  %v1451_v29 = vpop.f32.mrb[52].mxu0  ;;  %v1644_v30 = vpop.f32.mrb[52].mxu1 }
 0x2d4   : > { %v2603_v32 = vmax.f32 %v2602_v16, %v2375_v24  ;;  %v2677_v11 = vmax.f32 %v2676_v17, %v2377_v28  ;;  %v1452_v33 = vadd.f32 %v1451_v29, %v3975_v46  ;;  %v1645_v25 = vadd.f32 %v1644_v30, %v3983_v48  ;;  %v1453_v38 = vpop.f32.mrb[53].mxu0  ;;  %v1646_v41 = vpop.f32.mrb[53].mxu1 }
 0x2d5   : > { %v1454_v42 = vadd.f32 %v1453_v38, %v3988_v50  ;;  %v1647_v45 = vadd.f32 %v1646_v41, %v3990_v51  ;;  %v1455_v52 = vpop.f32.mrb[54].mxu0  ;;  %v1648_v6 = vpop.f32.mrb[54].mxu1  ;;  %vm4994_vm0 = vcmp.lt.s32.totalorder %v4187_v44, 500  ;;  %v4221_v18 = vadd.s32 %v3971_v62, %v2155_v59 }
 0x2d6   : > { %v2382_v37 = vsel %vm2216_vm14, %v1452_v33, -inf  ;;  %v2384_v43 = vsel %vm2216_vm14, %v1645_v25, -inf  ;;  %v1456_v53 = vadd.f32 %v1455_v52, %v3975_v46  ;;  %v1649_v54 = vadd.f32 %v1648_v6, %v3983_v48  ;;  %v1457_v55 = vpop.f32.mrb[55].mxu0  ;;  %v1650_v56 = vpop.f32.mrb[55].mxu1 }
 0x2d7   : > { %v2567_v26 = vmax.f32 %v2566_v20, %v2382_v37  ;;  %v2641_v57 = vmax.f32 %v2640_v21, %v2384_v43  ;;  %v2383_v58 = vsel %vm2216_vm14, %v1454_v42, -inf  ;;  %v2385_v63 = vsel %vm2216_vm14, %v1647_v45, -inf }
 0x2d8   : > { %v2604_v0 = vmax.f32 %v2603_v32, %v2383_v58  ;;  %v2678_v2 = vmax.f32 %v2677_v11, %v2385_v63  ;;  %v2390_v3 = vsel %vm2217_vm15, %v1456_v53, -inf  ;;  %v2392_v7 = vsel %vm2217_vm15, %v1649_v54, -inf }
 0x2d9   : > { %v2568_v8 = vmax.f32 %v2567_v26, %v2390_v3  ;;  %v2642_v9 = vmax.f32 %v2641_v57, %v2392_v7  ;;  %v1458_v10 = vadd.f32 %v1457_v55, %v3988_v50  ;;  %v1651_v27 = vadd.f32 %v1650_v56, %v3990_v51 }
 0x2da   : > { %v4224_v19 = vadd.s32 %v3971_v62, %v2156_v36  ;;  %v2157_v33 = vadd.s32 128, %v3958_v5  ;;  %v2158_v25 = vadd.s32 136, %v3958_v5  ;;  %vm4996_vm2 = vcmp.lt.s32.totalorder %v4221_v18, 500 }
 0x2db   : > { %v2391_v12 = vsel %vm2217_vm15, %v1458_v10, -inf  ;;  %v2393_v13 = vsel %vm2217_vm15, %v1651_v27, -inf  ;;  %v1461_v16 = vpop.f32.mrb[56].mxu0  ;;  %v1654_v17 = vpop.f32.mrb[56].mxu1 }
 0x2dc   : > { %v2605_v20 = vmax.f32 %v2604_v0, %v2391_v12  ;;  %v2679_v21 = vmax.f32 %v2678_v2, %v2393_v13  ;;  %v1462_v22 = vadd.f32 %v1461_v16, %v3975_v46  ;;  %v1655_v23 = vadd.f32 %v1654_v17, %v3983_v48  ;;  %v1463_v24 = vpop.f32.mrb[57].mxu0  ;;  %v1656_v28 = vpop.f32.mrb[57].mxu1 }
 0x2dd   : > { %v1464_v29 = vadd.f32 %v1463_v24, %v3988_v50  ;;  %v1657_v30 = vadd.f32 %v1656_v28, %v3990_v51  ;;  %v1465_v32 = vpop.f32.mrb[58].mxu0  ;;  %v1658_v11 = vpop.f32.mrb[58].mxu1  ;;  %vm4995_vm3 = vcmp.lt.s32.totalorder %v4224_v19, 500  ;;  %v2159_v24 = vadd.s32 144, %v3958_v5 }
 0x2de   : > { %v2398_v38 = vsel %vm4994_vm0, %v1462_v22, -inf  ;;  %v2400_v41 = vsel %vm4994_vm0, %v1655_v23, -inf  ;;  %v1466_v42 = vadd.f32 %v1465_v32, %v3975_v46  ;;  %v1659_v45 = vadd.f32 %v1658_v11, %v3983_v48  ;;  %v1467_v52 = vpop.f32.mrb[59].mxu0  ;;  %v1660_v6 = vpop.f32.mrb[59].mxu1 }
 0x2df   : > { %v2569_v59 = vmax.f32 %v2568_v8, %v2398_v38  ;;  %v2643_v36 = vmax.f32 %v2642_v9, %v2400_v41  ;;  %v2399_v37 = vsel %vm4994_vm0, %v1464_v29, -inf  ;;  %v2401_v43 = vsel %vm4994_vm0, %v1657_v30, -inf }
 0x2e0   : > { %v2606_v53 = vmax.f32 %v2605_v20, %v2399_v37  ;;  %v2680_v54 = vmax.f32 %v2679_v21, %v2401_v43  ;;  %v2406_v55 = vsel %vm4993_vm1, %v1466_v42, -inf  ;;  %v2408_v56 = vsel %vm4993_vm1, %v1659_v45, -inf }
 0x2e1   : > { %v2570_v26 = vmax.f32 %v2569_v59, %v2406_v55  ;;  %v2644_v57 = vmax.f32 %v2643_v36, %v2408_v56  ;;  %v1468_v58 = vadd.f32 %v1467_v52, %v3988_v50  ;;  %v1661_v63 = vadd.f32 %v1660_v6, %v3990_v51 }
 0x2e2   : > { %v4255_v8 = vadd.s32 %v3971_v62, %v2157_v33  ;;  %v4258_v9 = vadd.s32 %v3971_v62, %v2158_v25  ;;  %v2160_v28 = vadd.s32 152, %v3958_v5 }
 0x2e3   : > { %v2407_v0 = vsel %vm4993_vm1, %v1468_v58, -inf  ;;  %v2409_v2 = vsel %vm4993_vm1, %v1661_v63, -inf  ;;  %v1471_v3 = vpop.f32.mrb[60].mxu0  ;;  %v1664_v7 = vpop.f32.mrb[60].mxu1  ;;  %v4289_v58 = vadd.s32 %v3971_v62, %v2159_v24 }
 0x2e4   : > { %v2607_v10 = vmax.f32 %v2606_v53, %v2407_v0  ;;  %v2681_v27 = vmax.f32 %v2680_v54, %v2409_v2  ;;  %v1472_v12 = vadd.f32 %v1471_v3, %v3975_v46  ;;  %v1665_v13 = vadd.f32 %v1664_v7, %v3983_v48  ;;  %v1473_v16 = vpop.f32.mrb[61].mxu0  ;;  %v1666_v17 = vpop.f32.mrb[61].mxu1 }
 0x2e5   : > { %v1474_v20 = vadd.f32 %v1473_v16, %v3988_v50  ;;  %v1667_v21 = vadd.f32 %v1666_v17, %v3990_v51  ;;  %v1475_v22 = vpop.f32.mrb[62].mxu0  ;;  %v1668_v23 = vpop.f32.mrb[62].mxu1  ;;  %vm4998_vm1 = vcmp.lt.s32.totalorder %v4255_v8, 500  ;;  %vm4997_vm0 = vcmp.lt.s32.totalorder %v4258_v9, 500 }
 0x2e6   : > { %v2414_v29 = vsel %vm4996_vm2, %v1472_v12, -inf  ;;  %v2416_v30 = vsel %vm4996_vm2, %v1665_v13, -inf  ;;  %v1476_v32 = vadd.f32 %v1475_v22, %v3975_v46  ;;  %v1669_v11 = vadd.f32 %v1668_v23, %v3983_v48  ;;  %v1477_v33 = vpop.f32.mrb[63].mxu0  ;;  %v1670_v25 = vpop.f32.mrb[63].mxu1 }
 0x2e7   : > { %v2571_v38 = vmax.f32 %v2570_v26, %v2414_v29  ;;  %v2645_v41 = vmax.f32 %v2644_v57, %v2416_v30  ;;  %v2415_v42 = vsel %vm4996_vm2, %v1474_v20, -inf  ;;  %v2417_v45 = vsel %vm4996_vm2, %v1667_v21, -inf }
 0x2e8   : > { %v2608_v52 = vmax.f32 %v2607_v10, %v2415_v42  ;;  %v2682_v6 = vmax.f32 %v2681_v27, %v2417_v45  ;;  %v2422_v59 = vsel %vm4995_vm3, %v1476_v32, -inf  ;;  %v2424_v36 = vsel %vm4995_vm3, %v1669_v11, -inf }
 0x2e9   : > { %v2572_v37 = vmax.f32 %v2571_v38, %v2422_v59  ;;  %v2646_v43 = vmax.f32 %v2645_v41, %v2424_v36  ;;  %v1478_v53 = vadd.f32 %v1477_v33, %v3988_v50  ;;  %v1671_v54 = vadd.f32 %v1670_v25, %v3990_v51 }
 0x2ea   : > { %v4292_v63 = vadd.s32 %v3971_v62, %v2160_v28  ;;  %v2161_v20 = vadd.s32 160, %v3958_v5  ;;  %v2162_v21 = vadd.s32 168, %v3958_v5 }
 0x2eb   : > { %v2423_v55 = vsel %vm4995_vm3, %v1478_v53, -inf  ;;  %v2425_v56 = vsel %vm4995_vm3, %v1671_v54, -inf  ;;  %v1481_v26 = vpop.f32.mrb[64].mxu0  ;;  %v1674_v57 = vpop.f32.mrb[64].mxu1  ;;  %vm5000_vm3 = vcmp.lt.s32.totalorder %v4289_v58, 500 }
 0x2ec   : > { %v2609_v0 = vmax.f32 %v2608_v52, %v2423_v55  ;;  %v2683_v2 = vmax.f32 %v2682_v6, %v2425_v56  ;;  %v1482_v3 = vadd.f32 %v1481_v26, %v3975_v46  ;;  %v1675_v7 = vadd.f32 %v1674_v57, %v3983_v48  ;;  %v1483_v10 = vpop.f32.mrb[65].mxu0  ;;  %v1676_v27 = vpop.f32.mrb[65].mxu1 }
 0x2ed   : > { %v1484_v12 = vadd.f32 %v1483_v10, %v3988_v50  ;;  %v1677_v13 = vadd.f32 %v1676_v27, %v3990_v51  ;;  %v1485_v16 = vpop.f32.mrb[66].mxu0  ;;  %v1678_v17 = vpop.f32.mrb[66].mxu1  ;;  %vm4999_vm2 = vcmp.lt.s32.totalorder %v4292_v63, 500  ;;  %v4323_v55 = vadd.s32 %v3971_v62, %v2161_v20 }
 0x2ee   : > { %v2430_v22 = vsel %vm4998_vm1, %v1482_v3, -inf  ;;  %v2432_v23 = vsel %vm4998_vm1, %v1675_v7, -inf  ;;  %v1486_v24 = vadd.f32 %v1485_v16, %v3975_v46  ;;  %v1679_v28 = vadd.f32 %v1678_v17, %v3983_v48  ;;  %v1487_v29 = vpop.f32.mrb[67].mxu0  ;;  %v1680_v30 = vpop.f32.mrb[67].mxu1 }
 0x2ef   : > { %v2573_v32 = vmax.f32 %v2572_v37, %v2430_v22  ;;  %v2647_v11 = vmax.f32 %v2646_v43, %v2432_v23  ;;  %v2431_v33 = vsel %vm4998_vm1, %v1484_v12, -inf  ;;  %v2433_v25 = vsel %vm4998_vm1, %v1677_v13, -inf }
 0x2f0   : > { %v2610_v38 = vmax.f32 %v2609_v0, %v2431_v33  ;;  %v2684_v41 = vmax.f32 %v2683_v2, %v2433_v25  ;;  %v2438_v42 = vsel %vm4997_vm0, %v1486_v24, -inf  ;;  %v2440_v45 = vsel %vm4997_vm0, %v1679_v28, -inf }
 0x2f1   : > { %v2574_v52 = vmax.f32 %v2573_v32, %v2438_v42  ;;  %v2648_v6 = vmax.f32 %v2647_v11, %v2440_v45  ;;  %v1488_v59 = vadd.f32 %v1487_v29, %v3988_v50  ;;  %v1681_v36 = vadd.f32 %v1680_v30, %v3990_v51 }
 0x2f2   : > { %v4326_v56 = vadd.s32 %v3971_v62, %v2162_v21  ;;  %v2163_v16 = vadd.s32 176, %v3958_v5  ;;  %v2164_v17 = vadd.s32 184, %v3958_v5 }
 0x2f3   : > { %v2439_v37 = vsel %vm4997_vm0, %v1488_v59, -inf  ;;  %v2441_v43 = vsel %vm4997_vm0, %v1681_v36, -inf  ;;  %v1491_v53 = vpop.f32.mrb[68].mxu0  ;;  %v1684_v54 = vpop.f32.mrb[68].mxu1  ;;  %vm5002_vm0 = vcmp.lt.s32.totalorder %v4323_v55, 500 }
 0x2f4   : > { %v2611_v26 = vmax.f32 %v2610_v38, %v2439_v37  ;;  %v2685_v57 = vmax.f32 %v2684_v41, %v2441_v43  ;;  %v1492_v0 = vadd.f32 %v1491_v53, %v3975_v46  ;;  %v1685_v2 = vadd.f32 %v1684_v54, %v3983_v48  ;;  %v1493_v3 = vpop.f32.mrb[69].mxu0  ;;  %v1686_v7 = vpop.f32.mrb[69].mxu1 }
 0x2f5   : > { %v1494_v10 = vadd.f32 %v1493_v3, %v3988_v50  ;;  %v1687_v27 = vadd.f32 %v1686_v7, %v3990_v51  ;;  %v1495_v12 = vpop.f32.mrb[70].mxu0  ;;  %v1688_v13 = vpop.f32.mrb[70].mxu1  ;;  %vm5001_vm1 = vcmp.lt.s32.totalorder %v4326_v56, 500  ;;  %v4357_v53 = vadd.s32 %v3971_v62, %v2163_v16 }
 0x2f6   : > { %v2446_v20 = vsel %vm5000_vm3, %v1492_v0, -inf  ;;  %v2448_v21 = vsel %vm5000_vm3, %v1685_v2, -inf  ;;  %v1496_v22 = vadd.f32 %v1495_v12, %v3975_v46  ;;  %v1689_v23 = vadd.f32 %v1688_v13, %v3983_v48  ;;  %v1497_v24 = vpop.f32.mrb[71].mxu0  ;;  %v1690_v28 = vpop.f32.mrb[71].mxu1 }
 0x2f7   : > { %v2575_v29 = vmax.f32 %v2574_v52, %v2446_v20  ;;  %v2649_v30 = vmax.f32 %v2648_v6, %v2448_v21  ;;  %v2447_v32 = vsel %vm5000_vm3, %v1494_v10, -inf  ;;  %v2449_v11 = vsel %vm5000_vm3, %v1687_v27, -inf }
 0x2f8   : > { %v2612_v33 = vmax.f32 %v2611_v26, %v2447_v32  ;;  %v2686_v25 = vmax.f32 %v2685_v57, %v2449_v11  ;;  %v2454_v38 = vsel %vm4999_vm2, %v1496_v22, -inf  ;;  %v2456_v41 = vsel %vm4999_vm2, %v1689_v23, -inf }
 0x2f9   : > { %v2576_v42 = vmax.f32 %v2575_v29, %v2454_v38  ;;  %v2650_v45 = vmax.f32 %v2649_v30, %v2456_v41  ;;  %v1498_v59 = vadd.f32 %v1497_v24, %v3988_v50  ;;  %v1691_v52 = vadd.f32 %v1690_v28, %v3990_v51 }
 0x2fa   : > { %v4360_v54 = vadd.s32 %v3971_v62, %v2164_v17  ;;  %v2165_v16 = vadd.s32 192, %v3958_v5  ;;  %v2166_v20 = vadd.s32 200, %v3958_v5 }
 0x2fb   : > { %v2455_v6 = vsel %vm4999_vm2, %v1498_v59, -inf  ;;  %v2457_v36 = vsel %vm4999_vm2, %v1691_v52, -inf  ;;  %v1501_v37 = vpop.f32.mrb[72].mxu0  ;;  %v1694_v43 = vpop.f32.mrb[72].mxu1  ;;  %vm5004_vm2 = vcmp.lt.s32.totalorder %v4357_v53, 500 }
 0x2fc   : > { %v2613_v26 = vmax.f32 %v2612_v33, %v2455_v6  ;;  %v2687_v57 = vmax.f32 %v2686_v25, %v2457_v36  ;;  %v1502_v0 = vadd.f32 %v1501_v37, %v3975_v46  ;;  %v1695_v2 = vadd.f32 %v1694_v43, %v3983_v48  ;;  %v1503_v3 = vpop.f32.mrb[73].mxu0  ;;  %v1696_v7 = vpop.f32.mrb[73].mxu1 }
 0x2fd   : > { %v1504_v10 = vadd.f32 %v1503_v3, %v3988_v50  ;;  %v1697_v27 = vadd.f32 %v1696_v7, %v3990_v51  ;;  %v1505_v12 = vpop.f32.mrb[74].mxu0  ;;  %v1698_v13 = vpop.f32.mrb[74].mxu1  ;;  %vm5003_vm3 = vcmp.lt.s32.totalorder %v4360_v54, 500 }
 0x2fe   : > { %v2462_v17 = vsel %vm5002_vm0, %v1502_v0, -inf  ;;  %v2464_v21 = vsel %vm5002_vm0, %v1695_v2, -inf  ;;  %v1506_v22 = vadd.f32 %v1505_v12, %v3975_v46  ;;  %v1699_v23 = vadd.f32 %v1698_v13, %v3983_v48  ;;  %v1507_v24 = vpop.f32.mrb[75].mxu0  ;;  %v1700_v28 = vpop.f32.mrb[75].mxu1 }
 0x2ff   : > { %v2577_v29 = vmax.f32 %v2576_v42, %v2462_v17  ;;  %v2651_v30 = vmax.f32 %v2650_v45, %v2464_v21  ;;  %v2463_v32 = vsel %vm5002_vm0, %v1504_v10, -inf  ;;  %v2465_v11 = vsel %vm5002_vm0, %v1697_v27, -inf }
 0x300   : > { %v2614_v33 = vmax.f32 %v2613_v26, %v2463_v32  ;;  %v2688_v25 = vmax.f32 %v2687_v57, %v2465_v11  ;;  %v2470_v38 = vsel %vm5001_vm1, %v1506_v22, -inf  ;;  %v2472_v41 = vsel %vm5001_vm1, %v1699_v23, -inf }
 0x301   : > { %v2578_v59 = vmax.f32 %v2577_v29, %v2470_v38  ;;  %v2652_v52 = vmax.f32 %v2651_v30, %v2472_v41  ;;  %v1508_v6 = vadd.f32 %v1507_v24, %v3988_v50  ;;  %v1701_v42 = vadd.f32 %v1700_v28, %v3990_v51 }
 0x302   : > { %v4391_v26 = vadd.s32 %v3971_v62, %v2165_v16  ;;  %v4394_v57 = vadd.s32 %v3971_v62, %v2166_v20  ;;  %v2167_v16 = vadd.s32 208, %v3958_v5  ;;  %v2168_v22 = vadd.s32 216, %v3958_v5 }
 0x303   : > { %v2471_v45 = vsel %vm5001_vm1, %v1508_v6, -inf  ;;  %v2473_v36 = vsel %vm5001_vm1, %v1701_v42, -inf  ;;  %v1511_v37 = vpop.f32.mrb[76].mxu0  ;;  %v1704_v43 = vpop.f32.mrb[76].mxu1 }
 0x304   : > { %v2615_v0 = vmax.f32 %v2614_v33, %v2471_v45  ;;  %v2689_v2 = vmax.f32 %v2688_v25, %v2473_v36  ;;  %v1512_v3 = vadd.f32 %v1511_v37, %v3975_v46  ;;  %v1705_v7 = vadd.f32 %v1704_v43, %v3983_v48  ;;  %v1513_v10 = vpop.f32.mrb[77].mxu0  ;;  %v1706_v27 = vpop.f32.mrb[77].mxu1 }
 0x305   : > { %v1514_v12 = vadd.f32 %v1513_v10, %v3988_v50  ;;  %v1707_v13 = vadd.f32 %v1706_v27, %v3990_v51  ;;  %v1515_v17 = vpop.f32.mrb[78].mxu0  ;;  %v1708_v21 = vpop.f32.mrb[78].mxu1  ;;  %vm5006_vm1 = vcmp.lt.s32.totalorder %v4391_v26, 500  ;;  %vm5005_vm0 = vcmp.lt.s32.totalorder %v4394_v57, 500 }
 0x306   : > { %v2478_v20 = vsel %vm5004_vm2, %v1512_v3, -inf  ;;  %v2480_v23 = vsel %vm5004_vm2, %v1705_v7, -inf  ;;  %v1516_v24 = vadd.f32 %v1515_v17, %v3975_v46  ;;  %v1709_v28 = vadd.f32 %v1708_v21, %v3983_v48  ;;  %v1517_v29 = vpop.f32.mrb[79].mxu0  ;;  %v1710_v30 = vpop.f32.mrb[79].mxu1 }
 0x307   : > { %v2579_v32 = vmax.f32 %v2578_v59, %v2478_v20  ;;  %v2653_v11 = vmax.f32 %v2652_v52, %v2480_v23  ;;  %v2479_v33 = vsel %vm5004_vm2, %v1514_v12, -inf  ;;  %v2481_v25 = vsel %vm5004_vm2, %v1707_v13, -inf }
 0x308   : > { %v2616_v38 = vmax.f32 %v2615_v0, %v2479_v33  ;;  %v2690_v41 = vmax.f32 %v2689_v2, %v2481_v25  ;;  %v2486_v6 = vsel %vm5003_vm3, %v1516_v24, -inf  ;;  %v2488_v42 = vsel %vm5003_vm3, %v1709_v28, -inf }
 0x309   : > { %v2580_v45 = vmax.f32 %v2579_v32, %v2486_v6  ;;  %v2654_v36 = vmax.f32 %v2653_v11, %v2488_v42  ;;  %v1518_v37 = vadd.f32 %v1517_v29, %v3988_v50  ;;  %v1711_v59 = vadd.f32 %v1710_v30, %v3990_v51 }
 0x30a   : > { %v4425_v3 = vadd.s32 %v3971_v62, %v2167_v16  ;;  %v4428_v7 = vadd.s32 %v3971_v62, %v2168_v22  ;;  %v2169_v16 = vadd.s32 224, %v3958_v5  ;;  %v2170_v29 = vadd.s32 232, %v3958_v5 }
 0x30b   : > { %v2487_v52 = vsel %vm5003_vm3, %v1518_v37, -inf  ;;  %v2489_v43 = vsel %vm5003_vm3, %v1711_v59, -inf  ;;  %v1521_v0 = vpop.f32.mrb[80].mxu0  ;;  %v1714_v2 = vpop.f32.mrb[80].mxu1 }
 0x30c   : > { %v2617_v10 = vmax.f32 %v2616_v38, %v2487_v52  ;;  %v2691_v27 = vmax.f32 %v2690_v41, %v2489_v43  ;;  %v1522_v12 = vadd.f32 %v1521_v0, %v3975_v46  ;;  %v1715_v13 = vadd.f32 %v1714_v2, %v3983_v48  ;;  %v1523_v17 = vpop.f32.mrb[81].mxu0  ;;  %v1716_v21 = vpop.f32.mrb[81].mxu1 }
 0x30d   : > { %v1524_v20 = vadd.f32 %v1523_v17, %v3988_v50  ;;  %v1717_v23 = vadd.f32 %v1716_v21, %v3990_v51  ;;  %v1525_v24 = vpop.f32.mrb[82].mxu0  ;;  %v1718_v28 = vpop.f32.mrb[82].mxu1  ;;  %vm5008_vm3 = vcmp.lt.s32.totalorder %v4425_v3, 500  ;;  %vm5007_vm2 = vcmp.lt.s32.totalorder %v4428_v7, 500 }
 0x30e   : > { %v2494_v22 = vsel %vm5006_vm1, %v1522_v12, -inf  ;;  %v2496_v30 = vsel %vm5006_vm1, %v1715_v13, -inf  ;;  %v1526_v32 = vadd.f32 %v1525_v24, %v3975_v46  ;;  %v1719_v11 = vadd.f32 %v1718_v28, %v3983_v48  ;;  %v1527_v33 = vpop.f32.mrb[83].mxu0  ;;  %v1720_v25 = vpop.f32.mrb[83].mxu1 }
 0x30f   : > { %v2581_v38 = vmax.f32 %v2580_v45, %v2494_v22  ;;  %v2655_v41 = vmax.f32 %v2654_v36, %v2496_v30  ;;  %v2495_v6 = vsel %vm5006_vm1, %v1524_v20, -inf  ;;  %v2497_v42 = vsel %vm5006_vm1, %v1717_v23, -inf }
 0x310   : > { %v2618_v37 = vmax.f32 %v2617_v10, %v2495_v6  ;;  %v2692_v59 = vmax.f32 %v2691_v27, %v2497_v42  ;;  %v2502_v52 = vsel %vm5005_vm0, %v1526_v32, -inf  ;;  %v2504_v43 = vsel %vm5005_vm0, %v1719_v11, -inf }
 0x311   : > { %v2582_v0 = vmax.f32 %v2581_v38, %v2502_v52  ;;  %v2656_v2 = vmax.f32 %v2655_v41, %v2504_v43  ;;  %v1528_v12 = vadd.f32 %v1527_v33, %v3988_v50  ;;  %v1721_v45 = vadd.f32 %v1720_v25, %v3990_v51 }
 0x312   : > { %v4459_v17 = vadd.s32 %v3971_v62, %v2169_v16  ;;  %v4462_v21 = vadd.s32 %v3971_v62, %v2170_v29  ;;  %v2171_v16 = vadd.s32 240, %v3958_v5  ;;  %v2172_v38 = vadd.s32 248, %v3958_v5 }
 0x313   : > { %v2503_v36 = vsel %vm5005_vm0, %v1528_v12, -inf  ;;  %v2505_v10 = vsel %vm5005_vm0, %v1721_v45, -inf  ;;  %v1531_v27 = vpop.f32.mrb[84].mxu0  ;;  %v1724_v13 = vpop.f32.mrb[84].mxu1 }
 0x314   : > { %v2619_v20 = vmax.f32 %v2618_v37, %v2503_v36  ;;  %v2693_v23 = vmax.f32 %v2692_v59, %v2505_v10  ;;  %v1532_v24 = vadd.f32 %v1531_v27, %v3975_v46  ;;  %v1725_v28 = vadd.f32 %v1724_v13, %v3983_v48  ;;  %v1533_v22 = vpop.f32.mrb[85].mxu0  ;;  %v1726_v30 = vpop.f32.mrb[85].mxu1 }
 0x315   : > { %v1534_v32 = vadd.f32 %v1533_v22, %v3988_v50  ;;  %v1727_v11 = vadd.f32 %v1726_v30, %v3990_v51  ;;  %v1535_v33 = vpop.f32.mrb[86].mxu0  ;;  %v1728_v25 = vpop.f32.mrb[86].mxu1  ;;  %vm2234_vm0 = vcmp.lt.s32.totalorder %v4459_v17, 500  ;;  %vm2235_vm1 = vcmp.lt.s32.totalorder %v4462_v21, 500 }
 0x316   : > { %v2510_v29 = vsel %vm5008_vm3, %v1532_v24, -inf  ;;  %v2512_v41 = vsel %vm5008_vm3, %v1725_v28, -inf  ;;  %v1536_v6 = vadd.f32 %v1535_v33, %v3975_v46  ;;  %v1729_v42 = vadd.f32 %v1728_v25, %v3983_v48  ;;  %v1537_v37 = vpop.f32.mrb[87].mxu0  ;;  %v1730_v59 = vpop.f32.mrb[87].mxu1 }
 0x317   : > { %v2583_v52 = vmax.f32 %v2582_v0, %v2510_v29  ;;  %v2657_v43 = vmax.f32 %v2656_v2, %v2512_v41  ;;  %v2511_v12 = vsel %vm5008_vm3, %v1534_v32, -inf  ;;  %v2513_v45 = vsel %vm5008_vm3, %v1727_v11, -inf }
 0x318   : > { %v2620_v36 = vmax.f32 %v2619_v20, %v2511_v12  ;;  %v2694_v10 = vmax.f32 %v2693_v23, %v2513_v45  ;;  %v2518_v27 = vsel %vm5007_vm2, %v1536_v6, -inf  ;;  %v2520_v13 = vsel %vm5007_vm2, %v1729_v42, -inf }
 0x319   : > { %v2584_v24 = vmax.f32 %v2583_v52, %v2518_v27  ;;  %v2658_v28 = vmax.f32 %v2657_v43, %v2520_v13  ;;  %v1538_v22 = vadd.f32 %v1537_v37, %v3988_v50  ;;  %v1731_v0 = vadd.f32 %v1730_v59, %v3990_v51 }
 0x31a   : > { %v4489_v2 = vadd.s32 %v3971_v62, %v2171_v16  ;;  %v4492_v20 = vadd.s32 %v3971_v62, %v2172_v38  ;;  %v1025_v33 = vsub.s32 4, %v3958_v5  ;;  %v1033_v25 = vsub.s32 6, %v3958_v5 }
 0x31b   : > { %v2519_v23 = vsel %vm5007_vm2, %v1538_v22, -inf  ;;  %v2521_v30 = vsel %vm5007_vm2, %v1731_v0, -inf  ;;  %v1541_v32 = vpop.f32.mrb[88].mxu0  ;;  %v1734_v11 = vpop.f32.mrb[88].mxu1  ;;  %v1029_v43 = vsub.s32 5, %v3958_v5  ;;  %v1037_v12 = vsub.s32 7, %v3958_v5 }
 0x31c   : > { %5013 = vst [vmem:[#allocation3_spill] sm:$0xff] %v4492_v20  ;;  %v2621_v29 = vmax.f32 %v2620_v36, %v2519_v23  ;;  %v2695_v41 = vmax.f32 %v2694_v10, %v2521_v30  ;;  %v1542_v16 = vadd.f32 %v1541_v32, %v3975_v46  ;;  %v1735_v6 = vadd.f32 %v1734_v11, %v3983_v48  ;;  %v1543_v62 = vpop.f32.mrb[89].mxu0  ;;  %v1736_v38 = vpop.f32.mrb[89].mxu1 }
 0x31d   : > { %v1544_v42 = vadd.f32 %v1543_v62, %v3988_v50  ;;  %v1737_v37 = vadd.f32 %v1736_v38, %v3990_v51  ;;  %v1545_v59 = vpop.f32.mrb[90].mxu0  ;;  %v1738_v52 = vpop.f32.mrb[90].mxu1  ;;  %vm2236_vm2 = vcmp.lt.s32.totalorder %v4489_v2, 500  ;;  %vm2237_vm3 = vcmp.lt.s32.totalorder %v4492_v20, 500 }
 0x31e   : > { %v2526_v45 = vsel %vm2234_vm0, %v1542_v16, -inf  ;;  %v2528_v36 = vsel %vm2234_vm0, %v1735_v6, -inf  ;;  %v1546_v10 = vadd.f32 %v1545_v59, %v3975_v46  ;;  %v1739_v27 = vadd.f32 %v1738_v52, %v3983_v48  ;;  %v1547_v13 = vpop.f32.mrb[91].mxu0  ;;  %v1740_v22 = vpop.f32.mrb[91].mxu1 }
 0x31f   : > { %v2585_v0 = vmax.f32 %v2584_v24, %v2526_v45  ;;  %v2659_v23 = vmax.f32 %v2658_v28, %v2528_v36  ;;  %v2527_v30 = vsel %vm2234_vm0, %v1544_v42, -inf  ;;  %v2529_v32 = vsel %vm2234_vm0, %v1737_v37, -inf  ;;  %v3340_v37 = vld [vmem:[%s4991_s6] sm:$0xff] }
 0x320   : > { %v2622_v11 = vmax.f32 %v2621_v29, %v2527_v30  ;;  %v2696_v62 = vmax.f32 %v2695_v41, %v2529_v32  ;;  %v2534_v16 = vsel %vm2235_vm1, %v1546_v10, -inf  ;;  %v2536_v6 = vsel %vm2235_vm1, %v1739_v27, -inf }
 0x321   : > { %v2586_v38 = vmax.f32 %v2585_v0, %v2534_v16  ;;  %v2660_v59 = vmax.f32 %v2659_v23, %v2536_v6  ;;  %v1548_v52 = vadd.f32 %v1547_v13, %v3988_v50  ;;  %v1741_v24 = vadd.f32 %v1740_v22, %v3990_v51 }
 0x322   : > { %v4531_v45 = vrot.slane %v3340_v37, %v1025_v33  ;;  %v4533_v36 = vrot.slane %v3340_v37, %v1033_v25  ;;  %v4541_v33 = vrot.slane %v3340_v37, %v1037_v12 }
 0x323   : > { %v2535_v28 = vsel %vm2235_vm1, %v1548_v52, -inf  ;;  %v2537_v29 = vsel %vm2235_vm1, %v1741_v24, -inf  ;;  %v1551_v41 = vpop.f32.mrb[92].mxu0  ;;  %v1744_v42 = vpop.f32.mrb[92].mxu1  ;;  %v4539_v52 = vrot.slane %v3340_v37, %v1029_v43 }
 0x324   : > { %v2623_v10 = vmax.f32 %v2622_v11, %v2535_v28  ;;  %v2697_v27 = vmax.f32 %v2696_v62, %v2537_v29  ;;  %v1552_v13 = vadd.f32 %v1551_v41, %v3975_v46  ;;  %v1745_v22 = vadd.f32 %v1744_v42, %v3983_v48  ;;  %v1553_v0 = vpop.f32.mrb[93].mxu0  ;;  %v1746_v23 = vpop.f32.mrb[93].mxu1 }
 0x325   : > { %v1554_v30 = vadd.f32 %v1553_v0, %v3988_v50  ;;  %v1747_v32 = vadd.f32 %v1746_v23, %v3990_v51  ;;  %v1555_v16 = vpop.f32.mrb[94].mxu0  ;;  %v1748_v6 = vpop.f32.mrb[94].mxu1 }
 0x326   : > { %v2542_v25 = vsel %vm2236_vm2, %v1552_v13, -inf  ;;  %v2544_v11 = vsel %vm2236_vm2, %v1745_v22, -inf  ;;  %v1556_v62 = vadd.f32 %v1555_v16, %v3975_v46  ;;  %v1749_v24 = vadd.f32 %v1748_v6, %v3983_v48  ;;  %v1557_v28 = vpop.f32.mrb[95].mxu0  ;;  %v1750_v29 = vpop.f32.mrb[95].mxu1 }
 0x327   : > { %v2587_v41 = vmax.f32 %v2586_v38, %v2542_v25  ;;  %v2661_v42 = vmax.f32 %v2660_v59, %v2544_v11  ;;  %v2543_v43 = vsel %vm2236_vm2, %v1554_v30, -inf  ;;  %v2545_v12 = vsel %vm2236_vm2, %v1747_v32, -inf }
 0x328   : > { %v2624_v37 = vmax.f32 %v2623_v10, %v2543_v43  ;;  %v2698_v0 = vmax.f32 %v2697_v27, %v2545_v12  ;;  %v2550_v13 = vsel %vm2237_vm3, %v1556_v62, -inf  ;;  %v2552_v46 = vsel %vm2237_vm3, %v1749_v24, -inf }
 0x329   : > { %v2588_v22 = vmax.f32 %v2587_v41, %v2550_v13  ;;  %v2662_v48 = vmax.f32 %v2661_v42, %v2552_v46  ;;  %v1558_v23 = vadd.f32 %v1557_v28, %v3988_v50  ;;  %v1751_v38 = vadd.f32 %v1750_v29, %v3990_v51 }
 0x32b   : > { %v2589_v59 = vrot.slane %v2588_v22, 4  ;;  %v2663_v16 = vrot.slane %v2662_v48, 4  ;;  %v2551_v30 = vsel %vm2237_vm3, %v1558_v23, -inf  ;;  %v2553_v10 = vsel %vm2237_vm3, %v1751_v38, -inf  ;;  %v1787_v27 = vpop.f32.mrb[96].mxu0  ;;  %v1980_v32 = vpop.f32.mrb[96].mxu1 }
 0x32c   : > { %v2625_v6 = vmax.f32 %v2624_v37, %v2551_v30  ;;  %v2699_v25 = vmax.f32 %v2698_v0, %v2553_v10  ;;  %v1788_v11 = vadd.f32 %v1787_v27, %v4531_v45  ;;  %v1981_v62 = vadd.f32 %v1980_v32, %v4533_v36  ;;  %v1789_v24 = vpop.f32.mrb[97].mxu0  ;;  %v1982_v50 = vpop.f32.mrb[97].mxu1 }
 0x32d   : > { %v2590_v28 = vmax.f32 %v2588_v22, %v2589_v59  ;;  %v2664_v51 = vmax.f32 %v2662_v48, %v2663_v16  ;;  %v1790_v29 = vadd.f32 %v1789_v24, %v4539_v52  ;;  %v1983_v41 = vadd.f32 %v1982_v50, %v4541_v33  ;;  %v1791_v42 = vpop.f32.mrb[98].mxu0  ;;  %v1984_v43 = vpop.f32.mrb[98].mxu1 }
 0x32e   : > { %v2626_v12 = vrot.slane %v2625_v6, 4  ;;  %v2700_v13 = vrot.slane %v2699_v25, 4  ;;  %v2306_v37 = vsel %vm2206_vm4, %v1788_v11, -inf  ;;  %v2308_v0 = vsel %vm2206_vm4, %v1981_v62, -inf  ;;  %v1793_v46 = vpop.f32.mrb[99].mxu0  ;;  %v1986_v23 = vpop.f32.mrb[99].mxu1 }
 0x32f   : > { %v2591_v38 = vrot.slane %v2590_v28, 2  ;;  %v2665_v30 = vrot.slane %v2664_v51, 2  ;;  %v2307_v22 = vsel %vm2206_vm4, %v1790_v29, -inf  ;;  %v2309_v48 = vsel %vm2206_vm4, %v1983_v41, -inf }
 0x330   : > { %v2627_v59 = vmax.f32 %v2625_v6, %v2626_v12  ;;  %v2701_v16 = vmax.f32 %v2699_v25, %v2700_v13  ;;  %v1792_v10 = vadd.f32 %v1791_v42, %v4531_v45  ;;  %v1985_v27 = vadd.f32 %v1984_v43, %v4533_v36 }
 0x331   : > { %v2592_v32 = vmax.f32 %v2590_v28, %v2591_v38  ;;  %v2666_v11 = vmax.f32 %v2664_v51, %v2665_v30  ;;  %v1794_v62 = vadd.f32 %v1793_v46, %v4539_v52  ;;  %v1987_v24 = vadd.f32 %v1986_v23, %v4541_v33 }
 0x332   : > { %v2628_v50 = vrot.slane %v2627_v59, 2  ;;  %v2702_v5 = vrot.slane %v2701_v16, 2  ;;  %v2314_v29 = vsel %vm2207_vm5, %v1792_v10, -inf  ;;  %v2316_v47 = vsel %vm2207_vm5, %v1985_v27, -inf }
 0x333   : > { %v2593_v6 = vrot.slane %v2592_v32, 1  ;;  %v2667_v25 = vrot.slane %v2666_v11, 1  ;;  %v2706_v41 = vmax.f32 %v2306_v37, %v2314_v29  ;;  %v2780_v42 = vmax.f32 %v2308_v0, %v2316_v47  ;;  %v1797_v12 = vpop.f32.mrb[100].mxu0  ;;  %v1990_v43 = vpop.f32.mrb[100].mxu1 }
 0x334   : > { %v2629_v28 = vmax.f32 %v2627_v59, %v2628_v50  ;;  %v2703_v51 = vmax.f32 %v2701_v16, %v2702_v5  ;;  %v2315_v13 = vsel %vm2207_vm5, %v1794_v62, -inf  ;;  %v2317_v46 = vsel %vm2207_vm5, %v1987_v24, -inf  ;;  %v1799_v23 = vpop.f32.mrb[101].mxu0  ;;  %v1992_v38 = vpop.f32.mrb[101].mxu1 }
 0x335   : > { %v4587_v30 = vmax.f32 %v2592_v32, %v2593_v6  ;;  %v4589_v10 = vmax.f32 %v2666_v11, %v2667_v25  ;;  %v2743_v27 = vmax.f32 %v2307_v22, %v2315_v13  ;;  %v2817_v20 = vmax.f32 %v2309_v48, %v2317_v46  ;;  %v1801_v37 = vpop.f32.mrb[102].mxu0  ;;  %v1994_v0 = vpop.f32.mrb[102].mxu1 }
 0x336   : > { %v2630_v29 = vrot.slane %v2629_v28, 1  ;;  %v2704_v47 = vrot.slane %v2703_v51, 1  ;;  %v1798_v5 = vadd.f32 %v1797_v12, %v4531_v45  ;;  %v1991_v59 = vadd.f32 %v1990_v43, %v4533_v36  ;;  %v1803_v16 = vpop.f32.mrb[103].mxu0  ;;  %v1996_v62 = vpop.f32.mrb[103].mxu1 }
 0x337   : > { %v1800_v49 = vadd.f32 %v1799_v23, %v4539_v52  ;;  %v1993_v24 = vadd.f32 %v1992_v38, %v4541_v33  ;;  %v1802_v32 = vadd.f32 %v1801_v37, %v4531_v45  ;;  %v1995_v11 = vadd.f32 %v1994_v0, %v4533_v36 }
 0x338   : > { %v4597_v22 = vmax.f32 %v2629_v28, %v2630_v29  ;;  %v4599_v48 = vmax.f32 %v2703_v51, %v2704_v47  ;;  %v2322_v50 = vsel %vm2208_vm6, %v1798_v5, -inf  ;;  %v2324_v6 = vsel %vm2208_vm6, %v1991_v59, -inf }
 0x339   : > { %v2707_v25 = vmax.f32 %v2706_v41, %v2322_v50  ;;  %v2781_v12 = vmax.f32 %v2780_v42, %v2324_v6  ;;  %v2323_v43 = vsel %vm2208_vm6, %v1800_v49, -inf  ;;  %v2325_v13 = vsel %vm2208_vm6, %v1993_v24, -inf }
 0x33a   : > { %v2744_v46 = vmax.f32 %v2743_v27, %v2323_v43  ;;  %v2818_v23 = vmax.f32 %v2817_v20, %v2325_v13  ;;  %v2330_v28 = vsel %vm2209_vm7, %v1802_v32, -inf  ;;  %v2332_v51 = vsel %vm2209_vm7, %v1995_v11, -inf }
 0x33b   : > { %v2708_v38 = vmax.f32 %v2707_v25, %v2330_v28  ;;  %v2782_v37 = vmax.f32 %v2781_v12, %v2332_v51  ;;  %v1804_v0 = vadd.f32 %v1803_v16, %v4539_v52  ;;  %v1997_v41 = vadd.f32 %v1996_v62, %v4541_v33  ;;  %v1807_v42 = vpop.f32.mrb[104].mxu0  ;;  %v2000_v29 = vpop.f32.mrb[104].mxu1 }
 0x33c   : > { %v1808_v47 = vadd.f32 %v1807_v42, %v4531_v45  ;;  %v2001_v1 = vadd.f32 %v2000_v29, %v4533_v36  ;;  %v1809_v27 = vpop.f32.mrb[105].mxu0  ;;  %v2002_v20 = vpop.f32.mrb[105].mxu1  ;;  %vm5014_vm4 = vcmp.lt.s32.totalorder %v4187_v44, 500 }
 0x33d   : > { %v2331_v5 = vsel %vm2209_vm7, %v1804_v0, -inf  ;;  %v2333_v59 = vsel %vm2209_vm7, %v1997_v41, -inf  ;;  %v1810_v49 = vadd.f32 %v1809_v27, %v4539_v52  ;;  %v2003_v16 = vadd.f32 %v2002_v20, %v4541_v33  ;;  %v1811_v24 = vpop.f32.mrb[106].mxu0  ;;  %v2004_v62 = vpop.f32.mrb[106].mxu1  ;;  %vm5015_vm5 = vmmov %vm5014_vm4 }
 0x33e   : > { %v2745_v32 = vmax.f32 %v2744_v46, %v2331_v5  ;;  %v2819_v11 = vmax.f32 %v2818_v23, %v2333_v59  ;;  %v2338_v50 = vsel %vm2210_vm8, %v1808_v47, -inf  ;;  %v2340_v6 = vsel %vm2210_vm8, %v2001_v1, -inf  ;;  %v1813_v25 = vpop.f32.mrb[107].mxu0  ;;  %v2006_v12 = vpop.f32.mrb[107].mxu1  ;;  %vm5016_vm6 = vmmov %vm5014_vm4 }
 0x33f   : > { %v2709_v43 = vmax.f32 %v2708_v38, %v2338_v50  ;;  %v2783_v13 = vmax.f32 %v2782_v37, %v2340_v6  ;;  %v2339_v4 = vsel %vm2210_vm8, %v1810_v49, -inf  ;;  %v2341_v28 = vsel %vm2210_vm8, %v2003_v16, -inf  ;;  %vm5017_vm7 = vmmov %vm5014_vm4 }
 0x340   : > { %v2746_v51 = vmax.f32 %v2745_v32, %v2339_v4  ;;  %v2820_v0 = vmax.f32 %v2819_v11, %v2341_v28  ;;  %v1812_v46 = vadd.f32 %v1811_v24, %v4531_v45  ;;  %v2005_v23 = vadd.f32 %v2004_v62, %v4533_v36 }
 0x341   : > { %v1814_v41 = vadd.f32 %v1813_v25, %v4539_v52  ;;  %v2007_v42 = vadd.f32 %v2006_v12, %v4541_v33  ;;  %vm5018_vm8 = vcmp.lt.s32.totalorder %v4190_v31, 500 }
 0x342   : > { %v2346_v38 = vsel %vm2211_vm9, %v1812_v46, -inf  ;;  %v2348_v37 = vsel %vm2211_vm9, %v2005_v23, -inf }
 0x343   : > { %v2710_v29 = vmax.f32 %v2709_v43, %v2346_v38  ;;  %v2784_v47 = vmax.f32 %v2783_v13, %v2348_v37  ;;  %v2347_v39 = vsel %vm2211_vm9, %v1814_v41, -inf  ;;  %v2349_v1 = vsel %vm2211_vm9, %v2007_v42, -inf  ;;  %v1817_v27 = vpop.f32.mrb[108].mxu0  ;;  %v2010_v20 = vpop.f32.mrb[108].mxu1  ;;  %vm5019_vm9 = vmmov %vm5018_vm8 }
 0x344   : > { %v2747_v5 = vmax.f32 %v2746_v51, %v2347_v39  ;;  %v2821_v59 = vmax.f32 %v2820_v0, %v2349_v1  ;;  %v1818_v49 = vadd.f32 %v1817_v27, %v4531_v45  ;;  %v2011_v16 = vadd.f32 %v2010_v20, %v4533_v36  ;;  %v1819_v24 = vpop.f32.mrb[109].mxu0  ;;  %v2012_v62 = vpop.f32.mrb[109].mxu1 }
 0x345   : > { %v1820_v32 = vadd.f32 %v1819_v24, %v4539_v52  ;;  %v2013_v11 = vadd.f32 %v2012_v62, %v4541_v33  ;;  %v1821_v50 = vpop.f32.mrb[110].mxu0  ;;  %v2014_v6 = vpop.f32.mrb[110].mxu1 }
 0x346   : > { %v2354_v40 = vsel %vm2212_vm10, %v1818_v49, -inf  ;;  %v2356_v25 = vsel %vm2212_vm10, %v2011_v16, -inf  ;;  %v1822_v12 = vadd.f32 %v1821_v50, %v4531_v45  ;;  %v2015_v43 = vadd.f32 %v2014_v6, %v4533_v36  ;;  %v1823_v13 = vpop.f32.mrb[111].mxu0  ;;  %v2016_v4 = vpop.f32.mrb[111].mxu1 }
 0x347   : > { %v2711_v28 = vmax.f32 %v2710_v29, %v2354_v40  ;;  %v2785_v51 = vmax.f32 %v2784_v47, %v2356_v25  ;;  %v2355_v0 = vsel %vm2212_vm10, %v1820_v32, -inf  ;;  %v2357_v46 = vsel %vm2212_vm10, %v2013_v11, -inf  ;;  %vm5020_vm10 = vmmov %vm5018_vm8 }
 0x348   : > { %v2748_v23 = vmax.f32 %v2747_v5, %v2355_v0  ;;  %v2822_v41 = vmax.f32 %v2821_v59, %v2357_v46  ;;  %v2362_v42 = vsel %vm2213_vm11, %v1822_v12, -inf  ;;  %v2364_v38 = vsel %vm2213_vm11, %v2015_v43, -inf }
 0x349   : > { %v2712_v37 = vmax.f32 %v2711_v28, %v2362_v42  ;;  %v2786_v39 = vmax.f32 %v2785_v51, %v2364_v38  ;;  %v1824_v1 = vadd.f32 %v1823_v13, %v4539_v52  ;;  %v2017_v29 = vadd.f32 %v2016_v4, %v4541_v33 }
 0x34b   : > { %v2363_v47 = vsel %vm2213_vm11, %v1824_v1, -inf  ;;  %v2365_v14 = vsel %vm2213_vm11, %v2017_v29, -inf  ;;  %v1827_v27 = vpop.f32.mrb[112].mxu0  ;;  %v2020_v20 = vpop.f32.mrb[112].mxu1  ;;  %vm5021_vm11 = vmmov %vm5018_vm8 }
 0x34c   : > { %v2749_v5 = vmax.f32 %v2748_v23, %v2363_v47  ;;  %v2823_v59 = vmax.f32 %v2822_v41, %v2365_v14  ;;  %v1828_v49 = vadd.f32 %v1827_v27, %v4531_v45  ;;  %v2021_v16 = vadd.f32 %v2020_v20, %v4533_v36  ;;  %v1829_v24 = vpop.f32.mrb[113].mxu0  ;;  %v2022_v62 = vpop.f32.mrb[113].mxu1 }
 0x34d   : > { %v1830_v32 = vadd.f32 %v1829_v24, %v4539_v52  ;;  %v2023_v11 = vadd.f32 %v2022_v62, %v4541_v33  ;;  %v1831_v50 = vpop.f32.mrb[114].mxu0  ;;  %v2024_v6 = vpop.f32.mrb[114].mxu1 }
 0x34e   : > { %v2370_v15 = vsel %vm2214_vm12, %v1828_v49, -inf  ;;  %v2372_v40 = vsel %vm2214_vm12, %v2021_v16, -inf  ;;  %v1832_v25 = vadd.f32 %v1831_v50, %v4531_v45  ;;  %v2025_v12 = vadd.f32 %v2024_v6, %v4533_v36  ;;  %v1833_v43 = vpop.f32.mrb[115].mxu0  ;;  %v2026_v13 = vpop.f32.mrb[115].mxu1 }
 0x34f   : > { %v2713_v4 = vmax.f32 %v2712_v37, %v2370_v15  ;;  %v2787_v28 = vmax.f32 %v2786_v39, %v2372_v40  ;;  %v2371_v51 = vsel %vm2214_vm12, %v1830_v32, -inf  ;;  %v2373_v0 = vsel %vm2214_vm12, %v2023_v11, -inf }
 0x350   : > { %v2750_v46 = vmax.f32 %v2749_v5, %v2371_v51  ;;  %v2824_v23 = vmax.f32 %v2823_v59, %v2373_v0  ;;  %v2378_v41 = vsel %vm2215_vm13, %v1832_v25, -inf  ;;  %v2380_v42 = vsel %vm2215_vm13, %v2025_v12, -inf }
 0x351   : > { %v2714_v38 = vmax.f32 %v2713_v4, %v2378_v41  ;;  %v2788_v1 = vmax.f32 %v2787_v28, %v2380_v42  ;;  %v1834_v29 = vadd.f32 %v1833_v43, %v4539_v52  ;;  %v2027_v37 = vadd.f32 %v2026_v13, %v4541_v33 }
 0x352   : > { %vm5022_vm12 = vcmp.lt.s32.totalorder %v4221_v18, 500 }
 0x353   : > { %v2379_v39 = vsel %vm2215_vm13, %v1834_v29, -inf  ;;  %v2381_v60 = vsel %vm2215_vm13, %v2027_v37, -inf  ;;  %v1837_v47 = vpop.f32.mrb[116].mxu0  ;;  %v2030_v14 = vpop.f32.mrb[116].mxu1  ;;  %vm5023_vm13 = vmmov %vm5022_vm12 }
 0x354   : > { %v2751_v27 = vmax.f32 %v2750_v46, %v2379_v39  ;;  %v2825_v20 = vmax.f32 %v2824_v23, %v2381_v60  ;;  %v1838_v5 = vadd.f32 %v1837_v47, %v4531_v45  ;;  %v2031_v59 = vadd.f32 %v2030_v14, %v4533_v36  ;;  %v1839_v49 = vpop.f32.mrb[117].mxu0  ;;  %v2032_v16 = vpop.f32.mrb[117].mxu1 }
 0x355   : > { %v1840_v24 = vadd.f32 %v1839_v49, %v4539_v52  ;;  %v2033_v62 = vadd.f32 %v2032_v16, %v4541_v33  ;;  %v1841_v32 = vpop.f32.mrb[118].mxu0  ;;  %v2034_v11 = vpop.f32.mrb[118].mxu1 }
 0x356   : > { %v2386_v61 = vsel %vm2216_vm14, %v1838_v5, -inf  ;;  %v2388_v50 = vsel %vm2216_vm14, %v2031_v59, -inf  ;;  %v1842_v6 = vadd.f32 %v1841_v32, %v4531_v45  ;;  %v2035_v15 = vadd.f32 %v2034_v11, %v4533_v36  ;;  %v1843_v40 = vpop.f32.mrb[119].mxu0  ;;  %v2036_v25 = vpop.f32.mrb[119].mxu1 }
 0x357   : > { %v2715_v12 = vmax.f32 %v2714_v38, %v2386_v61  ;;  %v2789_v43 = vmax.f32 %v2788_v1, %v2388_v50  ;;  %v2387_v13 = vsel %vm2216_vm14, %v1840_v24, -inf  ;;  %v2389_v4 = vsel %vm2216_vm14, %v2033_v62, -inf  ;;  %vm5024_vm14 = vmmov %vm5022_vm12 }
 0x358   : > { %v2752_v28 = vmax.f32 %v2751_v27, %v2387_v13  ;;  %v2826_v51 = vmax.f32 %v2825_v20, %v2389_v4  ;;  %v2394_v0 = vsel %vm2217_vm15, %v1842_v6, -inf  ;;  %v2396_v46 = vsel %vm2217_vm15, %v2035_v15, -inf }
 0x359   : > { %v2716_v23 = vmax.f32 %v2715_v12, %v2394_v0  ;;  %v2790_v41 = vmax.f32 %v2789_v43, %v2396_v46  ;;  %v1844_v42 = vadd.f32 %v1843_v40, %v4539_v52  ;;  %v2037_v38 = vadd.f32 %v2036_v25, %v4541_v33 }
 0x35b   : > { %v2395_v1 = vsel %vm2217_vm15, %v1844_v42, -inf  ;;  %v2397_v34 = vsel %vm2217_vm15, %v2037_v38, -inf  ;;  %v1847_v29 = vpop.f32.mrb[120].mxu0  ;;  %v2040_v37 = vpop.f32.mrb[120].mxu1  ;;  %vm5025_vm15 = vmmov %vm5022_vm12 }
 0x35c   : > { %v2753_v39 = vmax.f32 %v2752_v28, %v2395_v1  ;;  %v2827_v60 = vmax.f32 %v2826_v51, %v2397_v34  ;;  %v1848_v47 = vadd.f32 %v1847_v29, %v4531_v45  ;;  %v2041_v14 = vadd.f32 %v2040_v37, %v4533_v36  ;;  %v1849_v27 = vpop.f32.mrb[121].mxu0  ;;  %v2042_v20 = vpop.f32.mrb[121].mxu1 }
 0x35d   : > { %v1850_v5 = vadd.f32 %v1849_v27, %v4539_v52  ;;  %v2043_v59 = vadd.f32 %v2042_v20, %v4541_v33  ;;  %v1851_v49 = vpop.f32.mrb[122].mxu0  ;;  %v2044_v16 = vpop.f32.mrb[122].mxu1 }
 0x35e   : > { %v2402_v35 = vsel %vm5014_vm4, %v1848_v47, -inf  ;;  %v2404_v24 = vsel %vm5015_vm5, %v2041_v14, -inf  ;;  %v1852_v62 = vadd.f32 %v1851_v49, %v4531_v45  ;;  %v2045_v32 = vadd.f32 %v2044_v16, %v4533_v36  ;;  %v1853_v11 = vpop.f32.mrb[123].mxu0  ;;  %v2046_v61 = vpop.f32.mrb[123].mxu1 }
 0x35f   : > { %v2717_v50 = vmax.f32 %v2716_v23, %v2402_v35  ;;  %v2791_v6 = vmax.f32 %v2790_v41, %v2404_v24  ;;  %v2403_v15 = vsel %vm5016_vm6, %v1850_v5, -inf  ;;  %v2405_v40 = vsel %vm5017_vm7, %v2043_v59, -inf }
 0x360   : > { %v2754_v25 = vmax.f32 %v2753_v39, %v2403_v15  ;;  %v2828_v12 = vmax.f32 %v2827_v60, %v2405_v40  ;;  %v2410_v43 = vsel %vm5018_vm8, %v1852_v62, -inf  ;;  %v2412_v13 = vsel %vm5019_vm9, %v2045_v32, -inf }
 0x361   : > { %v2718_v4 = vmax.f32 %v2717_v50, %v2410_v43  ;;  %v2792_v28 = vmax.f32 %v2791_v6, %v2412_v13  ;;  %v1854_v51 = vadd.f32 %v1853_v11, %v4539_v52  ;;  %v2047_v0 = vadd.f32 %v2046_v61, %v4541_v33 }
 0x362   : > { %vm5026_vm4 = vcmp.lt.s32.totalorder %v4224_v19, 500  ;;  %vm5030_vm8 = vcmp.lt.s32.totalorder %v4255_v8, 500 }
 0x363   : > { %v2411_v46 = vsel %vm5020_vm10, %v1854_v51, -inf  ;;  %v2413_v44 = vsel %vm5021_vm11, %v2047_v0, -inf  ;;  %v1857_v23 = vpop.f32.mrb[124].mxu0  ;;  %v2050_v41 = vpop.f32.mrb[124].mxu1  ;;  %vm5027_vm5 = vmmov %vm5026_vm4 }
 0x364   : > { %v2755_v42 = vmax.f32 %v2754_v25, %v2411_v46  ;;  %v2829_v38 = vmax.f32 %v2828_v12, %v2413_v44  ;;  %v1858_v1 = vadd.f32 %v1857_v23, %v4531_v45  ;;  %v2051_v34 = vadd.f32 %v2050_v41, %v4533_v36  ;;  %v1859_v29 = vpop.f32.mrb[125].mxu0  ;;  %v2052_v37 = vpop.f32.mrb[125].mxu1  ;;  %vm5028_vm6 = vmmov %vm5026_vm4 }
 0x365   : > { %v1860_v39 = vadd.f32 %v1859_v29, %v4539_v52  ;;  %v2053_v60 = vadd.f32 %v2052_v37, %v4541_v33  ;;  %v1861_v47 = vpop.f32.mrb[126].mxu0  ;;  %v2054_v14 = vpop.f32.mrb[126].mxu1  ;;  %vm5029_vm7 = vmmov %vm5026_vm4 }
 0x366   : > { %v2418_v31 = vsel %vm5022_vm12, %v1858_v1, -inf  ;;  %v2420_v27 = vsel %vm5023_vm13, %v2051_v34, -inf  ;;  %v1862_v20 = vadd.f32 %v1861_v47, %v4531_v45  ;;  %v2055_v5 = vadd.f32 %v2054_v14, %v4533_v36  ;;  %v1863_v59 = vpop.f32.mrb[127].mxu0  ;;  %v2056_v49 = vpop.f32.mrb[127].mxu1  ;;  %vm5031_vm9 = vmmov %vm5030_vm8 }
 0x367   : > { %v2719_v16 = vmax.f32 %v2718_v4, %v2418_v31  ;;  %v2793_v35 = vmax.f32 %v2792_v28, %v2420_v27  ;;  %v2419_v24 = vsel %vm5024_vm14, %v1860_v39, -inf  ;;  %v2421_v62 = vsel %vm5025_vm15, %v2053_v60, -inf  ;;  %vm5032_vm10 = vmmov %vm5030_vm8 }
 0x368   : > { %v2756_v32 = vmax.f32 %v2755_v42, %v2419_v24  ;;  %v2830_v11 = vmax.f32 %v2829_v38, %v2421_v62  ;;  %v2426_v61 = vsel %vm5026_vm4, %v1862_v20, -inf  ;;  %v2428_v50 = vsel %vm5027_vm5, %v2055_v5, -inf  ;;  %vm5033_vm11 = vmmov %vm5030_vm8 }
 0x369   : > { %v2720_v6 = vmax.f32 %v2719_v16, %v2426_v61  ;;  %v2794_v15 = vmax.f32 %v2793_v35, %v2428_v50  ;;  %v1864_v40 = vadd.f32 %v1863_v59, %v4539_v52  ;;  %v2057_v25 = vadd.f32 %v2056_v49, %v4541_v33 }
 0x36a   : > { %vm5034_vm12 = vcmp.lt.s32.totalorder %v4258_v9, 500  ;;  %vm5038_vm4 = vcmp.lt.s32.totalorder %v4289_v58, 500 }
 0x36b   : > { %v2427_v12 = vsel %vm5028_vm6, %v1864_v40, -inf  ;;  %v2429_v18 = vsel %vm5029_vm7, %v2057_v25, -inf  ;;  %v1867_v43 = vpop.f32.mrb[128].mxu0  ;;  %v2060_v13 = vpop.f32.mrb[128].mxu1  ;;  %vm5035_vm13 = vmmov %vm5034_vm12 }
 0x36c   : > { %v2757_v4 = vmax.f32 %v2756_v32, %v2427_v12  ;;  %v2831_v28 = vmax.f32 %v2830_v11, %v2429_v18  ;;  %v1868_v51 = vadd.f32 %v1867_v43, %v4531_v45  ;;  %v2061_v0 = vadd.f32 %v2060_v13, %v4533_v36  ;;  %v1869_v46 = vpop.f32.mrb[129].mxu0  ;;  %v2062_v44 = vpop.f32.mrb[129].mxu1  ;;  %vm5036_vm14 = vmmov %vm5034_vm12 }
 0x36d   : > { %v1870_v23 = vadd.f32 %v1869_v46, %v4539_v52  ;;  %v2063_v41 = vadd.f32 %v2062_v44, %v4541_v33  ;;  %v1871_v42 = vpop.f32.mrb[130].mxu0  ;;  %v2064_v38 = vpop.f32.mrb[130].mxu1  ;;  %vm5037_vm15 = vmmov %vm5034_vm12 }
 0x36e   : > { %v2434_v19 = vsel %vm5030_vm8, %v1868_v51, -inf  ;;  %v2436_v1 = vsel %vm5031_vm9, %v2061_v0, -inf  ;;  %v1872_v34 = vadd.f32 %v1871_v42, %v4531_v45  ;;  %v2065_v29 = vadd.f32 %v2064_v38, %v4533_v36  ;;  %v1873_v37 = vpop.f32.mrb[131].mxu0  ;;  %v2066_v39 = vpop.f32.mrb[131].mxu1  ;;  %vm5039_vm5 = vmmov %vm5038_vm4 }
 0x36f   : > { %v2721_v60 = vmax.f32 %v2720_v6, %v2434_v19  ;;  %v2795_v47 = vmax.f32 %v2794_v15, %v2436_v1  ;;  %v2435_v14 = vsel %vm5032_vm10, %v1870_v23, -inf  ;;  %v2437_v31 = vsel %vm5033_vm11, %v2063_v41, -inf  ;;  %vm5040_vm6 = vmmov %vm5038_vm4 }
 0x370   : > { %v2758_v27 = vmax.f32 %v2757_v4, %v2435_v14  ;;  %v2832_v20 = vmax.f32 %v2831_v28, %v2437_v31  ;;  %v2442_v5 = vsel %vm5034_vm12, %v1872_v34, -inf  ;;  %v2444_v59 = vsel %vm5035_vm13, %v2065_v29, -inf  ;;  %vm5041_vm7 = vmmov %vm5038_vm4 }
 0x371   : > { %v2722_v49 = vmax.f32 %v2721_v60, %v2442_v5  ;;  %v2796_v16 = vmax.f32 %v2795_v47, %v2444_v59  ;;  %v1874_v35 = vadd.f32 %v1873_v37, %v4539_v52  ;;  %v2067_v24 = vadd.f32 %v2066_v39, %v4541_v33 }
 0x372   : > { %vm5042_vm8 = vcmp.lt.s32.totalorder %v4292_v63, 500  ;;  %vm5046_vm12 = vcmp.lt.s32.totalorder %v4323_v55, 500 }
 0x373   : > { %v2443_v62 = vsel %vm5036_vm14, %v1874_v35, -inf  ;;  %v2445_v8 = vsel %vm5037_vm15, %v2067_v24, -inf  ;;  %v1877_v32 = vpop.f32.mrb[132].mxu0  ;;  %v2070_v11 = vpop.f32.mrb[132].mxu1  ;;  %vm5043_vm9 = vmmov %vm5042_vm8 }
 0x374   : > { %v2759_v61 = vmax.f32 %v2758_v27, %v2443_v62  ;;  %v2833_v50 = vmax.f32 %v2832_v20, %v2445_v8  ;;  %v1878_v6 = vadd.f32 %v1877_v32, %v4531_v45  ;;  %v2071_v15 = vadd.f32 %v2070_v11, %v4533_v36  ;;  %v1879_v40 = vpop.f32.mrb[133].mxu0  ;;  %v2072_v25 = vpop.f32.mrb[133].mxu1  ;;  %vm5044_vm10 = vmmov %vm5042_vm8 }
 0x375   : > { %v1880_v12 = vadd.f32 %v1879_v40, %v4539_v52  ;;  %v2073_v18 = vadd.f32 %v2072_v25, %v4541_v33  ;;  %v1881_v43 = vpop.f32.mrb[134].mxu0  ;;  %v2074_v13 = vpop.f32.mrb[134].mxu1  ;;  %vm5045_vm11 = vmmov %vm5042_vm8 }
 0x376   : > { %v2450_v9 = vsel %vm5038_vm4, %v1878_v6, -inf  ;;  %v2452_v4 = vsel %vm5039_vm5, %v2071_v15, -inf  ;;  %v1882_v28 = vadd.f32 %v1881_v43, %v4531_v45  ;;  %v2075_v51 = vadd.f32 %v2074_v13, %v4533_v36  ;;  %v1883_v0 = vpop.f32.mrb[135].mxu0  ;;  %v2076_v46 = vpop.f32.mrb[135].mxu1  ;;  %vm5047_vm13 = vmmov %vm5046_vm12 }
 0x377   : > { %v2723_v44 = vmax.f32 %v2722_v49, %v2450_v9  ;;  %v2797_v23 = vmax.f32 %v2796_v16, %v2452_v4  ;;  %v2451_v41 = vsel %vm5040_vm6, %v1880_v12, -inf  ;;  %v2453_v42 = vsel %vm5041_vm7, %v2073_v18, -inf  ;;  %vm5048_vm14 = vmmov %vm5046_vm12 }
 0x378   : > { %v2760_v38 = vmax.f32 %v2759_v61, %v2451_v41  ;;  %v2834_v19 = vmax.f32 %v2833_v50, %v2453_v42  ;;  %v2458_v1 = vsel %vm5042_vm8, %v1882_v28, -inf  ;;  %v2460_v34 = vsel %vm5043_vm9, %v2075_v51, -inf  ;;  %vm5049_vm15 = vmmov %vm5046_vm12 }
 0x379   : > { %v2724_v29 = vmax.f32 %v2723_v44, %v2458_v1  ;;  %v2798_v37 = vmax.f32 %v2797_v23, %v2460_v34  ;;  %v1884_v39 = vadd.f32 %v1883_v0, %v4539_v52  ;;  %v2077_v60 = vadd.f32 %v2076_v46, %v4541_v33 }
 0x37a   : > { %vm5050_vm4 = vcmp.lt.s32.totalorder %v4326_v56, 500  ;;  %vm5054_vm8 = vcmp.lt.s32.totalorder %v4357_v53, 500 }
 0x37b   : > { %v2459_v47 = vsel %vm5044_vm10, %v1884_v39, -inf  ;;  %v2461_v58 = vsel %vm5045_vm11, %v2077_v60, -inf  ;;  %v1887_v14 = vpop.f32.mrb[136].mxu0  ;;  %v2080_v31 = vpop.f32.mrb[136].mxu1  ;;  %vm5051_vm5 = vmmov %vm5050_vm4 }
 0x37c   : > { %v2761_v27 = vmax.f32 %v2760_v38, %v2459_v47  ;;  %v2835_v20 = vmax.f32 %v2834_v19, %v2461_v58  ;;  %v1888_v5 = vadd.f32 %v1887_v14, %v4531_v45  ;;  %v2081_v59 = vadd.f32 %v2080_v31, %v4533_v36  ;;  %v1889_v49 = vpop.f32.mrb[137].mxu0  ;;  %v2082_v16 = vpop.f32.mrb[137].mxu1  ;;  %vm5052_vm6 = vmmov %vm5050_vm4 }
 0x37d   : > { %v1890_v35 = vadd.f32 %v1889_v49, %v4539_v52  ;;  %v2083_v24 = vadd.f32 %v2082_v16, %v4541_v33  ;;  %v1891_v62 = vpop.f32.mrb[138].mxu0  ;;  %v2084_v8 = vpop.f32.mrb[138].mxu1  ;;  %vm5053_vm7 = vmmov %vm5050_vm4 }
 0x37e   : > { %v2466_v63 = vsel %vm5046_vm12, %v1888_v5, -inf  ;;  %v2468_v32 = vsel %vm5047_vm13, %v2081_v59, -inf  ;;  %v1892_v11 = vadd.f32 %v1891_v62, %v4531_v45  ;;  %v2085_v61 = vadd.f32 %v2084_v8, %v4533_v36  ;;  %v1893_v50 = vpop.f32.mrb[139].mxu0  ;;  %v2086_v6 = vpop.f32.mrb[139].mxu1  ;;  %vm5055_vm9 = vmmov %vm5054_vm8 }
 0x37f   : > { %v2725_v15 = vmax.f32 %v2724_v29, %v2466_v63  ;;  %v2799_v40 = vmax.f32 %v2798_v37, %v2468_v32  ;;  %v2467_v25 = vsel %vm5048_vm14, %v1890_v35, -inf  ;;  %v2469_v12 = vsel %vm5049_vm15, %v2083_v24, -inf  ;;  %vm5056_vm10 = vmmov %vm5054_vm8 }
 0x380   : > { %v2762_v18 = vmax.f32 %v2761_v27, %v2467_v25  ;;  %v2836_v43 = vmax.f32 %v2835_v20, %v2469_v12  ;;  %v2474_v13 = vsel %vm5050_vm4, %v1892_v11, -inf  ;;  %v2476_v9 = vsel %vm5051_vm5, %v2085_v61, -inf  ;;  %vm5057_vm11 = vmmov %vm5054_vm8 }
 0x381   : > { %v2726_v4 = vmax.f32 %v2725_v15, %v2474_v13  ;;  %v2800_v28 = vmax.f32 %v2799_v40, %v2476_v9  ;;  %v1894_v51 = vadd.f32 %v1893_v50, %v4539_v52  ;;  %v2087_v0 = vadd.f32 %v2086_v6, %v4541_v33 }
 0x382   : > { %vm5058_vm12 = vcmp.lt.s32.totalorder %v4360_v54, 500  ;;  %vm5062_vm4 = vcmp.lt.s32.totalorder %v4391_v26, 500 }
 0x383   : > { %v2475_v46 = vsel %vm5052_vm6, %v1894_v51, -inf  ;;  %v2477_v55 = vsel %vm5053_vm7, %v2087_v0, -inf  ;;  %v1897_v44 = vpop.f32.mrb[140].mxu0  ;;  %v2090_v23 = vpop.f32.mrb[140].mxu1  ;;  %vm5059_vm13 = vmmov %vm5058_vm12 }
 0x384   : > { %v2763_v41 = vmax.f32 %v2762_v18, %v2475_v46  ;;  %v2837_v42 = vmax.f32 %v2836_v43, %v2477_v55  ;;  %v1898_v38 = vadd.f32 %v1897_v44, %v4531_v45  ;;  %v2091_v19 = vadd.f32 %v2090_v23, %v4533_v36  ;;  %v1899_v1 = vpop.f32.mrb[141].mxu0  ;;  %v2092_v34 = vpop.f32.mrb[141].mxu1  ;;  %vm5060_vm14 = vmmov %vm5058_vm12 }
 0x385   : > { %v1900_v29 = vadd.f32 %v1899_v1, %v4539_v52  ;;  %v2093_v37 = vadd.f32 %v2092_v34, %v4541_v33  ;;  %v1901_v39 = vpop.f32.mrb[142].mxu0  ;;  %v2094_v60 = vpop.f32.mrb[142].mxu1  ;;  %vm5061_vm15 = vmmov %vm5058_vm12 }
 0x386   : > { %v2482_v56 = vsel %vm5054_vm8, %v1898_v38, -inf  ;;  %v2484_v47 = vsel %vm5055_vm9, %v2091_v19, -inf  ;;  %v1902_v58 = vadd.f32 %v1901_v39, %v4531_v45  ;;  %v2095_v14 = vadd.f32 %v2094_v60, %v4533_v36  ;;  %v1903_v31 = vpop.f32.mrb[143].mxu0  ;;  %v2096_v27 = vpop.f32.mrb[143].mxu1  ;;  %vm5063_vm5 = vmmov %vm5062_vm4 }
 0x387   : > { %v2727_v20 = vmax.f32 %v2726_v4, %v2482_v56  ;;  %v2801_v5 = vmax.f32 %v2800_v28, %v2484_v47  ;;  %v2483_v59 = vsel %vm5056_vm10, %v1900_v29, -inf  ;;  %v2485_v49 = vsel %vm5057_vm11, %v2093_v37, -inf  ;;  %vm5064_vm6 = vmmov %vm5062_vm4 }
 0x388   : > { %v2764_v16 = vmax.f32 %v2763_v41, %v2483_v59  ;;  %v2838_v35 = vmax.f32 %v2837_v42, %v2485_v49  ;;  %v2490_v24 = vsel %vm5058_vm12, %v1902_v58, -inf  ;;  %v2492_v62 = vsel %vm5059_vm13, %v2095_v14, -inf  ;;  %vm5065_vm7 = vmmov %vm5062_vm4 }
 0x389   : > { %v2728_v8 = vmax.f32 %v2727_v20, %v2490_v24  ;;  %v2802_v63 = vmax.f32 %v2801_v5, %v2492_v62  ;;  %v1904_v32 = vadd.f32 %v1903_v31, %v4539_v52  ;;  %v2097_v11 = vadd.f32 %v2096_v27, %v4541_v33 }
 0x38a   : > { %vm5066_vm8 = vcmp.lt.s32.totalorder %v4394_v57, 500  ;;  %vm5070_vm12 = vcmp.lt.s32.totalorder %v4425_v3, 500 }
 0x38b   : > { %v2491_v61 = vsel %vm5060_vm14, %v1904_v32, -inf  ;;  %v2493_v53 = vsel %vm5061_vm15, %v2097_v11, -inf  ;;  %v1907_v50 = vpop.f32.mrb[144].mxu0  ;;  %v2100_v6 = vpop.f32.mrb[144].mxu1  ;;  %vm5067_vm9 = vmmov %vm5066_vm8 }
 0x38c   : > { %v2765_v15 = vmax.f32 %v2764_v16, %v2491_v61  ;;  %v2839_v40 = vmax.f32 %v2838_v35, %v2493_v53  ;;  %v1908_v25 = vadd.f32 %v1907_v50, %v4531_v45  ;;  %v2101_v12 = vadd.f32 %v2100_v6, %v4533_v36  ;;  %v1909_v18 = vpop.f32.mrb[145].mxu0  ;;  %v2102_v43 = vpop.f32.mrb[145].mxu1  ;;  %vm5068_vm10 = vmmov %vm5066_vm8 }
 0x38d   : > { %v1910_v13 = vadd.f32 %v1909_v18, %v4539_v52  ;;  %v2103_v9 = vadd.f32 %v2102_v43, %v4541_v33  ;;  %v1911_v4 = vpop.f32.mrb[146].mxu0  ;;  %v2104_v28 = vpop.f32.mrb[146].mxu1  ;;  %vm5069_vm11 = vmmov %vm5066_vm8 }
 0x38e   : > { %v2498_v54 = vsel %vm5062_vm4, %v1908_v25, -inf  ;;  %v2500_v51 = vsel %vm5063_vm5, %v2101_v12, -inf  ;;  %v1912_v0 = vadd.f32 %v1911_v4, %v4531_v45  ;;  %v2105_v46 = vadd.f32 %v2104_v28, %v4533_v36  ;;  %v1913_v55 = vpop.f32.mrb[147].mxu0  ;;  %v2106_v44 = vpop.f32.mrb[147].mxu1  ;;  %vm5071_vm13 = vmmov %vm5070_vm12 }
 0x38f   : > { %v2729_v23 = vmax.f32 %v2728_v8, %v2498_v54  ;;  %v2803_v41 = vmax.f32 %v2802_v63, %v2500_v51  ;;  %v2499_v42 = vsel %vm5064_vm6, %v1910_v13, -inf  ;;  %v2501_v38 = vsel %vm5065_vm7, %v2103_v9, -inf  ;;  %vm5072_vm14 = vmmov %vm5070_vm12 }
 0x390   : > { %v2766_v19 = vmax.f32 %v2765_v15, %v2499_v42  ;;  %v2840_v1 = vmax.f32 %v2839_v40, %v2501_v38  ;;  %v2506_v34 = vsel %vm5066_vm8, %v1912_v0, -inf  ;;  %v2508_v29 = vsel %vm5067_vm9, %v2105_v46, -inf  ;;  %vm5073_vm15 = vmmov %vm5070_vm12 }
 0x391   : > { %v2730_v37 = vmax.f32 %v2729_v23, %v2506_v34  ;;  %v2804_v39 = vmax.f32 %v2803_v41, %v2508_v29  ;;  %v1914_v60 = vadd.f32 %v1913_v55, %v4539_v52  ;;  %v2107_v56 = vadd.f32 %v2106_v44, %v4541_v33 }
 0x392   : > { %vm5074_vm4 = vcmp.lt.s32.totalorder %v4428_v7, 500 }
 0x393   : > { %v2507_v47 = vsel %vm5068_vm10, %v1914_v60, -inf  ;;  %v2509_v26 = vsel %vm5069_vm11, %v2107_v56, -inf  ;;  %v1917_v58 = vpop.f32.mrb[148].mxu0  ;;  %v2110_v14 = vpop.f32.mrb[148].mxu1  ;;  %vm5075_vm5 = vmmov %vm5074_vm4 }
 0x394   : > { %v2767_v31 = vmax.f32 %v2766_v19, %v2507_v47  ;;  %v2841_v27 = vmax.f32 %v2840_v1, %v2509_v26  ;;  %v1918_v20 = vadd.f32 %v1917_v58, %v4531_v45  ;;  %v2111_v5 = vadd.f32 %v2110_v14, %v4533_v36  ;;  %v1919_v59 = vpop.f32.mrb[149].mxu0  ;;  %v2112_v49 = vpop.f32.mrb[149].mxu1  ;;  %vm5076_vm6 = vmmov %vm5074_vm4 }
 0x395   : > { %v1920_v16 = vadd.f32 %v1919_v59, %v4539_v52  ;;  %v2113_v35 = vadd.f32 %v2112_v49, %v4541_v33  ;;  %v1921_v24 = vpop.f32.mrb[150].mxu0  ;;  %v2114_v62 = vpop.f32.mrb[150].mxu1  ;;  %vm5077_vm7 = vmmov %vm5074_vm4 }
 0x396   : > { %v2514_v57 = vsel %vm5070_vm12, %v1918_v20, -inf  ;;  %v2516_v8 = vsel %vm5071_vm13, %v2111_v5, -inf  ;;  %v1922_v63 = vadd.f32 %v1921_v24, %v4531_v45  ;;  %v2115_v32 = vadd.f32 %v2114_v62, %v4533_v36  ;;  %v1923_v11 = vpop.f32.mrb[151].mxu0  ;;  %v2116_v61 = vpop.f32.mrb[151].mxu1 }
 0x397   : > { %v2731_v53 = vmax.f32 %v2730_v37, %v2514_v57  ;;  %v2805_v50 = vmax.f32 %v2804_v39, %v2516_v8  ;;  %v2515_v6 = vsel %vm5072_vm14, %v1920_v16, -inf  ;;  %v2517_v15 = vsel %vm5073_vm15, %v2113_v35, -inf }
 0x398   : > { %v2768_v40 = vmax.f32 %v2767_v31, %v2515_v6  ;;  %v2842_v25 = vmax.f32 %v2841_v27, %v2517_v15  ;;  %v2522_v12 = vsel %vm5074_vm4, %v1922_v63, -inf  ;;  %v2524_v18 = vsel %vm5075_vm5, %v2115_v32, -inf }
 0x399   : > { %v2732_v43 = vmax.f32 %v2731_v53, %v2522_v12  ;;  %v2806_v13 = vmax.f32 %v2805_v50, %v2524_v18  ;;  %v1924_v9 = vadd.f32 %v1923_v11, %v4539_v52  ;;  %v2117_v4 = vadd.f32 %v2116_v61, %v4541_v33 }
 0x39b   : > { %v2523_v28 = vsel %vm5076_vm6, %v1924_v9, -inf  ;;  %v2525_v3 = vsel %vm5077_vm7, %v2117_v4, -inf  ;;  %v1927_v54 = vpop.f32.mrb[152].mxu0  ;;  %v2120_v51 = vpop.f32.mrb[152].mxu1 }
 0x39c   : > { %v2769_v0 = vmax.f32 %v2768_v40, %v2523_v28  ;;  %v2843_v46 = vmax.f32 %v2842_v25, %v2525_v3  ;;  %v1928_v55 = vadd.f32 %v1927_v54, %v4531_v45  ;;  %v2121_v44 = vadd.f32 %v2120_v51, %v4533_v36  ;;  %v1929_v23 = vpop.f32.mrb[153].mxu0  ;;  %v2122_v41 = vpop.f32.mrb[153].mxu1 }
 0x39d   : > { %v1930_v42 = vadd.f32 %v1929_v23, %v4539_v52  ;;  %v2123_v38 = vadd.f32 %v2122_v41, %v4541_v33  ;;  %v1931_v19 = vpop.f32.mrb[154].mxu0  ;;  %v2124_v1 = vpop.f32.mrb[154].mxu1 }
 0x39e   : > { %v2530_v7 = vsel %vm2234_vm0, %v1928_v55, -inf  ;;  %v2532_v34 = vsel %vm2234_vm0, %v2121_v44, -inf  ;;  %v1932_v29 = vadd.f32 %v1931_v19, %v4531_v45  ;;  %v2125_v37 = vadd.f32 %v2124_v1, %v4533_v36  ;;  %v1933_v39 = vpop.f32.mrb[155].mxu0  ;;  %v2126_v60 = vpop.f32.mrb[155].mxu1 }
 0x39f   : > { %v2733_v56 = vmax.f32 %v2732_v43, %v2530_v7  ;;  %v2807_v47 = vmax.f32 %v2806_v13, %v2532_v34  ;;  %v2531_v26 = vsel %vm2234_vm0, %v1930_v42, -inf  ;;  %v2533_v58 = vsel %vm2234_vm0, %v2123_v38, -inf }
 0x3a0   : > { %v2770_v14 = vmax.f32 %v2769_v0, %v2531_v26  ;;  %v2844_v31 = vmax.f32 %v2843_v46, %v2533_v58  ;;  %v2538_v27 = vsel %vm2235_vm1, %v1932_v29, -inf  ;;  %v2540_v20 = vsel %vm2235_vm1, %v2125_v37, -inf }
 0x3a1   : > { %v2734_v5 = vmax.f32 %v2733_v56, %v2538_v27  ;;  %v2808_v59 = vmax.f32 %v2807_v47, %v2540_v20  ;;  %v1934_v49 = vadd.f32 %v1933_v39, %v4539_v52  ;;  %v2127_v16 = vadd.f32 %v2126_v60, %v4541_v33 }
 0x3a3   : > { %v2539_v35 = vsel %vm2235_vm1, %v1934_v49, -inf  ;;  %v2541_v17 = vsel %vm2235_vm1, %v2127_v16, -inf  ;;  %v1937_v24 = vpop.f32.mrb[156].mxu0  ;;  %v2130_v62 = vpop.f32.mrb[156].mxu1 }
 0x3a4   : > { %v2771_v57 = vmax.f32 %v2770_v14, %v2539_v35  ;;  %v2845_v8 = vmax.f32 %v2844_v31, %v2541_v17  ;;  %v1938_v63 = vadd.f32 %v1937_v24, %v4531_v45  ;;  %v2131_v32 = vadd.f32 %v2130_v62, %v4533_v36  ;;  %v1939_v11 = vpop.f32.mrb[157].mxu0  ;;  %v2132_v61 = vpop.f32.mrb[157].mxu1 }
 0x3a5   : > { %v1940_v53 = vadd.f32 %v1939_v11, %v4539_v52  ;;  %v2133_v50 = vadd.f32 %v2132_v61, %v4541_v33  ;;  %v1941_v6 = vpop.f32.mrb[158].mxu0  ;;  %v2134_v15 = vpop.f32.mrb[158].mxu1  ;;  %v3383_v17 = vmov (!%p3177_p7), 1966171168   ;;  %v2866_v62 = vcombine.low (!%p3177_p7), %v4587_v30, %v4597_v22  ;;  %v5079_v11 = vld [vmem:[#allocation2_spill] sm:$0xff] (!%p3177_p7) }
 0x3a6   : > { %v2546_v21 = vsel %vm2236_vm2, %v1938_v63, -inf  ;;  %v2548_v40 = vsel %vm2236_vm2, %v2131_v32, -inf  ;;  %v1942_v25 = vadd.f32 %v1941_v6, %v4531_v45  ;;  %v2135_v12 = vadd.f32 %v2134_v15, %v4533_v36  ;;  %v1943_v18 = vpop.f32.mrb[159].mxu0  ;;  %v2136_v43 = vpop.f32.mrb[159].mxu1 }
 0x3a7   : > { %v2735_v13 = vmax.f32 %v2734_v5, %v2546_v21  ;;  %v2809_v9 = vmax.f32 %v2808_v59, %v2548_v40  ;;  %v2547_v4 = vsel %vm2236_vm2, %v1940_v53, -inf  ;;  %v2549_v28 = vsel %vm2236_vm2, %v2133_v50, -inf }
 0x3a8   : > { %v2772_v3 = vmax.f32 %v2771_v57, %v2547_v4  ;;  %v2846_v54 = vmax.f32 %v2845_v8, %v2549_v28  ;;  %v2554_v0 = vsel %vm2237_vm3, %v1942_v25, -inf  ;;  %v2556_v45 = vsel %vm2237_vm3, %v2135_v12, -inf }
 0x3a9   : > { %v2736_v46 = vmax.f32 %v2735_v13, %v2554_v0  ;;  %v2810_v36 = vmax.f32 %v2809_v9, %v2556_v45  ;;  %v1944_v55 = vadd.f32 %v1943_v18, %v4539_v52  ;;  %v2137_v44 = vadd.f32 %v2136_v43, %v4541_v33 }
 0x3aa   : > { %v2871_v24 = vunpack.c.l.s4 (!%p3177_p7), %v3383_v17  ;;  %v2867_v57 = vcombine.low (!%p3177_p7), %v4589_v10, %v4599_v48 }
 0x3ab   : > { %v2737_v23 = vrot.slane %v2736_v46, 4  ;;  %v2811_v41 = vrot.slane %v2810_v36, 4  ;;  %v2555_v2 = vsel %vm2237_vm3, %v1944_v55, -inf  ;;  %v2557_v42 = vsel %vm2237_vm3, %v2137_v44, -inf }
 0x3ac   : > { %v2773_v38 = vmax.f32 %v2772_v3, %v2555_v2  ;;  %v2847_v19 = vmax.f32 %v2846_v54, %v2557_v42  ;;  %v2872_v32 = vunpack.c.0.s8 (!%p3177_p7), %v2871_v24 }
 0x3ad   : > { %v2738_v1 = vmax.f32 %v2736_v46, %v2737_v23  ;;  %v2812_v7 = vmax.f32 %v2810_v36, %v2811_v41 }
 0x3ae   : > { %v2774_v34 = vrot.slane %v2773_v38, 4  ;;  %v2848_v29 = vrot.slane %v2847_v19, 4  ;;  %v2875_v61 = vsub.s32 (!%p3177_p7), %v2872_v32, %v5079_v11 }
 0x3af   : > { %v2739_v37 = vrot.slane %v2738_v1, 2  ;;  %v2813_v39 = vrot.slane %v2812_v7, 2 }
 0x3b0   : > { %v2775_v60 = vmax.f32 %v2773_v38, %v2774_v34  ;;  %v2849_v52 = vmax.f32 %v2847_v19, %v2848_v29  ;;  %v2876_v53 = vrot.slane (!%p3177_p7), %v2866_v62, %v2875_v61  ;;  %v2883_v50 = vrot.slane (!%p3177_p7), %v2867_v57, %v2875_v61 }
 0x3b1   : > { %v2740_v56 = vmax.f32 %v2738_v1, %v2739_v37  ;;  %v2814_v33 = vmax.f32 %v2812_v7, %v2813_v39 }
 0x3b2   : > { %v2776_v47 = vrot.slane %v2775_v60, 2  ;;  %v2850_v26 = vrot.slane %v2849_v52, 2  ;;  %2857 = sbr.rel (%p3177_p7) target bundleno = 965 (0x3c5), region = 52  ;;  %v2898_v21 = vcombine.low (!%p3177_p7), %v2876_v53, %v2883_v50 }
 0x3b3   : > { %v2741_v58 = vrot.slane %v2740_v56, 1  ;;  %v2815_v14 = vrot.slane %v2814_v33, 1 }
 0x3b4   : > { %v2777_v31 = vmax.f32 %v2775_v60, %v2776_v47  ;;  %v2851_v27 = vmax.f32 %v2849_v52, %v2850_v26  ;;  %v2906_v25 = vrot.slane (!%p3177_p7), %v2898_v21, %v2875_v61 }
 0x3b5   : > { %v2742_v20 = vmax.f32 %v2740_v56, %v2741_v58  ;;  %v2816_v5 = vmax.f32 %v2814_v33, %v2815_v14 }
 0x3b6   : > { %v2778_v59 = vrot.slane %v2777_v31, 1  ;;  %v2852_v49 = vrot.slane %v2851_v27, 1 }
 0x3b8   : > { %v2779_v16 = vmax.f32 %v2777_v31, %v2778_v59  ;;  %v2853_v35 = vmax.f32 %v2851_v27, %v2852_v49 }
 0x3ba   : > { %v2868_v8 = vcombine.low %v2742_v20, %v2779_v16  ;;  %v2869_v63 = vcombine.low %v2816_v5, %v2853_v35 }
 0x3bc   : > { %v2890_v6 = vrot.slane %v2868_v8, %v2875_v61  ;;  %v2897_v15 = vrot.slane %v2869_v63, %v2875_v61 }
 0x3be   : > { %v2899_v40 = vcombine.low %v2890_v6, %v2897_v15 }
 0x3c0   : > { %v2913_v12 = vrot.slane %v2899_v40, %v2875_v61 }
 0x3c2   : > { %v2914_v18 = vcombine.low %v2906_v25, %v2913_v12 }
 0x3c4   : > { %2916 = vst [vmem:[%s3475_s8] sm:$0xff] %v2914_v18 }
 0x3c5 PF: > { %p3178_p8 = scmp.le.s32.totalorder %s3363_s24, 0 }
 0x3c6   : > { %v3384_v43 = vmov (!%p3178_p8), 1966171168   ;;  %v2930_v9 = vcombine.low (!%p3178_p8), %v4587_v30, %v4597_v22  ;;  %v2931_v4 = vcombine.low (!%p3178_p8), %v4589_v10, %v4599_v48  ;;  %v2932_v28 = vcombine.low (!%p3178_p8), %v2742_v20, %v2779_v16  ;;  %v5080_v51 = vld [vmem:[#allocation2_spill] sm:$0xff] (!%p3178_p8) }
 0x3c7   : > { %2920 = sbr.rel (%p3178_p8) target bundleno = 984 (0x3d8), region = 56  ;;  %v2935_v13 = vunpack.c.l.s4 (!%p3178_p8), %v3384_v43  ;;  %v2933_v3 = vcombine.low (!%p3178_p8), %v2816_v5, %v2853_v35 }
 0x3c9   : > { %v2936_v54 = vunpack.c.0.s8 (!%p3178_p8), %v2935_v13 }
 0x3cb   : > { %v2939_v0 = vsub.s32 (!%p3178_p8), %v2936_v54, %v5080_v51  ;;  %v2921_v42 = vld [vmem:[%s3475_s8] sm:$0xff] (!%p3178_p8) }
 0x3cd   : > { %v2940_v45 = vrot.slane (!%p3178_p8), %v2930_v9, %v2939_v0  ;;  %v2947_v46 = vrot.slane (!%p3178_p8), %v2931_v4, %v2939_v0  ;;  %v2954_v36 = vrot.slane (!%p3178_p8), %v2932_v28, %v2939_v0  ;;  %v2961_v55 = vrot.slane (!%p3178_p8), %v2933_v3, %v2939_v0 }
 0x3cf   : > { %v2962_v44 = vcombine.low %v2940_v45, %v2947_v46  ;;  %v2963_v23 = vcombine.low %v2954_v36, %v2961_v55 }
 0x3d1   : > { %v2970_v41 = vrot.slane %v2962_v44, %v2939_v0  ;;  %v2977_v2 = vrot.slane %v2963_v23, %v2939_v0 }
 0x3d3   : > { %v2978_v38 = vcombine.low %v2970_v41, %v2977_v2 }
 0x3d5   : > { %v2980_v30 = vmax.f32 %v2921_v42, %v2978_v38 }
 0x3d7   : > { %2981 = vst [vmem:[%s3475_s8] sm:$0xff] %v2980_v30 }
 0x3d8 PF: > { %s17_s28 = sadd.s32 1, %s3379_s28   ;;  %s5081_s24 = smov %s3371_s26 }
 0x3d9   : > { %p14_p9 = scmp.ge.s32.totalorder %s17_s28, 10   ;;  %s5082_s25 = smov %s3375_s27 }
 0x3da   : > { %s5083_s26 = smov %s5086_s29  ;;  %s5084_s27 = smov %s5090_s30 }
 0x3db   :  { %16 = sbr.rel (!%p14_p9) target bundleno = 3 (0x3), region = 89 }

// kernel: pointnetfeat.2
= control target key start
LH: loop header
LB: loop body
LE: loop exit
PB: predicated region body
PF: predicated region fallthrough
CT: control target
= control target key end

     0   :  { %s3650_s24 = smov 0   ;;  %s3652_s25 = smov 0   ;;  %s5237_s0 = inlined_call_operand.vmem [shape: f32[4,512,3], index: 0, kind: input, shape index: {}]   ;;  %s5238_s1 = inlined_call_operand.vmem [shape: bf16[3,64], index: 1, kind: input, shape index: {}]   ;;  %s5239_s2 = inlined_call_operand.vmem [shape: f32[1,64], index: 2, kind: input, shape index: {}]   ;;  %s5240_s3 = inlined_call_operand.vmem [shape: bf16[64,128], index: 3, kind: input, shape index: {}]   ;;  %s5241_s4 = inlined_call_operand.vmem [shape: f32[1,128], index: 4, kind: input, shape index: {}]   ;;  %s5242_s5 = inlined_call_operand.vmem [shape: bf16[128,1024], index: 5, kind: input, shape index: {}]   ;;  %s5243_s6 = inlined_call_operand.vmem [shape: f32[1,1024], index: 6, kind: input, shape index: {}]   ;;  %s5244_s7 = inlined_call_operand.vmem [shape: f32[4,1,1024], index: 7, kind: output, shape index: {}]  }
   0x1   :  { %s3654_s26 = smov 0   ;;  %s3656_s27 = smov 0  }
   0x2   :  { %s3658_s28 = smov 0  }
   0x3 LB: > { %s26_s29 = sadd.s32 1, %s3596_s26  ;;  %s29_s30 = sadd.s32 1, %s3600_s27  ;;  %s3604_s28 = sphi %s3658_s28, %s17_s28   ;;  %s3600_s27 = sphi %s3656_s27, %s5379_s27   ;;  %s3596_s26 = sphi %s3654_s26, %s5378_s26   ;;  %s3592_s25 = sphi %s3652_s25, %s5377_s25   ;;  %s3588_s24 = sphi %s3650_s24, %s5376_s24  }
   0x4   : > { %p27_p0 = scmp.ge.s32.totalorder %s26_s29, 2  ;;  %p3295_p1 = scmp.ge.s32.totalorder %s3604_s28, 1 }
   0x5   : > { %p256_p2 = scmp.lt.s32.totalorder %s3604_s28, 9 }
   0x6   : > { %s5381_s29 = smov (%p27_p0, %s26_s29), 0  ;;  %s5383_s30 = smov (!%p27_p0, %s29_s30), %s3600_s27 }
   0x7   : > { %p257_p3 = pnand %p3295_p1, %p256_p2  ;;  %p31_p4 = scmp.ge.s32.totalorder %s5383_s30, 4 }
   0x9   : > { %s5385_s30 = smov (%p31_p4, %s5383_s30), 0  ;;  %260 = sbr.rel (%p257_p3) target bundleno = 999 (0x3e7), region = 48 }
  0x10   : > { %v354_v0 = vld [vmem:[%s5238_s1] sm:$0x3]  ;;  %vm411_vm0 = vcmask 1040384   ;;  %vm412_vm1 = vcmask 1041408   ;;  %s3296_s10 = sshll.u32 %s3588_s24, 5  ;;  %v3606_v1 = vmov 65535  }
  0x11   : > { %v413_v2 = vsel %vm411_vm0, 4294967295, %v3606_v1  ;;  %p292_p5 = scmp.lt.s32.totalorder %s3592_s25, 3  ;;  %p294_p6 = scmp.lt.s32.totalorder %s3296_s10, 63  ;;  %v3562_v4 = vld [vmem:[%s5240_s3] sm:$0xff]   ;;  %v3563_v6 = vld [vmem:[%s5240_s3 + $0x8] sm:$0xff]   ;;  %vm362_vm2 = vcmask 23552  }
  0x12   : > { %v414_v3 = vsel %vm412_vm1, %v413_v2, 0  ;;  %3478 = vmatprep.subr.bf16.mxu1 %v3562_v4  ;;  %v3564_v55 = vld [vmem:[%s5240_s3 + $0x10] sm:$0xff]   ;;  %v3565_v56 = vld [vmem:[%s5240_s3 + $0x18] sm:$0xff]   ;;  %v924_v57 = vld [vmem:[%s5242_s5] sm:$0xff]  ;;  %vm666_vm3 = vcmask 523264   ;;  %s3402_s18 = sshll.u32 %s3588_s24, 8 }
  0x13   : > { %v416_v5 = vand.u32 %v414_v3, %v354_v0  ;;  %s5387_s25 = smov (!%p292_p5, %s3592_s25), 3  ;;  %s5389_s10 = smov (!%p294_p6, %s3296_s10), 63  ;;  %3479 = vmatpush3.bf16.msra.mxu1 %v3562_v4  ;;  %v928_v58 = vld [vmem:[%s5242_s5 + $0x20] sm:$0xff]  ;;  %v3765_v59 = vld [vmem:[%s5242_s5 + $0x8] sm:$0xff] }
  0x14   : > { %s3297_s15 = sshll.u32 %s5387_s25, 6  ;;  %s3299_s16 = sshll.u32 %s5387_s25, 3  ;;  %3480 = vmatprep.subr.bf16.mxu1 %v3563_v6  ;;  %v3338_v60 = vcombine.low %v924_v57, %v928_v58  ;;  %v3339_v61 = vcombine.high %v924_v57, %v928_v58  ;;  %v3770_v62 = vld [vmem:[%s5242_s5 + $0x28] sm:$0xff]  ;;  %v932_v63 = vld [vmem:[%s5242_s5 + $0x40] sm:$0xff] }
  0x15   : > { %3444 = vmatprep.subr.bf16.mxu0 %v416_v5  ;;  %s297_s17 = sadd.s32 %s3297_s15, %s5389_s10  ;;  %s3695_s20 = scalar_lea.vmem %s5244_s7, %s3299_s16  ;;  %v936_v0 = vld [vmem:[%s5242_s5 + $0x60] sm:$0xff]  ;;  %v3340_v1 = vcombine.low %v3765_v59, %v3770_v62  ;;  %v3341_v2 = vcombine.high %v3765_v59, %v3770_v62 }
  0x16   : > { %3445 = vmatpush3.bf16.msra.mxu0 %v416_v5  ;;  %s3298_s21 = sshll.u32 %s297_s17, 3  ;;  %v3347_v3 = vcombine.high %v932_v63, %v936_v0  ;;  %v940_v4 = vld [vmem:[%s5242_s5 + $0x80] sm:$0xff]  ;;  %p3403_p7 = scmp.ne.s32.totalorder %s3588_s24, 0 }
  0x17   : > { %s3700_s8 = scalar_lea.vmem %s5237_s0, %s3298_s21  ;;  %3481 = vmatpush3.bf16.msra.mxu1 %v3563_v6  ;;  %1350 = vmatprep.subr.bf16.mxu0 %v3339_v61  ;;  %v944_v5 = vld [vmem:[%s5242_s5 + $0xa0] sm:$0xff]  ;;  %v3346_v6 = vcombine.low %v932_v63, %v936_v0  ;;  %v953_v61 = vld [vmem:[%s5242_s5 + $0xe8] sm:$0xff] }
  0x18   : > { %v306_v7 = vld [vmem:[%s3700_s8] sm:$0xff]  ;;  %v307_v8 = vld [vmem:[%s3700_s8 + $0x8] sm:$0xff]  ;;  %v308_v9 = vld [vmem:[%s3700_s8 + $0x10] sm:$0xff]  ;;  %3482 = vmatprep.subr.bf16.mxu1 %v3564_v55 }
  0x19   : > { %v338_v10 = vpack.c.bf16 %v307_v8, %v306_v7  ;;  %v309_v11 = vld [vmem:[%s3700_s8 + $0x18] sm:$0xff]  ;;  %v310_v12 = vld [vmem:[%s3700_s8 + $0x20] sm:$0xff]  ;;  %v311_v13 = vld [vmem:[%s3700_s8 + $0x28] sm:$0xff]  ;;  %v3355_v7 = vcombine.high %v940_v4, %v944_v5 }
  0x1a   : > { %v339_v14 = vpack.c.bf16 %v309_v11, %v308_v9  ;;  %v340_v15 = vpack.c.bf16 %v311_v13, %v310_v12  ;;  %v312_v16 = vld [vmem:[%s3700_s8 + $0x30] sm:$0xff]  ;;  %v313_v17 = vld [vmem:[%s3700_s8 + $0x38] sm:$0xff]  ;;  %v314_v18 = vld [vmem:[%s3700_s8 + $0x40] sm:$0xff] }
  0x1b   : > { %3446 = vmatprep.mubr.msk.bf16.mxu0 %vm362_vm2, %v338_v10  ;;  %v315_v19 = vld [vmem:[%s3700_s8 + $0x48] sm:$0xff]  ;;  %v341_v20 = vpack.c.bf16 %v313_v17, %v312_v16  ;;  %v316_v22 = vld [vmem:[%s3700_s8 + $0x50] sm:$0xff]  ;;  %v317_v23 = vld [vmem:[%s3700_s8 + $0x58] sm:$0xff]  ;;  %3483 = vmatpush3.bf16.msra.mxu1 %v3564_v55  ;;  %v3354_v10 = vcombine.low %v940_v4, %v944_v5 }
  0x1c   : > { %3447 = vmatmul.mubr.msk.bf16.vlgmr.msra.gmra.mrb[0].mxu0 %vm362_vm2, %v339_v14  ;;  %v342_v21 = vpack.c.bf16 %v315_v19, %v314_v18  ;;  %v318_v24 = vld [vmem:[%s3700_s8 + $0x60] sm:$0xff]  ;;  %v319_v25 = vld [vmem:[%s3700_s8 + $0x68] sm:$0xff]  ;;  %v343_v26 = vpack.c.bf16 %v317_v23, %v316_v22  ;;  %v320_v28 = vld [vmem:[%s3700_s8 + $0x70] sm:$0xff]  ;;  %3484 = vmatprep.subr.bf16.mxu1 %v3565_v56 }
  0x1d   : > { %3450 = vmatprep.mubr.msk.bf16.mxu0 %vm362_vm2, %v340_v15  ;;  %v344_v27 = vpack.c.bf16 %v319_v25, %v318_v24  ;;  %v321_v29 = vld [vmem:[%s3700_s8 + $0x78] sm:$0xff]  ;;  %v322_v30 = vld [vmem:[%s3700_s8 + $0x80] sm:$0xff]  ;;  %v323_v31 = vld [vmem:[%s3700_s8 + $0x88] sm:$0xff]  ;;  %1351 = vmatpush1.bf16.msra.mxu0 %v3338_v60 }
  0x1e   : > { %v345_v32 = vpack.c.bf16 %v321_v29, %v320_v28  ;;  %v346_v33 = vpack.c.bf16 %v323_v31, %v322_v30  ;;  %v324_v34 = vld [vmem:[%s3700_s8 + $0x90] sm:$0xff]  ;;  %v325_v35 = vld [vmem:[%s3700_s8 + $0x98] sm:$0xff]  ;;  %v326_v36 = vld [vmem:[%s3700_s8 + $0xa0] sm:$0xff]  ;;  %1352 = vmatprep.subr.bf16.mxu0 %v3347_v3 }
  0x1f   : > { %v327_v37 = vld [vmem:[%s3700_s8 + $0xa8] sm:$0xff]  ;;  %v347_v38 = vpack.c.bf16 %v325_v35, %v324_v34  ;;  %v328_v40 = vld [vmem:[%s3700_s8 + $0xb0] sm:$0xff]  ;;  %v329_v41 = vld [vmem:[%s3700_s8 + $0xb8] sm:$0xff]  ;;  %3485 = vmatpush3.bf16.msra.mxu1 %v3565_v56 }
  0x20   : > { %v348_v39 = vpack.c.bf16 %v327_v37, %v326_v36  ;;  %v330_v42 = vld [vmem:[%s3700_s8 + $0xc0] sm:$0xff]  ;;  %v331_v43 = vld [vmem:[%s3700_s8 + $0xc8] sm:$0xff]  ;;  %v349_v44 = vpack.c.bf16 %v329_v41, %v328_v40  ;;  %v332_v46 = vld [vmem:[%s3700_s8 + $0xd0] sm:$0xff]  ;;  %1543 = vmatprep.subr.bf16.mxu1 %v3341_v2 }
  0x21   : > { %v350_v45 = vpack.c.bf16 %v331_v43, %v330_v42  ;;  %v333_v47 = vld [vmem:[%s3700_s8 + $0xd8] sm:$0xff]  ;;  %v334_v48 = vld [vmem:[%s3700_s8 + $0xe0] sm:$0xff]  ;;  %v335_v49 = vld [vmem:[%s3700_s8 + $0xe8] sm:$0xff]  ;;  %1353 = vmatpush1.bf16.msra.mxu0 %v3346_v6 }
  0x22   : > { %v351_v50 = vpack.c.bf16 %v333_v47, %v332_v46  ;;  %v352_v51 = vpack.c.bf16 %v335_v49, %v334_v48  ;;  %v336_v52 = vld [vmem:[%s3700_s8 + $0xf0] sm:$0xff]  ;;  %v337_v53 = vld [vmem:[%s3700_s8 + $0xf8] sm:$0xff]  ;;  %v948_v8 = vld [vmem:[%s5242_s5 + $0xc0] sm:$0xff]  ;;  %1354 = vmatprep.subr.bf16.mxu0 %v3355_v7 }
  0x23   : > { %v353_v54 = vpack.c.bf16 %v337_v53, %v336_v52  ;;  %v952_v9 = vld [vmem:[%s5242_s5 + $0xe0] sm:$0xff]  ;;  %v941_v48 = vld [vmem:[%s5242_s5 + $0x88] sm:$0xff] }
  0x24   : > { %3451 = vmatmul.mubr.msk.bf16.gmra.mrb[4].mxu0 %vm362_vm2, %v341_v20  ;;  %v3363_v11 = vcombine.high %v948_v8, %v952_v9  ;;  %v956_v12 = vld [vmem:[%s5242_s5 + $0x100] sm:$0xff]  ;;  %v3362_v14 = vcombine.low %v948_v8, %v952_v9  ;;  %v945_v49 = vld [vmem:[%s5242_s5 + $0xa8] sm:$0xff] }
  0x25   : > { %3454 = vmatprep.mubr.msk.bf16.mxu0 %vm362_vm2, %v342_v21  ;;  %v960_v13 = vld [vmem:[%s5242_s5 + $0x120] sm:$0xff]  ;;  %1355 = vmatpush1.bf16.msra.mxu0 %v3354_v10  ;;  %v3357_v57 = vcombine.high %v941_v48, %v945_v49  ;;  %v949_v60 = vld [vmem:[%s5242_s5 + $0xc8] sm:$0xff]  ;;  %v3356_v3 = vcombine.low %v941_v48, %v945_v49 }
  0x26   : > { %1356 = vmatprep.subr.bf16.mxu0 %v3363_v11  ;;  %v3371_v15 = vcombine.high %v956_v12, %v960_v13  ;;  %v964_v16 = vld [vmem:[%s5242_s5 + $0x140] sm:$0xff]  ;;  %v3370_v18 = vcombine.low %v956_v12, %v960_v13  ;;  %v957_v6 = vld [vmem:[%s5242_s5 + $0x108] sm:$0xff]  ;;  %v3364_v13 = vcombine.low %v949_v60, %v953_v61 }
  0x27   : > { %v968_v17 = vld [vmem:[%s5242_s5 + $0x160] sm:$0xff]  ;;  %v961_v7 = vld [vmem:[%s5242_s5 + $0x128] sm:$0xff] }
  0x28   : > { %v3379_v19 = vcombine.high %v964_v16, %v968_v17  ;;  %v972_v20 = vld [vmem:[%s5242_s5 + $0x180] sm:$0xff]  ;;  %v3378_v22 = vcombine.low %v964_v16, %v968_v17  ;;  %v965_v17 = vld [vmem:[%s5242_s5 + $0x148] sm:$0xff] }
  0x29   : > { %1357 = vmatpush1.bf16.msra.mxu0 %v3362_v14  ;;  %v976_v21 = vld [vmem:[%s5242_s5 + $0x1a0] sm:$0xff] }
  0x2a   : > { %1358 = vmatprep.subr.bf16.mxu0 %v3371_v15  ;;  %v3387_v23 = vcombine.high %v972_v20, %v976_v21  ;;  %v3386_v24 = vcombine.low %v972_v20, %v976_v21  ;;  %v3815_v25 = vld [vmem:[%s5239_s2] ss:$0 sm:$0xff]  ;;  %v3373_v15 = vcombine.high %v957_v6, %v961_v7 }
  0x2c   : > { %3455 = vmatmul.mubr.msk.bf16.gmra.mrb[8].mxu0 %vm362_vm2, %v343_v26 }
  0x2d   : > { %3458 = vmatprep.mubr.msk.bf16.mxu0 %vm362_vm2, %v344_v27  ;;  %1359 = vmatpush1.bf16.msra.mxu0 %v3370_v18  ;;  %v969_v18 = vld [vmem:[%s5242_s5 + $0x168] sm:$0xff] }
  0x2e   : > { %1360 = vmatprep.subr.bf16.mxu0 %v3379_v19 }
  0x31   : > { %1361 = vmatpush1.bf16.msra.mxu0 %v3378_v22  ;;  %v3372_v22 = vcombine.low %v957_v6, %v961_v7 }
  0x32   : > { %1362 = vmatprep.subr.bf16.mxu0 %v3387_v23 }
  0x34   : > { %3459 = vmatmul.mubr.msk.bf16.gmra.mrb[12].mxu0 %vm362_vm2, %v345_v32 }
  0x35   : > { %3462 = vmatprep.mubr.msk.bf16.mxu0 %vm362_vm2, %v346_v33  ;;  %1363 = vmatpush1.bf16.msra.mxu0 %v3386_v24 }
  0x3c   : > { %3463 = vmatmul.mubr.msk.bf16.gmra.mrb[16].mxu0 %vm362_vm2, %v347_v38  ;;  %v933_v38 = vld [vmem:[%s5242_s5 + $0x48] sm:$0xff] }
  0x3d   : > { %3466 = vmatprep.mubr.msk.bf16.mxu0 %vm362_vm2, %v348_v39  ;;  %v937_v39 = vld [vmem:[%s5242_s5 + $0x68] sm:$0xff] }
  0x3e   : > { %v3348_v55 = vcombine.low %v933_v38, %v937_v39 }
  0x44   : > { %3467 = vmatmul.mubr.msk.bf16.gmra.mrb[20].mxu0 %vm362_vm2, %v349_v44 }
  0x45   : > { %3470 = vmatprep.mubr.msk.bf16.mxu0 %vm362_vm2, %v350_v45  ;;  %v3349_v45 = vcombine.high %v933_v38, %v937_v39 }
  0x4c   : > { %3471 = vmatmul.mubr.msk.bf16.gmra.mrb[24].mxu0 %vm362_vm2, %v351_v50 }
  0x4d   : > { %3474 = vmatprep.mubr.msk.bf16.mxu0 %vm362_vm2, %v352_v51 }
  0x54   : > { %3475 = vmatmul.mubr.msk.bf16.gmra.mrb[28].mxu0 %vm362_vm2, %v353_v54 }
  0xef   : > { %v3448_v26 = vpop.f32.mrb[0].mxu0 }
  0xf0   : > { %v461_v27 = vadd.f32 %v3448_v26, %v3815_v25  ;;  %v452_v28 = vpop.f32.mrb[1].mxu0  ;;  %v3381_v26 = vcombine.high %v965_v17, %v969_v18 }
  0xf1   : > { %v453_v29 = vadd.f32 %v3815_v25, %v452_v28  ;;  %v3449_v30 = vpop.f32.mrb[2].mxu0 }
  0xf2   : > { %v464_v31 = vadd.f32 %v3449_v30, %v3815_v25  ;;  %v455_v32 = vpop.f32.mrb[3].mxu0  ;;  %v581_v34 = vmax.f32 %v461_v27, 0.0  ;;  %v977_v30 = vld [vmem:[%s5242_s5 + $0x1a8] sm:$0xff] }
  0xf3   : > { %v456_v33 = vadd.f32 %v3815_v25, %v455_v32  ;;  %v579_v36 = vmax.f32 %v453_v29, 0.0  ;;  %v973_v29 = vld [vmem:[%s5242_s5 + $0x188] sm:$0xff] }
  0xf4   : > { %v582_v35 = vmax.f32 %v464_v31, 0.0  ;;  %v3389_v38 = vcombine.high %v973_v29, %v977_v30 }
  0xf5   : > { %v580_v37 = vmax.f32 %v456_v33, 0.0 }
  0xf6   : > { %v612_v40 = vpack.c.bf16 %v582_v35, %v581_v34 }
  0xf7   : > { %v3452_v41 = vpop.f32.mrb[4].mxu0  ;;  %v611_v42 = vpack.c.bf16 %v580_v37, %v579_v36  ;;  %v3380_v36 = vcombine.low %v965_v17, %v969_v18 }
  0xf8   : > { %v477_v43 = vadd.f32 %v3452_v41, %v3815_v25  ;;  %v468_v44 = vpop.f32.mrb[5].mxu0 }
  0xf9   : > { %v469_v46 = vadd.f32 %v3815_v25, %v468_v44  ;;  %3486 = vmatprep.mubr.msk.bf16.mxu1 %vm666_vm3, %v611_v42  ;;  %v3453_v47 = vpop.f32.mrb[6].mxu0 }
  0xfa   : > { %v585_v50 = vmax.f32 %v477_v43, 0.0  ;;  %v480_v51 = vadd.f32 %v3453_v47, %v3815_v25  ;;  %3487 = vmatmul.mubr.msk.bf16.vlgmr.msra.gmra.mrb[0].mxu1 %vm666_vm3, %v612_v40  ;;  %v471_v52 = vpop.f32.mrb[7].mxu0  ;;  %v3388_v43 = vcombine.low %v973_v29, %v977_v30 }
  0xfb   : > { %v583_v53 = vmax.f32 %v469_v46, 0.0  ;;  %v472_v54 = vadd.f32 %v3815_v25, %v471_v52  ;;  %1544 = vmatpush1.bf16.msra.mxu1 %v3340_v1  ;;  %v3365_v1 = vcombine.high %v949_v60, %v953_v61 }
  0xfc   : > { %v586_v56 = vmax.f32 %v480_v51, 0.0  ;;  %1545 = vmatprep.subr.bf16.mxu1 %v3349_v45 }
  0xfd   : > { %v584_v58 = vmax.f32 %v472_v54, 0.0 }
  0xfe   : > { %v614_v63 = vpack.c.bf16 %v586_v56, %v585_v50 }
  0xff   : > { %v613_v0 = vpack.c.bf16 %v584_v58, %v583_v53  ;;  %v3456_v2 = vpop.f32.mrb[8].mxu0  ;;  %1546 = vmatpush1.bf16.msra.mxu1 %v3348_v55 }
 0x100   : > { %v493_v59 = vadd.f32 %v3456_v2, %v3815_v25  ;;  %v484_v62 = vpop.f32.mrb[9].mxu0  ;;  %1547 = vmatprep.subr.bf16.mxu1 %v3357_v57 }
 0x101   : > { %3490 = vmatprep.mubr.msk.bf16.mxu1 %vm666_vm3, %v613_v0  ;;  %v485_v4 = vadd.f32 %v3815_v25, %v484_v62  ;;  %v3457_v5 = vpop.f32.mrb[10].mxu0 }
 0x102   : > { %3491 = vmatmul.mubr.msk.bf16.gmra.mrb[4].mxu1 %vm666_vm3, %v614_v63  ;;  %v589_v8 = vmax.f32 %v493_v59, 0.0  ;;  %v496_v9 = vadd.f32 %v3457_v5, %v3815_v25  ;;  %v487_v10 = vpop.f32.mrb[11].mxu0 }
 0x103   : > { %v587_v11 = vmax.f32 %v485_v4, 0.0  ;;  %v488_v12 = vadd.f32 %v3815_v25, %v487_v10  ;;  %1548 = vmatpush1.bf16.msra.mxu1 %v3356_v3 }
 0x104   : > { %v590_v14 = vmax.f32 %v496_v9, 0.0  ;;  %1549 = vmatprep.subr.bf16.mxu1 %v3365_v1 }
 0x105   : > { %v588_v16 = vmax.f32 %v488_v12, 0.0 }
 0x106   : > { %v616_v19 = vpack.c.bf16 %v590_v14, %v589_v8 }
 0x107   : > { %v615_v20 = vpack.c.bf16 %v588_v16, %v587_v11  ;;  %v3460_v21 = vpop.f32.mrb[12].mxu0  ;;  %1550 = vmatpush1.bf16.msra.mxu1 %v3364_v13 }
 0x108   : > { %v509_v23 = vadd.f32 %v3460_v21, %v3815_v25  ;;  %v500_v24 = vpop.f32.mrb[13].mxu0  ;;  %1551 = vmatprep.subr.bf16.mxu1 %v3373_v15 }
 0x109   : > { %3494 = vmatprep.mubr.msk.bf16.mxu1 %vm666_vm3, %v615_v20  ;;  %v501_v27 = vadd.f32 %v3815_v25, %v500_v24  ;;  %v3461_v28 = vpop.f32.mrb[14].mxu0 }
 0x10a   : > { %3495 = vmatmul.mubr.msk.bf16.gmra.mrb[8].mxu1 %vm666_vm3, %v616_v19  ;;  %v593_v31 = vmax.f32 %v509_v23, 0.0  ;;  %v512_v32 = vadd.f32 %v3461_v28, %v3815_v25  ;;  %v503_v33 = vpop.f32.mrb[15].mxu0 }
 0x10b   : > { %v591_v34 = vmax.f32 %v501_v27, 0.0  ;;  %v504_v35 = vadd.f32 %v3815_v25, %v503_v33  ;;  %1552 = vmatpush1.bf16.msra.mxu1 %v3372_v22 }
 0x10c   : > { %v594_v37 = vmax.f32 %v512_v32, 0.0  ;;  %1553 = vmatprep.subr.bf16.mxu1 %v3381_v26 }
 0x10d   : > { %v592_v39 = vmax.f32 %v504_v35, 0.0 }
 0x10e   : > { %v618_v40 = vpack.c.bf16 %v594_v37, %v593_v31  ;;  %v984_v37 = vld [vmem:[%s5242_s5 + $0x1e0] sm:$0xff] }
 0x10f   : > { %v617_v41 = vpack.c.bf16 %v592_v39, %v591_v34  ;;  %v3464_v42 = vpop.f32.mrb[16].mxu0  ;;  %1554 = vmatpush1.bf16.msra.mxu1 %v3380_v36  ;;  %v980_v36 = vld [vmem:[%s5242_s5 + $0x1c0] sm:$0xff] }
 0x110   : > { %v525_v44 = vadd.f32 %v3464_v42, %v3815_v25  ;;  %v516_v45 = vpop.f32.mrb[17].mxu0  ;;  %1555 = vmatprep.subr.bf16.mxu1 %v3389_v38  ;;  %v3394_v38 = vcombine.low %v980_v36, %v984_v37  ;;  %v3395_v39 = vcombine.high %v980_v36, %v984_v37 }
 0x111   : > { %3498 = vmatprep.mubr.msk.bf16.mxu1 %vm666_vm3, %v617_v41  ;;  %v517_v46 = vadd.f32 %v3815_v25, %v516_v45  ;;  %v3465_v47 = vpop.f32.mrb[18].mxu0  ;;  %v930_v45 = vld [vmem:[%s5242_s5 + $0x30] sm:$0xff] }
 0x112   : > { %3499 = vmatmul.mubr.msk.bf16.gmra.mrb[12].mxu1 %vm666_vm3, %v618_v40  ;;  %v597_v48 = vmax.f32 %v525_v44, 0.0  ;;  %v528_v49 = vadd.f32 %v3465_v47, %v3815_v25  ;;  %v519_v50 = vpop.f32.mrb[19].mxu0  ;;  %v985_v40 = vld [vmem:[%s5242_s5 + $0x1e8] sm:$0xff]  ;;  %1364 = vmatprep.subr.bf16.mxu0 %v3395_v39  ;;  %v926_v44 = vld [vmem:[%s5242_s5 + $0x10] sm:$0xff] }
 0x113   : > { %v595_v51 = vmax.f32 %v517_v46, 0.0  ;;  %v520_v52 = vadd.f32 %v3815_v25, %v519_v50  ;;  %1556 = vmatpush1.bf16.msra.mxu1 %v3388_v43  ;;  %1365 = vmatpush1.bf16.msra.mxu0 %v3394_v38  ;;  %v5245_v43 = vmov 0   ;;  %v927_v46 = vld [vmem:[%s5242_s5 + $0x18] sm:$0xff]  ;;  %v3342_v47 = vcombine.low %v926_v44, %v930_v45 }
 0x114   : > { %v598_v53 = vmax.f32 %v528_v49, 0.0  ;;  %1382 = vmatprep.mubr.bf16.mxu0 %v5245_v43  ;;  %v931_v49 = vld [vmem:[%s5242_s5 + $0x38] sm:$0xff] }
 0x115   : > { %v596_v54 = vmax.f32 %v520_v52, 0.0  ;;  %v3344_v50 = vcombine.low %v927_v46, %v931_v49  ;;  %v3933_v52 = vld [vmem:[%s5241_s4] ss:$0 sm:$0xff] }
 0x116   : > { %v620_v55 = vpack.c.bf16 %v598_v53, %v597_v48  ;;  %v3343_v48 = vcombine.high %v926_v44, %v930_v45 }
 0x117   : > { %v619_v56 = vpack.c.bf16 %v596_v54, %v595_v51  ;;  %v3468_v57 = vpop.f32.mrb[20].mxu0  ;;  %v3345_v51 = vcombine.high %v927_v46, %v931_v49  ;;  %v962_v46 = vld [vmem:[%s5242_s5 + $0x130] sm:$0xff] }
 0x118   : > { %v541_v58 = vadd.f32 %v3468_v57, %v3815_v25  ;;  %v532_v60 = vpop.f32.mrb[21].mxu0  ;;  %1736 = vmatprep.subr.bf16.mxu0 %v3343_v48  ;;  %v963_v48 = vld [vmem:[%s5242_s5 + $0x138] sm:$0xff] }
 0x119   : > { %3502 = vmatprep.mubr.msk.bf16.mxu1 %vm666_vm3, %v619_v56  ;;  %v533_v61 = vadd.f32 %v3815_v25, %v532_v60  ;;  %v3469_v63 = vpop.f32.mrb[22].mxu0 }
 0x11a   : > { %3503 = vmatmul.mubr.msk.bf16.gmra.mrb[16].mxu1 %vm666_vm3, %v620_v55  ;;  %v601_v0 = vmax.f32 %v541_v58, 0.0  ;;  %v544_v2 = vadd.f32 %v3469_v63, %v3815_v25  ;;  %v535_v3 = vpop.f32.mrb[23].mxu0 }
 0x11b   : > { %v599_v59 = vmax.f32 %v533_v61, 0.0  ;;  %v536_v62 = vadd.f32 %v3815_v25, %v535_v3 }
 0x11c   : > { %v602_v1 = vmax.f32 %v544_v2, 0.0  ;;  %v934_v2 = vld [vmem:[%s5242_s5 + $0x50] sm:$0xff] }
 0x11d   : > { %v600_v4 = vmax.f32 %v536_v62, 0.0  ;;  %v938_v62 = vld [vmem:[%s5242_s5 + $0x70] sm:$0xff] }
 0x11e   : > { %v622_v5 = vpack.c.bf16 %v602_v1, %v601_v0  ;;  %v935_v1 = vld [vmem:[%s5242_s5 + $0x58] sm:$0xff] }
 0x11f   : > { %v621_v6 = vpack.c.bf16 %v600_v4, %v599_v59  ;;  %v3472_v7 = vpop.f32.mrb[24].mxu0  ;;  %v939_v4 = vld [vmem:[%s5242_s5 + $0x78] sm:$0xff] }
 0x120   : > { %v557_v8 = vadd.f32 %v3472_v7, %v3815_v25  ;;  %v548_v9 = vpop.f32.mrb[25].mxu0 }
 0x121   : > { %3506 = vmatprep.mubr.msk.bf16.mxu1 %vm666_vm3, %v621_v6  ;;  %v549_v10 = vadd.f32 %v3815_v25, %v548_v9  ;;  %v3473_v11 = vpop.f32.mrb[26].mxu0 }
 0x122   : > { %3507 = vmatmul.mubr.msk.bf16.gmra.mrb[20].mxu1 %vm666_vm3, %v622_v5  ;;  %v605_v12 = vmax.f32 %v557_v8, 0.0  ;;  %v560_v13 = vadd.f32 %v3473_v11, %v3815_v25  ;;  %v551_v14 = vpop.f32.mrb[27].mxu0  ;;  %v942_v8 = vld [vmem:[%s5242_s5 + $0x90] sm:$0xff]  ;;  %v3351_v11 = vcombine.high %v934_v2, %v938_v62 }
 0x123   : > { %v603_v15 = vmax.f32 %v549_v10, 0.0  ;;  %v552_v16 = vadd.f32 %v3815_v25, %v551_v14  ;;  %v943_v14 = vld [vmem:[%s5242_s5 + $0x98] sm:$0xff] }
 0x124   : > { %v606_v17 = vmax.f32 %v560_v13, 0.0  ;;  %v946_v13 = vld [vmem:[%s5242_s5 + $0xb0] sm:$0xff] }
 0x125   : > { %v604_v18 = vmax.f32 %v552_v16, 0.0  ;;  %v3358_v37 = vcombine.low %v942_v8, %v946_v13 }
 0x126   : > { %v624_v19 = vpack.c.bf16 %v606_v17, %v605_v12  ;;  %v3353_v12 = vcombine.high %v935_v1, %v939_v4 }
 0x127   : > { %v623_v20 = vpack.c.bf16 %v604_v18, %v603_v15  ;;  %v3476_v21 = vpop.f32.mrb[28].mxu0  ;;  %v947_v15 = vld [vmem:[%s5242_s5 + $0xb8] sm:$0xff] }
 0x128   : > { %v573_v22 = vadd.f32 %v3476_v21, %v3815_v25  ;;  %v564_v23 = vpop.f32.mrb[29].mxu0  ;;  %v3350_v21 = vcombine.low %v934_v2, %v938_v62  ;;  %v967_v2 = vld [vmem:[%s5242_s5 + $0x158] sm:$0xff] }
 0x129   : > { %3510 = vmatprep.mubr.msk.bf16.mxu1 %vm666_vm3, %v623_v20  ;;  %v565_v24 = vadd.f32 %v3815_v25, %v564_v23  ;;  %v3477_v26 = vpop.f32.mrb[30].mxu0 }
 0x12a   : > { %3511 = vmatmul.mubr.msk.bf16.gmra.mrb[24].mxu1 %vm666_vm3, %v624_v19  ;;  %v609_v27 = vmax.f32 %v573_v22, 0.0  ;;  %v576_v28 = vadd.f32 %v3477_v26, %v3815_v25  ;;  %v567_v29 = vpop.f32.mrb[31].mxu0  ;;  %v3352_v22 = vcombine.low %v935_v1, %v939_v4  ;;  %v3359_v26 = vcombine.high %v942_v8, %v946_v13 }
 0x12b   : > { %v607_v30 = vmax.f32 %v565_v24, 0.0  ;;  %v568_v31 = vadd.f32 %v3815_v25, %v567_v29  ;;  %v981_v25 = vld [vmem:[%s5242_s5 + $0x1c8] sm:$0xff]  ;;  %v950_v29 = vld [vmem:[%s5242_s5 + $0xd0] sm:$0xff] }
 0x12c   : > { %v610_v32 = vmax.f32 %v576_v28, 0.0  ;;  %v3396_v41 = vcombine.low %v981_v25, %v985_v40  ;;  %v3397_v42 = vcombine.high %v981_v25, %v985_v40  ;;  %v3360_v25 = vcombine.low %v943_v14, %v947_v15 }
 0x12d   : > { %v608_v33 = vmax.f32 %v568_v31, 0.0  ;;  %v954_v31 = vld [vmem:[%s5242_s5 + $0xf0] sm:$0xff] }
 0x12e   : > { %v626_v34 = vpack.c.bf16 %v610_v32, %v609_v27  ;;  %1557 = vmatprep.subr.bf16.mxu1 %v3397_v42  ;;  %v3361_v27 = vcombine.high %v943_v14, %v947_v15  ;;  %v951_v32 = vld [vmem:[%s5242_s5 + $0xd8] sm:$0xff]  ;;  %v3367_v40 = vcombine.high %v950_v29, %v954_v31  ;;  %v958_v42 = vld [vmem:[%s5242_s5 + $0x110] sm:$0xff] }
 0x12f   : > { %v625_v35 = vpack.c.bf16 %v608_v33, %v607_v30  ;;  %1558 = vmatpush1.bf16.msra.mxu1 %v3396_v41  ;;  %v955_v33 = vld [vmem:[%s5242_s5 + $0xf8] sm:$0xff]  ;;  %v3374_v4 = vcombine.low %v958_v42, %v962_v46  ;;  %v978_v15 = vld [vmem:[%s5242_s5 + $0x1b0] sm:$0xff] }
 0x130   : > { %1929 = vmatprep.subr.bf16.mxu1 %v3345_v51  ;;  %v3369_v41 = vcombine.high %v951_v32, %v955_v33 }
 0x131   : > { %3514 = vmatprep.mubr.msk.bf16.mxu1 %vm666_vm3, %v625_v35 }
 0x132   : > { %3515 = vmatmul.mubr.msk.bf16.gmra.mrb[28].mxu1 %vm666_vm3, %v626_v34 }
 0x133   : > { %1575 = vmatprep.mubr.bf16.mxu1 %v5245_v43 }
 0x1cd   : > { %v3488_v53 = vpop.f32.mrb[0].mxu1 }
 0x1ce   : > { %v758_v54 = vadd.f32 %v3488_v53, %v3933_v52  ;;  %v749_v55 = vpop.f32.mrb[1].mxu1 }
 0x1cf   : > { %v750_v56 = vadd.f32 %v3933_v52, %v749_v55  ;;  %v3489_v57 = vpop.f32.mrb[2].mxu1  ;;  %v3366_v55 = vcombine.low %v950_v29, %v954_v31  ;;  %v982_v29 = vld [vmem:[%s5242_s5 + $0x1d0] sm:$0xff] }
 0x1d0   : > { %v761_v58 = vadd.f32 %v3489_v57, %v3933_v52  ;;  %v752_v60 = vpop.f32.mrb[3].mxu1  ;;  %v878_v63 = vmax.f32 %v758_v54, 0.0  ;;  %v986_v31 = vld [vmem:[%s5242_s5 + $0x1f0] sm:$0xff] }
 0x1d1   : > { %v753_v61 = vadd.f32 %v3933_v52, %v752_v60  ;;  %v876_v3 = vmax.f32 %v750_v56, 0.0  ;;  %v3368_v56 = vcombine.low %v951_v32, %v955_v33  ;;  %v983_v32 = vld [vmem:[%s5242_s5 + $0x1d8] sm:$0xff] }
 0x1d2   : > { %v879_v0 = vmax.f32 %v761_v58, 0.0  ;;  %v3375_v58 = vcombine.high %v958_v42, %v962_v46  ;;  %v987_v33 = vld [vmem:[%s5242_s5 + $0x1f8] sm:$0xff]  ;;  %v3399_v42 = vcombine.high %v982_v29, %v986_v31 }
 0x1d3   : > { %v877_v59 = vmax.f32 %v753_v61, 0.0  ;;  %v966_v61 = vld [vmem:[%s5242_s5 + $0x150] sm:$0xff] }
 0x1d4   : > { %v3951_v5 = vpack.c.bf16 %v879_v0, %v878_v63  ;;  %v970_v0 = vld [vmem:[%s5242_s5 + $0x170] sm:$0xff] }
 0x1d5   : > { %v3953_v6 = vpack.c.bf16 %v877_v59, %v876_v3  ;;  %v3492_v7 = vpop.f32.mrb[4].mxu1  ;;  %v971_v3 = vld [vmem:[%s5242_s5 + $0x178] sm:$0xff] }
 0x1d6   : > { %v774_v9 = vadd.f32 %v3492_v7, %v3933_v52  ;;  %v765_v10 = vpop.f32.mrb[5].mxu1 }
 0x1d7   : > { %v766_v16 = vadd.f32 %v3933_v52, %v765_v10  ;;  %1383 = vmatmul.mubr.bf16.vlgmr.msra.gmra.mrb[32].mxu0 %v3953_v6  ;;  %1576 = vmatmul.mubr.bf16.vlgmr.msra.gmra.mrb[32].mxu1 %v3953_v6  ;;  %v3493_v17 = vpop.f32.mrb[6].mxu1  ;;  %v3383_v10 = vcombine.high %v966_v61, %v970_v0 }
 0x1d8   : > { %v882_v18 = vmax.f32 %v774_v9, 0.0  ;;  %1737 = vmatpush1.bf16.msra.mxu0 %v3342_v47  ;;  %1930 = vmatpush1.bf16.msra.mxu1 %v3344_v50  ;;  %v777_v19 = vadd.f32 %v3493_v17, %v3933_v52  ;;  %v768_v20 = vpop.f32.mrb[7].mxu1  ;;  %v959_v47 = vld [vmem:[%s5242_s5 + $0x118] sm:$0xff] }
 0x1d9   : > { %v880_v23 = vmax.f32 %v766_v16, 0.0  ;;  %v769_v24 = vadd.f32 %v3933_v52, %v768_v20  ;;  %1392 = vmatprep.mubr.bf16.mxu0 %v5245_v43  ;;  %1585 = vmatprep.mubr.bf16.mxu1 %v5245_v43  ;;  %v3377_v60 = vcombine.high %v959_v47, %v963_v48  ;;  %v3376_v7 = vcombine.low %v959_v47, %v963_v48  ;;  %v975_v16 = vld [vmem:[%s5242_s5 + $0x198] sm:$0xff] }
 0x1da   : > { %v883_v28 = vmax.f32 %v777_v19, 0.0  ;;  %1738 = vmatprep.subr.bf16.mxu0 %v3351_v11  ;;  %1931 = vmatprep.subr.bf16.mxu1 %v3353_v12  ;;  %v3385_v11 = vcombine.high %v967_v2, %v971_v3  ;;  %v974_v12 = vld [vmem:[%s5242_s5 + $0x190] sm:$0xff]  ;;  %v979_v17 = vld [vmem:[%s5242_s5 + $0x1b8] sm:$0xff] }
 0x1db   : > { %v881_v30 = vmax.f32 %v769_v24, 0.0  ;;  %v3384_v24 = vcombine.low %v967_v2, %v971_v3 }
 0x1dc   : > { %v3987_v34 = vpack.c.bf16 %v883_v28, %v882_v18  ;;  %1739 = vmatpush1.bf16.msra.mxu0 %v3350_v21  ;;  %1932 = vmatpush1.bf16.msra.mxu1 %v3352_v22  ;;  %v3393_v28 = vcombine.high %v975_v16, %v979_v17 }
 0x1dd   : > { %v3989_v35 = vpack.c.bf16 %v881_v30, %v880_v23  ;;  %v3496_v36 = vpop.f32.mrb[8].mxu1  ;;  %1740 = vmatprep.subr.bf16.mxu0 %v3359_v26  ;;  %1933 = vmatprep.subr.bf16.mxu1 %v3361_v27  ;;  %v3382_v23 = vcombine.low %v966_v61, %v970_v0  ;;  %v3391_v27 = vcombine.high %v974_v12, %v978_v15 }
 0x1de   : > { %v790_v38 = vadd.f32 %v3496_v36, %v3933_v52  ;;  %v781_v39 = vpop.f32.mrb[9].mxu1 }
 0x1df   : > { %1393 = vmatmul.mubr.bf16.gmra.mrb[36].mxu0 %v3951_v5  ;;  %1586 = vmatmul.mubr.bf16.gmra.mrb[36].mxu1 %v3951_v5  ;;  %v782_v44 = vadd.f32 %v3933_v52, %v781_v39  ;;  %v3497_v45 = vpop.f32.mrb[10].mxu1  ;;  %v3392_v39 = vcombine.low %v975_v16, %v979_v17 }
 0x1e0   : > { %v886_v49 = vmax.f32 %v790_v38, 0.0  ;;  %1402 = vmatprep.mubr.bf16.mxu0 %v5245_v43  ;;  %1595 = vmatprep.mubr.bf16.mxu1 %v5245_v43  ;;  %v793_v50 = vadd.f32 %v3497_v45, %v3933_v52  ;;  %v784_v51 = vpop.f32.mrb[11].mxu1  ;;  %v3390_v38 = vcombine.low %v974_v12, %v978_v15 }
 0x1e1   : > { %v884_v53 = vmax.f32 %v782_v44, 0.0  ;;  %v785_v54 = vadd.f32 %v3933_v52, %v784_v51  ;;  %1741 = vmatpush1.bf16.msra.mxu0 %v3358_v37  ;;  %1934 = vmatpush1.bf16.msra.mxu1 %v3360_v25  ;;  %v3401_v44 = vcombine.high %v983_v32, %v987_v33 }
 0x1e2   : > { %v887_v57 = vmax.f32 %v793_v50, 0.0  ;;  %1742 = vmatprep.subr.bf16.mxu0 %v3367_v40  ;;  %1935 = vmatprep.subr.bf16.mxu1 %v3369_v41 }
 0x1e3   : > { %v885_v63 = vmax.f32 %v785_v54, 0.0  ;;  %v3400_v54 = vcombine.low %v983_v32, %v987_v33 }
 0x1e4   : > { %v4023_v59 = vpack.c.bf16 %v887_v57, %v886_v49 }
 0x1e5   : > { %v4025_v62 = vpack.c.bf16 %v885_v63, %v884_v53  ;;  %v3500_v1 = vpop.f32.mrb[12].mxu1  ;;  %1743 = vmatpush1.bf16.msra.mxu0 %v3366_v55  ;;  %1936 = vmatpush1.bf16.msra.mxu1 %v3368_v56  ;;  %v3398_v53 = vcombine.low %v982_v29, %v986_v31 }
 0x1e6   : > { %v806_v8 = vadd.f32 %v3500_v1, %v3933_v52  ;;  %v797_v9 = vpop.f32.mrb[13].mxu1  ;;  %1744 = vmatprep.subr.bf16.mxu0 %v3375_v58  ;;  %1937 = vmatprep.subr.bf16.mxu1 %v3377_v60 }
 0x1e7   : > { %1403 = vmatmul.mubr.bf16.gmra.mrb[40].mxu0 %v3989_v35  ;;  %1596 = vmatmul.mubr.bf16.gmra.mrb[40].mxu1 %v3989_v35  ;;  %v798_v13 = vadd.f32 %v3933_v52, %v797_v9  ;;  %v3501_v14 = vpop.f32.mrb[14].mxu1 }
 0x1e8   : > { %1412 = vmatprep.mubr.bf16.mxu0 %v5245_v43  ;;  %1605 = vmatprep.mubr.bf16.mxu1 %v5245_v43  ;;  %v890_v18 = vmax.f32 %v806_v8, 0.0  ;;  %v809_v19 = vadd.f32 %v3501_v14, %v3933_v52  ;;  %v800_v20 = vpop.f32.mrb[15].mxu1 }
 0x1e9   : > { %v888_v21 = vmax.f32 %v798_v13, 0.0  ;;  %v801_v22 = vadd.f32 %v3933_v52, %v800_v20  ;;  %1745 = vmatpush1.bf16.msra.mxu0 %v3374_v4  ;;  %1938 = vmatpush1.bf16.msra.mxu1 %v3376_v7 }
 0x1ea   : > { %v891_v26 = vmax.f32 %v809_v19, 0.0  ;;  %1746 = vmatprep.subr.bf16.mxu0 %v3383_v10  ;;  %1939 = vmatprep.subr.bf16.mxu1 %v3385_v11 }
 0x1eb   : > { %v889_v30 = vmax.f32 %v801_v22, 0.0 }
 0x1ec   : > { %v4059_v36 = vpack.c.bf16 %v891_v26, %v890_v18 }
 0x1ed   : > { %v4061_v37 = vpack.c.bf16 %v889_v30, %v888_v21  ;;  %v3504_v25 = vpop.f32.mrb[16].mxu1  ;;  %1747 = vmatpush1.bf16.msra.mxu0 %v3382_v23  ;;  %1940 = vmatpush1.bf16.msra.mxu1 %v3384_v24 }
 0x1ee   : > { %v822_v40 = vadd.f32 %v3504_v25, %v3933_v52  ;;  %v813_v41 = vpop.f32.mrb[17].mxu1  ;;  %1748 = vmatprep.subr.bf16.mxu0 %v3391_v27  ;;  %1941 = vmatprep.subr.bf16.mxu1 %v3393_v28 }
 0x1ef   : > { %1413 = vmatmul.mubr.bf16.gmra.mrb[44].mxu0 %v3987_v34  ;;  %1606 = vmatmul.mubr.bf16.gmra.mrb[44].mxu1 %v3987_v34  ;;  %v814_v45 = vadd.f32 %v3933_v52, %v813_v41  ;;  %v3505_v46 = vpop.f32.mrb[18].mxu1 }
 0x1f0   : > { %1422 = vmatprep.mubr.bf16.mxu0 %v5245_v43  ;;  %1615 = vmatprep.mubr.bf16.mxu1 %v5245_v43  ;;  %v894_v47 = vmax.f32 %v822_v40, 0.0  ;;  %v825_v48 = vadd.f32 %v3505_v46, %v3933_v52  ;;  %v816_v49 = vpop.f32.mrb[19].mxu1 }
 0x1f1   : > { %v892_v50 = vmax.f32 %v814_v45, 0.0  ;;  %v817_v51 = vadd.f32 %v3933_v52, %v816_v49  ;;  %1749 = vmatpush1.bf16.msra.mxu0 %v3390_v38  ;;  %1942 = vmatpush1.bf16.msra.mxu1 %v3392_v39 }
 0x1f2   : > { %v895_v55 = vmax.f32 %v825_v48, 0.0  ;;  %1750 = vmatprep.subr.bf16.mxu0 %v3399_v42  ;;  %1943 = vmatprep.subr.bf16.mxu1 %v3401_v44 }
 0x1f3   : > { %v893_v56 = vmax.f32 %v817_v51, 0.0 }
 0x1f4   : > { %v4071_v57 = vpack.c.bf16 %v895_v55, %v894_v47  ;;  %v4202_v47 = vstv %s3402_s18 }
 0x1f5   : > { %v4073_v58 = vpack.c.bf16 %v893_v56, %v892_v50  ;;  %v3508_v60 = vpop.f32.mrb[20].mxu1  ;;  %1751 = vmatpush1.bf16.msra.mxu0 %v3398_v53  ;;  %1944 = vmatpush1.bf16.msra.mxu1 %v3400_v54 }
 0x1f6   : > { %v838_v61 = vadd.f32 %v3508_v60, %v3933_v52  ;;  %v829_v63 = vpop.f32.mrb[21].mxu1 }
 0x1f7   : > { %1423 = vmatmul.mubr.bf16.gmra.mrb[48].mxu0 %v4025_v62  ;;  %1616 = vmatmul.mubr.bf16.gmra.mrb[48].mxu1 %v4025_v62  ;;  %v830_v0 = vadd.f32 %v3933_v52, %v829_v63  ;;  %v3509_v2 = vpop.f32.mrb[22].mxu1 }
 0x1f8   : > { %1432 = vmatprep.mubr.bf16.mxu0 %v5245_v43  ;;  %1625 = vmatprep.mubr.bf16.mxu1 %v5245_v43  ;;  %v898_v3 = vmax.f32 %v838_v61, 0.0  ;;  %v841_v1 = vadd.f32 %v3509_v2, %v3933_v52  ;;  %v832_v4 = vpop.f32.mrb[23].mxu1 }
 0x1f9   : > { %v896_v7 = vmax.f32 %v830_v0, 0.0  ;;  %v833_v8 = vadd.f32 %v3933_v52, %v832_v4 }
 0x1fa   : > { %v899_v9 = vmax.f32 %v841_v1, 0.0 }
 0x1fb   : > { %v897_v10 = vmax.f32 %v833_v8, 0.0 }
 0x1fc   : > { %v4083_v11 = vpack.c.bf16 %v899_v9, %v898_v3 }
 0x1fd   : > { %v4085_v12 = vpack.c.bf16 %v897_v10, %v896_v7  ;;  %v3512_v13 = vpop.f32.mrb[24].mxu1 }
 0x1fe   : > { %v854_v14 = vadd.f32 %v3512_v13, %v3933_v52  ;;  %v845_v15 = vpop.f32.mrb[25].mxu1 }
 0x1ff   : > { %1433 = vmatmul.mubr.bf16.gmra.mrb[52].mxu0 %v4023_v59  ;;  %1626 = vmatmul.mubr.bf16.gmra.mrb[52].mxu1 %v4023_v59  ;;  %v846_v16 = vadd.f32 %v3933_v52, %v845_v15  ;;  %v3513_v17 = vpop.f32.mrb[26].mxu1 }
 0x200   : > { %1442 = vmatprep.mubr.bf16.mxu0 %v5245_v43  ;;  %1635 = vmatprep.mubr.bf16.mxu1 %v5245_v43  ;;  %v902_v18 = vmax.f32 %v854_v14, 0.0  ;;  %v857_v19 = vadd.f32 %v3513_v17, %v3933_v52  ;;  %v848_v20 = vpop.f32.mrb[27].mxu1 }
 0x201   : > { %v900_v21 = vmax.f32 %v846_v16, 0.0  ;;  %v849_v22 = vadd.f32 %v3933_v52, %v848_v20 }
 0x202   : > { %v903_v23 = vmax.f32 %v857_v19, 0.0 }
 0x203   : > { %v901_v24 = vmax.f32 %v849_v22, 0.0 }
 0x204   : > { %v4095_v26 = vpack.c.bf16 %v903_v23, %v902_v18 }
 0x205   : > { %v4097_v27 = vpack.c.bf16 %v901_v24, %v900_v21  ;;  %v3516_v28 = vpop.f32.mrb[28].mxu1 }
 0x206   : > { %v870_v29 = vadd.f32 %v3516_v28, %v3933_v52  ;;  %v861_v30 = vpop.f32.mrb[29].mxu1 }
 0x207   : > { %1443 = vmatmul.mubr.bf16.gmra.mrb[56].mxu0 %v4061_v37  ;;  %1636 = vmatmul.mubr.bf16.gmra.mrb[56].mxu1 %v4061_v37  ;;  %v862_v31 = vadd.f32 %v3933_v52, %v861_v30  ;;  %v3517_v32 = vpop.f32.mrb[30].mxu1 }
 0x208   : > { %1452 = vmatprep.mubr.bf16.mxu0 %v5245_v43  ;;  %1645 = vmatprep.mubr.bf16.mxu1 %v5245_v43  ;;  %v906_v33 = vmax.f32 %v870_v29, 0.0  ;;  %v873_v25 = vadd.f32 %v3517_v32, %v3933_v52  ;;  %v864_v38 = vpop.f32.mrb[31].mxu1 }
 0x209   : > { %v904_v39 = vmax.f32 %v862_v31, 0.0  ;;  %v865_v40 = vadd.f32 %v3933_v52, %v864_v38  ;;  %v990_v52 = vlaneseq }
 0x20a   : > { %v907_v41 = vmax.f32 %v873_v25, 0.0 }
 0x20b   : > { %v905_v42 = vmax.f32 %v865_v40, 0.0 }
 0x20c   : > { %v4107_v44 = vpack.c.bf16 %v907_v41, %v906_v33 }
 0x20d   : > { %v4109_v45 = vpack.c.bf16 %v905_v42, %v904_v39 }
 0x20f   : > { %1453 = vmatmul.mubr.bf16.gmra.mrb[60].mxu0 %v4059_v36  ;;  %1646 = vmatmul.mubr.bf16.gmra.mrb[60].mxu1 %v4059_v36 }
 0x210   : > { %1462 = vmatprep.mubr.bf16.mxu0 %v5245_v43  ;;  %1655 = vmatprep.mubr.bf16.mxu1 %v5245_v43 }
 0x217   : > { %1463 = vmatmul.mubr.bf16.gmra.mrb[64].mxu0 %v4073_v58  ;;  %1656 = vmatmul.mubr.bf16.gmra.mrb[64].mxu1 %v4073_v58 }
 0x218   : > { %1472 = vmatprep.mubr.bf16.mxu0 %v5245_v43  ;;  %1665 = vmatprep.mubr.bf16.mxu1 %v5245_v43 }
 0x21f   : > { %1473 = vmatmul.mubr.bf16.gmra.mrb[68].mxu0 %v4071_v57  ;;  %1666 = vmatmul.mubr.bf16.gmra.mrb[68].mxu1 %v4071_v57 }
 0x220   : > { %1482 = vmatprep.mubr.bf16.mxu0 %v5245_v43  ;;  %1675 = vmatprep.mubr.bf16.mxu1 %v5245_v43 }
 0x227   : > { %1483 = vmatmul.mubr.bf16.gmra.mrb[72].mxu0 %v4085_v12  ;;  %1676 = vmatmul.mubr.bf16.gmra.mrb[72].mxu1 %v4085_v12 }
 0x228   : > { %1492 = vmatprep.mubr.bf16.mxu0 %v5245_v43  ;;  %1685 = vmatprep.mubr.bf16.mxu1 %v5245_v43 }
 0x22f   : > { %1493 = vmatmul.mubr.bf16.gmra.mrb[76].mxu0 %v4083_v11  ;;  %1686 = vmatmul.mubr.bf16.gmra.mrb[76].mxu1 %v4083_v11 }
 0x230   : > { %1502 = vmatprep.mubr.bf16.mxu0 %v5245_v43  ;;  %1695 = vmatprep.mubr.bf16.mxu1 %v5245_v43 }
 0x237   : > { %1503 = vmatmul.mubr.bf16.gmra.mrb[80].mxu0 %v4097_v27  ;;  %1696 = vmatmul.mubr.bf16.gmra.mrb[80].mxu1 %v4097_v27 }
 0x238   : > { %1512 = vmatprep.mubr.bf16.mxu0 %v5245_v43  ;;  %1705 = vmatprep.mubr.bf16.mxu1 %v5245_v43 }
 0x23f   : > { %1513 = vmatmul.mubr.bf16.gmra.mrb[84].mxu0 %v4095_v26  ;;  %1706 = vmatmul.mubr.bf16.gmra.mrb[84].mxu1 %v4095_v26 }
 0x240   : > { %1522 = vmatprep.mubr.bf16.mxu0 %v5245_v43  ;;  %1715 = vmatprep.mubr.bf16.mxu1 %v5245_v43 }
 0x247   : > { %1523 = vmatmul.mubr.bf16.gmra.mrb[88].mxu0 %v4109_v45  ;;  %1716 = vmatmul.mubr.bf16.gmra.mrb[88].mxu1 %v4109_v45 }
 0x248   : > { %1532 = vmatprep.mubr.bf16.mxu0 %v5245_v43  ;;  %1725 = vmatprep.mubr.bf16.mxu1 %v5245_v43 }
 0x24f   : > { %1533 = vmatmul.mubr.bf16.gmra.mrb[92].mxu0 %v4107_v44  ;;  %1726 = vmatmul.mubr.bf16.gmra.mrb[92].mxu1 %v4107_v44 }
 0x250   : > { %1768 = vmatprep.mubr.bf16.mxu0 %v5245_v43  ;;  %1961 = vmatprep.mubr.bf16.mxu1 %v5245_v43 }
 0x257   : > { %1769 = vmatmul.mubr.bf16.vlgmr.msra.gmra.mrb[96].mxu0 %v3953_v6  ;;  %1962 = vmatmul.mubr.bf16.vlgmr.msra.gmra.mrb[96].mxu1 %v3953_v6 }
 0x258   : > { %1778 = vmatprep.mubr.bf16.mxu0 %v5245_v43  ;;  %1971 = vmatprep.mubr.bf16.mxu1 %v5245_v43 }
 0x25f   : > { %1779 = vmatmul.mubr.bf16.gmra.mrb[100].mxu0 %v3951_v5  ;;  %1972 = vmatmul.mubr.bf16.gmra.mrb[100].mxu1 %v3951_v5  ;;  %v4179_v5 = vshrl.u32 %v990_v52, 7 }
 0x260   : > { %1788 = vmatprep.mubr.bf16.mxu0 %v5245_v43  ;;  %1981 = vmatprep.mubr.bf16.mxu1 %v5245_v43 }
 0x261   : > { %5284 = vst [vmem:[#allocation2_spill] sm:$0xff] %v4179_v5  ;;  %v992_v6 = vsub.s32 0, %v4179_v5  ;;  %v2381_v46 = vadd.s32 8, %v4179_v5  ;;  %v2382_v49 = vadd.s32 16, %v4179_v5  ;;  %v2383_v50 = vadd.s32 24, %v4179_v5 }
 0x262   : > { %v2384_v51 = vadd.s32 32, %v4179_v5  ;;  %v2385_v53 = vadd.s32 40, %v4179_v5  ;;  %v2386_v54 = vadd.s32 48, %v4179_v5  ;;  %v2387_v55 = vadd.s32 56, %v4179_v5 }
 0x263   : > { %v2388_v56 = vadd.s32 64, %v4179_v5  ;;  %v2390_v60 = vadd.s32 80, %v4179_v5  ;;  %v2391_v61 = vadd.s32 88, %v4179_v5  ;;  %v4221_v63 = vadd.s32 %v4202_v47, %v4179_v5 }
 0x264   : > { %v4227_v2 = vadd.s32 %v4202_v47, %v2381_v46  ;;  %v2392_v3 = vadd.s32 96, %v4179_v5  ;;  %v4233_v1 = vadd.s32 %v4202_v47, %v2382_v49  ;;  %v2393_v4 = vadd.s32 104, %v4179_v5 }
 0x265   : > { %5285 = vst [vmem:[#allocation3_spill] sm:$0xff] %v4221_v63  ;;  %v2394_v7 = vadd.s32 112, %v4179_v5  ;;  %v4241_v8 = vadd.s32 %v4202_v47, %v2384_v51  ;;  %v4244_v9 = vadd.s32 %v4202_v47, %v2385_v53  ;;  %v4247_v10 = vadd.s32 %v4202_v47, %v2386_v54 }
 0x266   : > { %5286 = vst [vmem:[#allocation4_spill] sm:$0xff] %v4227_v2  ;;  %5287 = vst [vmem:[#allocation5_spill] sm:$0xff] %v4233_v1  ;;  %v4250_v13 = vadd.s32 %v4202_v47, %v2387_v55  ;;  %v4253_v14 = vadd.s32 %v4202_v47, %v2388_v56  ;;  %v4259_v16 = vadd.s32 %v4202_v47, %v2390_v60  ;;  %v2395_v19 = vadd.s32 120, %v4179_v5 }
 0x267   : > { %1789 = vmatmul.mubr.bf16.gmra.mrb[104].mxu0 %v3989_v35  ;;  %1982 = vmatmul.mubr.bf16.gmra.mrb[104].mxu1 %v3989_v35  ;;  %v4190_v35 = vld [vmem:[%s5243_s6] sm:$0xff]  ;;  %5289 = vst [vmem:[#allocation7_spill] sm:$0xff] %v4241_v8  ;;  %v4262_v17 = vadd.s32 %v4202_v47, %v2391_v61  ;;  %v4265_v18 = vadd.s32 %v4202_v47, %v2392_v3  ;;  %v2396_v20 = vadd.s32 128, %v4179_v5  ;;  %v2397_v21 = vadd.s32 136, %v4179_v5 }
 0x268   : > { %1798 = vmatprep.mubr.bf16.mxu0 %v5245_v43  ;;  %1991 = vmatprep.mubr.bf16.mxu1 %v5245_v43  ;;  %v4271_v22 = vadd.s32 %v4202_v47, %v2393_v4  ;;  %v4274_v23 = vadd.s32 %v4202_v47, %v2394_v7  ;;  %v2398_v24 = vadd.s32 144, %v4179_v5  ;;  %v2399_v28 = vadd.s32 152, %v4179_v5 }
 0x269   : > { %vm2445_vm4 = vcmp.lt.s32.totalorder %v4221_v63, 500  ;;  %v2400_v29 = vadd.s32 160, %v4179_v5  ;;  %v2401_v30 = vadd.s32 168, %v4179_v5  ;;  %v2402_v31 = vadd.s32 176, %v4179_v5 }
 0x26a   : > { %v2403_v32 = vadd.s32 184, %v4179_v5  ;;  %v2404_v33 = vadd.s32 192, %v4179_v5  ;;  %v2405_v25 = vadd.s32 200, %v4179_v5  ;;  %v2406_v38 = vadd.s32 208, %v4179_v5 }
 0x26b   : > { %v2407_v39 = vadd.s32 216, %v4179_v5  ;;  %vm2446_vm5 = vcmp.lt.s32.totalorder %v4227_v2, 500  ;;  %v4291_v40 = vadd.s32 %v4202_v47, %v2395_v19  ;;  %v4294_v41 = vadd.s32 %v4202_v47, %v2396_v20 }
 0x26c   : > { %v4297_v42 = vadd.s32 %v4202_v47, %v2397_v21  ;;  %v4302_v52 = vadd.s32 %v4202_v47, %v2398_v24  ;;  %v4316_v46 = vadd.s32 %v4202_v47, %v2402_v31  ;;  %v4319_v49 = vadd.s32 %v4202_v47, %v2403_v32 }
 0x26d   : > { %v4322_v53 = vadd.s32 %v4202_v47, %v2404_v33  ;;  %v4325_v54 = vadd.s32 %v4202_v47, %v2405_v25  ;;  %v4328_v55 = vadd.s32 %v4202_v47, %v2406_v38  ;;  %v4331_v56 = vadd.s32 %v4202_v47, %v2407_v39 }
 0x26e   : > { %v2410_v4 = vadd.s32 240, %v4179_v5  ;;  %v2411_v7 = vadd.s32 248, %v4179_v5  ;;  %vm2447_vm6 = vcmp.lt.s32.totalorder %v4233_v1, 500  ;;  %vm2449_vm8 = vcmp.lt.s32.totalorder %v4241_v8, 500 }
 0x26f   : > { %1799 = vmatmul.mubr.bf16.gmra.mrb[108].mxu0 %v3987_v34  ;;  %1992 = vmatmul.mubr.bf16.gmra.mrb[108].mxu1 %v3987_v34  ;;  %v1000_v34 = vsub.s32 2, %v4179_v5  ;;  %5290 = vst [vmem:[#allocation8_spill] sm:$0xff] %v4331_v56  ;;  %vm2450_vm9 = vcmp.lt.s32.totalorder %v4244_v9, 500  ;;  %vm2451_vm10 = vcmp.lt.s32.totalorder %v4247_v10, 500  ;;  %vm2452_vm11 = vcmp.lt.s32.totalorder %v4250_v13, 500 }
 0x270   : > { %1808 = vmatprep.mubr.bf16.mxu0 %v5245_v43  ;;  %2001 = vmatprep.mubr.bf16.mxu1 %v5245_v43  ;;  %vm2453_vm12 = vcmp.lt.s32.totalorder %v4253_v14, 500  ;;  %vm2455_vm14 = vcmp.lt.s32.totalorder %v4259_v16, 500  ;;  %vm2456_vm15 = vcmp.lt.s32.totalorder %v4262_v17, 500  ;;  %vm5258_vm0 = vcmp.lt.s32.totalorder %v4265_v18, 500 }
 0x271   : > { %vm5257_vm1 = vcmp.lt.s32.totalorder %v4271_v22, 500  ;;  %vm5260_vm2 = vcmp.lt.s32.totalorder %v4274_v23, 500  ;;  %vm5259_vm3 = vcmp.lt.s32.totalorder %v4291_v40, 500 }
 0x277   : > { %1809 = vmatmul.mubr.bf16.gmra.mrb[112].mxu0 %v4025_v62  ;;  %2002 = vmatmul.mubr.bf16.gmra.mrb[112].mxu1 %v4025_v62  ;;  %v4195_v62 = vrot.slane %v4190_v35, %v992_v6  ;;  %v2408_v6 = vadd.s32 224, %v4179_v5 }
 0x278   : > { %1818 = vmatprep.mubr.bf16.mxu0 %v5245_v43  ;;  %2011 = vmatprep.mubr.bf16.mxu1 %v5245_v43 }
 0x27f   : > { %1819 = vmatmul.mubr.bf16.gmra.mrb[116].mxu0 %v4023_v59  ;;  %2012 = vmatmul.mubr.bf16.gmra.mrb[116].mxu1 %v4023_v59  ;;  %v996_v59 = vsub.s32 1, %v4179_v5 }
 0x280   : > { %1828 = vmatprep.mubr.bf16.mxu0 %v5245_v43  ;;  %2021 = vmatprep.mubr.bf16.mxu1 %v5245_v43 }
 0x281   : > { %v4205_v48 = vrot.slane %v4190_v35, %v996_v59  ;;  %v4310_v59 = vadd.s32 %v4202_v47, %v2400_v29 }
 0x287   : > { %1829 = vmatmul.mubr.bf16.gmra.mrb[120].mxu0 %v4061_v37  ;;  %2022 = vmatmul.mubr.bf16.gmra.mrb[120].mxu1 %v4061_v37  ;;  %v1004_v37 = vsub.s32 3, %v4179_v5 }
 0x288   : > { %1838 = vmatprep.mubr.bf16.mxu0 %v5245_v43  ;;  %2031 = vmatprep.mubr.bf16.mxu1 %v5245_v43 }
 0x289   : > { %v4224_v0 = vrot.slane %v4190_v35, %v1004_v37  ;;  %v4313_v37 = vadd.s32 %v4202_v47, %v2401_v30 }
 0x28f   : > { %1839 = vmatmul.mubr.bf16.gmra.mrb[124].mxu0 %v4059_v36  ;;  %2032 = vmatmul.mubr.bf16.gmra.mrb[124].mxu1 %v4059_v36  ;;  %v4198_v36 = vrot.slane %v4190_v35, %v1000_v34  ;;  %v2409_v34 = vadd.s32 232, %v4179_v5 }
 0x290   : > { %1848 = vmatprep.mubr.bf16.mxu0 %v5245_v43  ;;  %2041 = vmatprep.mubr.bf16.mxu1 %v5245_v43 }
 0x291   : > { %v4344_v29 = vadd.s32 %v4202_v47, %v2409_v34  ;;  %v4354_v34 = vadd.s32 %v4202_v47, %v2410_v4 }
 0x293   : > { %5292 = vst [vmem:[#allocation10_spill] sm:$0xff] %v4344_v29  ;;  %5293 = vst [vmem:[#allocation11_spill] sm:$0xff] %v4354_v34 }
 0x297   : > { %1849 = vmatmul.mubr.bf16.gmra.mrb[128].mxu0 %v4073_v58  ;;  %2042 = vmatmul.mubr.bf16.gmra.mrb[128].mxu1 %v4073_v58  ;;  %v2389_v58 = vadd.s32 72, %v4179_v5 }
 0x298   : > { %1858 = vmatprep.mubr.bf16.mxu0 %v5245_v43  ;;  %2051 = vmatprep.mubr.bf16.mxu1 %v5245_v43 }
 0x299   : > { %v4256_v15 = vadd.s32 %v4202_v47, %v2389_v58 }
 0x29b   : > { %vm2454_vm13 = vcmp.lt.s32.totalorder %v4256_v15, 500 }
 0x29f   : > { %1859 = vmatmul.mubr.bf16.gmra.mrb[132].mxu0 %v4071_v57  ;;  %2052 = vmatmul.mubr.bf16.gmra.mrb[132].mxu1 %v4071_v57  ;;  %v4236_v57 = vadd.s32 %v4202_v47, %v2383_v50 }
 0x2a0   : > { %1868 = vmatprep.mubr.bf16.mxu0 %v5245_v43  ;;  %2061 = vmatprep.mubr.bf16.mxu1 %v5245_v43 }
 0x2a1   : > { %5288 = vst [vmem:[#allocation6_spill] sm:$0xff] %v4236_v57  ;;  %vm2448_vm7 = vcmp.lt.s32.totalorder %v4236_v57, 500 }
 0x2a7   : > { %1869 = vmatmul.mubr.bf16.gmra.mrb[136].mxu0 %v4085_v12  ;;  %2062 = vmatmul.mubr.bf16.gmra.mrb[136].mxu1 %v4085_v12  ;;  %v4305_v12 = vadd.s32 %v4202_v47, %v2399_v28  ;;  %v4341_v28 = vadd.s32 %v4202_v47, %v2408_v6 }
 0x2a8   : > { %1878 = vmatprep.mubr.bf16.mxu0 %v5245_v43  ;;  %2071 = vmatprep.mubr.bf16.mxu1 %v5245_v43 }
 0x2a9   : > { %5291 = vst [vmem:[#allocation9_spill] sm:$0xff] %v4341_v28 }
 0x2aa   : > { %v1384_v50 = vpop.f32.mrb[32].mxu0  ;;  %v1577_v51 = vpop.f32.mrb[32].mxu1 }
 0x2ab   : > { %v1385_v58 = vadd.f32 %v1384_v50, %v4195_v62  ;;  %v1578_v60 = vadd.f32 %v1577_v51, %v4198_v36  ;;  %v1386_v61 = vpop.f32.mrb[33].mxu0  ;;  %v1579_v3 = vpop.f32.mrb[33].mxu1 }
 0x2ac   : > { %v1387_v19 = vadd.f32 %v1386_v61, %v4205_v48  ;;  %v1580_v20 = vadd.f32 %v1579_v3, %v4224_v0  ;;  %v1388_v21 = vpop.f32.mrb[34].mxu0  ;;  %v1581_v24 = vpop.f32.mrb[34].mxu1 }
 0x2ad   : > { %v2122_v30 = vmax.f32 %v1385_v58, 0.0  ;;  %v2124_v31 = vmax.f32 %v1578_v60, 0.0  ;;  %v1389_v32 = vadd.f32 %v1388_v21, %v4195_v62  ;;  %v1582_v33 = vadd.f32 %v1581_v24, %v4198_v36  ;;  %v1390_v25 = vpop.f32.mrb[35].mxu0  ;;  %v1583_v38 = vpop.f32.mrb[35].mxu1 }
 0x2ae   : > { %v2123_v39 = vmax.f32 %v1387_v19, 0.0  ;;  %v2125_v50 = vmax.f32 %v1580_v20, 0.0  ;;  %v1391_v51 = vadd.f32 %v1390_v25, %v4205_v48  ;;  %v1584_v61 = vadd.f32 %v1583_v38, %v4224_v0 }
 0x2af   : > { %v2130_v6 = vmax.f32 %v1389_v32, 0.0  ;;  %v2132_v3 = vmax.f32 %v1582_v33, 0.0  ;;  %1879 = vmatmul.mubr.bf16.gmra.mrb[140].mxu0 %v4083_v11  ;;  %2072 = vmatmul.mubr.bf16.gmra.mrb[140].mxu1 %v4083_v11  ;;  %v4357_v58 = vadd.s32 %v4202_v47, %v2411_v7  ;;  %v2541_v60 = vsel %vm2445_vm4, %v2122_v30, -inf }
 0x2b0   : > { %v2543_v19 = vsel %vm2445_vm4, %v2124_v31, -inf  ;;  %v2131_v20 = vmax.f32 %v1391_v51, 0.0  ;;  %v2133_v21 = vmax.f32 %v1584_v61, 0.0  ;;  %1888 = vmatprep.mubr.bf16.mxu0 %v5245_v43  ;;  %2081 = vmatprep.mubr.bf16.mxu1 %v5245_v43  ;;  %v2542_v11 = vsel %vm2445_vm4, %v2123_v39, -inf }
 0x2b1   : > { %5294 = vst [vmem:[#allocation12_spill] sm:$0xff] %v4357_v58  ;;  %v2544_v4 = vsel %vm2445_vm4, %v2125_v50, -inf  ;;  %v2549_v47 = vsel %vm2446_vm5, %v2130_v6, -inf  ;;  %v2551_v7 = vsel %vm2446_vm5, %v2132_v3, -inf }
 0x2b2   : > { %v2797_v24 = vmax.f32 %v2541_v60, %v2549_v47  ;;  %v2871_v30 = vmax.f32 %v2543_v19, %v2551_v7  ;;  %v2550_v31 = vsel %vm2446_vm5, %v2131_v20, -inf  ;;  %v2552_v32 = vsel %vm2446_vm5, %v2133_v21, -inf  ;;  %v1394_v33 = vpop.f32.mrb[36].mxu0  ;;  %v1587_v25 = vpop.f32.mrb[36].mxu1 }
 0x2b3   : > { %v2834_v38 = vmax.f32 %v2542_v11, %v2550_v31  ;;  %v2908_v39 = vmax.f32 %v2544_v4, %v2552_v32  ;;  %v1395_v50 = vadd.f32 %v1394_v33, %v4195_v62  ;;  %v1588_v51 = vadd.f32 %v1587_v25, %v4198_v36  ;;  %v1396_v61 = vpop.f32.mrb[37].mxu0  ;;  %v1589_v6 = vpop.f32.mrb[37].mxu1 }
 0x2b4   : > { %v1397_v3 = vadd.f32 %v1396_v61, %v4205_v48  ;;  %v1590_v60 = vadd.f32 %v1589_v6, %v4224_v0  ;;  %v1398_v19 = vpop.f32.mrb[38].mxu0  ;;  %v1591_v47 = vpop.f32.mrb[38].mxu1 }
 0x2b5   : > { %v2138_v11 = vmax.f32 %v1395_v50, 0.0  ;;  %v2140_v4 = vmax.f32 %v1588_v51, 0.0  ;;  %v1399_v7 = vadd.f32 %v1398_v19, %v4195_v62  ;;  %v1592_v31 = vadd.f32 %v1591_v47, %v4198_v36  ;;  %v1400_v32 = vpop.f32.mrb[39].mxu0  ;;  %v1593_v33 = vpop.f32.mrb[39].mxu1 }
 0x2b6   : > { %v2139_v25 = vmax.f32 %v1397_v3, 0.0  ;;  %v2141_v61 = vmax.f32 %v1590_v60, 0.0  ;;  %v1401_v6 = vadd.f32 %v1400_v32, %v4205_v48  ;;  %v1594_v43 = vadd.f32 %v1593_v33, %v4224_v0 }
 0x2b7   : > { %v2557_v2 = vsel %vm2447_vm6, %v2138_v11, -inf  ;;  %v2559_v21 = vsel %vm2447_vm6, %v2140_v4, -inf  ;;  %v2146_v50 = vmax.f32 %v1399_v7, 0.0  ;;  %v2148_v51 = vmax.f32 %v1592_v31, 0.0  ;;  %1889 = vmatmul.mubr.bf16.gmra.mrb[144].mxu0 %v4097_v27  ;;  %2082 = vmatmul.mubr.bf16.gmra.mrb[144].mxu1 %v4097_v27 }
 0x2b8   : > { %v2798_v19 = vmax.f32 %v2797_v24, %v2557_v2  ;;  %v2872_v47 = vmax.f32 %v2871_v30, %v2559_v21  ;;  %v2558_v3 = vsel %vm2447_vm6, %v2139_v25, -inf  ;;  %v2560_v60 = vsel %vm2447_vm6, %v2141_v61, -inf }
 0x2b9   : > { %v5295_v11 = vmov 0   ;;  %v2835_v4 = vmax.f32 %v2834_v38, %v2558_v3  ;;  %v2909_v7 = vmax.f32 %v2908_v39, %v2560_v60  ;;  %v2565_v31 = vsel %vm2448_vm7, %v2146_v50, -inf }
 0x2ba   : > { %1898 = vmatprep.mubr.bf16.mxu0 %v5295_v11  ;;  %2091 = vmatprep.mubr.bf16.mxu1 %v5295_v11  ;;  %v2567_v27 = vsel %vm2448_vm7, %v2148_v51, -inf  ;;  %v2799_v2 = vmax.f32 %v2798_v19, %v2565_v31  ;;  %v2147_v30 = vmax.f32 %v1401_v6, 0.0  ;;  %v2149_v21 = vmax.f32 %v1594_v43, 0.0  ;;  %v1404_v32 = vpop.f32.mrb[40].mxu0  ;;  %v1597_v33 = vpop.f32.mrb[40].mxu1 }
 0x2bb   : > { %v2873_v24 = vmax.f32 %v2872_v47, %v2567_v27  ;;  %v1405_v25 = vadd.f32 %v1404_v32, %v4195_v62  ;;  %v1598_v61 = vadd.f32 %v1597_v33, %v4198_v36  ;;  %v1406_v20 = vpop.f32.mrb[41].mxu0  ;;  %v1599_v1 = vpop.f32.mrb[41].mxu1 }
 0x2bc   : > { %v2566_v50 = vsel %vm2448_vm7, %v2147_v30, -inf  ;;  %v2568_v51 = vsel %vm2448_vm7, %v2149_v21, -inf  ;;  %v1407_v43 = vadd.f32 %v1406_v20, %v4205_v48  ;;  %v1600_v6 = vadd.f32 %v1599_v1, %v4224_v0  ;;  %v1408_v19 = vpop.f32.mrb[42].mxu0  ;;  %v1601_v47 = vpop.f32.mrb[42].mxu1 }
 0x2bd   : > { %v2836_v3 = vmax.f32 %v2835_v4, %v2566_v50  ;;  %v2910_v60 = vmax.f32 %v2909_v7, %v2568_v51  ;;  %v2154_v31 = vmax.f32 %v1405_v25, 0.0  ;;  %v2156_v27 = vmax.f32 %v1598_v61, 0.0  ;;  %v1410_v32 = vpop.f32.mrb[43].mxu0  ;;  %v1603_v33 = vpop.f32.mrb[43].mxu1 }
 0x2be   : > { %v2155_v39 = vmax.f32 %v1407_v43, 0.0  ;;  %v2157_v38 = vmax.f32 %v1600_v6, 0.0  ;;  %v1409_v30 = vadd.f32 %v1408_v19, %v4195_v62  ;;  %v1602_v21 = vadd.f32 %v1601_v47, %v4198_v36 }
 0x2bf   : > { %v2573_v20 = vsel %vm2449_vm8, %v2154_v31, -inf  ;;  %v2575_v1 = vsel %vm2449_vm8, %v2156_v27, -inf  ;;  %v1411_v57 = vadd.f32 %v1410_v32, %v4205_v48  ;;  %v1604_v4 = vadd.f32 %v1603_v33, %v4224_v0  ;;  %1899 = vmatmul.mubr.bf16.gmra.mrb[148].mxu0 %v4095_v26  ;;  %2092 = vmatmul.mubr.bf16.gmra.mrb[148].mxu1 %v4095_v26 }
 0x2c0   : > { %v2800_v7 = vmax.f32 %v2799_v2, %v2573_v20  ;;  %v2874_v25 = vmax.f32 %v2873_v24, %v2575_v1  ;;  %v2574_v61 = vsel %vm2449_vm8, %v2155_v39, -inf  ;;  %v2576_v50 = vsel %vm2449_vm8, %v2157_v38, -inf  ;;  %1908 = vmatprep.mubr.bf16.mxu0 %v5295_v11  ;;  %2101 = vmatprep.mubr.bf16.mxu1 %v5295_v11 }
 0x2c1   : > { %v2837_v51 = vmax.f32 %v2836_v3, %v2574_v61  ;;  %v2911_v43 = vmax.f32 %v2910_v60, %v2576_v50  ;;  %v2162_v6 = vmax.f32 %v1409_v30, 0.0  ;;  %v2164_v19 = vmax.f32 %v1602_v21, 0.0 }
 0x2c2   : > { %v2163_v47 = vmax.f32 %v1411_v57, 0.0  ;;  %v2165_v26 = vmax.f32 %v1604_v4, 0.0  ;;  %v1414_v2 = vpop.f32.mrb[44].mxu0  ;;  %v1607_v24 = vpop.f32.mrb[44].mxu1  ;;  %v5296_v31 = vsub.s32 4, %v4179_v5  ;;  %v5297_v38 = vsub.s32 6, %v4179_v5 }
 0x2c3   : > { %v2581_v3 = vsel %vm2450_vm9, %v2162_v6, -inf  ;;  %v2583_v60 = vsel %vm2450_vm9, %v2164_v19, -inf  ;;  %v1415_v57 = vadd.f32 %v1414_v2, %v4195_v62  ;;  %v1608_v32 = vadd.f32 %v1607_v24, %v4198_v36  ;;  %v1416_v33 = vpop.f32.mrb[45].mxu0  ;;  %v1609_v30 = vpop.f32.mrb[45].mxu1 }
 0x2c4   : > { %v4436_v39 = vrot.slane %v4190_v35, %v5296_v31  ;;  %v4441_v27 = vrot.slane %v4190_v35, %v5297_v38  ;;  %v2801_v21 = vmax.f32 %v2800_v7, %v2581_v3  ;;  %v2875_v20 = vmax.f32 %v2874_v25, %v2583_v60  ;;  %v1418_v61 = vpop.f32.mrb[46].mxu0  ;;  %v1611_v50 = vpop.f32.mrb[46].mxu1 }
 0x2c5   : > { %v2582_v1 = vsel %vm2450_vm9, %v2163_v47, -inf  ;;  %v2584_v4 = vsel %vm2450_vm9, %v2165_v26, -inf  ;;  %v2170_v38 = vmax.f32 %v1415_v57, 0.0  ;;  %v2172_v19 = vmax.f32 %v1608_v32, 0.0  ;;  %v1420_v8 = vpop.f32.mrb[47].mxu0  ;;  %v1613_v2 = vpop.f32.mrb[47].mxu1 }
 0x2c6   : > { %v2838_v6 = vmax.f32 %v2837_v51, %v2582_v1  ;;  %v2912_v31 = vmax.f32 %v2911_v43, %v2584_v4  ;;  %v1417_v24 = vadd.f32 %v1416_v33, %v4205_v48  ;;  %v1610_v63 = vadd.f32 %v1609_v30, %v4224_v0 }
 0x2c7   : > { %v1419_v7 = vadd.f32 %v1418_v61, %v4195_v62  ;;  %v1612_v25 = vadd.f32 %v1611_v50, %v4198_v36  ;;  %v2589_v47 = vsel %vm2451_vm10, %v2170_v38, -inf  ;;  %v2591_v51 = vsel %vm2451_vm10, %v2172_v19, -inf  ;;  %1909 = vmatmul.mubr.bf16.gmra.mrb[152].mxu0 %v4109_v45  ;;  %2102 = vmatmul.mubr.bf16.gmra.mrb[152].mxu1 %v4109_v45 }
 0x2c8   : > { %v1421_v43 = vadd.f32 %v1420_v8, %v4205_v48  ;;  %v1614_v26 = vadd.f32 %v1613_v2, %v4224_v0  ;;  %v2802_v3 = vmax.f32 %v2801_v21, %v2589_v47  ;;  %v2876_v60 = vmax.f32 %v2875_v20, %v2591_v51  ;;  %1918 = vmatprep.mubr.bf16.mxu0 %v5295_v11 }
 0x2c9   : > { %v2171_v57 = vmax.f32 %v1417_v24, 0.0  ;;  %v2173_v32 = vmax.f32 %v1610_v63, 0.0  ;;  %2111 = vmatprep.mubr.bf16.mxu1 %v5295_v11  ;;  %v2178_v33 = vmax.f32 %v1419_v7, 0.0  ;;  %v2180_v30 = vmax.f32 %v1612_v25, 0.0 }
 0x2ca   : > { %v2179_v1 = vmax.f32 %v1421_v43, 0.0  ;;  %v2181_v8 = vmax.f32 %v1614_v26, 0.0  ;;  %v1424_v21 = vpop.f32.mrb[48].mxu0  ;;  %v1617_v20 = vpop.f32.mrb[48].mxu1  ;;  %v5298_v63 = vsub.s32 5, %v4179_v5  ;;  %v5299_v50 = vsub.s32 7, %v4179_v5 }
 0x2cb   : > { %v2590_v4 = vsel %vm2451_vm10, %v2171_v57, -inf  ;;  %v2592_v45 = vsel %vm2451_vm10, %v2173_v32, -inf  ;;  %v2597_v2 = vsel %vm2452_vm11, %v2178_v33, -inf  ;;  %v2599_v24 = vsel %vm2452_vm11, %v2180_v30, -inf  ;;  %v1426_v7 = vpop.f32.mrb[49].mxu0  ;;  %v1619_v25 = vpop.f32.mrb[49].mxu1 }
 0x2cc   : > { %v4476_v61 = vrot.slane %v4190_v35, %v5298_v63  ;;  %v4481_v11 = vrot.slane %v4190_v35, %v5299_v50  ;;  %v2839_v38 = vmax.f32 %v2838_v6, %v2590_v4  ;;  %v2913_v19 = vmax.f32 %v2912_v31, %v2592_v45  ;;  %v1428_v35 = vpop.f32.mrb[50].mxu0  ;;  %v1621_v57 = vpop.f32.mrb[50].mxu1 }
 0x2cd   : > { %v2803_v47 = vmax.f32 %v2802_v3, %v2597_v2  ;;  %v2877_v51 = vmax.f32 %v2876_v60, %v2599_v24  ;;  %v2598_v43 = vsel %vm2452_vm11, %v2179_v1, -inf  ;;  %v2600_v26 = vsel %vm2452_vm11, %v2181_v8, -inf  ;;  %v1430_v4 = vpop.f32.mrb[51].mxu0  ;;  %v1623_v30 = vpop.f32.mrb[51].mxu1 }
 0x2ce   : > { %v2840_v6 = vmax.f32 %v2839_v38, %v2598_v43  ;;  %v2914_v31 = vmax.f32 %v2913_v19, %v2600_v26  ;;  %v1425_v32 = vadd.f32 %v1424_v21, %v4195_v62  ;;  %v1618_v33 = vadd.f32 %v1617_v20, %v4198_v36 }
 0x2cf   : > { %v1427_v45 = vadd.f32 %v1426_v7, %v4205_v48  ;;  %v1620_v3 = vadd.f32 %v1619_v25, %v4224_v0  ;;  %v1429_v60 = vadd.f32 %v1428_v35, %v4195_v62  ;;  %v1622_v1 = vadd.f32 %v1621_v57, %v4198_v36  ;;  %1919 = vmatmul.mubr.bf16.gmra.mrb[156].mxu0 %v4107_v44 }
 0x2d0   : > { %v2186_v8 = vmax.f32 %v1425_v32, 0.0  ;;  %v2188_v63 = vmax.f32 %v1618_v33, 0.0  ;;  %v1431_v50 = vadd.f32 %v1430_v4, %v4205_v48  ;;  %v1624_v21 = vadd.f32 %v1623_v30, %v4224_v0  ;;  %2112 = vmatmul.mubr.bf16.gmra.mrb[156].mxu1 %v4107_v44 }
 0x2d1   : > { %v2187_v20 = vmax.f32 %v1427_v45, 0.0  ;;  %v2189_v38 = vmax.f32 %v1620_v3, 0.0  ;;  %v2194_v19 = vmax.f32 %v1429_v60, 0.0  ;;  %v2196_v2 = vmax.f32 %v1622_v1, 0.0 }
 0x2d2   : > { %v2605_v24 = vsel %vm2453_vm12, %v2186_v8, -inf  ;;  %v2607_v7 = vsel %vm2453_vm12, %v2188_v63, -inf  ;;  %v2195_v25 = vmax.f32 %v1431_v50, 0.0  ;;  %v2197_v43 = vmax.f32 %v1624_v21, 0.0  ;;  %v1434_v32 = vpop.f32.mrb[52].mxu0  ;;  %v1627_v33 = vpop.f32.mrb[52].mxu1 }
 0x2d3   : > { %v2804_v26 = vmax.f32 %v2803_v47, %v2605_v24  ;;  %v2878_v35 = vmax.f32 %v2877_v51, %v2607_v7  ;;  %v2606_v57 = vsel %vm2453_vm12, %v2187_v20, -inf  ;;  %v2608_v44 = vsel %vm2453_vm12, %v2189_v38, -inf  ;;  %v1436_v60 = vpop.f32.mrb[53].mxu0  ;;  %v1629_v1 = vpop.f32.mrb[53].mxu1 }
 0x2d4   : > { %v2841_v4 = vmax.f32 %v2840_v6, %v2606_v57  ;;  %v2915_v30 = vmax.f32 %v2914_v31, %v2608_v44  ;;  %v2613_v45 = vsel %vm2454_vm13, %v2194_v19, -inf  ;;  %v2615_v3 = vsel %vm2454_vm13, %v2196_v2, -inf  ;;  %v1438_v50 = vpop.f32.mrb[54].mxu0  ;;  %v1631_v21 = vpop.f32.mrb[54].mxu1 }
 0x2d5   : > { %v2805_v47 = vmax.f32 %v2804_v26, %v2613_v45  ;;  %v2879_v51 = vmax.f32 %v2878_v35, %v2615_v3  ;;  %v2614_v8 = vsel %vm2454_vm13, %v2195_v25, -inf  ;;  %v2616_v63 = vsel %vm2454_vm13, %v2197_v43, -inf  ;;  %v1440_v19 = vpop.f32.mrb[55].mxu0  ;;  %v1633_v2 = vpop.f32.mrb[55].mxu1 }
 0x2d6   : > { %v2842_v6 = vmax.f32 %v2841_v4, %v2614_v8  ;;  %v2916_v31 = vmax.f32 %v2915_v30, %v2616_v63  ;;  %v1435_v20 = vadd.f32 %v1434_v32, %v4195_v62  ;;  %v1628_v38 = vadd.f32 %v1627_v33, %v4198_v36 }
 0x2d7   : > { %v1437_v24 = vadd.f32 %v1436_v60, %v4205_v48  ;;  %v1630_v7 = vadd.f32 %v1629_v1, %v4224_v0  ;;  %v1439_v26 = vadd.f32 %v1438_v50, %v4195_v62  ;;  %v1632_v25 = vadd.f32 %v1631_v21, %v4198_v36 }
 0x2d8   : > { %v2202_v43 = vmax.f32 %v1435_v20, 0.0  ;;  %v2204_v35 = vmax.f32 %v1628_v38, 0.0  ;;  %v1441_v57 = vadd.f32 %v1440_v19, %v4205_v48  ;;  %v1634_v44 = vadd.f32 %v1633_v2, %v4224_v0 }
 0x2d9   : > { %v2203_v32 = vmax.f32 %v1437_v24, 0.0  ;;  %v2205_v33 = vmax.f32 %v1630_v7, 0.0  ;;  %v2210_v4 = vmax.f32 %v1439_v26, 0.0  ;;  %v2212_v30 = vmax.f32 %v1632_v25, 0.0 }
 0x2da   : > { %v2621_v45 = vsel %vm2455_vm14, %v2202_v43, -inf  ;;  %v2623_v3 = vsel %vm2455_vm14, %v2204_v35, -inf  ;;  %v2211_v60 = vmax.f32 %v1441_v57, 0.0  ;;  %v2213_v1 = vmax.f32 %v1634_v44, 0.0  ;;  %v1444_v20 = vpop.f32.mrb[56].mxu0  ;;  %v1637_v38 = vpop.f32.mrb[56].mxu1 }
 0x2db   : > { %v2806_v8 = vmax.f32 %v2805_v47, %v2621_v45  ;;  %v2880_v63 = vmax.f32 %v2879_v51, %v2623_v3  ;;  %v2622_v50 = vsel %vm2455_vm14, %v2203_v32, -inf  ;;  %v2624_v21 = vsel %vm2455_vm14, %v2205_v33, -inf  ;;  %v1446_v26 = vpop.f32.mrb[57].mxu0  ;;  %v1639_v25 = vpop.f32.mrb[57].mxu1 }
 0x2dc   : > { %v2843_v19 = vmax.f32 %v2842_v6, %v2622_v50  ;;  %v2917_v2 = vmax.f32 %v2916_v31, %v2624_v21  ;;  %v2629_v24 = vsel %vm2456_vm15, %v2210_v4, -inf  ;;  %v2631_v7 = vsel %vm2456_vm15, %v2212_v30, -inf  ;;  %v1448_v57 = vpop.f32.mrb[58].mxu0  ;;  %v1641_v44 = vpop.f32.mrb[58].mxu1 }
 0x2dd   : > { %v2807_v47 = vmax.f32 %v2806_v8, %v2629_v24  ;;  %v2881_v51 = vmax.f32 %v2880_v63, %v2631_v7  ;;  %v2630_v43 = vsel %vm2456_vm15, %v2211_v60, -inf  ;;  %v2632_v35 = vsel %vm2456_vm15, %v2213_v1, -inf  ;;  %v1450_v4 = vpop.f32.mrb[59].mxu0  ;;  %v1643_v30 = vpop.f32.mrb[59].mxu1 }
 0x2de   : > { %v2844_v6 = vmax.f32 %v2843_v19, %v2630_v43  ;;  %v2918_v31 = vmax.f32 %v2917_v2, %v2632_v35  ;;  %v1445_v32 = vadd.f32 %v1444_v20, %v4195_v62  ;;  %v1638_v33 = vadd.f32 %v1637_v38, %v4198_v36 }
 0x2df   : > { %v1447_v45 = vadd.f32 %v1446_v26, %v4205_v48  ;;  %v1640_v3 = vadd.f32 %v1639_v25, %v4224_v0  ;;  %v1449_v8 = vadd.f32 %v1448_v57, %v4195_v62  ;;  %v1642_v60 = vadd.f32 %v1641_v44, %v4198_v36 }
 0x2e0   : > { %v2218_v1 = vmax.f32 %v1445_v32, 0.0  ;;  %v2220_v63 = vmax.f32 %v1638_v33, 0.0  ;;  %v1451_v50 = vadd.f32 %v1450_v4, %v4205_v48  ;;  %v1644_v21 = vadd.f32 %v1643_v30, %v4224_v0 }
 0x2e1   : > { %v2219_v20 = vmax.f32 %v1447_v45, 0.0  ;;  %v2221_v38 = vmax.f32 %v1640_v3, 0.0  ;;  %v2226_v19 = vmax.f32 %v1449_v8, 0.0  ;;  %v2228_v2 = vmax.f32 %v1642_v60, 0.0 }
 0x2e2   : > { %v2637_v24 = vsel %vm5258_vm0, %v2218_v1, -inf  ;;  %v2639_v7 = vsel %vm5258_vm0, %v2220_v63, -inf  ;;  %v2227_v26 = vmax.f32 %v1451_v50, 0.0  ;;  %v2229_v25 = vmax.f32 %v1644_v21, 0.0  ;;  %v1454_v32 = vpop.f32.mrb[60].mxu0  ;;  %v1647_v33 = vpop.f32.mrb[60].mxu1 }
 0x2e3   : > { %v2808_v43 = vmax.f32 %v2807_v47, %v2637_v24  ;;  %v2882_v35 = vmax.f32 %v2881_v51, %v2639_v7  ;;  %v2638_v57 = vsel %vm5258_vm0, %v2219_v20, -inf  ;;  %v2640_v44 = vsel %vm5258_vm0, %v2221_v38, -inf  ;;  %v1456_v8 = vpop.f32.mrb[61].mxu0  ;;  %v1649_v60 = vpop.f32.mrb[61].mxu1 }
 0x2e4   : > { %v2845_v4 = vmax.f32 %v2844_v6, %v2638_v57  ;;  %v2919_v30 = vmax.f32 %v2918_v31, %v2640_v44  ;;  %v2645_v45 = vsel %vm5257_vm1, %v2226_v19, -inf  ;;  %v2647_v3 = vsel %vm5257_vm1, %v2228_v2, -inf  ;;  %v1458_v50 = vpop.f32.mrb[62].mxu0  ;;  %v1651_v21 = vpop.f32.mrb[62].mxu1 }
 0x2e5   : > { %v2809_v47 = vmax.f32 %v2808_v43, %v2645_v45  ;;  %v2883_v51 = vmax.f32 %v2882_v35, %v2647_v3  ;;  %v2646_v1 = vsel %vm5257_vm1, %v2227_v26, -inf  ;;  %v2648_v63 = vsel %vm5257_vm1, %v2229_v25, -inf  ;;  %v1460_v19 = vpop.f32.mrb[63].mxu0  ;;  %v1653_v2 = vpop.f32.mrb[63].mxu1 }
 0x2e6   : > { %v2846_v6 = vmax.f32 %v2845_v4, %v2646_v1  ;;  %v2920_v31 = vmax.f32 %v2919_v30, %v2648_v63  ;;  %v1455_v20 = vadd.f32 %v1454_v32, %v4195_v62  ;;  %v1648_v38 = vadd.f32 %v1647_v33, %v4198_v36 }
 0x2e7   : > { %v1457_v24 = vadd.f32 %v1456_v8, %v4205_v48  ;;  %v1650_v7 = vadd.f32 %v1649_v60, %v4224_v0  ;;  %v1459_v43 = vadd.f32 %v1458_v50, %v4195_v62  ;;  %v1652_v26 = vadd.f32 %v1651_v21, %v4198_v36 }
 0x2e8   : > { %vm5262_vm1 = vcmp.lt.s32.totalorder %v4294_v41, 500  ;;  %v2234_v25 = vmax.f32 %v1455_v20, 0.0  ;;  %v2236_v35 = vmax.f32 %v1648_v38, 0.0  ;;  %v1461_v57 = vadd.f32 %v1460_v19, %v4205_v48 }
 0x2e9   : > { %v1654_v44 = vadd.f32 %v1653_v2, %v4224_v0  ;;  %v2235_v32 = vmax.f32 %v1457_v24, 0.0  ;;  %v2237_v33 = vmax.f32 %v1650_v7, 0.0  ;;  %v2242_v4 = vmax.f32 %v1459_v43, 0.0 }
 0x2ea   : > { %v2244_v30 = vmax.f32 %v1652_v26, 0.0  ;;  %vm5261_vm0 = vcmp.lt.s32.totalorder %v4297_v42, 500  ;;  %v2653_v45 = vsel %vm5260_vm2, %v2234_v25, -inf  ;;  %v2655_v3 = vsel %vm5260_vm2, %v2236_v35, -inf  ;;  %v1464_v20 = vpop.f32.mrb[64].mxu0  ;;  %v1657_v38 = vpop.f32.mrb[64].mxu1 }
 0x2eb   : > { %v2243_v8 = vmax.f32 %v1461_v57, 0.0  ;;  %v2245_v60 = vmax.f32 %v1654_v44, 0.0  ;;  %v2810_v1 = vmax.f32 %v2809_v47, %v2653_v45  ;;  %v2884_v63 = vmax.f32 %v2883_v51, %v2655_v3  ;;  %v1466_v43 = vpop.f32.mrb[65].mxu0  ;;  %v1659_v26 = vpop.f32.mrb[65].mxu1 }
 0x2ec   : > { %v2654_v50 = vsel %vm5260_vm2, %v2235_v32, -inf  ;;  %v2656_v21 = vsel %vm5260_vm2, %v2237_v33, -inf  ;;  %v2661_v24 = vsel %vm5259_vm3, %v2242_v4, -inf  ;;  %v2663_v7 = vsel %vm5259_vm3, %v2244_v30, -inf  ;;  %v1468_v57 = vpop.f32.mrb[66].mxu0  ;;  %v1661_v44 = vpop.f32.mrb[66].mxu1 }
 0x2ed   : > { %v2847_v19 = vmax.f32 %v2846_v6, %v2654_v50  ;;  %v2921_v2 = vmax.f32 %v2920_v31, %v2656_v21  ;;  %v2811_v47 = vmax.f32 %v2810_v1, %v2661_v24  ;;  %v2885_v51 = vmax.f32 %v2884_v63, %v2663_v7  ;;  %v1470_v4 = vpop.f32.mrb[67].mxu0  ;;  %v1663_v30 = vpop.f32.mrb[67].mxu1 }
 0x2ee   : > { %v2662_v25 = vsel %vm5259_vm3, %v2243_v8, -inf  ;;  %v2664_v35 = vsel %vm5259_vm3, %v2245_v60, -inf  ;;  %v1465_v32 = vadd.f32 %v1464_v20, %v4195_v62  ;;  %v1658_v33 = vadd.f32 %v1657_v38, %v4198_v36 }
 0x2ef   : > { %v2848_v6 = vmax.f32 %v2847_v19, %v2662_v25  ;;  %v2922_v31 = vmax.f32 %v2921_v2, %v2664_v35  ;;  %v1467_v45 = vadd.f32 %v1466_v43, %v4205_v48  ;;  %v1660_v3 = vadd.f32 %v1659_v26, %v4224_v0 }
 0x2f0   : > { %v1469_v1 = vadd.f32 %v1468_v57, %v4195_v62  ;;  %v1662_v8 = vadd.f32 %v1661_v44, %v4198_v36  ;;  %vm5264_vm3 = vcmp.lt.s32.totalorder %v4302_v52, 500  ;;  %v2250_v60 = vmax.f32 %v1465_v32, 0.0 }
 0x2f1   : > { %v2252_v63 = vmax.f32 %v1658_v33, 0.0  ;;  %v1471_v50 = vadd.f32 %v1470_v4, %v4205_v48  ;;  %v1664_v21 = vadd.f32 %v1663_v30, %v4224_v0  ;;  %v2251_v20 = vmax.f32 %v1467_v45, 0.0 }
 0x2f2   : > { %v2253_v38 = vmax.f32 %v1660_v3, 0.0  ;;  %v2258_v19 = vmax.f32 %v1469_v1, 0.0  ;;  %v2260_v2 = vmax.f32 %v1662_v8, 0.0  ;;  %vm5263_vm2 = vcmp.lt.s32.totalorder %v4305_v12, 500  ;;  %v1474_v32 = vpop.f32.mrb[68].mxu0  ;;  %v1667_v33 = vpop.f32.mrb[68].mxu1 }
 0x2f3   : > { %v2669_v24 = vsel %vm5262_vm1, %v2250_v60, -inf  ;;  %v2671_v7 = vsel %vm5262_vm1, %v2252_v63, -inf  ;;  %v2259_v43 = vmax.f32 %v1471_v50, 0.0  ;;  %v2261_v26 = vmax.f32 %v1664_v21, 0.0  ;;  %v1476_v1 = vpop.f32.mrb[69].mxu0  ;;  %v1669_v8 = vpop.f32.mrb[69].mxu1 }
 0x2f4   : > { %v2812_v25 = vmax.f32 %v2811_v47, %v2669_v24  ;;  %v2886_v35 = vmax.f32 %v2885_v51, %v2671_v7  ;;  %v2670_v57 = vsel %vm5262_vm1, %v2251_v20, -inf  ;;  %v2672_v44 = vsel %vm5262_vm1, %v2253_v38, -inf  ;;  %v1478_v50 = vpop.f32.mrb[70].mxu0  ;;  %v1671_v21 = vpop.f32.mrb[70].mxu1 }
 0x2f5   : > { %v2849_v4 = vmax.f32 %v2848_v6, %v2670_v57  ;;  %v2923_v30 = vmax.f32 %v2922_v31, %v2672_v44  ;;  %v2677_v45 = vsel %vm5261_vm0, %v2258_v19, -inf  ;;  %v2679_v3 = vsel %vm5261_vm0, %v2260_v2, -inf  ;;  %v1480_v19 = vpop.f32.mrb[71].mxu0  ;;  %v1673_v2 = vpop.f32.mrb[71].mxu1 }
 0x2f6   : > { %v2813_v47 = vmax.f32 %v2812_v25, %v2677_v45  ;;  %v2887_v51 = vmax.f32 %v2886_v35, %v2679_v3  ;;  %v2678_v60 = vsel %vm5261_vm0, %v2259_v43, -inf  ;;  %v2680_v63 = vsel %vm5261_vm0, %v2261_v26, -inf }
 0x2f7   : > { %v2850_v6 = vmax.f32 %v2849_v4, %v2678_v60  ;;  %v2924_v31 = vmax.f32 %v2923_v30, %v2680_v63  ;;  %v1475_v20 = vadd.f32 %v1474_v32, %v4195_v62  ;;  %v1668_v38 = vadd.f32 %v1667_v33, %v4198_v36 }
 0x2f8   : > { %v1477_v24 = vadd.f32 %v1476_v1, %v4205_v48  ;;  %v1670_v7 = vadd.f32 %v1669_v8, %v4224_v0  ;;  %v1479_v25 = vadd.f32 %v1478_v50, %v4195_v62  ;;  %v1672_v43 = vadd.f32 %v1671_v21, %v4198_v36 }
 0x2f9   : > { %vm5266_vm0 = vcmp.lt.s32.totalorder %v4310_v59, 500  ;;  %v2266_v26 = vmax.f32 %v1475_v20, 0.0  ;;  %v2268_v35 = vmax.f32 %v1668_v38, 0.0  ;;  %v1481_v57 = vadd.f32 %v1480_v19, %v4205_v48 }
 0x2fa   : > { %v1674_v44 = vadd.f32 %v1673_v2, %v4224_v0  ;;  %v2267_v32 = vmax.f32 %v1477_v24, 0.0  ;;  %v2269_v33 = vmax.f32 %v1670_v7, 0.0  ;;  %v2274_v4 = vmax.f32 %v1479_v25, 0.0  ;;  %v1484_v20 = vpop.f32.mrb[72].mxu0  ;;  %v1677_v38 = vpop.f32.mrb[72].mxu1 }
 0x2fb   : > { %v2276_v30 = vmax.f32 %v1672_v43, 0.0  ;;  %vm5265_vm1 = vcmp.lt.s32.totalorder %v4313_v37, 500  ;;  %v2685_v45 = vsel %vm5264_vm3, %v2266_v26, -inf  ;;  %v2687_v3 = vsel %vm5264_vm3, %v2268_v35, -inf  ;;  %v1486_v25 = vpop.f32.mrb[73].mxu0  ;;  %v1679_v43 = vpop.f32.mrb[73].mxu1 }
 0x2fc   : > { %v2275_v1 = vmax.f32 %v1481_v57, 0.0  ;;  %v2277_v8 = vmax.f32 %v1674_v44, 0.0  ;;  %v2814_v60 = vmax.f32 %v2813_v47, %v2685_v45  ;;  %v2888_v63 = vmax.f32 %v2887_v51, %v2687_v3  ;;  %v1488_v57 = vpop.f32.mrb[74].mxu0  ;;  %v1681_v44 = vpop.f32.mrb[74].mxu1 }
 0x2fd   : > { %v2686_v50 = vsel %vm5264_vm3, %v2267_v32, -inf  ;;  %v2688_v21 = vsel %vm5264_vm3, %v2269_v33, -inf  ;;  %v2693_v24 = vsel %vm5263_vm2, %v2274_v4, -inf  ;;  %v2695_v7 = vsel %vm5263_vm2, %v2276_v30, -inf  ;;  %v1490_v4 = vpop.f32.mrb[75].mxu0  ;;  %v1683_v30 = vpop.f32.mrb[75].mxu1 }
 0x2fe   : > { %v2851_v19 = vmax.f32 %v2850_v6, %v2686_v50  ;;  %v2925_v2 = vmax.f32 %v2924_v31, %v2688_v21  ;;  %v2815_v47 = vmax.f32 %v2814_v60, %v2693_v24  ;;  %v2889_v51 = vmax.f32 %v2888_v63, %v2695_v7 }
 0x2ff   : > { %v2694_v26 = vsel %vm5263_vm2, %v2275_v1, -inf  ;;  %v2696_v35 = vsel %vm5263_vm2, %v2277_v8, -inf  ;;  %v1485_v32 = vadd.f32 %v1484_v20, %v4195_v62  ;;  %v1678_v33 = vadd.f32 %v1677_v38, %v4198_v36 }
 0x300   : > { %v2852_v6 = vmax.f32 %v2851_v19, %v2694_v26  ;;  %v2926_v31 = vmax.f32 %v2925_v2, %v2696_v35  ;;  %v1487_v45 = vadd.f32 %v1486_v25, %v4205_v48  ;;  %v1680_v3 = vadd.f32 %v1679_v43, %v4224_v0 }
 0x301   : > { %v1489_v60 = vadd.f32 %v1488_v57, %v4195_v62  ;;  %v1682_v1 = vadd.f32 %v1681_v44, %v4198_v36  ;;  %vm5268_vm2 = vcmp.lt.s32.totalorder %v4316_v46, 500  ;;  %v2282_v8 = vmax.f32 %v1485_v32, 0.0 }
 0x302   : > { %v2284_v63 = vmax.f32 %v1678_v33, 0.0  ;;  %v1491_v50 = vadd.f32 %v1490_v4, %v4205_v48  ;;  %v1684_v21 = vadd.f32 %v1683_v30, %v4224_v0  ;;  %v2283_v20 = vmax.f32 %v1487_v45, 0.0  ;;  %v1494_v32 = vpop.f32.mrb[76].mxu0  ;;  %v1687_v33 = vpop.f32.mrb[76].mxu1 }
 0x303   : > { %v2285_v38 = vmax.f32 %v1680_v3, 0.0  ;;  %v2290_v19 = vmax.f32 %v1489_v60, 0.0  ;;  %v2292_v2 = vmax.f32 %v1682_v1, 0.0  ;;  %vm5267_vm3 = vcmp.lt.s32.totalorder %v4319_v49, 500  ;;  %v1496_v60 = vpop.f32.mrb[77].mxu0  ;;  %v1689_v1 = vpop.f32.mrb[77].mxu1 }
 0x304   : > { %v2701_v24 = vsel %vm5266_vm0, %v2282_v8, -inf  ;;  %v2703_v7 = vsel %vm5266_vm0, %v2284_v63, -inf  ;;  %v2291_v25 = vmax.f32 %v1491_v50, 0.0  ;;  %v2293_v43 = vmax.f32 %v1684_v21, 0.0  ;;  %v1498_v50 = vpop.f32.mrb[78].mxu0  ;;  %v1691_v21 = vpop.f32.mrb[78].mxu1 }
 0x305   : > { %v2816_v26 = vmax.f32 %v2815_v47, %v2701_v24  ;;  %v2890_v35 = vmax.f32 %v2889_v51, %v2703_v7  ;;  %v2702_v57 = vsel %vm5266_vm0, %v2283_v20, -inf  ;;  %v2704_v44 = vsel %vm5266_vm0, %v2285_v38, -inf }
 0x306   : > { %v2853_v4 = vmax.f32 %v2852_v6, %v2702_v57  ;;  %v2927_v30 = vmax.f32 %v2926_v31, %v2704_v44  ;;  %v2709_v45 = vsel %vm5265_vm1, %v2290_v19, -inf  ;;  %v2711_v3 = vsel %vm5265_vm1, %v2292_v2, -inf  ;;  %v1500_v19 = vpop.f32.mrb[79].mxu0  ;;  %v1693_v2 = vpop.f32.mrb[79].mxu1 }
 0x307   : > { %v2817_v47 = vmax.f32 %v2816_v26, %v2709_v45  ;;  %v2891_v51 = vmax.f32 %v2890_v35, %v2711_v3  ;;  %v2710_v8 = vsel %vm5265_vm1, %v2291_v25, -inf  ;;  %v2712_v63 = vsel %vm5265_vm1, %v2293_v43, -inf }
 0x308   : > { %v2854_v6 = vmax.f32 %v2853_v4, %v2710_v8  ;;  %v2928_v31 = vmax.f32 %v2927_v30, %v2712_v63  ;;  %v1495_v20 = vadd.f32 %v1494_v32, %v4195_v62  ;;  %v1688_v38 = vadd.f32 %v1687_v33, %v4198_v36 }
 0x309   : > { %v1497_v24 = vadd.f32 %v1496_v60, %v4205_v48  ;;  %v1690_v7 = vadd.f32 %v1689_v1, %v4224_v0  ;;  %v1499_v26 = vadd.f32 %v1498_v50, %v4195_v62  ;;  %v1692_v25 = vadd.f32 %v1691_v21, %v4198_v36 }
 0x30a   : > { %vm5270_vm1 = vcmp.lt.s32.totalorder %v4322_v53, 500  ;;  %v2298_v43 = vmax.f32 %v1495_v20, 0.0  ;;  %v2300_v35 = vmax.f32 %v1688_v38, 0.0  ;;  %v1501_v57 = vadd.f32 %v1500_v19, %v4205_v48  ;;  %v1504_v20 = vpop.f32.mrb[80].mxu0  ;;  %v1697_v38 = vpop.f32.mrb[80].mxu1 }
 0x30b   : > { %v1694_v44 = vadd.f32 %v1693_v2, %v4224_v0  ;;  %v2299_v32 = vmax.f32 %v1497_v24, 0.0  ;;  %v2301_v33 = vmax.f32 %v1690_v7, 0.0  ;;  %v2306_v4 = vmax.f32 %v1499_v26, 0.0  ;;  %v1506_v26 = vpop.f32.mrb[81].mxu0 }
 0x30c   : > { %v2308_v30 = vmax.f32 %v1692_v25, 0.0  ;;  %vm5269_vm0 = vcmp.lt.s32.totalorder %v4325_v54, 500  ;;  %v2717_v45 = vsel %vm5268_vm2, %v2298_v43, -inf  ;;  %v2719_v3 = vsel %vm5268_vm2, %v2300_v35, -inf  ;;  %v1699_v25 = vpop.f32.mrb[81].mxu1 }
 0x30d   : > { %v2307_v60 = vmax.f32 %v1501_v57, 0.0  ;;  %v2309_v1 = vmax.f32 %v1694_v44, 0.0  ;;  %v2818_v8 = vmax.f32 %v2817_v47, %v2717_v45  ;;  %v2892_v63 = vmax.f32 %v2891_v51, %v2719_v3  ;;  %v1508_v57 = vpop.f32.mrb[82].mxu0  ;;  %v1701_v44 = vpop.f32.mrb[82].mxu1 }
 0x30e   : > { %v2718_v50 = vsel %vm5268_vm2, %v2299_v32, -inf  ;;  %v2720_v21 = vsel %vm5268_vm2, %v2301_v33, -inf  ;;  %v2725_v24 = vsel %vm5267_vm3, %v2306_v4, -inf  ;;  %v2727_v7 = vsel %vm5267_vm3, %v2308_v30, -inf  ;;  %v1510_v4 = vpop.f32.mrb[83].mxu0  ;;  %v1703_v30 = vpop.f32.mrb[83].mxu1 }
 0x30f   : > { %v2855_v19 = vmax.f32 %v2854_v6, %v2718_v50  ;;  %v2929_v2 = vmax.f32 %v2928_v31, %v2720_v21  ;;  %v2819_v47 = vmax.f32 %v2818_v8, %v2725_v24  ;;  %v2893_v51 = vmax.f32 %v2892_v63, %v2727_v7 }
 0x310   : > { %v2726_v43 = vsel %vm5267_vm3, %v2307_v60, -inf  ;;  %v2728_v35 = vsel %vm5267_vm3, %v2309_v1, -inf  ;;  %v1505_v32 = vadd.f32 %v1504_v20, %v4195_v62  ;;  %v1698_v33 = vadd.f32 %v1697_v38, %v4198_v36 }
 0x311   : > { %v2856_v6 = vmax.f32 %v2855_v19, %v2726_v43  ;;  %v2930_v31 = vmax.f32 %v2929_v2, %v2728_v35  ;;  %v1507_v45 = vadd.f32 %v1506_v26, %v4205_v48  ;;  %v1700_v3 = vadd.f32 %v1699_v25, %v4224_v0 }
 0x312   : > { %v1509_v8 = vadd.f32 %v1508_v57, %v4195_v62  ;;  %v1702_v60 = vadd.f32 %v1701_v44, %v4198_v36  ;;  %vm5272_vm3 = vcmp.lt.s32.totalorder %v4328_v55, 500  ;;  %v2314_v1 = vmax.f32 %v1505_v32, 0.0  ;;  %v1514_v32 = vpop.f32.mrb[84].mxu0 }
 0x313   : > { %v2316_v63 = vmax.f32 %v1698_v33, 0.0  ;;  %v1511_v50 = vadd.f32 %v1510_v4, %v4205_v48  ;;  %v1704_v21 = vadd.f32 %v1703_v30, %v4224_v0  ;;  %v2315_v20 = vmax.f32 %v1507_v45, 0.0  ;;  %v1707_v33 = vpop.f32.mrb[84].mxu1 }
 0x314   : > { %v2317_v38 = vmax.f32 %v1700_v3, 0.0  ;;  %v2322_v19 = vmax.f32 %v1509_v8, 0.0  ;;  %v2324_v2 = vmax.f32 %v1702_v60, 0.0  ;;  %vm5271_vm2 = vcmp.lt.s32.totalorder %v4331_v56, 500  ;;  %v1516_v8 = vpop.f32.mrb[85].mxu0  ;;  %v1709_v60 = vpop.f32.mrb[85].mxu1 }
 0x315   : > { %v2733_v24 = vsel %vm5270_vm1, %v2314_v1, -inf  ;;  %v2735_v7 = vsel %vm5270_vm1, %v2316_v63, -inf  ;;  %v2323_v26 = vmax.f32 %v1511_v50, 0.0  ;;  %v2325_v25 = vmax.f32 %v1704_v21, 0.0  ;;  %v1518_v50 = vpop.f32.mrb[86].mxu0  ;;  %v1711_v21 = vpop.f32.mrb[86].mxu1 }
 0x316   : > { %v2820_v43 = vmax.f32 %v2819_v47, %v2733_v24  ;;  %v2894_v35 = vmax.f32 %v2893_v51, %v2735_v7  ;;  %v2734_v57 = vsel %vm5270_vm1, %v2315_v20, -inf  ;;  %v2736_v44 = vsel %vm5270_vm1, %v2317_v38, -inf }
 0x317   : > { %v2857_v4 = vmax.f32 %v2856_v6, %v2734_v57  ;;  %v2931_v30 = vmax.f32 %v2930_v31, %v2736_v44  ;;  %v2741_v45 = vsel %vm5269_vm0, %v2322_v19, -inf  ;;  %v2743_v3 = vsel %vm5269_vm0, %v2324_v2, -inf  ;;  %v1520_v19 = vpop.f32.mrb[87].mxu0  ;;  %v1713_v2 = vpop.f32.mrb[87].mxu1 }
 0x318   : > { %v2821_v47 = vmax.f32 %v2820_v43, %v2741_v45  ;;  %v2895_v51 = vmax.f32 %v2894_v35, %v2743_v3  ;;  %v2742_v1 = vsel %vm5269_vm0, %v2323_v26, -inf  ;;  %v2744_v63 = vsel %vm5269_vm0, %v2325_v25, -inf }
 0x319   : > { %v2858_v6 = vmax.f32 %v2857_v4, %v2742_v1  ;;  %v2932_v31 = vmax.f32 %v2931_v30, %v2744_v63  ;;  %v1515_v20 = vadd.f32 %v1514_v32, %v4195_v62  ;;  %v1708_v38 = vadd.f32 %v1707_v33, %v4198_v36 }
 0x31a   : > { %v1517_v24 = vadd.f32 %v1516_v8, %v4205_v48  ;;  %v1710_v7 = vadd.f32 %v1709_v60, %v4224_v0  ;;  %v1519_v43 = vadd.f32 %v1518_v50, %v4195_v62  ;;  %v1712_v26 = vadd.f32 %v1711_v21, %v4198_v36 }
 0x31b   : > { %vm2473_vm0 = vcmp.lt.s32.totalorder %v4341_v28, 500  ;;  %v2330_v25 = vmax.f32 %v1515_v20, 0.0  ;;  %v2332_v35 = vmax.f32 %v1708_v38, 0.0  ;;  %v1521_v57 = vadd.f32 %v1520_v19, %v4205_v48  ;;  %v1524_v20 = vpop.f32.mrb[88].mxu0  ;;  %v1717_v38 = vpop.f32.mrb[88].mxu1 }
 0x31c   : > { %v1714_v44 = vadd.f32 %v1713_v2, %v4224_v0  ;;  %v2331_v32 = vmax.f32 %v1517_v24, 0.0  ;;  %v2333_v33 = vmax.f32 %v1710_v7, 0.0  ;;  %v2338_v4 = vmax.f32 %v1519_v43, 0.0  ;;  %v1526_v43 = vpop.f32.mrb[89].mxu0 }
 0x31d   : > { %v2340_v30 = vmax.f32 %v1712_v26, 0.0  ;;  %vm2474_vm1 = vcmp.lt.s32.totalorder %v4344_v29, 500  ;;  %v2749_v45 = vsel %vm5272_vm3, %v2330_v25, -inf  ;;  %v2751_v3 = vsel %vm5272_vm3, %v2332_v35, -inf  ;;  %v1719_v26 = vpop.f32.mrb[89].mxu1 }
 0x31e   : > { %v2339_v8 = vmax.f32 %v1521_v57, 0.0  ;;  %v2341_v60 = vmax.f32 %v1714_v44, 0.0  ;;  %v2822_v1 = vmax.f32 %v2821_v47, %v2749_v45  ;;  %v2896_v63 = vmax.f32 %v2895_v51, %v2751_v3  ;;  %v1528_v57 = vpop.f32.mrb[90].mxu0  ;;  %v1721_v44 = vpop.f32.mrb[90].mxu1 }
 0x31f   : > { %v2750_v50 = vsel %vm5272_vm3, %v2331_v32, -inf  ;;  %v2752_v21 = vsel %vm5272_vm3, %v2333_v33, -inf  ;;  %v2757_v24 = vsel %vm5271_vm2, %v2338_v4, -inf  ;;  %v2759_v7 = vsel %vm5271_vm2, %v2340_v30, -inf  ;;  %v1530_v4 = vpop.f32.mrb[91].mxu0  ;;  %v1723_v30 = vpop.f32.mrb[91].mxu1 }
 0x320   : > { %v2859_v19 = vmax.f32 %v2858_v6, %v2750_v50  ;;  %v2933_v2 = vmax.f32 %v2932_v31, %v2752_v21  ;;  %v2823_v47 = vmax.f32 %v2822_v1, %v2757_v24  ;;  %v2897_v51 = vmax.f32 %v2896_v63, %v2759_v7 }
 0x321   : > { %v2758_v25 = vsel %vm5271_vm2, %v2339_v8, -inf  ;;  %v2760_v35 = vsel %vm5271_vm2, %v2341_v60, -inf  ;;  %v1525_v32 = vadd.f32 %v1524_v20, %v4195_v62  ;;  %v1718_v33 = vadd.f32 %v1717_v38, %v4198_v36 }
 0x322   : > { %v2860_v6 = vmax.f32 %v2859_v19, %v2758_v25  ;;  %v2934_v31 = vmax.f32 %v2933_v2, %v2760_v35  ;;  %v1527_v45 = vadd.f32 %v1526_v43, %v4205_v48  ;;  %v1720_v3 = vadd.f32 %v1719_v26, %v4224_v0 }
 0x323   : > { %v1529_v1 = vadd.f32 %v1528_v57, %v4195_v62  ;;  %v1722_v8 = vadd.f32 %v1721_v44, %v4198_v36  ;;  %vm2475_vm2 = vcmp.lt.s32.totalorder %v4354_v34, 500  ;;  %v2346_v60 = vmax.f32 %v1525_v32, 0.0  ;;  %v1534_v32 = vpop.f32.mrb[92].mxu0 }
 0x324   : > { %v2348_v63 = vmax.f32 %v1718_v33, 0.0  ;;  %v1531_v50 = vadd.f32 %v1530_v4, %v4205_v48  ;;  %v1724_v21 = vadd.f32 %v1723_v30, %v4224_v0  ;;  %v2347_v20 = vmax.f32 %v1527_v45, 0.0  ;;  %v1727_v33 = vpop.f32.mrb[92].mxu1 }
 0x325   : > { %v2349_v38 = vmax.f32 %v1720_v3, 0.0  ;;  %v2354_v19 = vmax.f32 %v1529_v1, 0.0  ;;  %v2356_v2 = vmax.f32 %v1722_v8, 0.0  ;;  %vm2476_vm3 = vcmp.lt.s32.totalorder %v4357_v58, 500  ;;  %v1536_v1 = vpop.f32.mrb[93].mxu0  ;;  %v1729_v8 = vpop.f32.mrb[93].mxu1 }
 0x326   : > { %v2765_v24 = vsel %vm2473_vm0, %v2346_v60, -inf  ;;  %v2767_v7 = vsel %vm2473_vm0, %v2348_v63, -inf  ;;  %v2355_v43 = vmax.f32 %v1531_v50, 0.0  ;;  %v2357_v26 = vmax.f32 %v1724_v21, 0.0  ;;  %v1538_v50 = vpop.f32.mrb[94].mxu0  ;;  %v1731_v21 = vpop.f32.mrb[94].mxu1 }
 0x327   : > { %v2824_v25 = vmax.f32 %v2823_v47, %v2765_v24  ;;  %v2898_v35 = vmax.f32 %v2897_v51, %v2767_v7  ;;  %v2766_v57 = vsel %vm2473_vm0, %v2347_v20, -inf  ;;  %v2768_v44 = vsel %vm2473_vm0, %v2349_v38, -inf }
 0x328   : > { %v2861_v4 = vmax.f32 %v2860_v6, %v2766_v57  ;;  %v2935_v30 = vmax.f32 %v2934_v31, %v2768_v44  ;;  %v2773_v45 = vsel %vm2474_vm1, %v2354_v19, -inf  ;;  %v2775_v3 = vsel %vm2474_vm1, %v2356_v2, -inf  ;;  %v1540_v19 = vpop.f32.mrb[95].mxu0  ;;  %v1733_v2 = vpop.f32.mrb[95].mxu1 }
 0x329   : > { %v2825_v47 = vmax.f32 %v2824_v25, %v2773_v45  ;;  %v2899_v51 = vmax.f32 %v2898_v35, %v2775_v3  ;;  %v2774_v60 = vsel %vm2474_vm1, %v2355_v43, -inf  ;;  %v2776_v63 = vsel %vm2474_vm1, %v2357_v26, -inf }
 0x32a   : > { %v2862_v6 = vmax.f32 %v2861_v4, %v2774_v60  ;;  %v2936_v31 = vmax.f32 %v2935_v30, %v2776_v63  ;;  %v1535_v20 = vadd.f32 %v1534_v32, %v4195_v62  ;;  %v1728_v38 = vadd.f32 %v1727_v33, %v4198_v36  ;;  %v1963_v63 = vpop.f32.mrb[96].mxu1 }
 0x32b   : > { %v1537_v24 = vadd.f32 %v1536_v1, %v4205_v48  ;;  %v1730_v7 = vadd.f32 %v1729_v8, %v4224_v0  ;;  %v1539_v25 = vadd.f32 %v1538_v50, %v4195_v62  ;;  %v1732_v43 = vadd.f32 %v1731_v21, %v4198_v36 }
 0x32c   : > { %v2362_v35 = vmax.f32 %v1535_v20, 0.0  ;;  %v2364_v26 = vmax.f32 %v1728_v38, 0.0  ;;  %v1541_v57 = vadd.f32 %v1540_v19, %v4205_v48  ;;  %v1734_v44 = vadd.f32 %v1733_v2, %v4224_v0  ;;  %v1770_v0 = vpop.f32.mrb[96].mxu0  ;;  %v1965_v2 = vpop.f32.mrb[97].mxu1 }
 0x32d   : > { %v2363_v4 = vmax.f32 %v1537_v24, 0.0  ;;  %v2365_v32 = vmax.f32 %v1730_v7, 0.0  ;;  %v2370_v30 = vmax.f32 %v1539_v25, 0.0  ;;  %v2372_v33 = vmax.f32 %v1732_v43, 0.0  ;;  %v1772_v19 = vpop.f32.mrb[97].mxu0  ;;  %v1967_v43 = vpop.f32.mrb[98].mxu1 }
 0x32e   : > { %v2781_v45 = vsel %vm2475_vm2, %v2362_v35, -inf  ;;  %v2783_v3 = vsel %vm2475_vm2, %v2364_v26, -inf  ;;  %v2371_v1 = vmax.f32 %v1541_v57, 0.0  ;;  %v2373_v62 = vmax.f32 %v1734_v44, 0.0  ;;  %v1774_v25 = vpop.f32.mrb[98].mxu0  ;;  %v1969_v44 = vpop.f32.mrb[99].mxu1 }
 0x32f   : > { %v2826_v8 = vmax.f32 %v2825_v47, %v2781_v45  ;;  %v2900_v36 = vmax.f32 %v2899_v51, %v2783_v3  ;;  %v2782_v60 = vsel %vm2475_vm2, %v2363_v4, -inf  ;;  %v2784_v48 = vsel %vm2475_vm2, %v2365_v32, -inf  ;;  %v1776_v57 = vpop.f32.mrb[99].mxu0 }
 0x330   : > { %v2863_v50 = vmax.f32 %v2862_v6, %v2782_v60  ;;  %v2937_v21 = vmax.f32 %v2936_v31, %v2784_v48  ;;  %v2789_v20 = vsel %vm2476_vm3, %v2370_v30, -inf  ;;  %v2791_v38 = vsel %vm2476_vm3, %v2372_v33, -inf }
 0x331   : > { %v2827_v47 = vmax.f32 %v2826_v8, %v2789_v20  ;;  %v2901_v51 = vmax.f32 %v2900_v36, %v2791_v38  ;;  %v2790_v24 = vsel %vm2476_vm3, %v2371_v1, -inf  ;;  %v2792_v7 = vsel %vm2476_vm3, %v2373_v62, -inf }
 0x332   : > { %v2864_v6 = vmax.f32 %v2863_v50, %v2790_v24  ;;  %v2938_v31 = vmax.f32 %v2937_v21, %v2792_v7  ;;  %v1771_v35 = vadd.f32 %v1770_v0, %v4436_v39  ;;  %v1964_v26 = vadd.f32 %v1963_v63, %v4441_v27  ;;  %v1973_v24 = vpop.f32.mrb[100].mxu1 }
 0x333   : > { %v2828_v4 = vrot.slane %v2827_v47, 4  ;;  %v2902_v32 = vrot.slane %v2901_v51, 4  ;;  %v1773_v30 = vadd.f32 %v1772_v19, %v4476_v61  ;;  %v1966_v33 = vadd.f32 %v1965_v2, %v4481_v11 }
 0x334   : > { %v2865_v45 = vrot.slane %v2864_v6, 4  ;;  %v2939_v3 = vrot.slane %v2938_v31, 4  ;;  %v2126_v1 = vmax.f32 %v1771_v35, 0.0  ;;  %v2128_v62 = vmax.f32 %v1964_v26, 0.0 }
 0x335   : > { %v2829_v8 = vmax.f32 %v2827_v47, %v2828_v4  ;;  %v2903_v36 = vmax.f32 %v2901_v51, %v2902_v32  ;;  %v2127_v60 = vmax.f32 %v1773_v30, 0.0  ;;  %v2129_v48 = vmax.f32 %v1966_v33, 0.0  ;;  %v1780_v51 = vpop.f32.mrb[100].mxu0  ;;  %v1975_v4 = vpop.f32.mrb[101].mxu1 }
 0x336   : > { %v2866_v50 = vmax.f32 %v2864_v6, %v2865_v45  ;;  %v2940_v0 = vmax.f32 %v2938_v31, %v2939_v3  ;;  %v4809_v63 = vsel %vm2445_vm4, %v2126_v1, -inf  ;;  %v4813_v20 = vsel %vm2445_vm4, %v2128_v62, -inf  ;;  %v1782_v26 = vpop.f32.mrb[101].mxu0  ;;  %v1977_v1 = vpop.f32.mrb[102].mxu1 }
 0x337   : > { %v2830_v38 = vrot.slane %v2829_v8, 2  ;;  %v2904_v19 = vrot.slane %v2903_v36, 2  ;;  %v4817_v2 = vsel %vm2445_vm4, %v2127_v60, -inf  ;;  %v4821_v47 = vsel %vm2445_vm4, %v2129_v48, -inf  ;;  %v1784_v3 = vpop.f32.mrb[102].mxu0  ;;  %v1979_v58 = vpop.f32.mrb[103].mxu1 }
 0x338   : > { %v2867_v7 = vrot.slane %v2866_v50, 2  ;;  %v2941_v6 = vrot.slane %v2940_v0, 2  ;;  %v1775_v31 = vadd.f32 %v1774_v25, %v4436_v39  ;;  %v1968_v35 = vadd.f32 %v1967_v43, %v4441_v27  ;;  %v1786_v5 = vpop.f32.mrb[103].mxu0 }
 0x339   : > { %v2831_v32 = vmax.f32 %v2829_v8, %v2830_v38  ;;  %v2905_v30 = vmax.f32 %v2903_v36, %v2904_v19  ;;  %v1777_v33 = vadd.f32 %v1776_v57, %v4476_v61  ;;  %v1970_v45 = vadd.f32 %v1969_v44, %v4481_v11 }
 0x33a   : > { %v2868_v62 = vmax.f32 %v2866_v50, %v2867_v7  ;;  %v2942_v60 = vmax.f32 %v2940_v0, %v2941_v6  ;;  %v2134_v48 = vmax.f32 %v1775_v31, 0.0  ;;  %v2136_v21 = vmax.f32 %v1968_v35, 0.0 }
 0x33b   : > { %v2832_v34 = vrot.slane %v2831_v32, 1  ;;  %v2906_v25 = vrot.slane %v2905_v30, 1  ;;  %v2135_v29 = vmax.f32 %v1777_v33, 0.0  ;;  %v2137_v43 = vmax.f32 %v1970_v45, 0.0 }
 0x33c   : > { %v2869_v28 = vrot.slane %v2868_v62, 1  ;;  %v2943_v56 = vrot.slane %v2942_v60, 1  ;;  %v2553_v36 = vsel %vm2446_vm5, %v2134_v48, -inf  ;;  %v2555_v57 = vsel %vm2446_vm5, %v2136_v21, -inf }
 0x33d   : > { %v4831_v44 = vmax.f32 %v2831_v32, %v2832_v34  ;;  %v4833_v50 = vmax.f32 %v2905_v30, %v2906_v25  ;;  %v2945_v0 = vmax.f32 %v4809_v63, %v2553_v36  ;;  %v3019_v38 = vmax.f32 %v4813_v20, %v2555_v57  ;;  %v1790_v30 = vpop.f32.mrb[104].mxu0  ;;  %v1983_v20 = vpop.f32.mrb[104].mxu1 }
 0x33e   : > { %v4837_v19 = vmax.f32 %v2868_v62, %v2869_v28  ;;  %v4839_v7 = vmax.f32 %v2942_v60, %v2943_v56  ;;  %v2554_v6 = vsel %vm2446_vm5, %v2135_v29, -inf  ;;  %v2556_v31 = vsel %vm2446_vm5, %v2137_v43, -inf  ;;  %v1792_v45 = vpop.f32.mrb[105].mxu0  ;;  %v1985_v62 = vpop.f32.mrb[105].mxu1 }
 0x33f   : > { %v2982_v35 = vmax.f32 %v4817_v2, %v2554_v6  ;;  %v3056_v34 = vmax.f32 %v4821_v47, %v2556_v31  ;;  %v1781_v32 = vadd.f32 %v1780_v51, %v4436_v39  ;;  %v1974_v63 = vadd.f32 %v1973_v24, %v4441_v27  ;;  %v1794_v48 = vpop.f32.mrb[106].mxu0  ;;  %v1987_v24 = vpop.f32.mrb[106].mxu1 }
 0x340   : > { %v1783_v28 = vadd.f32 %v1782_v26, %v4476_v61  ;;  %v1976_v56 = vadd.f32 %v1975_v4, %v4481_v11  ;;  %v1785_v33 = vadd.f32 %v1784_v3, %v4436_v39  ;;  %v1978_v29 = vadd.f32 %v1977_v1, %v4441_v27  ;;  %v1796_v8 = vpop.f32.mrb[107].mxu0  ;;  %v1989_v4 = vpop.f32.mrb[107].mxu1 }
 0x341   : > { %v2142_v60 = vmax.f32 %v1781_v32, 0.0  ;;  %v2144_v2 = vmax.f32 %v1974_v63, 0.0  ;;  %v1787_v47 = vadd.f32 %v1786_v5, %v4476_v61  ;;  %v1980_v51 = vadd.f32 %v1979_v58, %v4481_v11 }
 0x342   : > { %v2143_v21 = vmax.f32 %v1783_v28, 0.0  ;;  %v2145_v25 = vmax.f32 %v1976_v56, 0.0  ;;  %v2150_v43 = vmax.f32 %v1785_v33, 0.0  ;;  %v2152_v26 = vmax.f32 %v1978_v29, 0.0 }
 0x343   : > { %v2561_v3 = vsel %vm2447_vm6, %v2142_v60, -inf  ;;  %v2563_v1 = vsel %vm2447_vm6, %v2144_v2, -inf  ;;  %v2151_v57 = vmax.f32 %v1787_v47, 0.0  ;;  %v2153_v6 = vmax.f32 %v1980_v51, 0.0 }
 0x344   : > { %v2946_v31 = vmax.f32 %v2945_v0, %v2561_v3  ;;  %v3020_v5 = vmax.f32 %v3019_v38, %v2563_v1  ;;  %v2562_v58 = vsel %vm2447_vm6, %v2143_v21, -inf  ;;  %v2564_v32 = vsel %vm2447_vm6, %v2145_v25, -inf  ;;  %v1993_v25 = vpop.f32.mrb[108].mxu1 }
 0x345   : > { %v2983_v63 = vmax.f32 %v2982_v35, %v2562_v58  ;;  %v3057_v28 = vmax.f32 %v3056_v34, %v2564_v32  ;;  %v2569_v33 = vsel %vm2448_vm7, %v2150_v43, -inf  ;;  %v2571_v29 = vsel %vm2448_vm7, %v2152_v26, -inf  ;;  %v1800_v34 = vpop.f32.mrb[108].mxu0 }
 0x346   : > { %v2947_v60 = vmax.f32 %v2946_v31, %v2569_v33  ;;  %v3021_v2 = vmax.f32 %v3020_v5, %v2571_v29  ;;  %v2570_v0 = vsel %vm2448_vm7, %v2151_v57, -inf  ;;  %v2572_v38 = vsel %vm2448_vm7, %v2153_v6, -inf  ;;  %v1802_v1 = vpop.f32.mrb[109].mxu0  ;;  %v1995_v57 = vpop.f32.mrb[109].mxu1 }
 0x347   : > { %v2984_v47 = vmax.f32 %v2983_v63, %v2570_v0  ;;  %v3058_v51 = vmax.f32 %v3057_v28, %v2572_v38  ;;  %v1791_v21 = vadd.f32 %v1790_v30, %v4436_v39  ;;  %v1984_v35 = vadd.f32 %v1983_v20, %v4441_v27  ;;  %v1804_v58 = vpop.f32.mrb[110].mxu0  ;;  %v1997_v20 = vpop.f32.mrb[110].mxu1 }
 0x348   : > { %v1793_v43 = vadd.f32 %v1792_v45, %v4476_v61  ;;  %v1986_v26 = vadd.f32 %v1985_v62, %v4481_v11  ;;  %v1795_v36 = vadd.f32 %v1794_v48, %v4436_v39  ;;  %v1988_v3 = vadd.f32 %v1987_v24, %v4441_v27  ;;  %v1806_v56 = vpop.f32.mrb[111].mxu0  ;;  %v1999_v62 = vpop.f32.mrb[111].mxu1 }
 0x349   : > { %v2158_v31 = vmax.f32 %v1791_v21, 0.0  ;;  %v2160_v6 = vmax.f32 %v1984_v35, 0.0  ;;  %v1797_v5 = vadd.f32 %v1796_v8, %v4476_v61  ;;  %v1990_v30 = vadd.f32 %v1989_v4, %v4481_v11 }
 0x34a   : > { %v2159_v32 = vmax.f32 %v1793_v43, 0.0  ;;  %v2161_v63 = vmax.f32 %v1986_v26, 0.0  ;;  %v2166_v28 = vmax.f32 %v1795_v36, 0.0  ;;  %v2168_v45 = vmax.f32 %v1988_v3, 0.0 }
 0x34b   : > { %v2577_v48 = vsel %vm2449_vm8, %v2158_v31, -inf  ;;  %v2579_v24 = vsel %vm2449_vm8, %v2160_v6, -inf  ;;  %v2167_v29 = vmax.f32 %v1797_v5, 0.0  ;;  %v2169_v0 = vmax.f32 %v1990_v30, 0.0 }
 0x34c   : > { %v2948_v38 = vmax.f32 %v2947_v60, %v2577_v48  ;;  %v3022_v8 = vmax.f32 %v3021_v2, %v2579_v24  ;;  %v2578_v4 = vsel %vm2449_vm8, %v2159_v32, -inf  ;;  %v2580_v21 = vsel %vm2449_vm8, %v2161_v63, -inf  ;;  %v2003_v32 = vpop.f32.mrb[112].mxu1 }
 0x34d   : > { %v2985_v35 = vmax.f32 %v2984_v47, %v2578_v4  ;;  %v3059_v43 = vmax.f32 %v3058_v51, %v2580_v21  ;;  %v2585_v26 = vsel %vm2450_vm9, %v2166_v28, -inf  ;;  %v2587_v36 = vsel %vm2450_vm9, %v2168_v45, -inf  ;;  %v1810_v51 = vpop.f32.mrb[112].mxu0  ;;  %v2005_v24 = vpop.f32.mrb[113].mxu1 }
 0x34e   : > { %v2949_v3 = vmax.f32 %v2948_v38, %v2585_v26  ;;  %v3023_v31 = vmax.f32 %v3022_v8, %v2587_v36  ;;  %v2586_v60 = vsel %vm2450_vm9, %v2167_v29, -inf  ;;  %v2588_v2 = vsel %vm2450_vm9, %v2169_v0, -inf  ;;  %v1812_v48 = vpop.f32.mrb[113].mxu0 }
 0x34f   : > { %v2986_v6 = vmax.f32 %v2985_v35, %v2586_v60  ;;  %v3060_v5 = vmax.f32 %v3059_v43, %v2588_v2  ;;  %v1801_v30 = vadd.f32 %v1800_v34, %v4436_v39  ;;  %v1994_v47 = vadd.f32 %v1993_v25, %v4441_v27  ;;  %v1814_v38 = vpop.f32.mrb[114].mxu0  ;;  %v2007_v25 = vpop.f32.mrb[114].mxu1 }
 0x350   : > { %v1803_v63 = vadd.f32 %v1802_v1, %v4476_v61  ;;  %v1996_v28 = vadd.f32 %v1995_v57, %v4481_v11  ;;  %v1805_v45 = vadd.f32 %v1804_v58, %v4436_v39  ;;  %v1998_v33 = vadd.f32 %v1997_v20, %v4441_v27  ;;  %v1816_v35 = vpop.f32.mrb[115].mxu0  ;;  %v2009_v57 = vpop.f32.mrb[115].mxu1 }
 0x351   : > { %v2174_v9 = vmax.f32 %v1801_v30, 0.0  ;;  %v2176_v29 = vmax.f32 %v1994_v47, 0.0  ;;  %v1807_v0 = vadd.f32 %v1806_v56, %v4476_v61  ;;  %v2000_v34 = vadd.f32 %v1999_v62, %v4481_v11 }
 0x352   : > { %v2175_v8 = vmax.f32 %v1803_v63, 0.0  ;;  %v2177_v4 = vmax.f32 %v1996_v28, 0.0  ;;  %v2182_v21 = vmax.f32 %v1805_v45, 0.0  ;;  %v2184_v1 = vmax.f32 %v1998_v33, 0.0 }
 0x353   : > { %v2593_v58 = vsel %vm2451_vm10, %v2174_v9, -inf  ;;  %v2595_v20 = vsel %vm2451_vm10, %v2176_v29, -inf  ;;  %v2183_v43 = vmax.f32 %v1807_v0, 0.0  ;;  %v2185_v26 = vmax.f32 %v2000_v34, 0.0  ;;  %v2013_v29 = vpop.f32.mrb[116].mxu1 }
 0x354   : > { %v2950_v36 = vmax.f32 %v2949_v3, %v2593_v58  ;;  %v3024_v56 = vmax.f32 %v3023_v31, %v2595_v20  ;;  %v2594_v62 = vsel %vm2451_vm10, %v2175_v8, -inf  ;;  %v2596_v60 = vsel %vm2451_vm10, %v2177_v4, -inf }
 0x355   : > { %v2987_v2 = vmax.f32 %v2986_v6, %v2594_v62  ;;  %v3061_v30 = vmax.f32 %v3060_v5, %v2596_v60  ;;  %v2601_v47 = vsel %vm2452_vm11, %v2182_v21, -inf  ;;  %v2603_v63 = vsel %vm2452_vm11, %v2184_v1, -inf  ;;  %v1820_v5 = vpop.f32.mrb[116].mxu0  ;;  %v2015_v1 = vpop.f32.mrb[117].mxu1 }
 0x356   : > { %v2951_v28 = vmax.f32 %v2950_v36, %v2601_v47  ;;  %v3025_v45 = vmax.f32 %v3024_v56, %v2603_v63  ;;  %v2602_v3 = vsel %vm2452_vm11, %v2183_v43, -inf  ;;  %v2604_v31 = vsel %vm2452_vm11, %v2185_v26, -inf  ;;  %v1822_v21 = vpop.f32.mrb[117].mxu0 }
 0x357   : > { %v2988_v33 = vmax.f32 %v2987_v2, %v2602_v3  ;;  %v3062_v9 = vmax.f32 %v3061_v30, %v2604_v31  ;;  %v1811_v10 = vadd.f32 %v1810_v51, %v4436_v39  ;;  %v2004_v6 = vadd.f32 %v2003_v32, %v4441_v27  ;;  %v1824_v43 = vpop.f32.mrb[118].mxu0  ;;  %v2017_v32 = vpop.f32.mrb[118].mxu1 }
 0x358   : > { %v1813_v0 = vadd.f32 %v1812_v48, %v4476_v61  ;;  %v2006_v34 = vadd.f32 %v2005_v24, %v4481_v11  ;;  %v1815_v8 = vadd.f32 %v1814_v38, %v4436_v39  ;;  %v2008_v4 = vadd.f32 %v2007_v25, %v4441_v27  ;;  %v1826_v62 = vpop.f32.mrb[119].mxu0  ;;  %v2019_v24 = vpop.f32.mrb[119].mxu1 }
 0x359   : > { %v2190_v13 = vmax.f32 %v1811_v10, 0.0  ;;  %v2192_v58 = vmax.f32 %v2004_v6, 0.0  ;;  %v1817_v20 = vadd.f32 %v1816_v35, %v4476_v61  ;;  %v2010_v51 = vadd.f32 %v2009_v57, %v4481_v11 }
 0x35a   : > { %v2191_v26 = vmax.f32 %v1813_v0, 0.0  ;;  %v2193_v36 = vmax.f32 %v2006_v34, 0.0  ;;  %v2198_v56 = vmax.f32 %v1815_v8, 0.0  ;;  %v2200_v48 = vmax.f32 %v2008_v4, 0.0  ;;  %v2023_v4 = vpop.f32.mrb[120].mxu1 }
 0x35b   : > { %v2609_v38 = vsel %vm2453_vm12, %v2190_v13, -inf  ;;  %v2611_v25 = vsel %vm2453_vm12, %v2192_v58, -inf  ;;  %v2199_v60 = vmax.f32 %v1817_v20, 0.0  ;;  %v2201_v2 = vmax.f32 %v2010_v51, 0.0 }
 0x35c   : > { %v2952_v30 = vmax.f32 %v2951_v28, %v2609_v38  ;;  %v3026_v35 = vmax.f32 %v3025_v45, %v2611_v25  ;;  %v2610_v57 = vsel %vm2453_vm12, %v2191_v26, -inf  ;;  %v2612_v47 = vsel %vm2453_vm12, %v2193_v36, -inf  ;;  %v2025_v36 = vpop.f32.mrb[121].mxu1 }
 0x35d   : > { %v2989_v63 = vmax.f32 %v2988_v33, %v2610_v57  ;;  %v3063_v3 = vmax.f32 %v3062_v9, %v2612_v47  ;;  %v2617_v31 = vsel %vm2454_vm13, %v2198_v56, -inf  ;;  %v2619_v10 = vsel %vm2454_vm13, %v2200_v48, -inf  ;;  %v1830_v9 = vpop.f32.mrb[120].mxu0 }
 0x35e   : > { %v2953_v6 = vmax.f32 %v2952_v30, %v2617_v31  ;;  %v3027_v0 = vmax.f32 %v3026_v35, %v2619_v10  ;;  %v2618_v28 = vsel %vm2454_vm13, %v2199_v60, -inf  ;;  %v2620_v45 = vsel %vm2454_vm13, %v2201_v2, -inf  ;;  %v1832_v26 = vpop.f32.mrb[121].mxu0 }
 0x35f   : > { %v2990_v34 = vmax.f32 %v2989_v63, %v2618_v28  ;;  %v3064_v8 = vmax.f32 %v3063_v3, %v2620_v45  ;;  %v1821_v14 = vadd.f32 %v1820_v5, %v4436_v39  ;;  %v2014_v33 = vadd.f32 %v2013_v29, %v4441_v27  ;;  %v1834_v38 = vpop.f32.mrb[122].mxu0  ;;  %v2027_v29 = vpop.f32.mrb[122].mxu1 }
 0x360   : > { %v1823_v13 = vadd.f32 %v1822_v21, %v4476_v61  ;;  %v2016_v58 = vadd.f32 %v2015_v1, %v4481_v11  ;;  %v1825_v20 = vadd.f32 %v1824_v43, %v4436_v39  ;;  %v2018_v51 = vadd.f32 %v2017_v32, %v4441_v27  ;;  %v1836_v30 = vpop.f32.mrb[123].mxu0  ;;  %v2029_v1 = vpop.f32.mrb[123].mxu1 }
 0x361   : > { %v2206_v15 = vmax.f32 %v1821_v14, 0.0  ;;  %v2208_v56 = vmax.f32 %v2014_v33, 0.0  ;;  %v1827_v48 = vadd.f32 %v1826_v62, %v4476_v61  ;;  %v2020_v5 = vadd.f32 %v2019_v24, %v4481_v11 }
 0x362   : > { %v2207_v25 = vmax.f32 %v1823_v13, 0.0  ;;  %v2209_v60 = vmax.f32 %v2016_v58, 0.0  ;;  %v2214_v2 = vmax.f32 %v1825_v20, 0.0  ;;  %v2216_v21 = vmax.f32 %v2018_v51, 0.0  ;;  %v2033_v58 = vpop.f32.mrb[124].mxu1 }
 0x363   : > { %v2625_v43 = vsel %vm2455_vm14, %v2206_v15, -inf  ;;  %v2627_v32 = vsel %vm2455_vm14, %v2208_v56, -inf  ;;  %v2215_v35 = vmax.f32 %v1827_v48, 0.0  ;;  %v2217_v57 = vmax.f32 %v2020_v5, 0.0  ;;  %v2035_v5 = vpop.f32.mrb[125].mxu1 }
 0x364   : > { %v2954_v47 = vmax.f32 %v2953_v6, %v2625_v43  ;;  %v3028_v62 = vmax.f32 %v3027_v0, %v2627_v32  ;;  %v2626_v24 = vsel %vm2455_vm14, %v2207_v25, -inf  ;;  %v2628_v63 = vsel %vm2455_vm14, %v2209_v60, -inf }
 0x365   : > { %v2991_v3 = vmax.f32 %v2990_v34, %v2626_v24  ;;  %v3065_v31 = vmax.f32 %v3064_v8, %v2628_v63  ;;  %v2633_v10 = vsel %vm2456_vm15, %v2214_v2, -inf  ;;  %v2635_v28 = vsel %vm2456_vm15, %v2216_v21, -inf  ;;  %v1840_v8 = vpop.f32.mrb[124].mxu0 }
 0x366   : > { %v2955_v45 = vmax.f32 %v2954_v47, %v2633_v10  ;;  %v3029_v14 = vmax.f32 %v3028_v62, %v2635_v28  ;;  %v2634_v6 = vsel %vm2456_vm15, %v2215_v35, -inf  ;;  %v2636_v0 = vsel %vm2456_vm15, %v2217_v57, -inf  ;;  %v1842_v48 = vpop.f32.mrb[125].mxu0 }
 0x367   : > { %v2992_v33 = vmax.f32 %v2991_v3, %v2634_v6  ;;  %v3066_v13 = vmax.f32 %v3065_v31, %v2636_v0  ;;  %v1831_v16 = vadd.f32 %v1830_v9, %v4436_v39  ;;  %v2024_v34 = vadd.f32 %v2023_v4, %v4441_v27  ;;  %v1844_v2 = vpop.f32.mrb[126].mxu0  ;;  %v2037_v4 = vpop.f32.mrb[126].mxu1 }
 0x368   : > { %v1833_v20 = vadd.f32 %v1832_v26, %v4476_v61  ;;  %v2026_v51 = vadd.f32 %v2025_v36, %v4481_v11  ;;  %v1835_v15 = vadd.f32 %v1834_v38, %v4436_v39  ;;  %v2028_v56 = vadd.f32 %v2027_v29, %v4441_v27  ;;  %v1846_v35 = vpop.f32.mrb[127].mxu0  ;;  %v2039_v36 = vpop.f32.mrb[127].mxu1 }
 0x369   : > { %v2222_v17 = vmax.f32 %v1831_v16, 0.0  ;;  %v2224_v25 = vmax.f32 %v2024_v34, 0.0  ;;  %v1837_v60 = vadd.f32 %v1836_v30, %v4476_v61  ;;  %v2030_v9 = vadd.f32 %v2029_v1, %v4481_v11 }
 0x36a   : > { %v2223_v21 = vmax.f32 %v1833_v20, 0.0  ;;  %v2225_v43 = vmax.f32 %v2026_v51, 0.0  ;;  %v2230_v32 = vmax.f32 %v1835_v15, 0.0  ;;  %v2232_v26 = vmax.f32 %v2028_v56, 0.0  ;;  %v2043_v34 = vpop.f32.mrb[128].mxu1 }
 0x36b   : > { %vm5305_vm4 = vcmp.lt.s32.totalorder %v4265_v18, 500  ;;  %v2231_v57 = vmax.f32 %v1837_v60, 0.0  ;;  %v2233_v47 = vmax.f32 %v2030_v9, 0.0  ;;  %vm5309_vm8 = vcmp.lt.s32.totalorder %v4271_v22, 500 }
 0x36c   : > { %v2641_v38 = vsel %vm5305_vm4, %v2222_v17, -inf  ;;  %vm5306_vm5 = vmmov %vm5305_vm4  ;;  %v2649_v31 = vsel %vm5309_vm8, %v2230_v32, -inf  ;;  %v1841_v18 = vadd.f32 %v1840_v8, %v4436_v39  ;;  %v1843_v20 = vadd.f32 %v1842_v48, %v4476_v61 }
 0x36d   : > { %v2643_v29 = vsel %vm5306_vm5, %v2224_v25, -inf  ;;  %v2956_v62 = vmax.f32 %v2955_v45, %v2641_v38  ;;  %vm5307_vm6 = vmmov %vm5305_vm4  ;;  %v2036_v51 = vadd.f32 %v2035_v5, %v4481_v11  ;;  %v1845_v15 = vadd.f32 %v1844_v2, %v4436_v39  ;;  %v2045_v25 = vpop.f32.mrb[129].mxu1 }
 0x36e   : > { %v3030_v30 = vmax.f32 %v3029_v14, %v2643_v29  ;;  %v2642_v1 = vsel %vm5307_vm6, %v2223_v21, -inf  ;;  %vm5308_vm7 = vmmov %vm5305_vm4  ;;  %v2038_v56 = vadd.f32 %v2037_v4, %v4441_v27  ;;  %v2238_v22 = vmax.f32 %v1841_v18, 0.0 }
 0x36f   : > { %v2644_v24 = vsel %vm5308_vm7, %v2225_v43, -inf  ;;  %v2993_v63 = vmax.f32 %v2992_v33, %v2642_v1  ;;  %vm5310_vm9 = vmmov %vm5309_vm8  ;;  %v2957_v28 = vmax.f32 %v2956_v62, %v2649_v31  ;;  %v2034_v33 = vadd.f32 %v2033_v58, %v4441_v27  ;;  %v2047_v58 = vpop.f32.mrb[130].mxu1 }
 0x370   : > { %v3067_v3 = vmax.f32 %v3066_v13, %v2644_v24  ;;  %v2651_v10 = vsel %vm5310_vm9, %v2232_v26, -inf  ;;  %vm5311_vm10 = vmmov %vm5309_vm8  ;;  %v1850_v13 = vpop.f32.mrb[128].mxu0  ;;  %v1847_v9 = vadd.f32 %v1846_v35, %v4476_v61  ;;  %v2040_v8 = vadd.f32 %v2039_v36, %v4481_v11  ;;  %v2049_v5 = vpop.f32.mrb[131].mxu1 }
 0x371   : > { %v3031_v6 = vmax.f32 %v3030_v30, %v2651_v10  ;;  %v2650_v45 = vsel %vm5311_vm10, %v2231_v57, -inf  ;;  %vm5312_vm11 = vmmov %vm5309_vm8  ;;  %v1852_v17 = vpop.f32.mrb[129].mxu0  ;;  %v2240_v60 = vmax.f32 %v2034_v33, 0.0  ;;  %v2239_v43 = vmax.f32 %v1843_v20, 0.0 }
 0x372   : > { %v2652_v14 = vsel %vm5312_vm11, %v2233_v47, -inf  ;;  %v2994_v0 = vmax.f32 %v2993_v63, %v2650_v45  ;;  %v1854_v21 = vpop.f32.mrb[130].mxu0  ;;  %v2241_v32 = vmax.f32 %v2036_v51, 0.0  ;;  %v2246_v26 = vmax.f32 %v1845_v15, 0.0 }
 0x373   : > { %v3068_v16 = vmax.f32 %v3067_v3, %v2652_v14  ;;  %v2248_v48 = vmax.f32 %v2038_v56, 0.0  ;;  %v1856_v38 = vpop.f32.mrb[131].mxu0  ;;  %vm5313_vm12 = vcmp.lt.s32.totalorder %v4274_v23, 500  ;;  %v2247_v29 = vmax.f32 %v1847_v9, 0.0 }
 0x374   : > { %v2657_v2 = vsel %vm5313_vm12, %v2238_v22, -inf  ;;  %vm5314_vm13 = vmmov %vm5313_vm12  ;;  %v2249_v57 = vmax.f32 %v2040_v8, 0.0  ;;  %vm5317_vm4 = vcmp.lt.s32.totalorder %v4291_v40, 500  ;;  %v1851_v23 = vadd.f32 %v1850_v13, %v4436_v39 }
 0x375   : > { %v2659_v4 = vsel %vm5314_vm13, %v2240_v60, -inf  ;;  %v2958_v47 = vmax.f32 %v2957_v28, %v2657_v2  ;;  %vm5315_vm14 = vmmov %vm5313_vm12  ;;  %v2665_v24 = vsel %vm5317_vm4, %v2246_v26, -inf  ;;  %v2044_v14 = vadd.f32 %v2043_v34, %v4441_v27 }
 0x376   : > { %v3032_v35 = vmax.f32 %v3031_v6, %v2659_v4  ;;  %v2658_v36 = vsel %vm5315_vm14, %v2239_v43, -inf  ;;  %vm5316_vm15 = vmmov %vm5313_vm12  ;;  %v1853_v18 = vadd.f32 %v1852_v17, %v4476_v61  ;;  %v2046_v33 = vadd.f32 %v2045_v25, %v4481_v11 }
 0x377   : > { %v2660_v62 = vsel %vm5316_vm15, %v2241_v32, -inf  ;;  %v2995_v30 = vmax.f32 %v2994_v0, %v2658_v36  ;;  %vm5318_vm5 = vmmov %vm5317_vm4  ;;  %v2959_v3 = vmax.f32 %v2958_v47, %v2665_v24  ;;  %v1860_v0 = vpop.f32.mrb[132].mxu0  ;;  %v1855_v20 = vadd.f32 %v1854_v21, %v4436_v39 }
 0x378   : > { %v3069_v1 = vmax.f32 %v3068_v16, %v2660_v62  ;;  %v2667_v63 = vsel %vm5318_vm5, %v2248_v48, -inf  ;;  %vm5319_vm6 = vmmov %vm5317_vm4  ;;  %v2053_v16 = vpop.f32.mrb[132].mxu1  ;;  %v2048_v51 = vadd.f32 %v2047_v58, %v4441_v27  ;;  %v1862_v15 = vpop.f32.mrb[133].mxu0  ;;  %v2254_v40 = vmax.f32 %v1851_v23, 0.0 }
 0x379   : > { %v3033_v31 = vmax.f32 %v3032_v35, %v2667_v63  ;;  %v2666_v10 = vsel %vm5319_vm6, %v2247_v29, -inf  ;;  %vm5320_vm7 = vmmov %vm5317_vm4  ;;  %v2055_v56 = vpop.f32.mrb[133].mxu1  ;;  %v2256_v22 = vmax.f32 %v2044_v14, 0.0  ;;  %v1857_v60 = vadd.f32 %v1856_v38, %v4476_v61  ;;  %v1864_v9 = vpop.f32.mrb[134].mxu0 }
 0x37a   : > { %v2668_v28 = vsel %vm5320_vm7, %v2249_v57, -inf  ;;  %v2996_v6 = vmax.f32 %v2995_v30, %v2666_v10  ;;  %v2050_v13 = vadd.f32 %v2049_v5, %v4481_v11  ;;  %v2057_v34 = vpop.f32.mrb[134].mxu1  ;;  %v2255_v8 = vmax.f32 %v1853_v18, 0.0  ;;  %v1866_v26 = vpop.f32.mrb[135].mxu0 }
 0x37b   : > { %v3070_v45 = vmax.f32 %v3069_v1, %v2668_v28  ;;  %v2257_v43 = vmax.f32 %v2046_v33, 0.0  ;;  %v2262_v32 = vmax.f32 %v1855_v20, 0.0  ;;  %v2264_v17 = vmax.f32 %v2048_v51, 0.0  ;;  %v2059_v25 = vpop.f32.mrb[135].mxu1  ;;  %v1870_v10 = vpop.f32.mrb[136].mxu0 }
 0x37c   : > { %vm5321_vm8 = vcmp.lt.s32.totalorder %v4294_v41, 500  ;;  %v2263_v48 = vmax.f32 %v1857_v60, 0.0  ;;  %v2265_v2 = vmax.f32 %v2050_v13, 0.0  ;;  %vm5325_vm12 = vcmp.lt.s32.totalorder %v4297_v42, 500  ;;  %v2063_v28 = vpop.f32.mrb[136].mxu1  ;;  %v1872_v18 = vpop.f32.mrb[137].mxu0 }
 0x37d   : > { %v2673_v21 = vsel %vm5321_vm8, %v2254_v40, -inf  ;;  %vm5322_vm9 = vmmov %vm5321_vm8  ;;  %v2681_v35 = vsel %vm5325_vm12, %v2262_v32, -inf  ;;  %v1861_v41 = vadd.f32 %v1860_v0, %v4436_v39  ;;  %v1865_v23 = vadd.f32 %v1864_v9, %v4436_v39  ;;  %v2065_v33 = vpop.f32.mrb[137].mxu1  ;;  %v1874_v40 = vpop.f32.mrb[138].mxu0 }
 0x37e   : > { %v2675_v58 = vsel %vm5322_vm9, %v2256_v22, -inf  ;;  %v2960_v4 = vmax.f32 %v2959_v3, %v2673_v21  ;;  %vm5323_vm10 = vmmov %vm5321_vm8  ;;  %v2058_v14 = vadd.f32 %v2057_v34, %v4441_v27  ;;  %v1867_v51 = vadd.f32 %v1866_v26, %v4476_v61 }
 0x37f   : > { %v3034_v38 = vmax.f32 %v3033_v31, %v2675_v58  ;;  %v2674_v5 = vsel %vm5323_vm10, %v2255_v8, -inf  ;;  %vm5324_vm11 = vmmov %vm5321_vm8  ;;  %v2054_v31 = vadd.f32 %v2053_v16, %v4441_v27  ;;  %v2270_v42 = vmax.f32 %v1861_v41, 0.0  ;;  %v2067_v16 = vpop.f32.mrb[138].mxu1  ;;  %v1876_v8 = vpop.f32.mrb[139].mxu0 }
 0x380   : > { %v2676_v29 = vsel %vm5324_vm11, %v2257_v43, -inf  ;;  %v2997_v57 = vmax.f32 %v2996_v6, %v2674_v5  ;;  %vm5326_vm13 = vmmov %vm5325_vm12  ;;  %v2961_v62 = vmax.f32 %v2960_v4, %v2681_v35  ;;  %v1863_v6 = vadd.f32 %v1862_v15, %v4476_v61 }
 0x381   : > { %v3071_v47 = vmax.f32 %v3070_v45, %v2676_v29  ;;  %v2683_v36 = vsel %vm5326_vm13, %v2264_v17, -inf  ;;  %vm5327_vm14 = vmmov %vm5325_vm12  ;;  %v2056_v45 = vadd.f32 %v2055_v56, %v4481_v11  ;;  %v2272_v20 = vmax.f32 %v2054_v31, 0.0  ;;  %v2069_v56 = vpop.f32.mrb[139].mxu1 }
 0x382   : > { %v3035_v30 = vmax.f32 %v3034_v38, %v2683_v36  ;;  %v2682_v1 = vsel %vm5327_vm14, %v2263_v48, -inf  ;;  %vm5328_vm15 = vmmov %vm5325_vm12  ;;  %v2060_v0 = vadd.f32 %v2059_v25, %v4481_v11  ;;  %v2271_v22 = vmax.f32 %v1863_v6, 0.0 }
 0x383   : > { %v2684_v24 = vsel %vm5328_vm15, %v2265_v2, -inf  ;;  %v2998_v63 = vmax.f32 %v2997_v57, %v2682_v1  ;;  %v2273_v60 = vmax.f32 %v2056_v45, 0.0  ;;  %v2278_v13 = vmax.f32 %v1865_v23, 0.0 }
 0x384   : > { %v3072_v3 = vmax.f32 %v3071_v47, %v2684_v24  ;;  %v2280_v15 = vmax.f32 %v2058_v14, 0.0  ;;  %vm5329_vm4 = vcmp.lt.s32.totalorder %v4302_v52, 500  ;;  %v2279_v43 = vmax.f32 %v1867_v51, 0.0 }
 0x385   : > { %v2689_v9 = vsel %vm5329_vm4, %v2270_v42, -inf  ;;  %vm5330_vm5 = vmmov %vm5329_vm4  ;;  %v2281_v32 = vmax.f32 %v2060_v0, 0.0  ;;  %vm5333_vm8 = vcmp.lt.s32.totalorder %v4305_v12, 500  ;;  %v1871_v52 = vadd.f32 %v1870_v10, %v4436_v39 }
 0x386   : > { %v2691_v34 = vsel %vm5330_vm5, %v2272_v20, -inf  ;;  %v2962_v17 = vmax.f32 %v2961_v62, %v2689_v9  ;;  %vm5331_vm6 = vmmov %vm5329_vm4  ;;  %v2697_v2 = vsel %vm5333_vm8, %v2278_v13, -inf  ;;  %v2064_v36 = vadd.f32 %v2063_v28, %v4441_v27  ;;  %v1880_v62 = vpop.f32.mrb[140].mxu0 }
 0x387   : > { %v3036_v26 = vmax.f32 %v3035_v30, %v2691_v34  ;;  %v2690_v25 = vsel %vm5331_vm6, %v2271_v22, -inf  ;;  %vm5332_vm7 = vmmov %vm5329_vm4  ;;  %v2073_v30 = vpop.f32.mrb[140].mxu1  ;;  %v1873_v1 = vadd.f32 %v1872_v18, %v4476_v61  ;;  %v2066_v24 = vadd.f32 %v2065_v33, %v4481_v11  ;;  %v1882_v41 = vpop.f32.mrb[141].mxu0 }
 0x388   : > { %v2692_v21 = vsel %vm5332_vm7, %v2273_v60, -inf  ;;  %v2999_v58 = vmax.f32 %v2998_v63, %v2690_v25  ;;  %vm5334_vm9 = vmmov %vm5333_vm8  ;;  %v2963_v38 = vmax.f32 %v2962_v17, %v2697_v2  ;;  %v1875_v63 = vadd.f32 %v1874_v40, %v4436_v39  ;;  %v2075_v31 = vpop.f32.mrb[141].mxu1  ;;  %v1884_v23 = vpop.f32.mrb[142].mxu0 }
 0x389   : > { %v3073_v48 = vmax.f32 %v3072_v3, %v2692_v21  ;;  %v2699_v4 = vsel %vm5334_vm9, %v2280_v15, -inf  ;;  %vm5335_vm10 = vmmov %vm5333_vm8  ;;  %v2068_v3 = vadd.f32 %v2067_v16, %v4441_v27  ;;  %v2286_v12 = vmax.f32 %v1871_v52, 0.0  ;;  %v2077_v28 = vpop.f32.mrb[142].mxu1  ;;  %v1886_v51 = vpop.f32.mrb[143].mxu0 }
 0x38a   : > { %v3037_v5 = vmax.f32 %v3036_v26, %v2699_v4  ;;  %v2698_v29 = vsel %vm5335_vm10, %v2279_v43, -inf  ;;  %vm5336_vm11 = vmmov %vm5333_vm8  ;;  %v2288_v6 = vmax.f32 %v2064_v36, 0.0  ;;  %v1877_v45 = vadd.f32 %v1876_v8, %v4476_v61  ;;  %v2079_v33 = vpop.f32.mrb[143].mxu1  ;;  %v1890_v2 = vpop.f32.mrb[144].mxu0 }
 0x38b   : > { %v2700_v57 = vsel %vm5336_vm11, %v2281_v32, -inf  ;;  %v3000_v47 = vmax.f32 %v2999_v58, %v2698_v29  ;;  %v2070_v10 = vadd.f32 %v2069_v56, %v4481_v11  ;;  %v2287_v14 = vmax.f32 %v1873_v1, 0.0  ;;  %v2083_v4 = vpop.f32.mrb[144].mxu1 }
 0x38c   : > { %v3074_v35 = vmax.f32 %v3073_v48, %v2700_v57  ;;  %v2289_v42 = vmax.f32 %v2066_v24, 0.0  ;;  %v2294_v20 = vmax.f32 %v1875_v63, 0.0  ;;  %v2296_v18 = vmax.f32 %v2068_v3, 0.0 }
 0x38d   : > { %vm5337_vm12 = vcmp.lt.s32.totalorder %v4310_v59, 500  ;;  %v2295_v16 = vmax.f32 %v1877_v45, 0.0  ;;  %v2297_v22 = vmax.f32 %v2070_v10, 0.0  ;;  %vm5341_vm4 = vcmp.lt.s32.totalorder %v4313_v37, 500 }
 0x38e   : > { %v2705_v0 = vsel %vm5337_vm12, %v2286_v12, -inf  ;;  %vm5338_vm13 = vmmov %vm5337_vm12  ;;  %v2713_v34 = vsel %vm5341_vm4, %v2294_v20, -inf  ;;  %v1881_v59 = vadd.f32 %v1880_v62, %v4436_v39  ;;  %v2074_v48 = vadd.f32 %v2073_v30, %v4441_v27 }
 0x38f   : > { %v2707_v40 = vsel %vm5338_vm13, %v2288_v6, -inf  ;;  %v2964_v60 = vmax.f32 %v2963_v38, %v2705_v0  ;;  %vm5339_vm14 = vmmov %vm5337_vm12  ;;  %v1883_v38 = vadd.f32 %v1882_v41, %v4476_v61  ;;  %v1885_v29 = vadd.f32 %v1884_v23, %v4436_v39 }
 0x390   : > { %v3038_v13 = vmax.f32 %v3037_v5, %v2707_v40  ;;  %v2706_v15 = vsel %vm5339_vm14, %v2287_v14, -inf  ;;  %vm5340_vm15 = vmmov %vm5337_vm12  ;;  %v2076_v5 = vadd.f32 %v2075_v31, %v4481_v11  ;;  %v2078_v57 = vadd.f32 %v2077_v28, %v4441_v27 }
 0x391   : > { %v2708_v8 = vsel %vm5340_vm15, %v2289_v42, -inf  ;;  %v3001_v56 = vmax.f32 %v3000_v47, %v2706_v15  ;;  %vm5342_vm5 = vmmov %vm5341_vm4  ;;  %v2965_v32 = vmax.f32 %v2964_v60, %v2713_v34  ;;  %v1892_v47 = vpop.f32.mrb[145].mxu0  ;;  %v2302_v37 = vmax.f32 %v1881_v59, 0.0 }
 0x392   : > { %v3075_v9 = vmax.f32 %v3074_v35, %v2708_v8  ;;  %v2715_v43 = vsel %vm5342_vm5, %v2296_v18, -inf  ;;  %vm5343_vm6 = vmmov %vm5341_vm4  ;;  %v2085_v35 = vpop.f32.mrb[145].mxu1  ;;  %v2304_v52 = vmax.f32 %v2074_v48, 0.0  ;;  %v1887_v36 = vadd.f32 %v1886_v51, %v4476_v61  ;;  %v1894_v1 = vpop.f32.mrb[146].mxu0 }
 0x393   : > { %v3039_v17 = vmax.f32 %v3038_v13, %v2715_v43  ;;  %v2714_v26 = vsel %vm5343_vm6, %v2295_v16, -inf  ;;  %vm5344_vm7 = vmmov %vm5341_vm4  ;;  %v2080_v62 = vadd.f32 %v2079_v33, %v4481_v11  ;;  %v2087_v30 = vpop.f32.mrb[146].mxu1  ;;  %v2303_v24 = vmax.f32 %v1883_v38, 0.0  ;;  %v1896_v12 = vpop.f32.mrb[147].mxu0 }
 0x394   : > { %v2716_v25 = vsel %vm5344_vm7, %v2297_v22, -inf  ;;  %v3002_v21 = vmax.f32 %v3001_v56, %v2714_v26  ;;  %v2305_v63 = vmax.f32 %v2076_v5, 0.0  ;;  %v2310_v3 = vmax.f32 %v1885_v29, 0.0  ;;  %v2089_v31 = vpop.f32.mrb[147].mxu1  ;;  %v1900_v56 = vpop.f32.mrb[148].mxu0 }
 0x395   : > { %v3076_v58 = vmax.f32 %v3075_v9, %v2716_v25  ;;  %v2312_v41 = vmax.f32 %v2078_v57, 0.0  ;;  %vm5345_vm8 = vcmp.lt.s32.totalorder %v4316_v46, 500  ;;  %v2311_v10 = vmax.f32 %v1887_v36, 0.0  ;;  %v2093_v9 = vpop.f32.mrb[148].mxu1  ;;  %v1902_v26 = vpop.f32.mrb[149].mxu0 }
 0x396   : > { %v2721_v6 = vsel %vm5345_vm8, %v2302_v37, -inf  ;;  %vm5346_vm9 = vmmov %vm5345_vm8  ;;  %v2313_v23 = vmax.f32 %v2080_v62, 0.0  ;;  %vm5349_vm12 = vcmp.lt.s32.totalorder %v4319_v49, 500  ;;  %v1891_v46 = vadd.f32 %v1890_v2, %v4436_v39  ;;  %v2095_v25 = vpop.f32.mrb[149].mxu1  ;;  %v1904_v48 = vpop.f32.mrb[150].mxu0 }
 0x397   : > { %v2723_v45 = vsel %vm5346_vm9, %v2304_v52, -inf  ;;  %v2966_v28 = vmax.f32 %v2965_v32, %v2721_v6  ;;  %vm5347_vm10 = vmmov %vm5345_vm8  ;;  %v2729_v33 = vsel %vm5349_vm12, %v2310_v3, -inf  ;;  %v2084_v8 = vadd.f32 %v2083_v4, %v4441_v27  ;;  %v2097_v2 = vpop.f32.mrb[150].mxu1  ;;  %v1906_v57 = vpop.f32.mrb[151].mxu0 }
 0x398   : > { %v3040_v14 = vmax.f32 %v3039_v17, %v2723_v45  ;;  %v2722_v42 = vsel %vm5347_vm10, %v2303_v24, -inf  ;;  %vm5348_vm11 = vmmov %vm5345_vm8  ;;  %v1893_v34 = vadd.f32 %v1892_v47, %v4476_v61  ;;  %v2086_v43 = vadd.f32 %v2085_v35, %v4481_v11  ;;  %v2099_v47 = vpop.f32.mrb[151].mxu1 }
 0x399   : > { %v2724_v20 = vsel %vm5348_vm11, %v2305_v63, -inf  ;;  %v3003_v18 = vmax.f32 %v3002_v21, %v2722_v42  ;;  %vm5350_vm13 = vmmov %vm5349_vm12  ;;  %v2967_v40 = vmax.f32 %v2966_v28, %v2729_v33  ;;  %v1895_v32 = vadd.f32 %v1894_v1, %v4436_v39 }
 0x39a   : > { %v3077_v51 = vmax.f32 %v3076_v58, %v2724_v20  ;;  %v2731_v0 = vsel %vm5350_vm13, %v2312_v41, -inf  ;;  %vm5351_vm14 = vmmov %vm5349_vm12  ;;  %v2088_v17 = vadd.f32 %v2087_v30, %v4441_v27  ;;  %v2318_v49 = vmax.f32 %v1891_v46, 0.0  ;;  %v1910_v42 = vpop.f32.mrb[152].mxu0  ;;  %v2103_v20 = vpop.f32.mrb[152].mxu1 }
 0x39b   : > { %v3041_v16 = vmax.f32 %v3040_v14, %v2731_v0  ;;  %v2730_v22 = vsel %vm5351_vm14, %v2311_v10, -inf  ;;  %vm5352_vm15 = vmmov %vm5349_vm12  ;;  %v2320_v21 = vmax.f32 %v2084_v8, 0.0  ;;  %v1897_v58 = vadd.f32 %v1896_v12, %v4476_v61 }
 0x39c   : > { %v2732_v60 = vsel %vm5352_vm15, %v2313_v23, -inf  ;;  %v3004_v13 = vmax.f32 %v3003_v18, %v2730_v22  ;;  %v2090_v59 = vadd.f32 %v2089_v31, %v4481_v11  ;;  %v2319_v4 = vmax.f32 %v1893_v34, 0.0 }
 0x39d   : > { %v3078_v15 = vmax.f32 %v3077_v51, %v2732_v60  ;;  %v2321_v38 = vmax.f32 %v2086_v43, 0.0  ;;  %v2326_v5 = vmax.f32 %v1895_v32, 0.0  ;;  %v2328_v29 = vmax.f32 %v2088_v17, 0.0 }
 0x39e   : > { %vm5353_vm4 = vcmp.lt.s32.totalorder %v4322_v53, 500  ;;  %v2327_v52 = vmax.f32 %v1897_v58, 0.0  ;;  %v2329_v36 = vmax.f32 %v2090_v59, 0.0  ;;  %vm5357_vm8 = vcmp.lt.s32.totalorder %v4325_v54, 500 }
 0x39f   : > { %v2737_v35 = vsel %vm5353_vm4, %v2318_v49, -inf  ;;  %vm5354_vm5 = vmmov %vm5353_vm4  ;;  %v2745_v41 = vsel %vm5357_vm8, %v2326_v5, -inf  ;;  %v1901_v53 = vadd.f32 %v1900_v56, %v4436_v39  ;;  %v2094_v14 = vadd.f32 %v2093_v9, %v4441_v27 }
 0x3a0   : > { %v2739_v37 = vsel %vm5354_vm5, %v2320_v21, -inf  ;;  %v2968_v62 = vmax.f32 %v2967_v40, %v2737_v35  ;;  %vm5355_vm6 = vmmov %vm5353_vm4  ;;  %v1903_v18 = vadd.f32 %v1902_v26, %v4476_v61  ;;  %v2096_v51 = vadd.f32 %v2095_v25, %v4481_v11  ;;  %v1912_v40 = vpop.f32.mrb[153].mxu0 }
 0x3a1   : > { %v3042_v1 = vmax.f32 %v3041_v16, %v2739_v37  ;;  %v2738_v30 = vsel %vm5355_vm6, %v2319_v4, -inf  ;;  %vm5356_vm7 = vmmov %vm5353_vm4  ;;  %v1905_v33 = vadd.f32 %v1904_v48, %v4436_v39  ;;  %v2098_v0 = vadd.f32 %v2097_v2, %v4441_v27  ;;  %v2105_v16 = vpop.f32.mrb[153].mxu1 }
 0x3a2   : > { %v2740_v24 = vsel %vm5356_vm7, %v2321_v38, -inf  ;;  %v3005_v63 = vmax.f32 %v3004_v13, %v2738_v30  ;;  %vm5358_vm9 = vmmov %vm5357_vm8  ;;  %v2969_v31 = vmax.f32 %v2968_v62, %v2745_v41  ;;  %v2334_v54 = vmax.f32 %v1901_v53, 0.0  ;;  %v2107_v46 = vpop.f32.mrb[154].mxu1  ;;  %v5365_v38 = vld [vmem:[#allocation8_spill] sm:$0xff] }
 0x3a3   : > { %v3079_v3 = vmax.f32 %v3078_v15, %v2740_v24  ;;  %v2747_v12 = vsel %vm5358_vm9, %v2328_v29, -inf  ;;  %vm5359_vm10 = vmmov %vm5357_vm8  ;;  %v2336_v22 = vmax.f32 %v2094_v14, 0.0  ;;  %v1907_v60 = vadd.f32 %v1906_v57, %v4476_v61  ;;  %v1914_v15 = vpop.f32.mrb[154].mxu0  ;;  %v2109_v32 = vpop.f32.mrb[155].mxu1 }
 0x3a4   : > { %v3043_v6 = vmax.f32 %v3042_v1, %v2747_v12  ;;  %v2746_v45 = vsel %vm5359_vm10, %v2327_v52, -inf  ;;  %vm5360_vm11 = vmmov %vm5357_vm8  ;;  %v2100_v13 = vadd.f32 %v2099_v47, %v4481_v11  ;;  %v2335_v8 = vmax.f32 %v1903_v18, 0.0  ;;  %v1916_v43 = vpop.f32.mrb[155].mxu0  ;;  %v2113_v30 = vpop.f32.mrb[156].mxu1 }
 0x3a5   : > { %v2748_v10 = vsel %vm5360_vm11, %v2329_v36, -inf  ;;  %v3006_v23 = vmax.f32 %v3005_v63, %v2746_v45  ;;  %v2337_v56 = vmax.f32 %v2096_v51, 0.0  ;;  %v2342_v9 = vmax.f32 %v1905_v33, 0.0  ;;  %v1920_v1 = vpop.f32.mrb[156].mxu0 }
 0x3a6   : > { %v3080_v28 = vmax.f32 %v3079_v3, %v2748_v10  ;;  %v2344_v34 = vmax.f32 %v2098_v0, 0.0  ;;  %vm5361_vm12 = vcmp.lt.s32.totalorder %v4328_v55, 500  ;;  %v2343_v25 = vmax.f32 %v1907_v60, 0.0  ;;  %v1922_v12 = vpop.f32.mrb[157].mxu0 }
 0x3a7   : > { %v2753_v17 = vsel %vm5361_vm12, %v2334_v54, -inf  ;;  %vm5362_vm13 = vmmov %vm5361_vm12  ;;  %v2345_v49 = vmax.f32 %v2100_v13, 0.0  ;;  %vm5366_vm4 = vcmp.lt.s32.totalorder %v5365_v38, 500  ;;  %v1911_v55 = vadd.f32 %v1910_v42, %v4436_v39 }
 0x3a8   : > { %v2755_v26 = vsel %vm5362_vm13, %v2336_v22, -inf  ;;  %v2970_v21 = vmax.f32 %v2969_v31, %v2753_v17  ;;  %vm5363_vm14 = vmmov %vm5361_vm12  ;;  %v2761_v5 = vsel %vm5366_vm4, %v2342_v9, -inf  ;;  %v2104_v62 = vadd.f32 %v2103_v20, %v4441_v27  ;;  %v2115_v31 = vpop.f32.mrb[157].mxu1 }
 0x3a9   : > { %v3044_v58 = vmax.f32 %v3043_v6, %v2755_v26  ;;  %v2754_v59 = vsel %vm5363_vm14, %v2335_v8, -inf  ;;  %vm5364_vm15 = vmmov %vm5361_vm12  ;;  %v1913_v24 = vadd.f32 %v1912_v40, %v4476_v61  ;;  %v2106_v63 = vadd.f32 %v2105_v16, %v4481_v11  ;;  %v2117_v53 = vpop.f32.mrb[158].mxu1 }
 0x3aa   : > { %v2756_v48 = vsel %vm5364_vm15, %v2337_v56, -inf  ;;  %v3007_v2 = vmax.f32 %v3006_v23, %v2754_v59  ;;  %vm5367_vm5 = vmmov %vm5366_vm4  ;;  %v2971_v57 = vmax.f32 %v2970_v21, %v2761_v5  ;;  %v1915_v3 = vadd.f32 %v1914_v15, %v4436_v39  ;;  %v2119_v33 = vpop.f32.mrb[159].mxu1 }
 0x3ab   : > { %v3081_v4 = vmax.f32 %v3080_v28, %v2756_v48  ;;  %v2763_v29 = vsel %vm5367_vm5, %v2344_v34, -inf  ;;  %vm5368_vm6 = vmmov %vm5366_vm4  ;;  %v2108_v41 = vadd.f32 %v2107_v46, %v4441_v27  ;;  %v2350_v6 = vmax.f32 %v1911_v55, 0.0  ;;  %v1924_v28 = vpop.f32.mrb[158].mxu0 }
 0x3ac   : > { %v3045_v47 = vmax.f32 %v3044_v58, %v2763_v29  ;;  %v2762_v35 = vsel %vm5368_vm6, %v2343_v25, -inf  ;;  %vm5369_vm7 = vmmov %vm5366_vm4  ;;  %v2352_v45 = vmax.f32 %v2104_v62, 0.0  ;;  %v1917_v10 = vadd.f32 %v1916_v43, %v4476_v61  ;;  %v1926_v51 = vpop.f32.mrb[159].mxu0 }
 0x3ad   : > { %v2764_v37 = vsel %vm5369_vm7, %v2345_v49, -inf  ;;  %v3008_v52 = vmax.f32 %v3007_v2, %v2762_v35  ;;  %v2110_v23 = vadd.f32 %v2109_v32, %v4481_v11  ;;  %v2351_v14 = vmax.f32 %v1913_v24, 0.0 }
 0x3ae   : > { %v3082_v36 = vmax.f32 %v3081_v4, %v2764_v37  ;;  %v2353_v42 = vmax.f32 %v2106_v63, 0.0  ;;  %v2358_v20 = vmax.f32 %v1915_v3, 0.0  ;;  %v2360_v18 = vmax.f32 %v2108_v41, 0.0 }
 0x3af   : > { %v2769_v40 = vsel %vm2473_vm0, %v2350_v6, -inf  ;;  %v2771_v16 = vsel %vm2473_vm0, %v2352_v45, -inf  ;;  %v2359_v54 = vmax.f32 %v1917_v10, 0.0  ;;  %v2361_v22 = vmax.f32 %v2110_v23, 0.0 }
 0x3b0   : > { %v2972_v60 = vmax.f32 %v2971_v57, %v2769_v40  ;;  %v3046_v13 = vmax.f32 %v3045_v47, %v2771_v16  ;;  %v2770_v15 = vsel %vm2473_vm0, %v2351_v14, -inf  ;;  %v2772_v46 = vsel %vm2473_vm0, %v2353_v42, -inf }
 0x3b1   : > { %v3009_v8 = vmax.f32 %v3008_v52, %v2770_v15  ;;  %v3083_v56 = vmax.f32 %v3082_v36, %v2772_v46  ;;  %v2777_v34 = vsel %vm2474_vm1, %v2358_v20, -inf  ;;  %v2779_v43 = vsel %vm2474_vm1, %v2360_v18, -inf }
 0x3b2   : > { %v2973_v32 = vmax.f32 %v2972_v60, %v2777_v34  ;;  %v3047_v17 = vmax.f32 %v3046_v13, %v2779_v43  ;;  %v2778_v26 = vsel %vm2474_vm1, %v2359_v54, -inf  ;;  %v2780_v25 = vsel %vm2474_vm1, %v2361_v22, -inf }
 0x3b3   : > { %v3010_v49 = vmax.f32 %v3009_v8, %v2778_v26  ;;  %v3084_v21 = vmax.f32 %v3083_v56, %v2780_v25  ;;  %v1921_v58 = vadd.f32 %v1920_v1, %v4436_v39  ;;  %v2114_v59 = vadd.f32 %v2113_v30, %v4441_v27 }
 0x3b4   : > { %v1923_v48 = vadd.f32 %v1922_v12, %v4476_v61  ;;  %v2116_v2 = vadd.f32 %v2115_v31, %v4481_v11  ;;  %v1925_v4 = vadd.f32 %v1924_v28, %v4436_v39  ;;  %v2118_v38 = vadd.f32 %v2117_v53, %v4441_v27 }
 0x3b5   : > { %v2366_v5 = vmax.f32 %v1921_v58, 0.0  ;;  %v2368_v29 = vmax.f32 %v2114_v59, 0.0  ;;  %v1927_v57 = vadd.f32 %v1926_v51, %v4476_v61  ;;  %v2120_v47 = vadd.f32 %v2119_v33, %v4481_v11 }
 0x3b6   : > { %v2367_v35 = vmax.f32 %v1923_v48, 0.0  ;;  %v2369_v37 = vmax.f32 %v2116_v2, 0.0  ;;  %v2374_v52 = vmax.f32 %v1925_v4, 0.0  ;;  %v2376_v36 = vmax.f32 %v2118_v38, 0.0  ;;  %v5374_v38 = vld [vmem:[#allocation2_spill] sm:$0xff] (!%p3403_p7) }
 0x3b7   : > { %v2785_v62 = vsel %vm2475_vm2, %v2366_v5, -inf  ;;  %v2787_v1 = vsel %vm2475_vm2, %v2368_v29, -inf  ;;  %v2375_v30 = vmax.f32 %v1927_v57, 0.0  ;;  %v2377_v39 = vmax.f32 %v2120_v47, 0.0 }
 0x3b8   : > { %v2974_v24 = vmax.f32 %v2973_v32, %v2785_v62  ;;  %v3048_v27 = vmax.f32 %v3047_v17, %v2787_v1  ;;  %v2786_v63 = vsel %vm2475_vm2, %v2367_v35, -inf  ;;  %v2788_v61 = vsel %vm2475_vm2, %v2369_v37, -inf }
 0x3b9   : > { %v3011_v11 = vmax.f32 %v3010_v49, %v2786_v63  ;;  %v3085_v3 = vmax.f32 %v3084_v21, %v2788_v61  ;;  %v2793_v12 = vsel %vm2476_vm3, %v2374_v52, -inf  ;;  %v2795_v31 = vsel %vm2476_vm3, %v2376_v36, -inf }
 0x3ba   : > { %v2975_v6 = vmax.f32 %v2974_v24, %v2793_v12  ;;  %v3049_v45 = vmax.f32 %v3048_v27, %v2795_v31  ;;  %v2794_v10 = vsel %vm2476_vm3, %v2375_v30, -inf  ;;  %v2796_v23 = vsel %vm2476_vm3, %v2377_v39, -inf }
 0x3bb   : > { %v3012_v28 = vmax.f32 %v3011_v11, %v2794_v10  ;;  %v3086_v53 = vmax.f32 %v3085_v3, %v2796_v23  ;;  %v3608_v49 = vmov (!%p3403_p7), 1966171168   ;;  %v3105_v58 = vcombine.low (!%p3403_p7), %v4831_v44, %v4837_v19 }
 0x3bc   : > { %v2976_v14 = vrot.slane %v2975_v6, 4  ;;  %v3050_v42 = vrot.slane %v3049_v45, 4  ;;  %v3110_v21 = vunpack.c.l.s4 (!%p3403_p7), %v3608_v49  ;;  %v3106_v59 = vcombine.low (!%p3403_p7), %v4833_v50, %v4839_v7 }
 0x3bd   : > { %v3013_v20 = vrot.slane %v3012_v28, 4  ;;  %v3087_v18 = vrot.slane %v3086_v53, 4 }
 0x3be   : > { %v2977_v51 = vmax.f32 %v2975_v6, %v2976_v14  ;;  %v3051_v33 = vmax.f32 %v3049_v45, %v3050_v42  ;;  %v3111_v4 = vunpack.c.0.s8 (!%p3403_p7), %v3110_v21 }
 0x3bf   : > { %v3014_v0 = vmax.f32 %v3012_v28, %v3013_v20  ;;  %v3088_v40 = vmax.f32 %v3086_v53, %v3087_v18 }
 0x3c0   : > { %v2978_v16 = vrot.slane %v2977_v51, 2  ;;  %v3052_v54 = vrot.slane %v3051_v33, 2  ;;  %v3114_v5 = vsub.s32 (!%p3403_p7), %v3111_v4, %v5374_v38 }
 0x3c1   : > { %v3015_v22 = vrot.slane %v3014_v0, 2  ;;  %v3089_v60 = vrot.slane %v3088_v40, 2  ;;  %3096 = sbr.rel (%p3403_p7) target bundleno = 980 (0x3d4), region = 52 }
 0x3c2   : > { %v2979_v13 = vmax.f32 %v2977_v51, %v2978_v16  ;;  %v3053_v15 = vmax.f32 %v3051_v33, %v3052_v54  ;;  %v3115_v29 = vrot.slane (!%p3403_p7), %v3105_v58, %v3114_v5  ;;  %v3122_v57 = vrot.slane (!%p3403_p7), %v3106_v59, %v3114_v5 }
 0x3c3   : > { %v3016_v46 = vmax.f32 %v3014_v0, %v3015_v22  ;;  %v3090_v8 = vmax.f32 %v3088_v40, %v3089_v60 }
 0x3c4   : > { %v2980_v56 = vrot.slane %v2979_v13, 1  ;;  %v3054_v9 = vrot.slane %v3053_v15, 1  ;;  %v3137_v37 = vcombine.low (!%p3403_p7), %v3115_v29, %v3122_v57 }
 0x3c5   : > { %v3017_v34 = vrot.slane %v3016_v46, 1  ;;  %v3091_v43 = vrot.slane %v3090_v8, 1 }
 0x3c6   : > { %v2981_v32 = vmax.f32 %v2979_v13, %v2980_v56  ;;  %v3055_v17 = vmax.f32 %v3053_v15, %v3054_v9  ;;  %v3145_v36 = vrot.slane (!%p3403_p7), %v3137_v37, %v3114_v5 }
 0x3c7   : > { %v3018_v26 = vmax.f32 %v3016_v46, %v3017_v34  ;;  %v3092_v25 = vmax.f32 %v3090_v8, %v3091_v43 }
 0x3c9   : > { %v3107_v48 = vcombine.low %v2981_v32, %v3018_v26  ;;  %v3108_v2 = vcombine.low %v3055_v17, %v3092_v25 }
 0x3cb   : > { %v3129_v47 = vrot.slane %v3107_v48, %v3114_v5  ;;  %v3136_v35 = vrot.slane %v3108_v2, %v3114_v5 }
 0x3cd   : > { %v3138_v52 = vcombine.low %v3129_v47, %v3136_v35 }
 0x3cf   : > { %v3152_v55 = vrot.slane %v3138_v52, %v3114_v5 }
 0x3d1   : > { %v3153_v62 = vcombine.low %v3145_v36, %v3152_v55 }
 0x3d3   : > { %3155 = vst [vmem:[%s3695_s20] sm:$0xff] %v3153_v62 }
 0x3d4 PF: > { %p3404_p8 = scmp.le.s32.totalorder %s3588_s24, 0 }
 0x3d5   : > { %v3609_v1 = vmov (!%p3404_p8), 1966171168   ;;  %v3169_v39 = vcombine.low (!%p3404_p8), %v4831_v44, %v4837_v19  ;;  %v3170_v24 = vcombine.low (!%p3404_p8), %v4833_v50, %v4839_v7  ;;  %v3171_v27 = vcombine.low (!%p3404_p8), %v2981_v32, %v3018_v26  ;;  %v5375_v11 = vld [vmem:[#allocation2_spill] sm:$0xff] (!%p3404_p8) }
 0x3d6   : > { %3159 = sbr.rel (%p3404_p8) target bundleno = 999 (0x3e7), region = 56  ;;  %v3174_v30 = vunpack.c.l.s4 (!%p3404_p8), %v3609_v1  ;;  %v3172_v63 = vcombine.low (!%p3404_p8), %v3055_v17, %v3092_v25 }
 0x3d8   : > { %v3175_v61 = vunpack.c.0.s8 (!%p3404_p8), %v3174_v30 }
 0x3da   : > { %v3178_v3 = vsub.s32 (!%p3404_p8), %v3175_v61, %v5375_v11  ;;  %v3160_v53 = vld [vmem:[%s3695_s20] sm:$0xff] (!%p3404_p8) }
 0x3dc   : > { %v3179_v41 = vrot.slane (!%p3404_p8), %v3169_v39, %v3178_v3  ;;  %v3186_v12 = vrot.slane (!%p3404_p8), %v3170_v24, %v3178_v3  ;;  %v3193_v31 = vrot.slane (!%p3404_p8), %v3171_v27, %v3178_v3  ;;  %v3200_v6 = vrot.slane (!%p3404_p8), %v3172_v63, %v3178_v3 }
 0x3de   : > { %v3201_v45 = vcombine.low %v3179_v41, %v3186_v12  ;;  %v3202_v10 = vcombine.low %v3193_v31, %v3200_v6 }
 0x3e0   : > { %v3209_v23 = vrot.slane %v3201_v45, %v3178_v3  ;;  %v3216_v28 = vrot.slane %v3202_v10, %v3178_v3 }
 0x3e2   : > { %v3217_v14 = vcombine.low %v3209_v23, %v3216_v28 }
 0x3e4   : > { %v3219_v44 = vmax.f32 %v3160_v53, %v3217_v14 }
 0x3e6   : > { %3220 = vst [vmem:[%s3695_s20] sm:$0xff] %v3219_v44 }
 0x3e7 PF: > { %s17_s28 = sadd.s32 1, %s3604_s28   ;;  %s5376_s24 = smov %s3596_s26 }
 0x3e8   : > { %p14_p9 = scmp.ge.s32.totalorder %s17_s28, 10   ;;  %s5377_s25 = smov %s3600_s27 }
 0x3e9   : > { %s5378_s26 = smov %s5381_s29  ;;  %s5379_s27 = smov %s5385_s30 }
 0x3ea   :  { %16 = sbr.rel (!%p14_p9) target bundleno = 3 (0x3), region = 86 }

</bundles_post_ra>
